<compile_context>
chip_gen: v5e
topology: v5e:2x2
jax: 0.10.0
libtpu: 0.0.40
codegen_flags: <defaults>
</compile_context>

<pallas_src>
import jax
import jax.numpy as jnp
from jax.experimental import pallas as pl
from jax.experimental.pallas import tpu as pltpu

D = 512            # hidden size of ReidEncoder
_TM_CAP_MULTI = 512   # per-step row cap when sharding across 2 TCs (v7x)
_TM_CAP_SINGLE = 1024  # per-step row cap on single-TC chips (v5e/v6e)


def _round_up(n: int, m: int) -> int:
    return ((n + m - 1) // m) * m


def _cdiv(a: int, b: int) -> int:
    return -(-a // b)


def _tensorcores_per_chip() -> int:
    """Best-effort TC count; default to 1 (always correct, just less sharding)."""
    try:
        kind = jax.devices()[0].device_kind.lower()
    except Exception:
        return 1
    return 2 if "v7" in kind else 1


def _choose_row_tile(n: int, num_tc: int) -> int:
    """Pick the per-step row tile (multiple of 8) per the generation policy."""
    n8 = _round_up(max(n, 1), 8)
    if num_tc >= 2 and n >= 16:
        # >= 2 grid steps so dimension_semantics=("parallel",) can use both TCs.
        return min(_round_up(_cdiv(n, 2), 8), _TM_CAP_MULTI)
    # Single TensorCore: one big step when it fits (no per-step overhead),
    # otherwise large 1024-row tiles (near HBM roofline, multiple of 128).
    return min(n8, _TM_CAP_SINGLE)


def reid_encoder_kernel(x_ref, w1_ref, b1_ref, w2_ref, b2_ref, o_ref):
    # x_ref: (tm, D) x-dtype; w*_ref: (D, D) bf16 pre-transposed (in, out);
    # b*_ref: (1, D) f32; o_ref: (tm, D) x-dtype.
    x = x_ref[...].astype(jnp.bfloat16)          # no-op if x is already bf16
    h = jnp.dot(x, w1_ref[...], preferred_element_type=jnp.float32) + b1_ref[...]
    h = jnp.maximum(h, 0.0)
    y = jnp.dot(h.astype(jnp.bfloat16), w2_ref[...],
                preferred_element_type=jnp.float32) + b2_ref[...]
    o_ref[...] = jnp.maximum(y, 0.0).astype(o_ref.dtype)


def prepare_reid_params(w1, b1, w2, b2, compute_dtype=jnp.bfloat16):
    """One-time parameter prep (hoisted out of the per-call path).

    w1, w2: (out=512, in=512) PyTorch layout; b1, b2: (512,).
    Returns (w1_t, b1_2d, w2_t, b2_2d): weights transposed to (in, out) and
    cast to bf16 for the MXU, biases reshaped to (1, D) f32.
    """
    w1_t = jnp.asarray(w1).T.astype(compute_dtype)
    w2_t = jnp.asarray(w2).T.astype(compute_dtype)
    b1_2d = jnp.asarray(b1).reshape(1, D).astype(jnp.float32)
    b2_2d = jnp.asarray(b2).reshape(1, D).astype(jnp.float32)
    return w1_t, b1_2d, w2_t, b2_2d


def reid_encoder(x, w1_t, b1_2d, w2_t, b2_2d, *, tm=None):
    """x: (N, 512) f32 or bf16. Params must come from prepare_reid_params().

    Output dtype matches x.dtype (f32 input preserves the PyTorch module's
    semantics; bf16 input halves activation HBM traffic on the mem-bound path).
    """
    N, Din = x.shape
    assert Din == D, f"expected feature dim {D}, got {Din}"
    assert N >= 1, "empty batch not supported"

    tm_eff = tm if tm is not None else _choose_row_tile(N, _tensorcores_per_chip())
    tm_eff = _round_up(min(tm_eff, _round_up(N, 8)), 8)
    grid = (pl.cdiv(N, tm_eff),)   # ragged last block handled by Pallas

    resident = pl.BlockSpec(memory_space=pltpu.MemorySpace.VMEM)  # single-buffered

    out = pl.pallas_call(
        reid_encoder_kernel,
        out_shape=jax.ShapeDtypeStruct((N, D), x.dtype),
        grid_spec=pltpu.PrefetchScalarGridSpec(
            num_scalar_prefetch=0,
            grid=grid,
            in_specs=[
                pl.BlockSpec((tm_eff, D), lambda i: (i, 0)),  # x row tile (pipelined)
                resident,                                     # w1^T (bf16, whole array)
                resident,                                     # b1
                resident,                                     # w2^T (bf16, whole array)
                resident,                                     # b2
            ],
            out_specs=pl.BlockSpec((tm_eff, D), lambda i: (i, 0)),
        ),
        compiler_params=pltpu.CompilerParams(
            dimension_semantics=("parallel",),   # shard row tiles across TCs (v7x)
            vmem_limit_bytes=32 * 1024 * 1024,   # safe ceiling on v5e/v6e/v7x
        ),
    )(x, w1_t, b1_2d, w2_t, b2_2d)

    return out


if __name__ == "__main__":
    key = jax.random.PRNGKey(0)

    # Ragged batch (not a multiple of 8 or of the tile) to exercise the
    # partial-last-block path and (on v7x) a 2-step parallel grid.
    N = 300
    kx, kw1, kw2 = jax.random.split(key, 3)
    x = jax.random.normal(kx, (N, D), dtype=jnp.float32)

    # ---- Module-spec parameters: eye_ weights, zero biases (ReidEncoder._init_param)
    w1 = jnp.eye(D, dtype=jnp.float32)
    b1 = jnp.zeros((D,), dtype=jnp.float32)
    w2 = jnp.eye(D, dtype=jnp.float32)
    b2 = jnp.zeros((D,), dtype=jnp.float32)

    params = prepare_reid_params(w1, b1, w2, b2)   # hoisted, one-time prep
    out = jax.block_until_ready(reid_encoder(x, *params))

    # Pure-f32 reference: relu(relu(x @ W1^T + b1) @ W2^T + b2).
    ref = jnp.maximum(jnp.maximum(x @ w1.T + b1, 0.0) @ w2.T + b2, 0.0)
    assert out.shape == (N, D) and out.dtype == x.dtype
    # bf16 rounding on the MXU path -> loosened tolerance.
    assert jnp.allclose(out, ref, atol=2e-2, rtol=2e-2), "mismatch vs f32 reference"

    # ---- Generality check with random (non-identity) weights.
    w1r = jax.random.normal(kw1, (D, D), dtype=jnp.float32) / jnp.sqrt(D)
    w2r = jax.random.normal(kw2, (D, D), dtype=jnp.float32) / jnp.sqrt(D)
    b1r = jnp.full((D,), 0.01, dtype=jnp.float32)
    b2r = jnp.full((D,), -0.01, dtype=jnp.float32)
    out_r = jax.block_until_ready(
        reid_encoder(x, *prepare_reid_params(w1r, b1r, w2r, b2r)))

    # bf16-emulated reference (same roundings as the kernel, f32 accumulation).
    def _bf(a):
        return a.astype(jnp.bfloat16).astype(jnp.float32)
    h_ref = jnp.maximum(_bf(x) @ _bf(w1r).T + b1r, 0.0)
    ref_r = jnp.maximum(_bf(h_ref) @ _bf(w2r).T + b2r, 0.0)
    assert jnp.allclose(out_r, ref_r, atol=2e-3, rtol=2e-3), "mismatch (random weights)"

    # ---- Optional low-traffic path: bf16 activations in / bf16 out (opt-in).
    out_bf16 = jax.block_until_ready(reid_encoder(x.astype(jnp.bfloat16), *params))
    assert out_bf16.dtype == jnp.bfloat16 and out_bf16.shape == (N, D)
    assert jnp.allclose(out_bf16.astype(jnp.float32), ref, atol=6e-2, rtol=6e-2)

    print("KERNEL_OK")
</pallas_src>

<mosaic_0001>
module attributes {stable_mosaic.version = 11 : i64} {
  func.func @reid_encoder_kernel(%arg0: i32, %arg1: memref<304x512xf32, #tpu.memory_space<vmem>>, %arg2: memref<512x512xbf16, #tpu.memory_space<vmem>>, %arg3: memref<1x512xf32, #tpu.memory_space<vmem>>, %arg4: memref<512x512xbf16, #tpu.memory_space<vmem>>, %arg5: memref<1x512xf32, #tpu.memory_space<vmem>>, %arg6: memref<304x512xf32, #tpu.memory_space<vmem>>) attributes {dimension_semantics = [#tpu.dimension_semantics<parallel>], iteration_bounds = array<i64: 1>, scalar_prefetch = 0 : i64, scratch_operands = 0 : i64, tpu.core_type = #tpu.core_type<tc>, window_params = [{transform_indices = @transform_0, window_bounds = array<i64: 304, 512>}, {pipeline_mode = #tpu.pipeline_mode<synchronous>, transform_indices = @transform_1, window_bounds = array<i64: 512, 512>}, {pipeline_mode = #tpu.pipeline_mode<synchronous>, transform_indices = @transform_2, window_bounds = array<i64: 1, 512>}, {pipeline_mode = #tpu.pipeline_mode<synchronous>, transform_indices = @transform_3, window_bounds = array<i64: 512, 512>}, {pipeline_mode = #tpu.pipeline_mode<synchronous>, transform_indices = @transform_4, window_bounds = array<i64: 1, 512>}, {transform_indices = @transform_5, window_bounds = array<i64: 304, 512>}]} {
    %c0 = arith.constant 0 : index
    %c0_0 = arith.constant 0 : index
    %0 = vector.load %arg1[%c0, %c0_0] : memref<304x512xf32, #tpu.memory_space<vmem>>, vector<304x512xf32>
    %1 = arith.truncf %0 : vector<304x512xf32> to vector<304x512xbf16>
    %c0_1 = arith.constant 0 : index
    %c0_2 = arith.constant 0 : index
    %2 = vector.load %arg2[%c0_1, %c0_2] : memref<512x512xbf16, #tpu.memory_space<vmem>>, vector<512x512xbf16>
    %cst = arith.constant dense<0.000000e+00> : vector<304x512xf32>
    %3 = tpu.matmul %1, %2, %cst {dimension_numbers = #tpu.dot_dimension_numbers<[1], [0], [0], [1], [0, 0, 1, 1], [], []>} : vector<304x512xbf16>, vector<512x512xbf16>, vector<304x512xf32> -> vector<304x512xf32>
    %c0_3 = arith.constant 0 : index
    %c0_4 = arith.constant 0 : index
    %4 = vector.load %arg3[%c0_3, %c0_4] : memref<1x512xf32, #tpu.memory_space<vmem>>, vector<1x512xf32>
    %5 = vector.broadcast %4 : vector<1x512xf32> to vector<304x512xf32>
    %6 = arith.addf %3, %5 : vector<304x512xf32>
    %cst_5 = arith.constant 0.000000e+00 : f32
    %7 = vector.broadcast %cst_5 : f32 to vector<304x512xf32>
    %8 = arith.maximumf %6, %7 : vector<304x512xf32>
    %9 = arith.truncf %8 : vector<304x512xf32> to vector<304x512xbf16>
    %c0_6 = arith.constant 0 : index
    %c0_7 = arith.constant 0 : index
    %10 = vector.load %arg4[%c0_6, %c0_7] : memref<512x512xbf16, #tpu.memory_space<vmem>>, vector<512x512xbf16>
    %cst_8 = arith.constant dense<0.000000e+00> : vector<304x512xf32>
    %11 = tpu.matmul %9, %10, %cst_8 {dimension_numbers = #tpu.dot_dimension_numbers<[1], [0], [0], [1], [0, 0, 1, 1], [], []>} : vector<304x512xbf16>, vector<512x512xbf16>, vector<304x512xf32> -> vector<304x512xf32>
    %c0_9 = arith.constant 0 : index
    %c0_10 = arith.constant 0 : index
    %12 = vector.load %arg5[%c0_9, %c0_10] : memref<1x512xf32, #tpu.memory_space<vmem>>, vector<1x512xf32>
    %13 = vector.broadcast %12 : vector<1x512xf32> to vector<304x512xf32>
    %14 = arith.addf %11, %13 : vector<304x512xf32>
    %cst_11 = arith.constant 0.000000e+00 : f32
    %15 = vector.broadcast %cst_11 : f32 to vector<304x512xf32>
    %16 = arith.maximumf %14, %15 : vector<304x512xf32>
    %c0_12 = arith.constant 0 : index
    %c0_13 = arith.constant 0 : index
    %17 = vector.load %arg6[%c0_12, %c0_13] : memref<304x512xf32, #tpu.memory_space<vmem>>, vector<304x512xf32>
    tpu.vector_store %arg6[%c0_12, %c0_13], %16 {strides = array<i32>} : memref<304x512xf32, #tpu.memory_space<vmem>>, vector<304x512xf32>,
    return
  }
  func.func @transform_0(%arg0: i32) -> (i32, i32) {
    %c0_i32 = arith.constant 0 : i32
    %c0_i32_0 = arith.constant 0 : i32
    return %arg0, %c0_i32 : i32, i32
  }
  func.func @transform_1(%arg0: i32) -> (i32, i32) {
    %c0_i32 = arith.constant 0 : i32
    %c0_i32_0 = arith.constant 0 : i32
    %c0_i32_1 = arith.constant 0 : i32
    return %c0_i32, %c0_i32_0 : i32, i32
  }
  func.func @transform_2(%arg0: i32) -> (i32, i32) {
    %c0_i32 = arith.constant 0 : i32
    %c0_i32_0 = arith.constant 0 : i32
    %c0_i32_1 = arith.constant 0 : i32
    return %c0_i32, %c0_i32_0 : i32, i32
  }
  func.func @transform_3(%arg0: i32) -> (i32, i32) {
    %c0_i32 = arith.constant 0 : i32
    %c0_i32_0 = arith.constant 0 : i32
    %c0_i32_1 = arith.constant 0 : i32
    return %c0_i32, %c0_i32_0 : i32, i32
  }
  func.func @transform_4(%arg0: i32) -> (i32, i32) {
    %c0_i32 = arith.constant 0 : i32
    %c0_i32_0 = arith.constant 0 : i32
    %c0_i32_1 = arith.constant 0 : i32
    return %c0_i32, %c0_i32_0 : i32, i32
  }
  func.func @transform_5(%arg0: i32) -> (i32, i32) {
    %c0_i32 = arith.constant 0 : i32
    %c0_i32_0 = arith.constant 0 : i32
    return %arg0, %c0_i32 : i32, i32
  }
}

</mosaic_0001>

<bundles_post_ra>
// kernel: tpu_custom_call.1
= control target key start
LH: loop header
LB: loop body
LE: loop exit
PB: predicated region body
PF: predicated region fallthrough
CT: control target
= control target key end

     0   :  { %10 = vsyncpa [#allocation3], 0  ;;  %s8504_s0 = inlined_call_operand.hbm [shape: f32[300,512], index: 0, kind: input, shape index: {}]   ;;  %s8505_s1 = inlined_call_operand.hbm [shape: bf16[512,512], index: 1, kind: input, shape index: {}]   ;;  %s8506_s2 = inlined_call_operand.hbm [shape: f32[1,512], index: 2, kind: input, shape index: {}]   ;;  %s8507_s3 = inlined_call_operand.hbm [shape: bf16[512,512], index: 3, kind: input, shape index: {}]   ;;  %s8508_s4 = inlined_call_operand.hbm [shape: f32[1,512], index: 4, kind: input, shape index: {}]   ;;  %s8509_s5 = inlined_call_operand.hbm [shape: f32[300,512], index: 5, kind: output, shape index: {}]  }
   0x1   :  { %11 = vsyncpa [#allocation6], 0 }
   0x2   :  { %12 = vsyncpa [#allocation9], 0  ;;  %s31_s20 = sshll.u32 %s8505_s1, 4  ;;  %s32_s20 = int_to_ptr.hbm [resolvable:$true] %s31_s20 }
   0x3   :  { %13 = vsyncpa [#allocation4], 0  ;;  %s7208_s21 = smov [#allocation5]   ;;  %s55_s25 = sshll.u32 %s8507_s3, 4  ;;  %s56_s25 = int_to_ptr.hbm [resolvable:$true] %s55_s25 }
   0x4   :  { %s33_s22 = sshll.u32 %s7208_s21, 4  ;;  %s7209_s26 = smov 256   ;;  %s34_s22 = int_to_ptr.vmem [resolvable:$true] %s33_s22 }
   0x5   :  { %s7210_s27 = smov 16   ;;  %s7211_s28 = smov [#allocation8]  }
   0x6   :  { %39 = dma.hbm_to_vmem [thread:$0]  %s32_s20, 16384, %s34_s22, [#allocation6], %s7209_s26, %s7209_s26, %s7210_s27  }
   0x7   :  { %s57_s29 = sshll.u32 %s7211_s28, 4  ;;  %s18_s7 = sshll.u32 %s8504_s0, 4  ;;  %s58_s29 = int_to_ptr.vmem [resolvable:$true] %s57_s29  ;;  %s19_s7 = int_to_ptr.hbm [resolvable:$true] %s18_s7 }
   0x8   :  { %63 = dma.hbm_to_vmem [thread:$0]  %s56_s25, 16384, %s58_s29, [#allocation9], %s7209_s26, %s7209_s26, %s7210_s27  }
   0x9   :  { %s7212_s1 = smov [#allocation2]   ;;  %s45_s3 = sshll.u32 %s8506_s2, 4  ;;  %s46_s3 = int_to_ptr.hbm [resolvable:$true] %s45_s3 }
   0xa   :  { %s20_s8 = sshll.u32 %s7212_s1, 4  ;;  %s7213_s11 = smov 512   ;;  %s21_s8 = int_to_ptr.vmem [resolvable:$true] %s20_s8 }
   0xb   :  { %s7214_s12 = smov 32   ;;  %s7215_s13 = smov [#allocation7]  }
   0xc   :  { %26 = dma.hbm_to_vmem [thread:$0]  %s19_s7, 19456, %s21_s8, [#allocation3], %s7213_s11, %s7213_s11, %s7214_s12  }
   0xd   :  { %s47_s14 = sshll.u32 %s7215_s13, 4  ;;  %s69_s16 = sshll.u32 %s8508_s4, 4  ;;  %s48_s14 = int_to_ptr.vmem [resolvable:$true] %s47_s14  ;;  %s70_s16 = int_to_ptr.hbm [resolvable:$true] %s69_s16 }
   0xe   :  { %50 = dma.hbm_to_vmem [thread:$0]  %s46_s3, 64, %s48_s14, [#allocation6]  }
   0xf   :  { %s7216_s17 = smov [#allocation10]  }
  0x10   :  { %s71_s18 = sshll.u32 %s7216_s17, 4  ;;  %s72_s18 = int_to_ptr.vmem [resolvable:$true] %s71_s18 }
  0x11   :  { %74 = dma.hbm_to_vmem [thread:$0]  %s70_s16, 64, %s72_s18, [#allocation9]  }
  0x12   :  { %7200 = dma.done.wait [#allocation3], 19456  }
  0x13   :  { %7201 = vsyncadd [#allocation3], 4294947840 }
  0x14   :  { %7202 = dma.done.wait [#allocation6], 16448  }
  0x15   :  { %7203 = vsyncadd [#allocation6], 4294950848 }
  0x16   :  { %7204 = dma.done.wait [#allocation9], 16448  }
  0x17   :  { %7205 = vsyncadd [#allocation9], 4294950848  ;;  %v5874_v0 = vld [vmem:[#allocation5 + $0xe0] sm:$0xf]  ;;  %v6814_v1 = vld [vmem:[#allocation5 + $0xec] sm:$0xf0] }
  0x18   :  { %v6002_v2 = vld [vmem:[#allocation5 + $0x1e0] sm:$0xf]  ;;  %v5875_v3 = vor.u32 %v6814_v1, %v5874_v0  ;;  %v6846_v4 = vld [vmem:[#allocation5 + $0x1ec] sm:$0xf0]  ;;  %s7217_s2 = smov [#allocation11]   ;;  %s5745_s21 = sshll.u32 %s8509_s5, 4  ;;  %s5746_s21 = int_to_ptr.hbm [resolvable:$true] %s5745_s21 }
  0x19   :  { %v6130_v5 = vld [vmem:[#allocation5 + $0x2e0] sm:$0xf]  ;;  %v6878_v6 = vld [vmem:[#allocation5 + $0x2ec] sm:$0xf0]  ;;  %v6003_v7 = vor.u32 %v6846_v4, %v6002_v2  ;;  %s5743_s4 = sshll.u32 %s7217_s2, 4  ;;  %s5744_s4 = int_to_ptr.vmem [resolvable:$true] %s5743_s4 }
  0x1a   :  { %v6131_v8 = vor.u32 %v6878_v6, %v6130_v5  ;;  %v6258_v9 = vld [vmem:[#allocation5 + $0x3e0] sm:$0xf]  ;;  %v6910_v10 = vld [vmem:[#allocation5 + $0x3ec] sm:$0xf0]  ;;  %1101 = vmatpush.bf16.msra.mxu0 %v5875_v3 }
  0x1b   :  { %v5858_v11 = vld [vmem:[#allocation5 + $0xc0] sm:$0xf]  ;;  %v6259_v12 = vor.u32 %v6910_v10, %v6258_v9  ;;  %v6810_v13 = vld [vmem:[#allocation5 + $0xcc] sm:$0xf0]  ;;  %1205 = vmatpush.bf16.msra.mxu1 %v6003_v7 }
  0x1c   :  { %v5986_v14 = vld [vmem:[#allocation5 + $0x1c0] sm:$0xf]  ;;  %v6842_v15 = vld [vmem:[#allocation5 + $0x1cc] sm:$0xf0]  ;;  %1309 = vmatpush.bf16.msra.mxu2 %v6131_v8  ;;  %v5859_v16 = vor.u32 %v6810_v13, %v5858_v11 }
  0x1d   :  { %v5987_v17 = vor.u32 %v6842_v15, %v5986_v14  ;;  %v6114_v18 = vld [vmem:[#allocation5 + $0x2c0] sm:$0xf]  ;;  %v6874_v19 = vld [vmem:[#allocation5 + $0x2cc] sm:$0xf0]  ;;  %1413 = vmatpush.bf16.msra.mxu3 %v6259_v12 }
  0x1e   :  { %v6242_v20 = vld [vmem:[#allocation5 + $0x3c0] sm:$0xf]  ;;  %v6115_v21 = vor.u32 %v6874_v19, %v6114_v18  ;;  %v6906_v22 = vld [vmem:[#allocation5 + $0x3cc] sm:$0xf0]  ;;  %1102 = vmatpush.bf16.msra.mxu0 %v5859_v16 }
  0x1f   :  { %v5842_v23 = vld [vmem:[#allocation5 + $0xa0] sm:$0xf]  ;;  %v6806_v24 = vld [vmem:[#allocation5 + $0xac] sm:$0xf0]  ;;  %v6243_v25 = vor.u32 %v6906_v22, %v6242_v20  ;;  %1206 = vmatpush.bf16.msra.mxu1 %v5987_v17 }
  0x20   :  { %v5970_v26 = vld [vmem:[#allocation5 + $0x1a0] sm:$0xf]  ;;  %v6838_v27 = vld [vmem:[#allocation5 + $0x1ac] sm:$0xf0]  ;;  %v5843_v29 = vor.u32 %v6806_v24, %v5842_v23  ;;  %1310 = vmatpush.bf16.msra.mxu2 %v6115_v21 }
  0x21   :  { %v6098_v28 = vld [vmem:[#allocation5 + $0x2a0] sm:$0xf]  ;;  %v6870_v30 = vld [vmem:[#allocation5 + $0x2ac] sm:$0xf0]  ;;  %v5971_v33 = vor.u32 %v6838_v27, %v5970_v26  ;;  %1414 = vmatpush.bf16.msra.mxu3 %v6243_v25 }
  0x22   :  { %v6226_v31 = vld [vmem:[#allocation5 + $0x3a0] sm:$0xf]  ;;  %v6902_v32 = vld [vmem:[#allocation5 + $0x3ac] sm:$0xf0]  ;;  %v6099_v34 = vor.u32 %v6870_v30, %v6098_v28  ;;  %1103 = vmatpush.bf16.msra.mxu0 %v5843_v29  ;;  %v96_v30 = vld [vmem:[#allocation2 + $0x8] sm:$0xff] }
  0x23   :  { %v5826_v35 = vld [vmem:[#allocation5 + $0x80] sm:$0xf]  ;;  %v6802_v36 = vld [vmem:[#allocation5 + $0x8c] sm:$0xf0]  ;;  %v6227_v38 = vor.u32 %v6902_v32, %v6226_v31  ;;  %1207 = vmatpush.bf16.msra.mxu1 %v5971_v33  ;;  %v6876_v31 = vld [vmem:[#allocation5 + $0x2e4] sm:$0xf] }
  0x24   :  { %v5954_v37 = vld [vmem:[#allocation5 + $0x180] sm:$0xf]  ;;  %v6834_v39 = vld [vmem:[#allocation5 + $0x18c] sm:$0xf0]  ;;  %v5827_v44 = vor.u32 %v6802_v36, %v5826_v35  ;;  %1311 = vmatpush.bf16.msra.mxu2 %v6099_v34  ;;  %v6132_v32 = vld [vmem:[#allocation5 + $0x2f0] sm:$0xf0] }
  0x25   :  { %v6082_v40 = vld [vmem:[#allocation5 + $0x280] sm:$0xf]  ;;  %v6866_v41 = vld [vmem:[#allocation5 + $0x28c] sm:$0xf0]  ;;  %v5955_v45 = vor.u32 %v6834_v39, %v5954_v37  ;;  %1415 = vmatpush.bf16.msra.mxu3 %v6227_v38  ;;  %v100_v34 = vld [vmem:[#allocation2 + $0x28] sm:$0xff] }
  0x26   :  { %v6210_v42 = vld [vmem:[#allocation5 + $0x380] sm:$0xf]  ;;  %v6898_v43 = vld [vmem:[#allocation5 + $0x38c] sm:$0xf0]  ;;  %v6083_v46 = vor.u32 %v6866_v41, %v6082_v40  ;;  %1104 = vmatpush.bf16.msra.mxu0 %v5827_v44  ;;  %v6908_v35 = vld [vmem:[#allocation5 + $0x3e4] sm:$0xf]  ;;  %v6135_v44 = vor.u32 %v6876_v31, %v6132_v32 }
  0x27   :  { %v5810_v47 = vld [vmem:[#allocation5 + $0x60] sm:$0xf]  ;;  %v6798_v48 = vld [vmem:[#allocation5 + $0x6c] sm:$0xf0]  ;;  %v6211_v50 = vor.u32 %v6898_v43, %v6210_v42  ;;  %1208 = vmatpush.bf16.msra.mxu1 %v5955_v45  ;;  %v6260_v36 = vld [vmem:[#allocation5 + $0x3f0] sm:$0xf0] }
  0x28   :  { %v5938_v49 = vld [vmem:[#allocation5 + $0x160] sm:$0xf]  ;;  %v6830_v51 = vld [vmem:[#allocation5 + $0x16c] sm:$0xf0]  ;;  %v5811_v56 = vor.u32 %v6798_v48, %v5810_v47  ;;  %1312 = vmatpush.bf16.msra.mxu2 %v6083_v46  ;;  %v98_v41 = vld [vmem:[#allocation2 + $0x18] sm:$0xff]  ;;  %v6263_v48 = vor.u32 %v6908_v35, %v6260_v36 }
  0x29   :  { %v6066_v52 = vld [vmem:[#allocation5 + $0x260] sm:$0xf]  ;;  %v6862_v53 = vld [vmem:[#allocation5 + $0x26c] sm:$0xf0]  ;;  %v5939_v57 = vor.u32 %v6830_v51, %v5938_v49  ;;  %1416 = vmatpush.bf16.msra.mxu3 %v6211_v50  ;;  %v102_v43 = vld [vmem:[#allocation2 + $0x38] sm:$0xff]  ;;  %v7268_v51 = vpack.c.bf16 %v100_v34, %v96_v30 }
  0x2a   :  { %v6194_v54 = vld [vmem:[#allocation5 + $0x360] sm:$0xf]  ;;  %v6894_v55 = vld [vmem:[#allocation5 + $0x36c] sm:$0xf0]  ;;  %v6067_v58 = vor.u32 %v6862_v53, %v6066_v52  ;;  %1105 = vmatpush.bf16.msra.mxu0 %v5811_v56  ;;  %v6812_v45 = vld [vmem:[#allocation5 + $0xe4] sm:$0xf]  ;;  %v7272_v53 = vpack.c.bf16 %v102_v43, %v98_v41 }
  0x2b   :  { %v5794_v59 = vld [vmem:[#allocation5 + $0x40] sm:$0xf]  ;;  %v6794_v60 = vld [vmem:[#allocation5 + $0x4c] sm:$0xf0]  ;;  %v6195_v62 = vor.u32 %v6894_v55, %v6194_v54  ;;  %1209 = vmatpush.bf16.msra.mxu1 %v5939_v57  ;;  %v5876_v46 = vld [vmem:[#allocation5 + $0xf0] sm:$0xf0] }
  0x2c   :  { %v5922_v61 = vld [vmem:[#allocation5 + $0x140] sm:$0xf]  ;;  %v6826_v63 = vld [vmem:[#allocation5 + $0x14c] sm:$0xf0]  ;;  %v5795_v4 = vor.u32 %v6794_v60, %v5794_v59  ;;  %1313 = vmatpush.bf16.msra.mxu2 %v6067_v58  ;;  %v6844_v49 = vld [vmem:[#allocation5 + $0x1e4] sm:$0xf]  ;;  %v5879_v54 = vor.u32 %v6812_v45, %v5876_v46 }
  0x2d   :  { %v6050_v0 = vld [vmem:[#allocation5 + $0x240] sm:$0xf]  ;;  %v6858_v1 = vld [vmem:[#allocation5 + $0x24c] sm:$0xf0]  ;;  %v5923_v5 = vor.u32 %v6826_v63, %v5922_v61  ;;  %1417 = vmatpush.bf16.msra.mxu3 %v6195_v62  ;;  %v6004_v50 = vld [vmem:[#allocation5 + $0x1f0] sm:$0xf0] }
  0x2e   :  { %v6178_v2 = vld [vmem:[#allocation5 + $0x340] sm:$0xf]  ;;  %v6890_v3 = vld [vmem:[#allocation5 + $0x34c] sm:$0xf0]  ;;  %v6051_v6 = vor.u32 %v6858_v1, %v6050_v0  ;;  %1106 = vmatpush.bf16.msra.mxu0 %v5795_v4  ;;  %8678 = vst [vmem:[#allocation17_spill] sm:$0xff] %v7272_v53  ;;  %v6007_v55 = vor.u32 %v6844_v49, %v6004_v50  ;;  %v122_v43 = vld [vmem:[#allocation2 + $0xd8] sm:$0xff] }
  0x2f   :  { %v5778_v7 = vld [vmem:[#allocation5 + $0x20] sm:$0xf]  ;;  %v6790_v8 = vld [vmem:[#allocation5 + $0x2c] sm:$0xf0]  ;;  %v6179_v10 = vor.u32 %v6890_v3, %v6178_v2  ;;  %1210 = vmatpush.bf16.msra.mxu1 %v5923_v5  ;;  %v6872_v56 = vld [vmem:[#allocation5 + $0x2c4] sm:$0xf] }
  0x30   :  { %v5906_v9 = vld [vmem:[#allocation5 + $0x120] sm:$0xf]  ;;  %v6822_v11 = vld [vmem:[#allocation5 + $0x12c] sm:$0xf0]  ;;  %v5779_v17 = vor.u32 %v6790_v8, %v5778_v7  ;;  %1314 = vmatpush.bf16.msra.mxu2 %v6051_v6  ;;  %v6116_v57 = vld [vmem:[#allocation5 + $0x2d0] sm:$0xf0] }
  0x31   :  { %v6034_v12 = vld [vmem:[#allocation5 + $0x220] sm:$0xf]  ;;  %v6854_v13 = vld [vmem:[#allocation5 + $0x22c] sm:$0xf0]  ;;  %v5907_v21 = vor.u32 %v6822_v11, %v5906_v9  ;;  %1418 = vmatpush.bf16.msra.mxu3 %v6179_v10  ;;  %v6808_v58 = vld [vmem:[#allocation5 + $0xc4] sm:$0xf]  ;;  %v6119_v59 = vor.u32 %v6872_v56, %v6116_v57 }
  0x32   :  { %v6162_v14 = vld [vmem:[#allocation5 + $0x320] sm:$0xf]  ;;  %v6886_v15 = vld [vmem:[#allocation5 + $0x32c] sm:$0xf0]  ;;  %v6035_v22 = vor.u32 %v6854_v13, %v6034_v12  ;;  %1107 = vmatpush.bf16.msra.mxu0 %v5779_v17  ;;  %v5860_v60 = vld [vmem:[#allocation5 + $0xd0] sm:$0xf0] }
  0x33   :  { %v5762_v16 = vld [vmem:[#allocation5] sm:$0xf]  ;;  %v6786_v18 = vld [vmem:[#allocation5 + $0xc] sm:$0xf0]  ;;  %v6163_v26 = vor.u32 %v6886_v15, %v6162_v14  ;;  %1211 = vmatpush.bf16.msra.mxu1 %v5907_v21  ;;  %v6904_v61 = vld [vmem:[#allocation5 + $0x3c4] sm:$0xf]  ;;  %v5863_v63 = vor.u32 %v6808_v58, %v5860_v60 }
  0x34   :  { %v5890_v19 = vld [vmem:[#allocation5 + $0x100] sm:$0xf]  ;;  %v6818_v20 = vld [vmem:[#allocation5 + $0x10c] sm:$0xf0]  ;;  %v5763_v33 = vor.u32 %v6786_v18, %v5762_v16  ;;  %1315 = vmatpush.bf16.msra.mxu2 %v6035_v22  ;;  %v6244_v62 = vld [vmem:[#allocation5 + $0x3d0] sm:$0xf0] }
  0x35   :  { %v6018_v23 = vld [vmem:[#allocation5 + $0x200] sm:$0xf]  ;;  %v6850_v24 = vld [vmem:[#allocation5 + $0x20c] sm:$0xf0]  ;;  %v5891_v37 = vor.u32 %v6818_v20, %v5890_v19  ;;  %1419 = vmatpush.bf16.msra.mxu3 %v6163_v26  ;;  %v6247_v0 = vor.u32 %v6904_v61, %v6244_v62  ;;  %v6840_v1 = vld [vmem:[#allocation5 + $0x1c4] sm:$0xf] }
  0x36   :  { %v6146_v25 = vld [vmem:[#allocation5 + $0x300] sm:$0xf]  ;;  %v6882_v27 = vld [vmem:[#allocation5 + $0x30c] sm:$0xf0]  ;;  %v6019_v38 = vor.u32 %v6850_v24, %v6018_v23  ;;  %1108 = vmatpush.bf16.msra.mxu0 %v5763_v33  ;;  %v5988_v2 = vld [vmem:[#allocation5 + $0x1d0] sm:$0xf0] }
  0x37   :  { %v95_v28 = vld [vmem:[#allocation2] sm:$0xff]  ;;  %v97_v39 = vld [vmem:[#allocation2 + $0x10] sm:$0xff]  ;;  %v6147_v42 = vor.u32 %v6882_v27, %v6146_v25  ;;  %1212 = vmatpush.bf16.msra.mxu1 %v5891_v37  ;;  %v5991_v3 = vor.u32 %v6840_v1, %v5988_v2  ;;  %v104_v6 = vld [vmem:[#allocation2 + $0x48] sm:$0xff] }
  0x38   :  { %v99_v29 = vld [vmem:[#allocation2 + $0x20] sm:$0xff]  ;;  %v101_v40 = vld [vmem:[#allocation2 + $0x30] sm:$0xff]  ;;  %1316 = vmatpush.bf16.msra.mxu2 %v6019_v38  ;;  %v108_v7 = vld [vmem:[#allocation2 + $0x68] sm:$0xff] }
  0x39   :  { %v7266_v47 = vpack.c.bf16 %v99_v29, %v95_v28  ;;  %v7270_v52 = vpack.c.bf16 %v101_v40, %v97_v39  ;;  %1420 = vmatpush.bf16.msra.mxu3 %v6147_v42  ;;  %v103_v4 = vld [vmem:[#allocation2 + $0x40] sm:$0xff]  ;;  %v105_v8 = vld [vmem:[#allocation2 + $0x50] sm:$0xff]  ;;  %v106_v10 = vld [vmem:[#allocation2 + $0x58] sm:$0xff]  ;;  %v7280_v13 = vpack.c.bf16 %v108_v7, %v104_v6 }
  0x3a   :  { %1213 = vmatmul.bf16.vlgmr.msra.gmra.mxu1 %v7268_v51  ;;  %1517 = vmatpush.bf16.msrb.mxu0 %v5879_v54  ;;  %v107_v5 = vld [vmem:[#allocation2 + $0x60] sm:$0xff]  ;;  %v109_v9 = vld [vmem:[#allocation2 + $0x70] sm:$0xff]  ;;  %v110_v11 = vld [vmem:[#allocation2 + $0x78] sm:$0xff] }
  0x3b   :  { %8677 = vst [vmem:[#allocation16_spill] sm:$0xff] %v7270_v52  ;;  %1109 = vmatmul.bf16.vlgmr.msra.gmra.mxu0 %v7266_v47  ;;  %1317 = vmatmul.bf16.vlgmr.msra.gmra.mxu2 %v7270_v52  ;;  %v7278_v12 = vpack.c.bf16 %v107_v5, %v103_v4  ;;  %v7282_v14 = vpack.c.bf16 %v109_v9, %v105_v8  ;;  %v111_v16 = vld [vmem:[#allocation2 + $0x80] sm:$0xff]  ;;  %v112_v18 = vld [vmem:[#allocation2 + $0x88] sm:$0xff]  ;;  %v113_v20 = vld [vmem:[#allocation2 + $0x90] sm:$0xff] }
  0x3c   :  { %1725 = vmatpush.bf16.msrb.mxu2 %v6135_v44  ;;  %1421 = vmatmul.bf16.vlgmr.msra.gmra.mxu3 %v7272_v53  ;;  %v7284_v15 = vpack.c.bf16 %v110_v11, %v106_v10  ;;  %v115_v17 = vld [vmem:[#allocation2 + $0xa0] sm:$0xff]  ;;  %v116_v19 = vld [vmem:[#allocation2 + $0xa8] sm:$0xff]  ;;  %v117_v21 = vld [vmem:[#allocation2 + $0xb0] sm:$0xff] }
  0x3d   :  { %1829 = vmatpush.bf16.msrb.mxu3 %v6263_v48  ;;  %1621 = vmatpush.bf16.msrb.mxu1 %v6007_v55  ;;  %v114_v22 = vld [vmem:[#allocation2 + $0x98] sm:$0xff]  ;;  %v7290_v24 = vpack.c.bf16 %v115_v17, %v111_v16  ;;  %v7292_v25 = vpack.c.bf16 %v116_v19, %v112_v18  ;;  %v7294_v26 = vpack.c.bf16 %v117_v21, %v113_v20  ;;  %v6868_v28 = vld [vmem:[#allocation5 + $0x2a4] sm:$0xf]  ;;  %v6100_v29 = vld [vmem:[#allocation5 + $0x2b0] sm:$0xf0] }
  0x3e   :  { %1518 = vmatpush.bf16.msrb.mxu0 %v5863_v63  ;;  %v118_v23 = vld [vmem:[#allocation2 + $0xb8] sm:$0xff]  ;;  %v6804_v30 = vld [vmem:[#allocation5 + $0xa4] sm:$0xf]  ;;  %v6103_v31 = vor.u32 %v6868_v28, %v6100_v29  ;;  %v5844_v32 = vld [vmem:[#allocation5 + $0xb0] sm:$0xf0] }
  0x3f   :  { %v7296_v27 = vpack.c.bf16 %v118_v23, %v114_v22  ;;  %v6900_v33 = vld [vmem:[#allocation5 + $0x3a4] sm:$0xf]  ;;  %v6228_v34 = vld [vmem:[#allocation5 + $0x3b0] sm:$0xf0]  ;;  %v5847_v35 = vor.u32 %v6804_v30, %v5844_v32  ;;  %v120_v39 = vld [vmem:[#allocation2 + $0xc8] sm:$0xff] }
  0x40   :  { %1726 = vmatpush.bf16.msrb.mxu2 %v6119_v59  ;;  %v6231_v36 = vor.u32 %v6900_v33, %v6228_v34  ;;  %v119_v37 = vld [vmem:[#allocation2 + $0xc0] sm:$0xff]  ;;  %v124_v40 = vld [vmem:[#allocation2 + $0xe8] sm:$0xff]  ;;  %v121_v41 = vld [vmem:[#allocation2 + $0xd0] sm:$0xff] }
  0x41   :  { %1830 = vmatpush.bf16.msrb.mxu3 %v6247_v0  ;;  %1622 = vmatpush.bf16.msrb.mxu1 %v5991_v3  ;;  %v123_v38 = vld [vmem:[#allocation2 + $0xe0] sm:$0xff]  ;;  %v125_v42 = vld [vmem:[#allocation2 + $0xf0] sm:$0xff]  ;;  %v126_v44 = vld [vmem:[#allocation2 + $0xf8] sm:$0xff]  ;;  %v7304_v46 = vpack.c.bf16 %v124_v40, %v120_v39 }
  0x42   :  { %1519 = vmatpush.bf16.msrb.mxu0 %v5847_v35  ;;  %v7302_v45 = vpack.c.bf16 %v123_v38, %v119_v37  ;;  %v7306_v48 = vpack.c.bf16 %v125_v42, %v121_v41  ;;  %v7308_v49 = vpack.c.bf16 %v126_v44, %v122_v43  ;;  %v6836_v50 = vld [vmem:[#allocation5 + $0x1a4] sm:$0xf]  ;;  %v5972_v54 = vld [vmem:[#allocation5 + $0x1b0] sm:$0xf0]  ;;  %v128_v58 = vld [vmem:[#allocation2 + $0x108] sm:$0xff] }
  0x43   :  { %v5975_v55 = vor.u32 %v6836_v50, %v5972_v54  ;;  %v127_v56 = vld [vmem:[#allocation2 + $0x100] sm:$0xff]  ;;  %v132_v59 = vld [vmem:[#allocation2 + $0x128] sm:$0xff]  ;;  %v129_v60 = vld [vmem:[#allocation2 + $0x110] sm:$0xff] }
  0x44   :  { %1727 = vmatpush.bf16.msrb.mxu2 %v6103_v31  ;;  %v131_v57 = vld [vmem:[#allocation2 + $0x120] sm:$0xff]  ;;  %v133_v61 = vld [vmem:[#allocation2 + $0x130] sm:$0xff]  ;;  %v130_v62 = vld [vmem:[#allocation2 + $0x118] sm:$0xff]  ;;  %v7316_v1 = vpack.c.bf16 %v132_v59, %v128_v58 }
  0x45   :  { %1831 = vmatpush.bf16.msrb.mxu3 %v6231_v36  ;;  %1623 = vmatpush.bf16.msrb.mxu1 %v5975_v55  ;;  %v134_v63 = vld [vmem:[#allocation2 + $0x138] sm:$0xff]  ;;  %v7314_v0 = vpack.c.bf16 %v131_v57, %v127_v56  ;;  %v7318_v2 = vpack.c.bf16 %v133_v61, %v129_v60  ;;  %v135_v4 = vld [vmem:[#allocation2 + $0x140] sm:$0xff]  ;;  %v136_v6 = vld [vmem:[#allocation2 + $0x148] sm:$0xff] }
  0x46   :  { %v7320_v3 = vpack.c.bf16 %v134_v63, %v130_v62  ;;  %v139_v5 = vld [vmem:[#allocation2 + $0x160] sm:$0xff]  ;;  %v140_v7 = vld [vmem:[#allocation2 + $0x168] sm:$0xff]  ;;  %v137_v8 = vld [vmem:[#allocation2 + $0x150] sm:$0xff] }
  0x47   :  { %v141_v9 = vld [vmem:[#allocation2 + $0x170] sm:$0xff]  ;;  %v138_v10 = vld [vmem:[#allocation2 + $0x158] sm:$0xff]  ;;  %v7326_v16 = vpack.c.bf16 %v139_v5, %v135_v4  ;;  %v7328_v17 = vpack.c.bf16 %v140_v7, %v136_v6  ;;  %v6864_v20 = vld [vmem:[#allocation5 + $0x284] sm:$0xf] }
  0x48   :  { %v142_v11 = vld [vmem:[#allocation2 + $0x178] sm:$0xff]  ;;  %v7330_v18 = vpack.c.bf16 %v141_v9, %v137_v8  ;;  %v6084_v21 = vld [vmem:[#allocation5 + $0x290] sm:$0xf0]  ;;  %v6800_v22 = vld [vmem:[#allocation5 + $0x84] sm:$0xf] }
  0x49   :  { %v7332_v19 = vpack.c.bf16 %v142_v11, %v138_v10  ;;  %v6087_v23 = vor.u32 %v6864_v20, %v6084_v21  ;;  %v5828_v28 = vld [vmem:[#allocation5 + $0x90] sm:$0xf0]  ;;  %v6896_v29 = vld [vmem:[#allocation5 + $0x384] sm:$0xf]  ;;  %v144_v38 = vld [vmem:[#allocation2 + $0x188] sm:$0xff] }
  0x4a   :  { %1218 = vmatmul.bf16.gmra.mxu1 %v7280_v13  ;;  %v6212_v30 = vld [vmem:[#allocation5 + $0x390] sm:$0xf0]  ;;  %v5831_v31 = vor.u32 %v6800_v22, %v5828_v28  ;;  %v6832_v33 = vld [vmem:[#allocation5 + $0x184] sm:$0xf]  ;;  %v148_v39 = vld [vmem:[#allocation2 + $0x1a8] sm:$0xff] }
  0x4b   :  { %1114 = vmatmul.bf16.gmra.mxu0 %v7278_v12  ;;  %1322 = vmatmul.bf16.gmra.mxu2 %v7282_v14  ;;  %v6215_v32 = vor.u32 %v6896_v29, %v6212_v30  ;;  %v5956_v34 = vld [vmem:[#allocation5 + $0x190] sm:$0xf0]  ;;  %v143_v36 = vld [vmem:[#allocation2 + $0x180] sm:$0xff]  ;;  %v146_v42 = vld [vmem:[#allocation2 + $0x198] sm:$0xff]  ;;  %v7340_v50 = vpack.c.bf16 %v148_v39, %v144_v38 }
  0x4c   :  { %1426 = vmatmul.bf16.gmra.mxu3 %v7284_v15  ;;  %1728 = vmatpush.bf16.msrb.mxu2 %v6087_v23  ;;  %v5959_v35 = vor.u32 %v6832_v33, %v5956_v34  ;;  %v147_v37 = vld [vmem:[#allocation2 + $0x1a0] sm:$0xff]  ;;  %v145_v40 = vld [vmem:[#allocation2 + $0x190] sm:$0xff]  ;;  %v150_v43 = vld [vmem:[#allocation2 + $0x1b8] sm:$0xff] }
  0x4d   :  { %1520 = vmatpush.bf16.msrb.mxu0 %v5831_v31  ;;  %1832 = vmatpush.bf16.msrb.mxu3 %v6215_v32  ;;  %v149_v41 = vld [vmem:[#allocation2 + $0x1b0] sm:$0xff]  ;;  %v7338_v44 = vpack.c.bf16 %v147_v37, %v143_v36  ;;  %v7344_v55 = vpack.c.bf16 %v150_v43, %v146_v42  ;;  %v151_v56 = vld [vmem:[#allocation2 + $0x1c0] sm:$0xff]  ;;  %v152_v58 = vld [vmem:[#allocation2 + $0x1c8] sm:$0xff] }
  0x4e   :  { %1624 = vmatpush.bf16.msrb.mxu1 %v5959_v35  ;;  %v7342_v54 = vpack.c.bf16 %v149_v41, %v145_v40  ;;  %v155_v57 = vld [vmem:[#allocation2 + $0x1e0] sm:$0xff]  ;;  %v156_v59 = vld [vmem:[#allocation2 + $0x1e8] sm:$0xff]  ;;  %v153_v60 = vld [vmem:[#allocation2 + $0x1d0] sm:$0xff] }
  0x4f   :  { %v157_v61 = vld [vmem:[#allocation2 + $0x1f0] sm:$0xff]  ;;  %v154_v62 = vld [vmem:[#allocation2 + $0x1d8] sm:$0xff]  ;;  %v7350_v4 = vpack.c.bf16 %v155_v57, %v151_v56  ;;  %v7352_v5 = vpack.c.bf16 %v156_v59, %v152_v58  ;;  %v451_v8 = vld [vmem:[#allocation7] sm:$0xf] }
  0x50   :  { %v158_v63 = vld [vmem:[#allocation2 + $0x1f8] sm:$0xff]  ;;  %v7354_v6 = vpack.c.bf16 %v157_v61, %v153_v60  ;;  %v159_v9 = vld [vmem:[#allocation2 + $0x200] sm:$0xff]  ;;  %v7362_v11 = vperm.slane %v451_v8, 0  ;;  %v160_v20 = vld [vmem:[#allocation2 + $0x208] sm:$0xff] }
  0x51   :  { %v7356_v7 = vpack.c.bf16 %v158_v63, %v154_v62  ;;  %v163_v10 = vld [vmem:[#allocation2 + $0x220] sm:$0xff]  ;;  %v164_v21 = vld [vmem:[#allocation2 + $0x228] sm:$0xff]  ;;  %v161_v22 = vld [vmem:[#allocation2 + $0x210] sm:$0xff] }
  0x52   :  { %v165_v23 = vld [vmem:[#allocation2 + $0x230] sm:$0xff]  ;;  %v6860_v28 = vld [vmem:[#allocation5 + $0x264] sm:$0xf]  ;;  %v162_v35 = vld [vmem:[#allocation2 + $0x218] sm:$0xff]  ;;  %v7364_v39 = vpack.c.bf16 %v163_v10, %v159_v9  ;;  %v7366_v41 = vpack.c.bf16 %v164_v21, %v160_v20 }
  0x53   :  { %v6068_v29 = vld [vmem:[#allocation5 + $0x270] sm:$0xf0]  ;;  %v6796_v30 = vld [vmem:[#allocation5 + $0x64] sm:$0xf]  ;;  %v166_v36 = vld [vmem:[#allocation2 + $0x238] sm:$0xff]  ;;  %v7368_v42 = vpack.c.bf16 %v165_v23, %v161_v22 }
  0x54   :  { %v6071_v31 = vor.u32 %v6860_v28, %v6068_v29  ;;  %v5812_v32 = vld [vmem:[#allocation5 + $0x70] sm:$0xf0]  ;;  %v6892_v33 = vld [vmem:[#allocation5 + $0x364] sm:$0xf]  ;;  %8679 = vst [vmem:[#allocation18_spill] sm:$0xff] %v7366_v41  ;;  %v7371_v57 = vpack.c.bf16 %v166_v36, %v162_v35  ;;  %v168_v29 = vld [vmem:[#allocation2 + $0x248] sm:$0xff] }
  0x55   :  { %v6196_v34 = vld [vmem:[#allocation5 + $0x370] sm:$0xf0]  ;;  %v5815_v37 = vor.u32 %v6796_v30, %v5812_v32  ;;  %8680 = vst [vmem:[#allocation19_spill] sm:$0xff] %v7368_v42  ;;  %v6828_v59 = vld [vmem:[#allocation5 + $0x164] sm:$0xf]  ;;  %v172_v30 = vld [vmem:[#allocation2 + $0x268] sm:$0xff] }
  0x56   :  { %v6199_v38 = vor.u32 %v6892_v33, %v6196_v34  ;;  %1729 = vmatpush.bf16.msrb.mxu2 %v6071_v31  ;;  %8681 = vst [vmem:[#allocation20_spill] sm:$0xff] %v7371_v57  ;;  %v5940_v60 = vld [vmem:[#allocation5 + $0x170] sm:$0xf0]  ;;  %v167_v23 = vld [vmem:[#allocation2 + $0x240] sm:$0xff]  ;;  %v170_v33 = vld [vmem:[#allocation2 + $0x258] sm:$0xff] }
  0x57   :  { %1521 = vmatpush.bf16.msrb.mxu0 %v5815_v37  ;;  %v5943_v62 = vor.u32 %v6828_v59, %v5940_v60  ;;  %v171_v28 = vld [vmem:[#allocation2 + $0x260] sm:$0xff]  ;;  %v169_v31 = vld [vmem:[#allocation2 + $0x250] sm:$0xff]  ;;  %v174_v34 = vld [vmem:[#allocation2 + $0x278] sm:$0xff] }
  0x58   :  { %1833 = vmatpush.bf16.msrb.mxu3 %v6199_v38  ;;  %v173_v32 = vld [vmem:[#allocation2 + $0x270] sm:$0xff]  ;;  %v7378_v36 = vpack.c.bf16 %v171_v28, %v167_v23  ;;  %v7385_v60 = vpack.c.bf16 %v174_v34, %v170_v33  ;;  %v176_v33 = vld [vmem:[#allocation2 + $0x288] sm:$0xff] }
  0x59   :  { %1625 = vmatpush.bf16.msrb.mxu1 %v5943_v62  ;;  %v180_v34 = vld [vmem:[#allocation2 + $0x2a8] sm:$0xff] }
  0x5a   :  { %1223 = vmatmul.bf16.gmra.mxu1 %v7292_v25  ;;  %8682 = vst [vmem:[#allocation21_spill] sm:$0xff] %v7378_v36 }
  0x5b   :  { %1119 = vmatmul.bf16.gmra.mxu0 %v7290_v24  ;;  %1327 = vmatmul.bf16.gmra.mxu2 %v7294_v26  ;;  %8685 = vst [vmem:[#allocation24_spill] sm:$0xff] %v7385_v60 }
  0x5c   :  { %1431 = vmatmul.bf16.gmra.mxu3 %v7296_v27 }
  0x6a   :  { %1228 = vmatmul.bf16.gmra.mxu1 %v7304_v46 }
  0x6b   :  { %1124 = vmatmul.bf16.gmra.mxu0 %v7302_v45  ;;  %1332 = vmatmul.bf16.gmra.mxu2 %v7306_v48 }
  0x6c   :  { %1436 = vmatmul.bf16.gmra.mxu3 %v7308_v49 }
  0x7a   :  { %1233 = vmatmul.bf16.gmra.mxu1 %v7316_v1 }
  0x7b   :  { %1129 = vmatmul.bf16.gmra.mxu0 %v7314_v0  ;;  %1337 = vmatmul.bf16.gmra.mxu2 %v7318_v2 }
  0x7c   :  { %1441 = vmatmul.bf16.gmra.mxu3 %v7320_v3 }
  0x8a   :  { %1238 = vmatmul.bf16.gmra.mxu1 %v7328_v17 }
  0x8b   :  { %1134 = vmatmul.bf16.gmra.mxu0 %v7326_v16  ;;  %1342 = vmatmul.bf16.gmra.mxu2 %v7330_v18 }
  0x8c   :  { %1446 = vmatmul.bf16.gmra.mxu3 %v7332_v19 }
  0x9a   :  { %1243 = vmatmul.bf16.gmra.mxu1 %v7340_v50 }
  0x9b   :  { %1139 = vmatmul.bf16.gmra.mxu0 %v7338_v44  ;;  %1347 = vmatmul.bf16.gmra.mxu2 %v7342_v54 }
  0x9c   :  { %1451 = vmatmul.bf16.gmra.mxu3 %v7344_v55 }
  0xaa   :  { %1248 = vmatmul.bf16.gmra.mxu1 %v7352_v5 }
  0xab   :  { %1144 = vmatmul.bf16.gmra.mxu0 %v7350_v4  ;;  %1352 = vmatmul.bf16.gmra.mxu2 %v7354_v6 }
  0xac   :  { %1456 = vmatmul.bf16.gmra.mxu3 %v7356_v7 }
  0xb7   :  { %v1214_v56 = vpop.f32.mrf.mxu1 }
  0xb8   :  { %v1110_v40 = vpop.f32.mrf.mxu0 }
  0xb9   :  { %v1111_v43 = vadd.f32 %v1110_v40, %v7362_v11 }
  0xba   :  { %1253 = vmatmul.bf16.gmra.mxu1 %v7366_v41 }
  0xbb   :  { %v1215_v58 = vadd.f32 %v1214_v56, %v1111_v43  ;;  %1149 = vmatmul.bf16.gmra.mxu0 %v7364_v39  ;;  %1357 = vmatmul.bf16.gmra.mxu2 %v7368_v42  ;;  %v7380_v43 = vpack.c.bf16 %v172_v30, %v168_v29  ;;  %v7382_v56 = vpack.c.bf16 %v173_v32, %v169_v31  ;;  %v175_v32 = vld [vmem:[#allocation2 + $0x280] sm:$0xff] }
  0xbc   :  { %1461 = vmatmul.bf16.gmra.mxu3 %v7371_v57 }
  0xbd   :  { %8683 = vst [vmem:[#allocation22_spill] sm:$0xff] %v7380_v43 }
  0xbe   :  { %v1318_v61 = vpop.f32.mrf.mxu2  ;;  %8684 = vst [vmem:[#allocation23_spill] sm:$0xff] %v7382_v56 }
  0xbf   :  { %v1319_v63 = vadd.f32 %v1318_v61, %v1215_v58  ;;  %v1422_v8 = vpop.f32.mrf.mxu3  ;;  %v1216_v20 = vpop.f32.mrf.mxu1 }
  0xc0   :  { %v1112_v9 = vpop.f32.mrf.mxu0 }
  0xc1   :  { %v1113_v10 = vadd.f32 %v1112_v9, %v7362_v11  ;;  %v1423_v21 = vadd.f32 %v1422_v8, %v1319_v63 }
  0xc3   :  { %v1217_v22 = vadd.f32 %v1216_v20, %v1113_v10  ;;  %v2765_v63 = vmax.f32 %v1423_v21, 0.0  ;;  %v179_v21 = vld [vmem:[#allocation2 + $0x2a0] sm:$0xff] }
  0xc6   :  { %v1320_v35 = vpop.f32.mrf.mxu2 }
  0xc7   :  { %v1321_v37 = vadd.f32 %v1320_v35, %v1217_v22  ;;  %v1424_v38 = vpop.f32.mrf.mxu3  ;;  %v1219_v59 = vpop.f32.mrf.mxu1  ;;  %v177_v35 = vld [vmem:[#allocation2 + $0x290] sm:$0xff] }
  0xc8   :  { %v1115_v40 = vpop.f32.mrf.mxu0 }
  0xc9   :  { %v1116_v58 = vadd.f32 %v1115_v40, %v7362_v11  ;;  %v1425_v61 = vadd.f32 %v1424_v38, %v1321_v37  ;;  %v181_v37 = vld [vmem:[#allocation2 + $0x2b0] sm:$0xff]  ;;  %v178_v38 = vld [vmem:[#allocation2 + $0x298] sm:$0xff] }
  0xca   :  { %1258 = vmatmul.bf16.gmra.mxu1 %v7380_v43  ;;  %v182_v40 = vld [vmem:[#allocation2 + $0x2b8] sm:$0xff] }
  0xcb   :  { %v1220_v62 = vadd.f32 %v1219_v59, %v1116_v58  ;;  %1154 = vmatmul.bf16.gmra.mxu0 %v7378_v36  ;;  %v2769_v8 = vmax.f32 %v1425_v61, 0.0  ;;  %1362 = vmatmul.bf16.gmra.mxu2 %v7382_v56  ;;  %v7394_v59 = vpack.c.bf16 %v179_v21, %v175_v32  ;;  %v6856_v32 = vld [vmem:[#allocation5 + $0x244] sm:$0xf]  ;;  %v6052_v21 = vld [vmem:[#allocation5 + $0x250] sm:$0xf0] }
  0xcc   :  { %1466 = vmatmul.bf16.gmra.mxu3 %v7385_v60 }
  0xcd   :  { %v7391_v9 = vpack.c.bf16 %v2769_v8, %v2765_v63  ;;  %8687 = vst [vmem:[#allocation26_spill] sm:$0xff] %v7394_v59  ;;  %v7396_v8 = vpack.c.bf16 %v180_v34, %v176_v33  ;;  %v6792_v33 = vld [vmem:[#allocation5 + $0x44] sm:$0xf] }
  0xce   :  { %v1323_v10 = vpop.f32.mrf.mxu2 }
  0xcf   :  { %8686 = vst [vmem:[#allocation25_spill] sm:$0xff] %v7391_v9  ;;  %v1324_v20 = vadd.f32 %v1323_v10, %v1220_v62  ;;  %v1427_v22 = vpop.f32.mrf.mxu3  ;;  %v1221_v29 = vpop.f32.mrf.mxu1  ;;  %v7398_v10 = vpack.c.bf16 %v181_v37, %v177_v35  ;;  %v6055_v35 = vor.u32 %v6856_v32, %v6052_v21  ;;  %v5796_v37 = vld [vmem:[#allocation5 + $0x50] sm:$0xf0]  ;;  %v183_v32 = vld [vmem:[#allocation2 + $0x2c0] sm:$0xff] }
  0xd0   :  { %v1117_v23 = vpop.f32.mrf.mxu0  ;;  %8688 = vst [vmem:[#allocation27_spill] sm:$0xff] %v7396_v8  ;;  %v187_v21 = vld [vmem:[#allocation2 + $0x2e0] sm:$0xff] }
  0xd1   :  { %v1118_v28 = vadd.f32 %v1117_v23, %v7362_v11  ;;  %v1428_v30 = vadd.f32 %v1427_v22, %v1324_v20  ;;  %8689 = vst [vmem:[#allocation28_spill] sm:$0xff] %v7398_v10  ;;  %v7401_v23 = vpack.c.bf16 %v182_v40, %v178_v38  ;;  %v6888_v38 = vld [vmem:[#allocation5 + $0x344] sm:$0xf]  ;;  %v6180_v40 = vld [vmem:[#allocation5 + $0x350] sm:$0xf0]  ;;  %1730 = vmatpush.bf16.msrb.mxu2 %v6055_v35 }
  0xd3   :  { %v1222_v31 = vadd.f32 %v1221_v29, %v1118_v28  ;;  %8690 = vst [vmem:[#allocation29_spill] sm:$0xff] %v7401_v23  ;;  %v2773_v9 = vmax.f32 %v1428_v30, 0.0 }
  0xd6   :  { %v1325_v58 = vpop.f32.mrf.mxu2 }
  0xd7   :  { %v1326_v61 = vadd.f32 %v1325_v58, %v1222_v31  ;;  %v1429_v62 = vpop.f32.mrf.mxu3  ;;  %v1224_v22 = vpop.f32.mrf.mxu1 }
  0xd8   :  { %v1120_v63 = vpop.f32.mrf.mxu0 }
  0xd9   :  { %v1121_v20 = vadd.f32 %v1120_v63, %v7362_v11  ;;  %v1430_v28 = vadd.f32 %v1429_v62, %v1326_v61  ;;  %v5799_v62 = vor.u32 %v6792_v33, %v5796_v37  ;;  %v6183_v63 = vor.u32 %v6888_v38, %v6180_v40  ;;  %v186_v33 = vld [vmem:[#allocation2 + $0x2d8] sm:$0xff] }
  0xda   :  { %1263 = vmatmul.bf16.gmra.mxu1 %v7396_v8  ;;  %v189_v8 = vld [vmem:[#allocation2 + $0x2f0] sm:$0xff]  ;;  %v190_v37 = vld [vmem:[#allocation2 + $0x2f8] sm:$0xff]  ;;  %v7410_v40 = vpack.c.bf16 %v187_v21, %v183_v32 }
  0xdb   :  { %v1225_v29 = vadd.f32 %v1224_v22, %v1121_v20  ;;  %1159 = vmatmul.bf16.gmra.mxu0 %v7394_v59  ;;  %v2777_v60 = vmax.f32 %v1430_v28, 0.0  ;;  %1367 = vmatmul.bf16.gmra.mxu2 %v7398_v10  ;;  %v6824_v20 = vld [vmem:[#allocation5 + $0x144] sm:$0xf]  ;;  %v5924_v22 = vld [vmem:[#allocation5 + $0x150] sm:$0xf0]  ;;  %v184_v10 = vld [vmem:[#allocation2 + $0x2c8] sm:$0xff] }
  0xdc   :  { %1471 = vmatmul.bf16.gmra.mxu3 %v7401_v23  ;;  %1522 = vmatpush.bf16.msrb.mxu0 %v5799_v62  ;;  %8692 = vst [vmem:[#allocation31_spill] sm:$0xff] %v7410_v40  ;;  %v7417_v62 = vpack.c.bf16 %v190_v37, %v186_v33  ;;  %v191_v37 = vld [vmem:[#allocation2 + $0x300] sm:$0xff] }
  0xdd   :  { %v7407_v31 = vpack.c.bf16 %v2777_v60, %v2773_v9  ;;  %v5927_v60 = vor.u32 %v6824_v20, %v5924_v22  ;;  %1834 = vmatpush.bf16.msrb.mxu3 %v6183_v63 }
  0xde   :  { %v1328_v34 = vpop.f32.mrf.mxu2  ;;  %8695 = vst [vmem:[#allocation34_spill] sm:$0xff] %v7417_v62 }
  0xdf   :  { %8691 = vst [vmem:[#allocation30_spill] sm:$0xff] %v7407_v31  ;;  %v1329_v58 = vadd.f32 %v1328_v34, %v1225_v29  ;;  %v1432_v61 = vpop.f32.mrf.mxu3  ;;  %v1226_v23 = vpop.f32.mrf.mxu1  ;;  %1626 = vmatpush.bf16.msrb.mxu1 %v5927_v60  ;;  %v188_v29 = vld [vmem:[#allocation2 + $0x2e8] sm:$0xff]  ;;  %v185_v34 = vld [vmem:[#allocation2 + $0x2d0] sm:$0xff] }
  0xe0   :  { %v1122_v30 = vpop.f32.mrf.mxu0  ;;  %v7412_v20 = vpack.c.bf16 %v188_v29, %v184_v10 }
  0xe1   :  { %v1123_v28 = vadd.f32 %v1122_v30, %v7362_v11  ;;  %v1433_v9 = vadd.f32 %v1432_v61, %v1329_v58  ;;  %v7414_v58 = vpack.c.bf16 %v189_v8, %v185_v34 }
  0xe2   :  { %8693 = vst [vmem:[#allocation32_spill] sm:$0xff] %v7412_v20 }
  0xe3   :  { %v1227_v31 = vadd.f32 %v1226_v23, %v1123_v28  ;;  %8694 = vst [vmem:[#allocation33_spill] sm:$0xff] %v7414_v58  ;;  %v2781_v28 = vmax.f32 %v1433_v9, 0.0  ;;  %v195_v9 = vld [vmem:[#allocation2 + $0x320] sm:$0xff] }
  0xe6   :  { %v1330_v38 = vpop.f32.mrf.mxu2 }
  0xe7   :  { %v1331_v30 = vadd.f32 %v1330_v38, %v1227_v31  ;;  %v1434_v59 = vpop.f32.mrf.mxu3  ;;  %v1229_v61 = vpop.f32.mrf.mxu1  ;;  %v192_v38 = vld [vmem:[#allocation2 + $0x308] sm:$0xff] }
  0xe8   :  { %v1125_v35 = vpop.f32.mrf.mxu0 }
  0xe9   :  { %v1126_v23 = vadd.f32 %v1125_v35, %v7362_v11  ;;  %v1435_v63 = vadd.f32 %v1434_v59, %v1331_v30  ;;  %v196_v30 = vld [vmem:[#allocation2 + $0x328] sm:$0xff]  ;;  %v193_v35 = vld [vmem:[#allocation2 + $0x310] sm:$0xff] }
  0xea   :  { %1268 = vmatmul.bf16.gmra.mxu1 %v7412_v20 }
  0xeb   :  { %v1230_v22 = vadd.f32 %v1229_v61, %v1126_v23  ;;  %1164 = vmatmul.bf16.gmra.mxu0 %v7410_v40  ;;  %v2785_v60 = vmax.f32 %v1435_v63, 0.0  ;;  %1372 = vmatmul.bf16.gmra.mxu2 %v7414_v58  ;;  %v197_v23 = vld [vmem:[#allocation2 + $0x330] sm:$0xff]  ;;  %v194_v61 = vld [vmem:[#allocation2 + $0x318] sm:$0xff] }
  0xec   :  { %1476 = vmatmul.bf16.gmra.mxu3 %v7417_v62  ;;  %v198_v63 = vld [vmem:[#allocation2 + $0x338] sm:$0xff] }
  0xed   :  { %v7423_v10 = vpack.c.bf16 %v2785_v60, %v2781_v28  ;;  %v7426_v28 = vpack.c.bf16 %v195_v9, %v191_v37 }
  0xee   :  { %v1333_v8 = vpop.f32.mrf.mxu2 }
  0xef   :  { %8696 = vst [vmem:[#allocation35_spill] sm:$0xff] %v7423_v10  ;;  %v1334_v31 = vadd.f32 %v1333_v8, %v1230_v22  ;;  %v1437_v32 = vpop.f32.mrf.mxu3  ;;  %v1231_v59 = vpop.f32.mrf.mxu1  ;;  %v7428_v10 = vpack.c.bf16 %v196_v30, %v192_v38 }
  0xf0   :  { %v1127_v21 = vpop.f32.mrf.mxu0  ;;  %8697 = vst [vmem:[#allocation36_spill] sm:$0xff] %v7426_v28 }
  0xf1   :  { %v1128_v29 = vadd.f32 %v1127_v21, %v7362_v11  ;;  %v1438_v34 = vadd.f32 %v1437_v32, %v1334_v31  ;;  %8698 = vst [vmem:[#allocation37_spill] sm:$0xff] %v7428_v10  ;;  %v7430_v21 = vpack.c.bf16 %v197_v23, %v193_v35 }
  0xf3   :  { %v1232_v33 = vadd.f32 %v1231_v59, %v1128_v29  ;;  %8699 = vst [vmem:[#allocation38_spill] sm:$0xff] %v7430_v21  ;;  %v7433_v29 = vpack.c.bf16 %v198_v63, %v194_v61  ;;  %v2789_v20 = vmax.f32 %v1438_v34, 0.0  ;;  %v199_v61 = vld [vmem:[#allocation2 + $0x340] sm:$0xff] }
  0xf4   :  { %v203_v63 = vld [vmem:[#allocation2 + $0x360] sm:$0xff] }
  0xf5   :  { %8700 = vst [vmem:[#allocation39_spill] sm:$0xff] %v7433_v29 }
  0xf6   :  { %v1335_v62 = vpop.f32.mrf.mxu2 }
  0xf7   :  { %v1336_v60 = vadd.f32 %v1335_v62, %v1232_v33  ;;  %v1439_v22 = vpop.f32.mrf.mxu3  ;;  %v1234_v32 = vpop.f32.mrf.mxu1 }
  0xf8   :  { %v1130_v8 = vpop.f32.mrf.mxu0 }
  0xf9   :  { %v1131_v31 = vadd.f32 %v1130_v8, %v7362_v11  ;;  %v1440_v59 = vadd.f32 %v1439_v22, %v1336_v60  ;;  %v200_v60 = vld [vmem:[#allocation2 + $0x348] sm:$0xff]  ;;  %v201_v8 = vld [vmem:[#allocation2 + $0x350] sm:$0xff] }
  0xfa   :  { %1273 = vmatmul.bf16.gmra.mxu1 %v7428_v10  ;;  %v204_v22 = vld [vmem:[#allocation2 + $0x368] sm:$0xff]  ;;  %v6164_v10 = vld [vmem:[#allocation5 + $0x330] sm:$0xf0] }
  0xfb   :  { %v1235_v58 = vadd.f32 %v1234_v32, %v1131_v31  ;;  %1169 = vmatmul.bf16.gmra.mxu0 %v7426_v28  ;;  %v2793_v40 = vmax.f32 %v1440_v59, 0.0  ;;  %1377 = vmatmul.bf16.gmra.mxu2 %v7430_v21  ;;  %v205_v31 = vld [vmem:[#allocation2 + $0x370] sm:$0xff]  ;;  %v202_v32 = vld [vmem:[#allocation2 + $0x358] sm:$0xff]  ;;  %v7444_v57 = vpack.c.bf16 %v204_v22, %v200_v60 }
  0xfc   :  { %1481 = vmatmul.bf16.gmra.mxu3 %v7433_v29  ;;  %v206_v59 = vld [vmem:[#allocation2 + $0x378] sm:$0xff]  ;;  %v6852_v29 = vld [vmem:[#allocation5 + $0x224] sm:$0xf]  ;;  %v5908_v28 = vld [vmem:[#allocation5 + $0x130] sm:$0xf0]  ;;  %v7446_v42 = vpack.c.bf16 %v205_v31, %v201_v8 }
  0xfd   :  { %v7439_v62 = vpack.c.bf16 %v2793_v40, %v2789_v20  ;;  %v6036_v40 = vld [vmem:[#allocation5 + $0x230] sm:$0xf0] }
  0xfe   :  { %v1338_v33 = vpop.f32.mrf.mxu2  ;;  %v6039_v20 = vor.u32 %v6852_v29, %v6036_v40  ;;  %v7449_v40 = vpack.c.bf16 %v206_v59, %v202_v32  ;;  %v207_v32 = vld [vmem:[#allocation2 + $0x380] sm:$0xff]  ;;  %v208_v59 = vld [vmem:[#allocation2 + $0x388] sm:$0xff] }
  0xff   :  { %8701 = vst [vmem:[#allocation40_spill] sm:$0xff] %v7439_v62  ;;  %v1339_v37 = vadd.f32 %v1338_v33, %v1235_v58  ;;  %v1442_v9 = vpop.f32.mrf.mxu3  ;;  %v1236_v35 = vpop.f32.mrf.mxu1  ;;  %v6788_v62 = vld [vmem:[#allocation5 + $0x24] sm:$0xf]  ;;  %v5780_v58 = vld [vmem:[#allocation5 + $0x30] sm:$0xf0] }
 0x100   :  { %v1132_v38 = vpop.f32.mrf.mxu0  ;;  %v6884_v33 = vld [vmem:[#allocation5 + $0x324] sm:$0xf]  ;;  %v5783_v21 = vor.u32 %v6788_v62, %v5780_v58  ;;  %1731 = vmatpush.bf16.msrb.mxu2 %v6039_v20  ;;  %v212_v20 = vld [vmem:[#allocation2 + $0x3a8] sm:$0xff]  ;;  %v209_v58 = vld [vmem:[#allocation2 + $0x390] sm:$0xff] }
 0x101   :  { %v1133_v30 = vadd.f32 %v1132_v38, %v7362_v11  ;;  %v1443_v23 = vadd.f32 %v1442_v9, %v1339_v37  ;;  %v6820_v38 = vld [vmem:[#allocation5 + $0x124] sm:$0xf]  ;;  %v7442_v9 = vpack.c.bf16 %v203_v63, %v199_v61 }
 0x102   :  { %1523 = vmatpush.bf16.msrb.mxu0 %v5783_v21 }
 0x103   :  { %v1237_v34 = vadd.f32 %v1236_v35, %v1133_v30  ;;  %v6167_v30 = vor.u32 %v6884_v33, %v6164_v10  ;;  %v5911_v35 = vor.u32 %v6820_v38, %v5908_v28  ;;  %v2797_v10 = vmax.f32 %v1443_v23, 0.0  ;;  %v211_v23 = vld [vmem:[#allocation2 + $0x3a0] sm:$0xff]  ;;  %v213_v33 = vld [vmem:[#allocation2 + $0x3b0] sm:$0xff]  ;;  %v210_v38 = vld [vmem:[#allocation2 + $0x398] sm:$0xff] }
 0x105   :  { %1835 = vmatpush.bf16.msrb.mxu3 %v6167_v30  ;;  %1627 = vmatpush.bf16.msrb.mxu1 %v5911_v35  ;;  %v7458_v35 = vpack.c.bf16 %v211_v23, %v207_v32 }
 0x106   :  { %v1340_v37 = vpop.f32.mrf.mxu2 }
 0x107   :  { %v1341_v56 = vadd.f32 %v1340_v37, %v1237_v34  ;;  %v1444_v43 = vpop.f32.mrf.mxu3  ;;  %v1239_v62 = vpop.f32.mrf.mxu1  ;;  %v214_v37 = vld [vmem:[#allocation2 + $0x3b8] sm:$0xff]  ;;  %8703 = vst [vmem:[#allocation42_spill] sm:$0xff] %v7458_v35 }
 0x108   :  { %v1135_v36 = vpop.f32.mrf.mxu0 }
 0x109   :  { %v1136_v29 = vadd.f32 %v1135_v36, %v7362_v11  ;;  %v1445_v61 = vadd.f32 %v1444_v43, %v1341_v56 }
 0x10a   :  { %1278 = vmatmul.bf16.gmra.mxu1 %v7444_v57 }
 0x10b   :  { %v1240_v63 = vadd.f32 %v1239_v62, %v1136_v29  ;;  %1174 = vmatmul.bf16.gmra.mxu0 %v7442_v9  ;;  %v2801_v28 = vmax.f32 %v1445_v61, 0.0  ;;  %1382 = vmatmul.bf16.gmra.mxu2 %v7446_v42 }
 0x10c   :  { %1486 = vmatmul.bf16.gmra.mxu3 %v7449_v40 }
 0x10d   :  { %v7455_v21 = vpack.c.bf16 %v2801_v28, %v2797_v10  ;;  %v7462_v10 = vpack.c.bf16 %v213_v33, %v209_v58 }
 0x10e   :  { %v1343_v36 = vpop.f32.mrf.mxu2 }
 0x10f   :  { %8702 = vst [vmem:[#allocation41_spill] sm:$0xff] %v7455_v21  ;;  %v1344_v34 = vadd.f32 %v1343_v36, %v1240_v63  ;;  %v1447_v60 = vpop.f32.mrf.mxu3  ;;  %v1241_v43 = vpop.f32.mrf.mxu1  ;;  %v7460_v63 = vpack.c.bf16 %v212_v20, %v208_v59 }
 0x110   :  { %v1137_v22 = vpop.f32.mrf.mxu0  ;;  %8705 = vst [vmem:[#allocation44_spill] sm:$0xff] %v7462_v10 }
 0x111   :  { %v1138_v8 = vadd.f32 %v1137_v22, %v7362_v11  ;;  %v1448_v56 = vadd.f32 %v1447_v60, %v1344_v34  ;;  %8704 = vst [vmem:[#allocation43_spill] sm:$0xff] %v7460_v63  ;;  %v7465_v34 = vpack.c.bf16 %v214_v37, %v210_v38 }
 0x113   :  { %v1242_v31 = vadd.f32 %v1241_v43, %v1138_v8  ;;  %8706 = vst [vmem:[#allocation45_spill] sm:$0xff] %v7465_v34  ;;  %v2805_v8 = vmax.f32 %v1448_v56, 0.0  ;;  %v219_v56 = vld [vmem:[#allocation2 + $0x3e0] sm:$0xff] }
 0x116   :  { %v1345_v30 = vpop.f32.mrf.mxu2 }
 0x117   :  { %v1346_v29 = vadd.f32 %v1345_v30, %v1242_v31  ;;  %v1449_v62 = vpop.f32.mrf.mxu3  ;;  %v1244_v36 = vpop.f32.mrf.mxu1  ;;  %v215_v30 = vld [vmem:[#allocation2 + $0x3c0] sm:$0xff] }
 0x118   :  { %v1140_v61 = vpop.f32.mrf.mxu0 }
 0x119   :  { %v1141_v28 = vadd.f32 %v1140_v61, %v7362_v11  ;;  %v1450_v60 = vadd.f32 %v1449_v62, %v1346_v29  ;;  %v216_v29 = vld [vmem:[#allocation2 + $0x3c8] sm:$0xff]  ;;  %v6848_v62 = vld [vmem:[#allocation5 + $0x204] sm:$0xf]  ;;  %v6020_v61 = vld [vmem:[#allocation5 + $0x210] sm:$0xf0] }
 0x11a   :  { %1283 = vmatmul.bf16.gmra.mxu1 %v7460_v63  ;;  %v6023_v21 = vor.u32 %v6848_v62, %v6020_v61 }
 0x11b   :  { %v1245_v22 = vadd.f32 %v1244_v36, %v1141_v28  ;;  %1179 = vmatmul.bf16.gmra.mxu0 %v7458_v35  ;;  %v2809_v43 = vmax.f32 %v1450_v60, 0.0  ;;  %1387 = vmatmul.bf16.gmra.mxu2 %v7462_v10  ;;  %v220_v28 = vld [vmem:[#allocation2 + $0x3e8] sm:$0xff]  ;;  %v217_v36 = vld [vmem:[#allocation2 + $0x3d0] sm:$0xff] }
 0x11c   :  { %1491 = vmatmul.bf16.gmra.mxu3 %v7465_v34  ;;  %v221_v60 = vld [vmem:[#allocation2 + $0x3f0] sm:$0xff]  ;;  %1732 = vmatpush.bf16.msrb.mxu2 %v6023_v21 }
 0x11d   :  { %v7471_v31 = vpack.c.bf16 %v2809_v43, %v2805_v8  ;;  %v218_v8 = vld [vmem:[#allocation2 + $0x3d8] sm:$0xff] }
 0x11e   :  { %v1348_v32 = vpop.f32.mrf.mxu2  ;;  %v222_v43 = vld [vmem:[#allocation2 + $0x3f8] sm:$0xff] }
 0x11f   :  { %8707 = vst [vmem:[#allocation46_spill] sm:$0xff] %v7471_v31  ;;  %v1349_v23 = vadd.f32 %v1348_v32, %v1245_v22  ;;  %v1452_v59 = vpop.f32.mrf.mxu3  ;;  %v1246_v33 = vpop.f32.mrf.mxu1  ;;  %v7474_v22 = vpack.c.bf16 %v219_v56, %v215_v30  ;;  %v7481_v10 = vpack.c.bf16 %v222_v43, %v218_v8 }
 0x120   :  { %v1142_v20 = vpop.f32.mrf.mxu0 }
 0x121   :  { %v1143_v58 = vadd.f32 %v1142_v20, %v7362_v11  ;;  %v1453_v38 = vadd.f32 %v1452_v59, %v1349_v23  ;;  %8708 = vst [vmem:[#allocation47_spill] sm:$0xff] %v7474_v22  ;;  %v7476_v23 = vpack.c.bf16 %v220_v28, %v216_v29  ;;  %v7478_v59 = vpack.c.bf16 %v221_v60, %v217_v36  ;;  %v6148_v28 = vld [vmem:[#allocation5 + $0x310] sm:$0xf0]  ;;  %v6816_v36 = vld [vmem:[#allocation5 + $0x104] sm:$0xf] }
 0x122   :  { %8711 = vst [vmem:[#allocation50_spill] sm:$0xff] %v7481_v10  ;;  %v5892_v60 = vld [vmem:[#allocation5 + $0x110] sm:$0xf0] }
 0x123   :  { %v1247_v37 = vadd.f32 %v1246_v33, %v1143_v58  ;;  %8709 = vst [vmem:[#allocation48_spill] sm:$0xff] %v7476_v23  ;;  %v2813_v61 = vmax.f32 %v1453_v38, 0.0 }
 0x124   :  { %8710 = vst [vmem:[#allocation49_spill] sm:$0xff] %v7478_v59 }
 0x126   :  { %v1350_v31 = vpop.f32.mrf.mxu2 }
 0x127   :  { %v1351_v32 = vadd.f32 %v1350_v31, %v1247_v37  ;;  %v1454_v20 = vpop.f32.mrf.mxu3  ;;  %v1249_v33 = vpop.f32.mrf.mxu1  ;;  %v6784_v31 = vld [vmem:[#allocation5 + $0x4] sm:$0xf]  ;;  %v5764_v37 = vld [vmem:[#allocation5 + $0x10] sm:$0xf0] }
 0x128   :  { %v1145_v34 = vpop.f32.mrf.mxu0  ;;  %v5767_v29 = vor.u32 %v6784_v31, %v5764_v37  ;;  %v228_v31 = vld [vmem:[#allocation2 + $0x428] sm:$0xff]  ;;  %v225_v37 = vld [vmem:[#allocation2 + $0x410] sm:$0xff] }
 0x129   :  { %v1146_v58 = vadd.f32 %v1145_v34, %v7362_v11  ;;  %v1455_v63 = vadd.f32 %v1454_v20, %v1351_v32  ;;  %v6880_v34 = vld [vmem:[#allocation5 + $0x304] sm:$0xf]  ;;  %v5895_v32 = vor.u32 %v6816_v36, %v5892_v60 }
 0x12a   :  { %1288 = vmatmul.bf16.gmra.mxu1 %v7476_v23  ;;  %1524 = vmatpush.bf16.msrb.mxu0 %v5767_v29  ;;  %v226_v23 = vld [vmem:[#allocation2 + $0x418] sm:$0xff] }
 0x12b   :  { %v1250_v62 = vadd.f32 %v1249_v33, %v1146_v58  ;;  %1184 = vmatmul.bf16.gmra.mxu0 %v7474_v22  ;;  %v2817_v30 = vmax.f32 %v1455_v63, 0.0  ;;  %1392 = vmatmul.bf16.gmra.mxu2 %v7478_v59  ;;  %v6151_v63 = vor.u32 %v6880_v34, %v6148_v28  ;;  %v229_v59 = vld [vmem:[#allocation2 + $0x430] sm:$0xff] }
 0x12c   :  { %1496 = vmatmul.bf16.gmra.mxu3 %v7481_v10  ;;  %1628 = vmatpush.bf16.msrb.mxu1 %v5895_v32  ;;  %v224_v10 = vld [vmem:[#allocation2 + $0x408] sm:$0xff]  ;;  %v7494_v29 = vpack.c.bf16 %v229_v59, %v225_v37 }
 0x12d   :  { %v7487_v21 = vpack.c.bf16 %v2817_v30, %v2813_v61  ;;  %1836 = vmatpush.bf16.msrb.mxu3 %v6151_v63  ;;  %v223_v30 = vld [vmem:[#allocation2 + $0x400] sm:$0xff]  ;;  %v7492_v60 = vpack.c.bf16 %v228_v31, %v224_v10 }
 0x12e   :  { %v1353_v56 = vpop.f32.mrf.mxu2  ;;  %8715 = vst [vmem:[#allocation54_spill] sm:$0xff] %v7494_v29 }
 0x12f   :  { %8712 = vst [vmem:[#allocation51_spill] sm:$0xff] %v7487_v21  ;;  %v1354_v8 = vadd.f32 %v1353_v56, %v1250_v62  ;;  %v1457_v43 = vpop.f32.mrf.mxu3  ;;  %v1251_v58 = vpop.f32.mrf.mxu1  ;;  %v227_v21 = vld [vmem:[#allocation2 + $0x420] sm:$0xff]  ;;  %v230_v62 = vld [vmem:[#allocation2 + $0x438] sm:$0xff] }
 0x130   :  { %v1147_v38 = vpop.f32.mrf.mxu0  ;;  %v7490_v22 = vpack.c.bf16 %v227_v21, %v223_v30  ;;  %8714 = vst [vmem:[#allocation53_spill] sm:$0xff] %v7492_v60 }
 0x131   :  { %v1148_v20 = vadd.f32 %v1147_v38, %v7362_v11  ;;  %v1458_v33 = vadd.f32 %v1457_v43, %v1354_v8  ;;  %v7497_v38 = vpack.c.bf16 %v230_v62, %v226_v23 }
 0x132   :  { %8713 = vst [vmem:[#allocation52_spill] sm:$0xff] %v7490_v22 }
 0x133   :  { %v1252_v61 = vadd.f32 %v1251_v58, %v1148_v20  ;;  %8716 = vst [vmem:[#allocation55_spill] sm:$0xff] %v7497_v38  ;;  %v2821_v20 = vmax.f32 %v1458_v33, 0.0  ;;  %v235_v33 = vld [vmem:[#allocation2 + $0x460] sm:$0xff] }
 0x136   :  { %v1355_v56 = vpop.f32.mrf.mxu2 }
 0x137   :  { %v1356_v34 = vadd.f32 %v1355_v56, %v1252_v61  ;;  %v1459_v28 = vpop.f32.mrf.mxu3  ;;  %v1254_v43 = vpop.f32.mrf.mxu1  ;;  %v231_v56 = vld [vmem:[#allocation2 + $0x440] sm:$0xff] }
 0x138   :  { %v1150_v36 = vpop.f32.mrf.mxu0 }
 0x139   :  { %v1151_v8 = vadd.f32 %v1150_v36, %v7362_v11  ;;  %v1460_v63 = vadd.f32 %v1459_v28, %v1356_v34  ;;  %v232_v34 = vld [vmem:[#allocation2 + $0x448] sm:$0xff]  ;;  %v233_v36 = vld [vmem:[#allocation2 + $0x450] sm:$0xff] }
 0x13a   :  { %1293 = vmatmul.bf16.gmra.mxu1 %v7492_v60  ;;  %v236_v28 = vld [vmem:[#allocation2 + $0x468] sm:$0xff] }
 0x13b   :  { %v1255_v32 = vadd.f32 %v1254_v43, %v1151_v8  ;;  %1189 = vmatmul.bf16.gmra.mxu0 %v7490_v22  ;;  %v2825_v58 = vmax.f32 %v1460_v63, 0.0  ;;  %1397 = vmatmul.bf16.gmra.mxu2 %v7494_v29  ;;  %v237_v8 = vld [vmem:[#allocation2 + $0x470] sm:$0xff]  ;;  %v234_v43 = vld [vmem:[#allocation2 + $0x458] sm:$0xff] }
 0x13c   :  { %1501 = vmatmul.bf16.gmra.mxu3 %v7497_v38  ;;  %v238_v63 = vld [vmem:[#allocation2 + $0x478] sm:$0xff] }
 0x13d   :  { %v7503_v10 = vpack.c.bf16 %v2825_v58, %v2821_v20  ;;  %v7506_v20 = vpack.c.bf16 %v235_v33, %v231_v56  ;;  %v6879_v56 = vld [vmem:[#allocation5 + $0x2f4] sm:$0xf0]  ;;  %v5882_v33 = vld [vmem:[#allocation5 + $0xe8] sm:$0xf] }
 0x13e   :  { %v1358_v59 = vpop.f32.mrf.mxu2 }
 0x13f   :  { %8717 = vst [vmem:[#allocation56_spill] sm:$0xff] %v7503_v10  ;;  %v1359_v21 = vadd.f32 %v1358_v59, %v1255_v32  ;;  %v1462_v61 = vpop.f32.mrf.mxu3  ;;  %v1256_v31 = vpop.f32.mrf.mxu1  ;;  %v7508_v10 = vpack.c.bf16 %v236_v28, %v232_v34 }
 0x140   :  { %v1152_v30 = vpop.f32.mrf.mxu0  ;;  %8718 = vst [vmem:[#allocation57_spill] sm:$0xff] %v7506_v20 }
 0x141   :  { %v1153_v23 = vadd.f32 %v1152_v30, %v7362_v11  ;;  %v1463_v37 = vadd.f32 %v1462_v61, %v1359_v21  ;;  %8719 = vst [vmem:[#allocation58_spill] sm:$0xff] %v7508_v10  ;;  %v7510_v30 = vpack.c.bf16 %v237_v8, %v233_v36  ;;  %v6815_v36 = vld [vmem:[#allocation5 + $0xf4] sm:$0xf0]  ;;  %v6266_v8 = vld [vmem:[#allocation5 + $0x3e8] sm:$0xf] }
 0x143   :  { %v1257_v62 = vadd.f32 %v1256_v31, %v1153_v23  ;;  %8720 = vst [vmem:[#allocation59_spill] sm:$0xff] %v7510_v30  ;;  %v7513_v23 = vpack.c.bf16 %v238_v63, %v234_v43  ;;  %v2829_v60 = vmax.f32 %v1463_v37, 0.0  ;;  %v6911_v43 = vld [vmem:[#allocation5 + $0x3f4] sm:$0xf0] }
 0x145   :  { %8721 = vst [vmem:[#allocation60_spill] sm:$0xff] %v7513_v23 }
 0x146   :  { %v1360_v38 = vpop.f32.mrf.mxu2 }
 0x147   :  { %v1361_v58 = vadd.f32 %v1360_v38, %v1257_v62  ;;  %v1464_v32 = vpop.f32.mrf.mxu3  ;;  %v1259_v61 = vpop.f32.mrf.mxu1  ;;  %v6138_v62 = vld [vmem:[#allocation5 + $0x2e8] sm:$0xf] }
 0x148   :  { %v1155_v59 = vpop.f32.mrf.mxu0  ;;  %v6139_v28 = vor.u32 %v6879_v56, %v6138_v62  ;;  %v6010_v62 = vld [vmem:[#allocation5 + $0x1e8] sm:$0xf]  ;;  %v6847_v56 = vld [vmem:[#allocation5 + $0x1f4] sm:$0xf0] }
 0x149   :  { %v1156_v21 = vadd.f32 %v1155_v59, %v7362_v11  ;;  %v1465_v31 = vadd.f32 %v1464_v32, %v1361_v58  ;;  %v5883_v32 = vor.u32 %v6815_v36, %v5882_v33  ;;  %v6267_v59 = vor.u32 %v6911_v43, %v6266_v8  ;;  %v246_v33 = vld [vmem:[#allocation2 + $0x4b8] sm:$0xff] }
 0x14a   :  { %1298 = vmatmul.bf16.gmra.mxu1 %v7508_v10  ;;  %2141 = vmatpush.bf16.msra.mxu2 %v6139_v28  ;;  %v241_v10 = vld [vmem:[#allocation2 + $0x490] sm:$0xff] }
 0x14b   :  { %v1260_v29 = vadd.f32 %v1259_v61, %v1156_v21  ;;  %1194 = vmatmul.bf16.gmra.mxu0 %v7506_v20  ;;  %v2833_v22 = vmax.f32 %v1465_v31, 0.0  ;;  %1402 = vmatmul.bf16.gmra.mxu2 %v7510_v30  ;;  %v244_v30 = vld [vmem:[#allocation2 + $0x4a8] sm:$0xff]  ;;  %v242_v20 = vld [vmem:[#allocation2 + $0x498] sm:$0xff] }
 0x14c   :  { %1506 = vmatmul.bf16.gmra.mxu3 %v7513_v23  ;;  %1933 = vmatpush.bf16.msra.mxu0 %v5883_v32  ;;  %v240_v23 = vld [vmem:[#allocation2 + $0x488] sm:$0xff] }
 0x14d   :  { %v7519_v38 = vpack.c.bf16 %v2833_v22, %v2829_v60  ;;  %2245 = vmatpush.bf16.msra.mxu3 %v6267_v59  ;;  %v239_v60 = vld [vmem:[#allocation2 + $0x480] sm:$0xff] }
 0x14e   :  { %v1363_v34 = vpop.f32.mrf.mxu2 }
 0x14f   :  { %8722 = vst [vmem:[#allocation61_spill] sm:$0xff] %v7519_v38  ;;  %v1364_v63 = vadd.f32 %v1363_v34, %v1260_v29  ;;  %v1467_v58 = vpop.f32.mrf.mxu3  ;;  %v1261_v61 = vpop.f32.mrf.mxu1  ;;  %v243_v38 = vld [vmem:[#allocation2 + $0x4a0] sm:$0xff]  ;;  %v245_v29 = vld [vmem:[#allocation2 + $0x4b0] sm:$0xff]  ;;  %v6011_v34 = vor.u32 %v6847_v56, %v6010_v62 }
 0x150   :  { %v1157_v37 = vpop.f32.mrf.mxu0  ;;  %v7522_v8 = vpack.c.bf16 %v243_v38, %v239_v60 }
 0x151   :  { %v1158_v21 = vadd.f32 %v1157_v37, %v7362_v11  ;;  %v1468_v31 = vadd.f32 %v1467_v58, %v1364_v63  ;;  %2037 = vmatpush.bf16.msra.mxu1 %v6011_v34  ;;  %v7524_v58 = vpack.c.bf16 %v244_v30, %v240_v23  ;;  %v7526_v37 = vpack.c.bf16 %v245_v29, %v241_v10 }
 0x153   :  { %v1262_v22 = vadd.f32 %v1261_v61, %v1158_v21  ;;  %v7529_v21 = vpack.c.bf16 %v246_v33, %v242_v20  ;;  %v2837_v56 = vmax.f32 %v1468_v31, 0.0 }
 0x156   :  { %v1365_v36 = vpop.f32.mrf.mxu2 }
 0x157   :  { %v1366_v28 = vadd.f32 %v1365_v36, %v1262_v22  ;;  %v1469_v43 = vpop.f32.mrf.mxu3  ;;  %v1264_v59 = vpop.f32.mrf.mxu1 }
 0x158   :  { %v1160_v63 = vpop.f32.mrf.mxu0 }
 0x159   :  { %v1161_v32 = vadd.f32 %v1160_v63, %v7362_v11  ;;  %v1470_v61 = vadd.f32 %v1469_v43, %v1366_v28 }
 0x15a   :  { %1303 = vmatmul.bf16.gmra.mxu1 %v7524_v58 }
 0x15b   :  { %v1265_v62 = vadd.f32 %v1264_v59, %v1161_v32  ;;  %1199 = vmatmul.bf16.gmra.mxu0 %v7522_v8  ;;  %v2841_v38 = vmax.f32 %v1470_v61, 0.0  ;;  %1407 = vmatmul.bf16.gmra.mxu2 %v7526_v37 }
 0x15c   :  { %1511 = vmatmul.bf16.gmra.mxu3 %v7529_v21 }
 0x15d   :  { %v7535_v30 = vpack.c.bf16 %v2841_v38, %v2837_v56 }
 0x15e   :  { %v1368_v10 = vpop.f32.mrf.mxu2 }
 0x15f   :  { %8723 = vst [vmem:[#allocation62_spill] sm:$0xff] %v7535_v30  ;;  %v1369_v23 = vadd.f32 %v1368_v10, %v1265_v62  ;;  %v1472_v22 = vpop.f32.mrf.mxu3  ;;  %v1266_v29 = vpop.f32.mrf.mxu1  ;;  %v6907_v30 = vld [vmem:[#allocation5 + $0x3d4] sm:$0xf0] }
 0x160   :  { %v1162_v60 = vpop.f32.mrf.mxu0 }
 0x161   :  { %v1163_v20 = vadd.f32 %v1162_v60, %v7362_v11  ;;  %v1473_v34 = vadd.f32 %v1472_v22, %v1369_v23 }
 0x163   :  { %v1267_v33 = vadd.f32 %v1266_v29, %v1163_v20  ;;  %v2845_v56 = vmax.f32 %v1473_v34, 0.0  ;;  %v6875_v34 = vld [vmem:[#allocation5 + $0x2d4] sm:$0xf0] }
 0x166   :  { %v1370_v36 = vpop.f32.mrf.mxu2 }
 0x167   :  { %v1371_v31 = vadd.f32 %v1370_v36, %v1267_v33  ;;  %v1474_v28 = vpop.f32.mrf.mxu3  ;;  %v1269_v32 = vpop.f32.mrf.mxu1 }
 0x168   :  { %v1165_v43 = vpop.f32.mrf.mxu0 }
 0x169   :  { %v1166_v63 = vadd.f32 %v1165_v43, %v7362_v11  ;;  %v1475_v59 = vadd.f32 %v1474_v28, %v1371_v31  ;;  %v6122_v31 = vld [vmem:[#allocation5 + $0x2c8] sm:$0xf] }
 0x16a   :  { %1629 = vmatmul.bf16.vlgmr.msrb.gmra.mxu1 %v7268_v51  ;;  %v6123_v28 = vor.u32 %v6875_v34, %v6122_v31  ;;  %v5866_v43 = vld [vmem:[#allocation5 + $0xc8] sm:$0xf] }
 0x16b   :  { %v1270_v61 = vadd.f32 %v1269_v32, %v1166_v63  ;;  %1525 = vmatmul.bf16.vlgmr.msrb.gmra.mxu0 %v7266_v47  ;;  %v2849_v62 = vmax.f32 %v1475_v59, 0.0  ;;  %1733 = vmatmul.bf16.vlgmr.msrb.gmra.mxu2 %v7270_v52  ;;  %v6811_v63 = vld [vmem:[#allocation5 + $0xd4] sm:$0xf0]  ;;  %v6250_v32 = vld [vmem:[#allocation5 + $0x3c8] sm:$0xf] }
 0x16c   :  { %1837 = vmatmul.bf16.vlgmr.msrb.gmra.mxu3 %v7272_v53  ;;  %v5867_v59 = vor.u32 %v6811_v63, %v5866_v43  ;;  %v5994_v53 = vld [vmem:[#allocation5 + $0x1c8] sm:$0xf]  ;;  %2142 = vmatpush.bf16.msra.mxu2 %v6123_v28 }
 0x16d   :  { %v7543_v38 = vpack.c.bf16 %v2849_v62, %v2845_v56  ;;  %v6843_v56 = vld [vmem:[#allocation5 + $0x1d4] sm:$0xf0] }
 0x16e   :  { %v1373_v10 = vpop.f32.mrf.mxu2  ;;  %1934 = vmatpush.bf16.msra.mxu0 %v5867_v59 }
 0x16f   :  { %8724 = vst [vmem:[#allocation63_spill] sm:$0xff] %v7543_v38  ;;  %v1374_v23 = vadd.f32 %v1373_v10, %v1270_v61  ;;  %v1477_v22 = vpop.f32.mrf.mxu3  ;;  %v1271_v29 = vpop.f32.mrf.mxu1  ;;  %v6251_v61 = vor.u32 %v6907_v30, %v6250_v32  ;;  %v5995_v10 = vor.u32 %v6843_v56, %v5994_v53 }
 0x170   :  { %v1167_v60 = vpop.f32.mrf.mxu0 }
 0x171   :  { %v1168_v20 = vadd.f32 %v1167_v60, %v7362_v11  ;;  %v1478_v33 = vadd.f32 %v1477_v22, %v1374_v23  ;;  %2246 = vmatpush.bf16.msra.mxu3 %v6251_v61  ;;  %2038 = vmatpush.bf16.msra.mxu1 %v5995_v10 }
 0x173   :  { %v1272_v36 = vadd.f32 %v1271_v29, %v1168_v20  ;;  %v2853_v31 = vmax.f32 %v1478_v33, 0.0 }
 0x176   :  { %v1375_v62 = vpop.f32.mrf.mxu2 }
 0x177   :  { %v1376_v38 = vadd.f32 %v1375_v62, %v1272_v36  ;;  %v1479_v52 = vpop.f32.mrf.mxu3  ;;  %v1274_v22 = vpop.f32.mrf.mxu1 }
 0x178   :  { %v1170_v60 = vpop.f32.mrf.mxu0 }
 0x179   :  { %v1171_v23 = vadd.f32 %v1170_v60, %v7362_v11  ;;  %v1480_v20 = vadd.f32 %v1479_v52, %v1376_v38 }
 0x17a   :  { %1634 = vmatmul.bf16.gmra.mxu1 %v7280_v13 }
 0x17b   :  { %v1275_v29 = vadd.f32 %v1274_v22, %v1171_v23  ;;  %1530 = vmatmul.bf16.gmra.mxu0 %v7278_v12  ;;  %v2857_v34 = vmax.f32 %v1480_v20, 0.0  ;;  %1738 = vmatmul.bf16.gmra.mxu2 %v7282_v14 }
 0x17c   :  { %1842 = vmatmul.bf16.gmra.mxu3 %v7284_v15 }
 0x17d   :  { %v7551_v53 = vpack.c.bf16 %v2857_v34, %v2853_v31 }
 0x17e   :  { %v1378_v30 = vpop.f32.mrf.mxu2 }
 0x17f   :  { %8725 = vst [vmem:[#allocation64_spill] sm:$0xff] %v7551_v53  ;;  %v1379_v36 = vadd.f32 %v1378_v30, %v1275_v29  ;;  %v1482_v28 = vpop.f32.mrf.mxu3  ;;  %v1276_v52 = vpop.f32.mrf.mxu1 }
 0x180   :  { %v1172_v43 = vpop.f32.mrf.mxu0 }
 0x181   :  { %v1173_v63 = vadd.f32 %v1172_v43, %v7362_v11  ;;  %v1483_v38 = vadd.f32 %v1482_v28, %v1379_v36 }
 0x183   :  { %v1277_v32 = vadd.f32 %v1276_v52, %v1173_v63  ;;  %v2861_v22 = vmax.f32 %v1483_v38, 0.0 }
 0x186   :  { %v1380_v59 = vpop.f32.mrf.mxu2 }
 0x187   :  { %v1381_v33 = vadd.f32 %v1380_v59, %v1277_v32  ;;  %v1484_v56 = vpop.f32.mrf.mxu3  ;;  %v1279_v10 = vpop.f32.mrf.mxu1 }
 0x188   :  { %v1175_v62 = vpop.f32.mrf.mxu0 }
 0x189   :  { %v1176_v61 = vadd.f32 %v1175_v62, %v7362_v11  ;;  %v1485_v60 = vadd.f32 %v1484_v56, %v1381_v33 }
 0x18a   :  { %1639 = vmatmul.bf16.gmra.mxu1 %v7292_v25 }
 0x18b   :  { %v1280_v23 = vadd.f32 %v1279_v10, %v1176_v61  ;;  %1535 = vmatmul.bf16.gmra.mxu0 %v7290_v24  ;;  %v2865_v20 = vmax.f32 %v1485_v60, 0.0  ;;  %1743 = vmatmul.bf16.gmra.mxu2 %v7294_v26 }
 0x18c   :  { %1847 = vmatmul.bf16.gmra.mxu3 %v7296_v27 }
 0x18d   :  { %v7559_v29 = vpack.c.bf16 %v2865_v20, %v2861_v22  ;;  %v6106_v20 = vld [vmem:[#allocation5 + $0x2a8] sm:$0xf] }
 0x18e   :  { %v1383_v31 = vpop.f32.mrf.mxu2 }
 0x18f   :  { %8726 = vst [vmem:[#allocation65_spill] sm:$0xff] %v7559_v29  ;;  %v1384_v34 = vadd.f32 %v1383_v31, %v1280_v23  ;;  %v1487_v30 = vpop.f32.mrf.mxu3  ;;  %v1281_v43 = vpop.f32.mrf.mxu1  ;;  %v6871_v31 = vld [vmem:[#allocation5 + $0x2b4] sm:$0xf0] }
 0x190   :  { %v1177_v36 = vpop.f32.mrf.mxu0 }
 0x191   :  { %v1178_v28 = vadd.f32 %v1177_v36, %v7362_v11  ;;  %v1488_v63 = vadd.f32 %v1487_v30, %v1384_v34  ;;  %v5850_v34 = vld [vmem:[#allocation5 + $0xa8] sm:$0xf]  ;;  %v6107_v36 = vor.u32 %v6871_v31, %v6106_v20 }
 0x193   :  { %v1282_v52 = vadd.f32 %v1281_v43, %v1178_v28  ;;  %v2869_v60 = vmax.f32 %v1488_v63, 0.0  ;;  %v6807_v28 = vld [vmem:[#allocation5 + $0xb4] sm:$0xf0]  ;;  %v6234_v43 = vld [vmem:[#allocation5 + $0x3a8] sm:$0xf]  ;;  %2143 = vmatpush.bf16.msra.mxu2 %v6107_v36 }
 0x196   :  { %v1385_v32 = vpop.f32.mrf.mxu2 }
 0x197   :  { %v1386_v38 = vadd.f32 %v1385_v32, %v1282_v52  ;;  %v1489_v59 = vpop.f32.mrf.mxu3  ;;  %v1284_v62 = vpop.f32.mrf.mxu1  ;;  %v6903_v52 = vld [vmem:[#allocation5 + $0x3b4] sm:$0xf0] }
 0x198   :  { %v1180_v33 = vpop.f32.mrf.mxu0 }
 0x199   :  { %v1181_v56 = vadd.f32 %v1180_v33, %v7362_v11  ;;  %v1490_v61 = vadd.f32 %v1489_v59, %v1386_v38  ;;  %v5851_v59 = vor.u32 %v6807_v28, %v5850_v34  ;;  %v6235_v33 = vor.u32 %v6903_v52, %v6234_v43 }
 0x19a   :  { %1644 = vmatmul.bf16.gmra.mxu1 %v7304_v46 }
 0x19b   :  { %v1285_v10 = vadd.f32 %v1284_v62, %v1181_v56  ;;  %1540 = vmatmul.bf16.gmra.mxu0 %v7302_v45  ;;  %v2873_v23 = vmax.f32 %v1490_v61, 0.0  ;;  %1748 = vmatmul.bf16.gmra.mxu2 %v7306_v48  ;;  %v5978_v56 = vld [vmem:[#allocation5 + $0x1a8] sm:$0xf]  ;;  %v6839_v62 = vld [vmem:[#allocation5 + $0x1b4] sm:$0xf0] }
 0x19c   :  { %1852 = vmatmul.bf16.gmra.mxu3 %v7308_v49  ;;  %1935 = vmatpush.bf16.msra.mxu0 %v5851_v59 }
 0x19d   :  { %v7567_v22 = vpack.c.bf16 %v2873_v23, %v2869_v60  ;;  %v5979_v60 = vor.u32 %v6839_v62, %v5978_v56  ;;  %2247 = vmatpush.bf16.msra.mxu3 %v6235_v33 }
 0x19e   :  { %v1388_v30 = vpop.f32.mrf.mxu2 }
 0x19f   :  { %8727 = vst [vmem:[#allocation66_spill] sm:$0xff] %v7567_v22  ;;  %v1389_v32 = vadd.f32 %v1388_v30, %v1285_v10  ;;  %v1492_v38 = vpop.f32.mrf.mxu3  ;;  %v1286_v29 = vpop.f32.mrf.mxu1  ;;  %2039 = vmatpush.bf16.msra.mxu1 %v5979_v60 }
 0x1a0   :  { %v1182_v63 = vpop.f32.mrf.mxu0 }
 0x1a1   :  { %v1183_v61 = vadd.f32 %v1182_v63, %v7362_v11  ;;  %v1493_v23 = vadd.f32 %v1492_v38, %v1389_v32 }
 0x1a3   :  { %v1287_v22 = vadd.f32 %v1286_v29, %v1183_v61  ;;  %v2877_v52 = vmax.f32 %v1493_v23, 0.0 }
 0x1a6   :  { %v1390_v20 = vpop.f32.mrf.mxu2 }
 0x1a7   :  { %v1391_v31 = vadd.f32 %v1390_v20, %v1287_v22  ;;  %v1494_v53 = vpop.f32.mrf.mxu3  ;;  %v1289_v34 = vpop.f32.mrf.mxu1 }
 0x1a8   :  { %v1185_v10 = vpop.f32.mrf.mxu0 }
 0x1a9   :  { %v1186_v30 = vadd.f32 %v1185_v10, %v7362_v11  ;;  %v1495_v28 = vadd.f32 %v1494_v53, %v1391_v31 }
 0x1aa   :  { %1649 = vmatmul.bf16.gmra.mxu1 %v7316_v1 }
 0x1ab   :  { %v1290_v43 = vadd.f32 %v1289_v34, %v1186_v30  ;;  %1545 = vmatmul.bf16.gmra.mxu0 %v7314_v0  ;;  %v2881_v63 = vmax.f32 %v1495_v28, 0.0  ;;  %1753 = vmatmul.bf16.gmra.mxu2 %v7318_v2 }
 0x1ac   :  { %1857 = vmatmul.bf16.gmra.mxu3 %v7320_v3 }
 0x1ad   :  { %v7575_v29 = vpack.c.bf16 %v2881_v63, %v2877_v52  ;;  %v6090_v52 = vld [vmem:[#allocation5 + $0x288] sm:$0xf]  ;;  %v6867_v63 = vld [vmem:[#allocation5 + $0x294] sm:$0xf0] }
 0x1ae   :  { %v1393_v22 = vpop.f32.mrf.mxu2 }
 0x1af   :  { %8728 = vst [vmem:[#allocation67_spill] sm:$0xff] %v7575_v29  ;;  %v1394_v36 = vadd.f32 %v1393_v22, %v1290_v43  ;;  %v1497_v32 = vpop.f32.mrf.mxu3  ;;  %v1291_v53 = vpop.f32.mrf.mxu1 }
 0x1b0   :  { %v1187_v38 = vpop.f32.mrf.mxu0 }
 0x1b1   :  { %v1188_v59 = vadd.f32 %v1187_v38, %v7362_v11  ;;  %v1498_v33 = vadd.f32 %v1497_v32, %v1394_v36  ;;  %v6091_v36 = vor.u32 %v6867_v63, %v6090_v52 }
 0x1b3   :  { %v1292_v56 = vadd.f32 %v1291_v53, %v1188_v59  ;;  %v2885_v34 = vmax.f32 %v1498_v33, 0.0  ;;  %2144 = vmatpush.bf16.msra.mxu2 %v6091_v36 }
 0x1b6   :  { %v1395_v62 = vpop.f32.mrf.mxu2 }
 0x1b7   :  { %v1396_v61 = vadd.f32 %v1395_v62, %v1292_v56  ;;  %v1499_v60 = vpop.f32.mrf.mxu3  ;;  %v1294_v31 = vpop.f32.mrf.mxu1 }
 0x1b8   :  { %v1190_v23 = vpop.f32.mrf.mxu0 }
 0x1b9   :  { %v1191_v20 = vadd.f32 %v1190_v23, %v7362_v11  ;;  %v1500_v10 = vadd.f32 %v1499_v60, %v1396_v61  ;;  %v5834_v61 = vld [vmem:[#allocation5 + $0x88] sm:$0xf]  ;;  %v6803_v60 = vld [vmem:[#allocation5 + $0x94] sm:$0xf0] }
 0x1ba   :  { %1654 = vmatmul.bf16.gmra.mxu1 %v7328_v17  ;;  %v5835_v23 = vor.u32 %v6803_v60, %v5834_v61 }
 0x1bb   :  { %v1295_v30 = vadd.f32 %v1294_v31, %v1191_v20  ;;  %1550 = vmatmul.bf16.gmra.mxu0 %v7326_v16  ;;  %v2889_v28 = vmax.f32 %v1500_v10, 0.0  ;;  %1758 = vmatmul.bf16.gmra.mxu2 %v7330_v18  ;;  %v6218_v20 = vld [vmem:[#allocation5 + $0x388] sm:$0xf]  ;;  %v6899_v31 = vld [vmem:[#allocation5 + $0x394] sm:$0xf0] }
 0x1bc   :  { %1862 = vmatmul.bf16.gmra.mxu3 %v7332_v19  ;;  %v5962_v10 = vld [vmem:[#allocation5 + $0x188] sm:$0xf]  ;;  %1936 = vmatpush.bf16.msra.mxu0 %v5835_v23 }
 0x1bd   :  { %v7583_v43 = vpack.c.bf16 %v2889_v28, %v2885_v34  ;;  %v6219_v34 = vor.u32 %v6899_v31, %v6218_v20  ;;  %v6835_v28 = vld [vmem:[#allocation5 + $0x194] sm:$0xf0] }
 0x1be   :  { %v1398_v22 = vpop.f32.mrf.mxu2  ;;  %v5963_v52 = vor.u32 %v6835_v28, %v5962_v10 }
 0x1bf   :  { %8729 = vst [vmem:[#allocation68_spill] sm:$0xff] %v7583_v43  ;;  %v1399_v32 = vadd.f32 %v1398_v22, %v1295_v30  ;;  %v1502_v38 = vpop.f32.mrf.mxu3  ;;  %v1296_v56 = vpop.f32.mrf.mxu1  ;;  %2248 = vmatpush.bf16.msra.mxu3 %v6219_v34 }
 0x1c0   :  { %v1192_v59 = vpop.f32.mrf.mxu0  ;;  %2040 = vmatpush.bf16.msra.mxu1 %v5963_v52 }
 0x1c1   :  { %v1193_v53 = vadd.f32 %v1192_v59, %v7362_v11  ;;  %v1503_v33 = vadd.f32 %v1502_v38, %v1399_v32 }
 0x1c3   :  { %v1297_v62 = vadd.f32 %v1296_v56, %v1193_v53  ;;  %v2893_v53 = vmax.f32 %v1503_v33, 0.0 }
 0x1c6   :  { %v1400_v43 = vpop.f32.mrf.mxu2 }
 0x1c7   :  { %v1401_v30 = vadd.f32 %v1400_v43, %v1297_v62  ;;  %v1504_v63 = vpop.f32.mrf.mxu3  ;;  %v1299_v36 = vpop.f32.mrf.mxu1 }
 0x1c8   :  { %v1195_v22 = vpop.f32.mrf.mxu0 }
 0x1c9   :  { %v1196_v59 = vadd.f32 %v1195_v22, %v7362_v11  ;;  %v1505_v32 = vadd.f32 %v1504_v63, %v1401_v30 }
 0x1ca   :  { %1659 = vmatmul.bf16.gmra.mxu1 %v7340_v50 }
 0x1cb   :  { %v1300_v38 = vadd.f32 %v1299_v36, %v1196_v59  ;;  %1555 = vmatmul.bf16.gmra.mxu0 %v7338_v44  ;;  %v2897_v56 = vmax.f32 %v1505_v32, 0.0  ;;  %1763 = vmatmul.bf16.gmra.mxu2 %v7342_v54 }
 0x1cc   :  { %1867 = vmatmul.bf16.gmra.mxu3 %v7344_v55 }
 0x1cd   :  { %v7591_v43 = vpack.c.bf16 %v2897_v56, %v2893_v53 }
 0x1ce   :  { %v1403_v62 = vpop.f32.mrf.mxu2 }
 0x1cf   :  { %8730 = vst [vmem:[#allocation69_spill] sm:$0xff] %v7591_v43  ;;  %v1404_v61 = vadd.f32 %v1403_v62, %v1300_v38  ;;  %v1507_v60 = vpop.f32.mrf.mxu3  ;;  %v1301_v31 = vpop.f32.mrf.mxu1 }
 0x1d0   :  { %v1197_v23 = vpop.f32.mrf.mxu0 }
 0x1d1   :  { %v1198_v20 = vadd.f32 %v1197_v23, %v7362_v11  ;;  %v1508_v10 = vadd.f32 %v1507_v60, %v1404_v61 }
 0x1d3   :  { %v1302_v34 = vadd.f32 %v1301_v31, %v1198_v20  ;;  %v2901_v32 = vmax.f32 %v1508_v10, 0.0 }
 0x1d6   :  { %v1405_v28 = vpop.f32.mrf.mxu2 }
 0x1d7   :  { %v1406_v33 = vadd.f32 %v1405_v28, %v1302_v34  ;;  %v1509_v52 = vpop.f32.mrf.mxu3  ;;  %v1304_v22 = vpop.f32.mrf.mxu1  ;;  %v7050_v28 = vld [vmem:[#allocation7] sm:$0xf] }
 0x1d8   :  { %v1200_v30 = vpop.f32.mrf.mxu0  ;;  %v7602_v10 = vperm.slane %v7050_v28, 1 }
 0x1d9   :  { %v1201_v63 = vadd.f32 %v1200_v30, %v7362_v11  ;;  %v1510_v59 = vadd.f32 %v1509_v52, %v1406_v33  ;;  %v6074_v33 = vld [vmem:[#allocation5 + $0x268] sm:$0xf]  ;;  %v6863_v52 = vld [vmem:[#allocation5 + $0x274] sm:$0xf0] }
 0x1da   :  { %1664 = vmatmul.bf16.gmra.mxu1 %v7352_v5  ;;  %v6075_v30 = vor.u32 %v6863_v52, %v6074_v33  ;;  %v8732_v33 = vld [vmem:[#allocation19_spill] sm:$0xff]  ;;  %v8733_v52 = vld [vmem:[#allocation20_spill] sm:$0xff] }
 0x1db   :  { %v1305_v36 = vadd.f32 %v1304_v22, %v1201_v63  ;;  %1560 = vmatmul.bf16.gmra.mxu0 %v7350_v4  ;;  %v2905_v38 = vmax.f32 %v1510_v59, 0.0  ;;  %1768 = vmatmul.bf16.gmra.mxu2 %v7354_v6  ;;  %v5818_v63 = vld [vmem:[#allocation5 + $0x68] sm:$0xf]  ;;  %v6799_v22 = vld [vmem:[#allocation5 + $0x74] sm:$0xf0] }
 0x1dc   :  { %1872 = vmatmul.bf16.gmra.mxu3 %v7356_v7  ;;  %v6202_v59 = vld [vmem:[#allocation5 + $0x368] sm:$0xf]  ;;  %2145 = vmatpush.bf16.msra.mxu2 %v6075_v30  ;;  %v6831_v30 = vld [vmem:[#allocation5 + $0x174] sm:$0xf0] }
 0x1dd   :  { %v7599_v53 = vpack.c.bf16 %v2905_v38, %v2901_v32  ;;  %v5819_v32 = vor.u32 %v6799_v22, %v5818_v63  ;;  %v6895_v38 = vld [vmem:[#allocation5 + $0x374] sm:$0xf0] }
 0x1de   :  { %v1408_v56 = vpop.f32.mrf.mxu2 }
 0x1df   :  { %8731 = vst [vmem:[#allocation70_spill] sm:$0xff] %v7599_v53  ;;  %v1409_v62 = vadd.f32 %v1408_v56, %v1305_v36  ;;  %v1512_v61 = vpop.f32.mrf.mxu3  ;;  %v1306_v20 = vpop.f32.mrf.mxu1  ;;  %v6203_v36 = vor.u32 %v6895_v38, %v6202_v59  ;;  %1937 = vmatpush.bf16.msra.mxu0 %v5819_v32 }
 0x1e0   :  { %v1202_v60 = vpop.f32.mrf.mxu0 }
 0x1e1   :  { %v1203_v23 = vadd.f32 %v1202_v60, %v7362_v11  ;;  %v1513_v31 = vadd.f32 %v1512_v61, %v1409_v62  ;;  %2249 = vmatpush.bf16.msra.mxu3 %v6203_v36 }
 0x1e3   :  { %v1307_v34 = vadd.f32 %v1306_v20, %v1203_v23  ;;  %v2909_v20 = vmax.f32 %v1513_v31, 0.0 }
 0x1e6   :  { %v1410_v53 = vpop.f32.mrf.mxu2 }
 0x1e7   :  { %v1411_v56 = vadd.f32 %v1410_v53, %v1307_v34  ;;  %v1514_v43 = vpop.f32.mrf.mxu3  ;;  %v1630_v61 = vpop.f32.mrf.mxu1  ;;  %v5946_v34 = vld [vmem:[#allocation5 + $0x168] sm:$0xf] }
 0x1e8   :  { %v1526_v11 = vpop.f32.mrf.mxu0  ;;  %v5947_v22 = vor.u32 %v6831_v30, %v5946_v34  ;;  %v8736_v30 = vld [vmem:[#allocation22_spill] sm:$0xff] }
 0x1e9   :  { %v1527_v62 = vadd.f32 %v1526_v11, %v7602_v10  ;;  %v1515_v60 = vadd.f32 %v1514_v43, %v1411_v56 }
 0x1ea   :  { %1669 = vmatmul.bf16.gmra.mxu1 %v7366_v41 }
 0x1eb   :  { %v1631_v23 = vadd.f32 %v1630_v61, %v1527_v62  ;;  %1565 = vmatmul.bf16.gmra.mxu0 %v7364_v39  ;;  %v2913_v28 = vmax.f32 %v1515_v60, 0.0  ;;  %1773 = vmatmul.bf16.gmra.mxu2 %v8732_v33 }
 0x1ec   :  { %1877 = vmatmul.bf16.gmra.mxu3 %v8733_v52  ;;  %2041 = vmatpush.bf16.msra.mxu1 %v5947_v22  ;;  %v8735_v52 = vld [vmem:[#allocation21_spill] sm:$0xff]  ;;  %v8738_v22 = vld [vmem:[#allocation24_spill] sm:$0xff] }
 0x1ed   :  { %v7609_v53 = vpack.c.bf16 %v2913_v28, %v2909_v20 }
 0x1ee   :  { %v1734_v63 = vpop.f32.mrf.mxu2 }
 0x1ef   :  { %8734 = vst [vmem:[#allocation71_spill] sm:$0xff] %v7609_v53  ;;  %v1735_v59 = vadd.f32 %v1734_v63, %v1631_v23  ;;  %v1838_v32 = vpop.f32.mrf.mxu3  ;;  %v1632_v36 = vpop.f32.mrf.mxu1  ;;  %v8737_v63 = vld [vmem:[#allocation23_spill] sm:$0xff] }
 0x1f0   :  { %v1528_v43 = vpop.f32.mrf.mxu0 }
 0x1f1   :  { %v1529_v38 = vadd.f32 %v1528_v43, %v7602_v10  ;;  %v1839_v31 = vadd.f32 %v1838_v32, %v1735_v59 }
 0x1f3   :  { %v1633_v56 = vadd.f32 %v1632_v36, %v1529_v38  ;;  %v2766_v23 = vmax.f32 %v1839_v31, 0.0 }
 0x1f6   :  { %v1736_v11 = vpop.f32.mrf.mxu2 }
 0x1f7   :  { %v1737_v62 = vadd.f32 %v1736_v11, %v1633_v56  ;;  %v1840_v61 = vpop.f32.mrf.mxu3  ;;  %v1635_v28 = vpop.f32.mrf.mxu1 }
 0x1f8   :  { %v1531_v60 = vpop.f32.mrf.mxu0 }
 0x1f9   :  { %v1532_v20 = vadd.f32 %v1531_v60, %v7602_v10  ;;  %v1841_v53 = vadd.f32 %v1840_v61, %v1737_v62 }
 0x1fa   :  { %1674 = vmatmul.bf16.gmra.mxu1 %v8736_v30 }
 0x1fb   :  { %v1636_v29 = vadd.f32 %v1635_v28, %v1532_v20  ;;  %1570 = vmatmul.bf16.gmra.mxu0 %v8735_v52  ;;  %v2770_v34 = vmax.f32 %v1841_v53, 0.0  ;;  %1778 = vmatmul.bf16.gmra.mxu2 %v8737_v63  ;;  %v6827_v52 = vld [vmem:[#allocation5 + $0x154] sm:$0xf0] }
 0x1fc   :  { %1882 = vmatmul.bf16.gmra.mxu3 %v8738_v22 }
 0x1fd   :  { %v7617_v59 = vpack.c.bf16 %v2770_v34, %v2766_v23  ;;  %v8740_v23 = vld [vmem:[#allocation26_spill] sm:$0xff] }
 0x1fe   :  { %v1739_v32 = vpop.f32.mrf.mxu2 }
 0x1ff   :  { %8739 = vst [vmem:[#allocation72_spill] sm:$0xff] %v7617_v59  ;;  %v1740_v43 = vadd.f32 %v1739_v32, %v1636_v29  ;;  %v1843_v38 = vpop.f32.mrf.mxu3  ;;  %v1637_v11 = vpop.f32.mrf.mxu1  ;;  %v8741_v32 = vld [vmem:[#allocation27_spill] sm:$0xff]  ;;  %v8742_v59 = vld [vmem:[#allocation28_spill] sm:$0xff] }
 0x200   :  { %v1533_v36 = vpop.f32.mrf.mxu0 }
 0x201   :  { %v1534_v56 = vadd.f32 %v1533_v36, %v7602_v10  ;;  %v1844_v62 = vadd.f32 %v1843_v38, %v1740_v43  ;;  %v8743_v36 = vld [vmem:[#allocation29_spill] sm:$0xff]  ;;  %v6058_v38 = vld [vmem:[#allocation5 + $0x248] sm:$0xf] }
 0x203   :  { %v1638_v61 = vadd.f32 %v1637_v11, %v1534_v56  ;;  %v2774_v34 = vmax.f32 %v1844_v62, 0.0  ;;  %v6859_v56 = vld [vmem:[#allocation5 + $0x254] sm:$0xf0]  ;;  %v5802_v11 = vld [vmem:[#allocation5 + $0x48] sm:$0xf] }
 0x206   :  { %v1741_v60 = vpop.f32.mrf.mxu2 }
 0x207   :  { %v1742_v31 = vadd.f32 %v1741_v60, %v1638_v61  ;;  %v1845_v53 = vpop.f32.mrf.mxu3  ;;  %v1640_v63 = vpop.f32.mrf.mxu1  ;;  %v6059_v60 = vor.u32 %v6859_v56, %v6058_v38 }
 0x208   :  { %v1536_v20 = vpop.f32.mrf.mxu0 }
 0x209   :  { %v1537_v28 = vadd.f32 %v1536_v20, %v7602_v10  ;;  %v1846_v30 = vadd.f32 %v1845_v53, %v1742_v31  ;;  %v6795_v20 = vld [vmem:[#allocation5 + $0x54] sm:$0xf0]  ;;  %v6186_v31 = vld [vmem:[#allocation5 + $0x348] sm:$0xf]  ;;  %2146 = vmatpush.bf16.msra.mxu2 %v6059_v60 }
 0x20a   :  { %1679 = vmatmul.bf16.gmra.mxu1 %v8741_v32  ;;  %v5930_v32 = vld [vmem:[#allocation5 + $0x148] sm:$0xf] }
 0x20b   :  { %v1641_v22 = vadd.f32 %v1640_v63, %v1537_v28  ;;  %1575 = vmatmul.bf16.gmra.mxu0 %v8740_v23  ;;  %v2778_v29 = vmax.f32 %v1846_v30, 0.0  ;;  %1783 = vmatmul.bf16.gmra.mxu2 %v8742_v59  ;;  %v6891_v63 = vld [vmem:[#allocation5 + $0x354] sm:$0xf0]  ;;  %v5803_v30 = vor.u32 %v6795_v20, %v5802_v11  ;;  %v8746_v60 = vld [vmem:[#allocation32_spill] sm:$0xff] }
 0x20c   :  { %1887 = vmatmul.bf16.gmra.mxu3 %v8743_v36  ;;  %v6187_v23 = vor.u32 %v6891_v63, %v6186_v31  ;;  %v8745_v63 = vld [vmem:[#allocation31_spill] sm:$0xff] }
 0x20d   :  { %v7625_v43 = vpack.c.bf16 %v2778_v29, %v2774_v34  ;;  %v5931_v34 = vor.u32 %v6827_v52, %v5930_v32  ;;  %1938 = vmatpush.bf16.msra.mxu0 %v5803_v30  ;;  %v8747_v52 = vld [vmem:[#allocation33_spill] sm:$0xff] }
 0x20e   :  { %v1744_v61 = vpop.f32.mrf.mxu2  ;;  %2250 = vmatpush.bf16.msra.mxu3 %v6187_v23  ;;  %v8748_v23 = vld [vmem:[#allocation34_spill] sm:$0xff] }
 0x20f   :  { %8744 = vst [vmem:[#allocation73_spill] sm:$0xff] %v7625_v43  ;;  %v1745_v53 = vadd.f32 %v1744_v61, %v1641_v22  ;;  %v1848_v28 = vpop.f32.mrf.mxu3  ;;  %v1642_v36 = vpop.f32.mrf.mxu1  ;;  %2042 = vmatpush.bf16.msra.mxu1 %v5931_v34 }
 0x210   :  { %v1538_v62 = vpop.f32.mrf.mxu0 }
 0x211   :  { %v1539_v59 = vadd.f32 %v1538_v62, %v7602_v10  ;;  %v1849_v29 = vadd.f32 %v1848_v28, %v1745_v53 }
 0x213   :  { %v1643_v43 = vadd.f32 %v1642_v36, %v1539_v59  ;;  %v2782_v62 = vmax.f32 %v1849_v29, 0.0 }
 0x216   :  { %v1746_v38 = vpop.f32.mrf.mxu2 }
 0x217   :  { %v1747_v56 = vadd.f32 %v1746_v38, %v1643_v43  ;;  %v1850_v33 = vpop.f32.mrf.mxu3  ;;  %v1645_v11 = vpop.f32.mrf.mxu1 }
 0x218   :  { %v1541_v22 = vpop.f32.mrf.mxu0 }
 0x219   :  { %v1542_v61 = vadd.f32 %v1541_v22, %v7602_v10  ;;  %v1851_v20 = vadd.f32 %v1850_v33, %v1747_v56 }
 0x21a   :  { %1684 = vmatmul.bf16.gmra.mxu1 %v8746_v60 }
 0x21b   :  { %v1646_v31 = vadd.f32 %v1645_v11, %v1542_v61  ;;  %1580 = vmatmul.bf16.gmra.mxu0 %v8745_v63  ;;  %v2786_v41 = vmax.f32 %v1851_v20, 0.0  ;;  %1788 = vmatmul.bf16.gmra.mxu2 %v8747_v52  ;;  %v6887_v52 = vld [vmem:[#allocation5 + $0x334] sm:$0xf0] }
 0x21c   :  { %1892 = vmatmul.bf16.gmra.mxu3 %v8748_v23 }
 0x21d   :  { %v7633_v59 = vpack.c.bf16 %v2786_v41, %v2782_v62  ;;  %v8750_v41 = vld [vmem:[#allocation36_spill] sm:$0xff] }
 0x21e   :  { %v1749_v32 = vpop.f32.mrf.mxu2 }
 0x21f   :  { %8749 = vst [vmem:[#allocation31_spill] sm:$0xff] %v7633_v59  ;;  %v1750_v36 = vadd.f32 %v1749_v32, %v1646_v31  ;;  %v1853_v43 = vpop.f32.mrf.mxu3  ;;  %v1647_v33 = vpop.f32.mrf.mxu1  ;;  %v8751_v32 = vld [vmem:[#allocation37_spill] sm:$0xff]  ;;  %v8752_v59 = vld [vmem:[#allocation38_spill] sm:$0xff] }
 0x220   :  { %v1543_v53 = vpop.f32.mrf.mxu0 }
 0x221   :  { %v1544_v28 = vadd.f32 %v1543_v53, %v7602_v10  ;;  %v1854_v30 = vadd.f32 %v1853_v43, %v1750_v36  ;;  %v8753_v53 = vld [vmem:[#allocation39_spill] sm:$0xff] }
 0x223   :  { %v1648_v34 = vadd.f32 %v1647_v33, %v1544_v28  ;;  %v2790_v62 = vmax.f32 %v1854_v30, 0.0  ;;  %v6855_v30 = vld [vmem:[#allocation5 + $0x234] sm:$0xf0] }
 0x226   :  { %v1751_v38 = vpop.f32.mrf.mxu2 }
 0x227   :  { %v1752_v29 = vadd.f32 %v1751_v38, %v1648_v34  ;;  %v1855_v56 = vpop.f32.mrf.mxu3  ;;  %v1650_v11 = vpop.f32.mrf.mxu1 }
 0x228   :  { %v1546_v22 = vpop.f32.mrf.mxu0 }
 0x229   :  { %v1547_v61 = vadd.f32 %v1546_v22, %v7602_v10  ;;  %v1856_v20 = vadd.f32 %v1855_v56, %v1752_v29 }
 0x22a   :  { %1689 = vmatmul.bf16.gmra.mxu1 %v8751_v32  ;;  %v6791_v32 = vld [vmem:[#allocation5 + $0x34] sm:$0xf0] }
 0x22b   :  { %v1651_v23 = vadd.f32 %v1650_v11, %v1547_v61  ;;  %1585 = vmatmul.bf16.gmra.mxu0 %v8750_v41  ;;  %v2794_v31 = vmax.f32 %v1856_v20, 0.0  ;;  %1793 = vmatmul.bf16.gmra.mxu2 %v8752_v59  ;;  %v6042_v61 = vld [vmem:[#allocation5 + $0x228] sm:$0xf] }
 0x22c   :  { %1897 = vmatmul.bf16.gmra.mxu3 %v8753_v53  ;;  %v6043_v11 = vor.u32 %v6855_v30, %v6042_v61  ;;  %v5786_v20 = vld [vmem:[#allocation5 + $0x28] sm:$0xf] }
 0x22d   :  { %v7641_v36 = vpack.c.bf16 %v2794_v31, %v2790_v62  ;;  %v6170_v41 = vld [vmem:[#allocation5 + $0x328] sm:$0xf]  ;;  %v5787_v59 = vor.u32 %v6791_v32, %v5786_v20  ;;  %v6823_v62 = vld [vmem:[#allocation5 + $0x134] sm:$0xf0] }
 0x22e   :  { %v1754_v43 = vpop.f32.mrf.mxu2  ;;  %v5914_v53 = vld [vmem:[#allocation5 + $0x128] sm:$0xf]  ;;  %2147 = vmatpush.bf16.msra.mxu2 %v6043_v11 }
 0x22f   :  { %8754 = vst [vmem:[#allocation74_spill] sm:$0xff] %v7641_v36  ;;  %v1755_v28 = vadd.f32 %v1754_v43, %v1651_v23  ;;  %v1858_v33 = vpop.f32.mrf.mxu3  ;;  %v1652_v29 = vpop.f32.mrf.mxu1  ;;  %v6171_v23 = vor.u32 %v6887_v52, %v6170_v41  ;;  %v5915_v43 = vor.u32 %v6823_v62, %v5914_v53  ;;  %1939 = vmatpush.bf16.msra.mxu0 %v5787_v59 }
 0x230   :  { %v1548_v34 = vpop.f32.mrf.mxu0 }
 0x231   :  { %v1549_v38 = vadd.f32 %v1548_v34, %v7602_v10  ;;  %v1859_v56 = vadd.f32 %v1858_v33, %v1755_v28  ;;  %2251 = vmatpush.bf16.msra.mxu3 %v6171_v23  ;;  %2043 = vmatpush.bf16.msra.mxu1 %v5915_v43 }
 0x233   :  { %v1653_v22 = vadd.f32 %v1652_v29, %v1549_v38  ;;  %v2798_v32 = vmax.f32 %v1859_v56, 0.0 }
 0x236   :  { %v1756_v31 = vpop.f32.mrf.mxu2 }
 0x237   :  { %v1757_v36 = vadd.f32 %v1756_v31, %v1653_v22  ;;  %v1860_v60 = vpop.f32.mrf.mxu3  ;;  %v1655_v33 = vpop.f32.mrf.mxu1 }
 0x238   :  { %v1551_v34 = vpop.f32.mrf.mxu0 }
 0x239   :  { %v1552_v28 = vadd.f32 %v1551_v34, %v7602_v10  ;;  %v1861_v38 = vadd.f32 %v1860_v60, %v1757_v36 }
 0x23a   :  { %1694 = vmatmul.bf16.gmra.mxu1 %v7444_v57 }
 0x23b   :  { %v1656_v29 = vadd.f32 %v1655_v33, %v1552_v28  ;;  %1590 = vmatmul.bf16.gmra.mxu0 %v7442_v9  ;;  %v2802_v61 = vmax.f32 %v1861_v38, 0.0  ;;  %1798 = vmatmul.bf16.gmra.mxu2 %v7446_v42 }
 0x23c   :  { %1902 = vmatmul.bf16.gmra.mxu3 %v7449_v40 }
 0x23d   :  { %v7649_v52 = vpack.c.bf16 %v2802_v61, %v2798_v32  ;;  %v8757_v32 = vld [vmem:[#allocation44_spill] sm:$0xff]  ;;  %v8758_v61 = vld [vmem:[#allocation45_spill] sm:$0xff] }
 0x23e   :  { %v1759_v59 = vpop.f32.mrf.mxu2 }
 0x23f   :  { %8755 = vst [vmem:[#allocation75_spill] sm:$0xff] %v7649_v52  ;;  %v1760_v41 = vadd.f32 %v1759_v59, %v1656_v29  ;;  %v1863_v53 = vpop.f32.mrf.mxu3  ;;  %v1657_v60 = vpop.f32.mrf.mxu1  ;;  %v8756_v29 = vld [vmem:[#allocation43_spill] sm:$0xff] }
 0x240   :  { %v1553_v22 = vpop.f32.mrf.mxu0 }
 0x241   :  { %v1554_v30 = vadd.f32 %v1553_v22, %v7602_v10  ;;  %v1864_v36 = vadd.f32 %v1863_v53, %v1760_v41 }
 0x243   :  { %v1658_v11 = vadd.f32 %v1657_v60, %v1554_v30  ;;  %v2806_v33 = vmax.f32 %v1864_v36, 0.0  ;;  %v6851_v36 = vld [vmem:[#allocation5 + $0x214] sm:$0xf0] }
 0x246   :  { %v1761_v20 = vpop.f32.mrf.mxu2 }
 0x247   :  { %v1762_v56 = vadd.f32 %v1761_v20, %v1658_v11  ;;  %v1865_v62 = vpop.f32.mrf.mxu3  ;;  %v1660_v43 = vpop.f32.mrf.mxu1 }
 0x248   :  { %v1556_v31 = vpop.f32.mrf.mxu0 }
 0x249   :  { %v1557_v23 = vadd.f32 %v1556_v31, %v7602_v10  ;;  %v1866_v34 = vadd.f32 %v1865_v62, %v1762_v56  ;;  %v6026_v62 = vld [vmem:[#allocation5 + $0x208] sm:$0xf] }
 0x24a   :  { %1699 = vmatmul.bf16.gmra.mxu1 %v8756_v29  ;;  %v6027_v31 = vor.u32 %v6851_v36, %v6026_v62  ;;  %v6154_v62 = vld [vmem:[#allocation5 + $0x308] sm:$0xf] }
 0x24b   :  { %v1661_v28 = vadd.f32 %v1660_v43, %v1557_v23  ;;  %1595 = vmatmul.bf16.gmra.mxu0 %v7458_v35  ;;  %v2810_v38 = vmax.f32 %v1866_v34, 0.0  ;;  %1803 = vmatmul.bf16.gmra.mxu2 %v8757_v32  ;;  %v8761_v32 = vld [vmem:[#allocation48_spill] sm:$0xff] }
 0x24c   :  { %1907 = vmatmul.bf16.gmra.mxu3 %v8758_v61  ;;  %2148 = vmatpush.bf16.msra.mxu2 %v6027_v31  ;;  %v6883_v31 = vld [vmem:[#allocation5 + $0x314] sm:$0xf0]  ;;  %v8765_v35 = vld [vmem:[#allocation52_spill] sm:$0xff] }
 0x24d   :  { %v7657_v59 = vpack.c.bf16 %v2810_v38, %v2806_v33 }
 0x24e   :  { %v1764_v41 = vpop.f32.mrf.mxu2 }
 0x24f   :  { %8759 = vst [vmem:[#allocation76_spill] sm:$0xff] %v7657_v59  ;;  %v1765_v53 = vadd.f32 %v1764_v41, %v1661_v28  ;;  %v1868_v22 = vpop.f32.mrf.mxu3  ;;  %v1662_v11 = vpop.f32.mrf.mxu1  ;;  %v8760_v41 = vld [vmem:[#allocation47_spill] sm:$0xff] }
 0x250   :  { %v1558_v30 = vpop.f32.mrf.mxu0 }
 0x251   :  { %v1559_v60 = vadd.f32 %v1558_v30, %v7602_v10  ;;  %v1869_v20 = vadd.f32 %v1868_v22, %v1765_v53  ;;  %v8762_v53 = vld [vmem:[#allocation49_spill] sm:$0xff]  ;;  %v8763_v22 = vld [vmem:[#allocation50_spill] sm:$0xff] }
 0x253   :  { %v1663_v56 = vadd.f32 %v1662_v11, %v1559_v60  ;;  %v2814_v61 = vmax.f32 %v1869_v20, 0.0  ;;  %v5770_v11 = vld [vmem:[#allocation5 + $0x8] sm:$0xf] }
 0x256   :  { %v1766_v23 = vpop.f32.mrf.mxu2 }
 0x257   :  { %v1767_v43 = vadd.f32 %v1766_v23, %v1663_v56  ;;  %v1870_v34 = vpop.f32.mrf.mxu3  ;;  %v1665_v38 = vpop.f32.mrf.mxu1  ;;  %v6787_v56 = vld [vmem:[#allocation5 + $0x14] sm:$0xf0]  ;;  %v5898_v23 = vld [vmem:[#allocation5 + $0x108] sm:$0xf] }
 0x258   :  { %v1561_v52 = vpop.f32.mrf.mxu0 }
 0x259   :  { %v1562_v33 = vadd.f32 %v1561_v52, %v7602_v10  ;;  %v1871_v59 = vadd.f32 %v1870_v34, %v1767_v43  ;;  %v5771_v52 = vor.u32 %v6787_v56, %v5770_v11  ;;  %v6819_v43 = vld [vmem:[#allocation5 + $0x114] sm:$0xf0] }
 0x25a   :  { %1704 = vmatmul.bf16.gmra.mxu1 %v8761_v32 }
 0x25b   :  { %v1666_v28 = vadd.f32 %v1665_v38, %v1562_v33  ;;  %1600 = vmatmul.bf16.gmra.mxu0 %v8760_v41  ;;  %v2818_v30 = vmax.f32 %v1871_v59, 0.0  ;;  %1808 = vmatmul.bf16.gmra.mxu2 %v8762_v53  ;;  %v6155_v59 = vor.u32 %v6883_v31, %v6154_v62  ;;  %v5899_v38 = vor.u32 %v6819_v43, %v5898_v23  ;;  %v8766_v23 = vld [vmem:[#allocation53_spill] sm:$0xff]  ;;  %v8768_v43 = vld [vmem:[#allocation55_spill] sm:$0xff] }
 0x25c   :  { %1912 = vmatmul.bf16.gmra.mxu3 %v8763_v22  ;;  %1940 = vmatpush.bf16.msra.mxu0 %v5771_v52  ;;  %v8767_v52 = vld [vmem:[#allocation54_spill] sm:$0xff] }
 0x25d   :  { %v7665_v60 = vpack.c.bf16 %v2818_v30, %v2814_v61  ;;  %2252 = vmatpush.bf16.msra.mxu3 %v6155_v59  ;;  %2044 = vmatpush.bf16.msra.mxu1 %v5899_v38 }
 0x25e   :  { %v1769_v36 = vpop.f32.mrf.mxu2 }
 0x25f   :  { %8764 = vst [vmem:[#allocation77_spill] sm:$0xff] %v7665_v60  ;;  %v1770_v34 = vadd.f32 %v1769_v36, %v1666_v28  ;;  %v1873_v33 = vpop.f32.mrf.mxu3  ;;  %v1667_v53 = vpop.f32.mrf.mxu1 }
 0x260   :  { %v1563_v20 = vpop.f32.mrf.mxu0 }
 0x261   :  { %v1564_v32 = vadd.f32 %v1563_v20, %v7602_v10  ;;  %v1874_v22 = vadd.f32 %v1873_v33, %v1770_v34 }
 0x263   :  { %v1668_v61 = vadd.f32 %v1667_v53, %v1564_v32  ;;  %v2822_v62 = vmax.f32 %v1874_v22, 0.0 }
 0x266   :  { %v1771_v30 = vpop.f32.mrf.mxu2 }
 0x267   :  { %v1772_v60 = vadd.f32 %v1771_v30, %v1668_v61  ;;  %v1875_v41 = vpop.f32.mrf.mxu3  ;;  %v1670_v29 = vpop.f32.mrf.mxu1 }
 0x268   :  { %v1566_v11 = vpop.f32.mrf.mxu0 }
 0x269   :  { %v1567_v56 = vadd.f32 %v1566_v11, %v7602_v10  ;;  %v1876_v28 = vadd.f32 %v1875_v41, %v1772_v60 }
 0x26a   :  { %1709 = vmatmul.bf16.gmra.mxu1 %v8766_v23 }
 0x26b   :  { %v1671_v36 = vadd.f32 %v1670_v29, %v1567_v56  ;;  %1605 = vmatmul.bf16.gmra.mxu0 %v8765_v35  ;;  %v2826_v31 = vmax.f32 %v1876_v28, 0.0  ;;  %1813 = vmatmul.bf16.gmra.mxu2 %v8767_v52 }
 0x26c   :  { %1917 = vmatmul.bf16.gmra.mxu3 %v8768_v43 }
 0x26d   :  { %v7673_v32 = vpack.c.bf16 %v2826_v31, %v2822_v62  ;;  %v8770_v62 = vld [vmem:[#allocation57_spill] sm:$0xff] }
 0x26e   :  { %v1774_v53 = vpop.f32.mrf.mxu2 }
 0x26f   :  { %8769 = vst [vmem:[#allocation52_spill] sm:$0xff] %v7673_v32  ;;  %v1775_v34 = vadd.f32 %v1774_v53, %v1671_v36  ;;  %v1878_v33 = vpop.f32.mrf.mxu3  ;;  %v1672_v41 = vpop.f32.mrf.mxu1  ;;  %v8771_v53 = vld [vmem:[#allocation58_spill] sm:$0xff]  ;;  %v8772_v32 = vld [vmem:[#allocation59_spill] sm:$0xff] }
 0x270   :  { %v1568_v20 = vpop.f32.mrf.mxu0 }
 0x271   :  { %v1569_v59 = vadd.f32 %v1568_v20, %v7602_v10  ;;  %v1879_v29 = vadd.f32 %v1878_v33, %v1775_v34  ;;  %v8773_v20 = vld [vmem:[#allocation60_spill] sm:$0xff] }
 0x272   :  { %v6877_v33 = vld [vmem:[#allocation5 + $0x2ec] sm:$0xf] }
 0x273   :  { %v1673_v60 = vadd.f32 %v1672_v41, %v1569_v59  ;;  %v2830_v31 = vmax.f32 %v1879_v29, 0.0  ;;  %v6140_v59 = vld [vmem:[#allocation5 + $0x2f8] sm:$0xf0]  ;;  %v6813_v41 = vld [vmem:[#allocation5 + $0xec] sm:$0xf] }
 0x276   :  { %v1776_v38 = vpop.f32.mrf.mxu2 }
 0x277   :  { %v1777_v22 = vadd.f32 %v1776_v38, %v1673_v60  ;;  %v1880_v61 = vpop.f32.mrf.mxu3  ;;  %v1675_v56 = vpop.f32.mrf.mxu1  ;;  %v6143_v38 = vor.u32 %v6877_v33, %v6140_v59 }
 0x278   :  { %v1571_v30 = vpop.f32.mrf.mxu0 }
 0x279   :  { %v1572_v11 = vadd.f32 %v1571_v30, %v7602_v10  ;;  %v1881_v28 = vadd.f32 %v1880_v61, %v1777_v22  ;;  %v5884_v30 = vld [vmem:[#allocation5 + $0xf8] sm:$0xf0]  ;;  %v6909_v22 = vld [vmem:[#allocation5 + $0x3ec] sm:$0xf]  ;;  %2557 = vmatpush.bf16.msrb.mxu2 %v6143_v38 }
 0x27a   :  { %1714 = vmatmul.bf16.gmra.mxu1 %v8771_v53  ;;  %v6268_v61 = vld [vmem:[#allocation5 + $0x3f8] sm:$0xf0] }
 0x27b   :  { %v1676_v43 = vadd.f32 %v1675_v56, %v1572_v11  ;;  %1610 = vmatmul.bf16.gmra.mxu0 %v8770_v62  ;;  %v2834_v36 = vmax.f32 %v1881_v28, 0.0  ;;  %1818 = vmatmul.bf16.gmra.mxu2 %v8772_v32  ;;  %v5887_v28 = vor.u32 %v6813_v41, %v5884_v30  ;;  %v6271_v62 = vor.u32 %v6909_v22, %v6268_v61 }
 0x27c   :  { %1922 = vmatmul.bf16.gmra.mxu3 %v8773_v20 }
 0x27d   :  { %v7681_v34 = vpack.c.bf16 %v2834_v36, %v2830_v31  ;;  %2349 = vmatpush.bf16.msrb.mxu0 %v5887_v28  ;;  %2661 = vmatpush.bf16.msrb.mxu3 %v6271_v62  ;;  %v6845_v36 = vld [vmem:[#allocation5 + $0x1ec] sm:$0xf] }
 0x27e   :  { %v1779_v60 = vpop.f32.mrf.mxu2 }
 0x27f   :  { %8774 = vst [vmem:[#allocation78_spill] sm:$0xff] %v7681_v34  ;;  %v1780_v11 = vadd.f32 %v1779_v60, %v1676_v43  ;;  %v1883_v56 = vpop.f32.mrf.mxu3  ;;  %v1677_v32 = vpop.f32.mrf.mxu1  ;;  %v6012_v34 = vld [vmem:[#allocation5 + $0x1f8] sm:$0xf0] }
 0x280   :  { %v1573_v29 = vpop.f32.mrf.mxu0  ;;  %v6015_v52 = vor.u32 %v6845_v36, %v6012_v34 }
 0x281   :  { %v1574_v53 = vadd.f32 %v1573_v29, %v7602_v10  ;;  %v1884_v20 = vadd.f32 %v1883_v56, %v1780_v11 }
 0x282   :  { %2453 = vmatpush.bf16.msrb.mxu1 %v6015_v52 }
 0x283   :  { %v1678_v31 = vadd.f32 %v1677_v32, %v1574_v53  ;;  %v2838_v38 = vmax.f32 %v1884_v20, 0.0 }
 0x286   :  { %v1781_v33 = vpop.f32.mrf.mxu2 }
 0x287   :  { %v1782_v59 = vadd.f32 %v1781_v33, %v1678_v31  ;;  %v1885_v23 = vpop.f32.mrf.mxu3  ;;  %v1680_v41 = vpop.f32.mrf.mxu1 }
 0x288   :  { %v1576_v43 = vpop.f32.mrf.mxu0 }
 0x289   :  { %v1577_v60 = vadd.f32 %v1576_v43, %v7602_v10  ;;  %v1886_v30 = vadd.f32 %v1885_v23, %v1782_v59 }
 0x28a   :  { %1719 = vmatmul.bf16.gmra.mxu1 %v7524_v58 }
 0x28b   :  { %v1681_v22 = vadd.f32 %v1680_v41, %v1577_v60  ;;  %1615 = vmatmul.bf16.gmra.mxu0 %v7522_v8  ;;  %v2842_v61 = vmax.f32 %v1886_v30, 0.0  ;;  %1823 = vmatmul.bf16.gmra.mxu2 %v7526_v37 }
 0x28c   :  { %1927 = vmatmul.bf16.gmra.mxu3 %v7529_v21 }
 0x28d   :  { %v7689_v32 = vpack.c.bf16 %v2842_v61, %v2838_v38  ;;  %v8777_v38 = vld [vmem:[#allocation17_spill] sm:$0xff] }
 0x28e   :  { %v1784_v52 = vpop.f32.mrf.mxu2 }
 0x28f   :  { %8775 = vst [vmem:[#allocation79_spill] sm:$0xff] %v7689_v32  ;;  %v1785_v62 = vadd.f32 %v1784_v52, %v1681_v22  ;;  %v1888_v53 = vpop.f32.mrf.mxu3  ;;  %v1682_v23 = vpop.f32.mrf.mxu1  ;;  %v8776_v22 = vld [vmem:[#allocation16_spill] sm:$0xff]  ;;  %v6252_v32 = vld [vmem:[#allocation5 + $0x3d8] sm:$0xf0] }
 0x290   :  { %v1578_v34 = vpop.f32.mrf.mxu0 }
 0x291   :  { %v1579_v11 = vadd.f32 %v1578_v34, %v7602_v10  ;;  %v1889_v56 = vadd.f32 %v1888_v53, %v1785_v62 }
 0x293   :  { %v1683_v29 = vadd.f32 %v1682_v23, %v1579_v11  ;;  %v2846_v41 = vmax.f32 %v1889_v56, 0.0  ;;  %v6124_v56 = vld [vmem:[#allocation5 + $0x2d8] sm:$0xf0] }
 0x296   :  { %v1786_v28 = vpop.f32.mrf.mxu2 }
 0x297   :  { %v1787_v20 = vadd.f32 %v1786_v28, %v1683_v29  ;;  %v1890_v31 = vpop.f32.mrf.mxu3  ;;  %v1685_v59 = vpop.f32.mrf.mxu1 }
 0x298   :  { %v1581_v36 = vpop.f32.mrf.mxu0 }
 0x299   :  { %v1582_v33 = vadd.f32 %v1581_v36, %v7602_v10  ;;  %v1891_v43 = vadd.f32 %v1890_v31, %v1787_v20  ;;  %v6873_v20 = vld [vmem:[#allocation5 + $0x2cc] sm:$0xf] }
 0x29a   :  { %2045 = vmatmul.bf16.vlgmr.msra.gmra.mxu1 %v7268_v51  ;;  %v6127_v31 = vor.u32 %v6873_v20, %v6124_v56  ;;  %v6809_v36 = vld [vmem:[#allocation5 + $0xcc] sm:$0xf] }
 0x29b   :  { %v1686_v60 = vadd.f32 %v1685_v59, %v1582_v33  ;;  %1941 = vmatmul.bf16.vlgmr.msra.gmra.mxu0 %v7266_v47  ;;  %v2850_v30 = vmax.f32 %v1891_v43, 0.0  ;;  %2149 = vmatmul.bf16.vlgmr.msra.gmra.mxu2 %v8776_v22  ;;  %v5868_v33 = vld [vmem:[#allocation5 + $0xd8] sm:$0xf0]  ;;  %v6905_v59 = vld [vmem:[#allocation5 + $0x3cc] sm:$0xf] }
 0x29c   :  { %2253 = vmatmul.bf16.vlgmr.msra.gmra.mxu3 %v8777_v38  ;;  %v5871_v43 = vor.u32 %v6809_v36, %v5868_v33  ;;  %v6841_v38 = vld [vmem:[#allocation5 + $0x1cc] sm:$0xf]  ;;  %2558 = vmatpush.bf16.msrb.mxu2 %v6127_v31 }
 0x29d   :  { %v7697_v61 = vpack.c.bf16 %v2850_v30, %v2846_v41  ;;  %v5996_v41 = vld [vmem:[#allocation5 + $0x1d8] sm:$0xf0] }
 0x29e   :  { %v1789_v52 = vpop.f32.mrf.mxu2  ;;  %2350 = vmatpush.bf16.msrb.mxu0 %v5871_v43 }
 0x29f   :  { %8778 = vst [vmem:[#allocation80_spill] sm:$0xff] %v7697_v61  ;;  %v1790_v62 = vadd.f32 %v1789_v52, %v1686_v60  ;;  %v1893_v53 = vpop.f32.mrf.mxu3  ;;  %v1687_v23 = vpop.f32.mrf.mxu1  ;;  %v6255_v60 = vor.u32 %v6905_v59, %v6252_v32  ;;  %v5999_v52 = vor.u32 %v6841_v38, %v5996_v41 }
 0x2a0   :  { %v1583_v34 = vpop.f32.mrf.mxu0 }
 0x2a1   :  { %v1584_v11 = vadd.f32 %v1583_v34, %v7602_v10  ;;  %v1894_v29 = vadd.f32 %v1893_v53, %v1790_v62  ;;  %2662 = vmatpush.bf16.msrb.mxu3 %v6255_v60  ;;  %2454 = vmatpush.bf16.msrb.mxu1 %v5999_v52 }
 0x2a3   :  { %v1688_v28 = vadd.f32 %v1687_v23, %v1584_v11  ;;  %v2854_v20 = vmax.f32 %v1894_v29, 0.0 }
 0x2a6   :  { %v1791_v30 = vpop.f32.mrf.mxu2 }
 0x2a7   :  { %v1792_v61 = vadd.f32 %v1791_v30, %v1688_v28  ;;  %v1895_v22 = vpop.f32.mrf.mxu3  ;;  %v1690_v53 = vpop.f32.mrf.mxu1 }
 0x2a8   :  { %v1586_v34 = vpop.f32.mrf.mxu0 }
 0x2a9   :  { %v1587_v62 = vadd.f32 %v1586_v34, %v7602_v10  ;;  %v1896_v11 = vadd.f32 %v1895_v22, %v1792_v61 }
 0x2aa   :  { %2050 = vmatmul.bf16.gmra.mxu1 %v7280_v13 }
 0x2ab   :  { %v1691_v23 = vadd.f32 %v1690_v53, %v1587_v62  ;;  %1946 = vmatmul.bf16.gmra.mxu0 %v7278_v12  ;;  %v2858_v56 = vmax.f32 %v1896_v11, 0.0  ;;  %2154 = vmatmul.bf16.gmra.mxu2 %v7282_v14 }
 0x2ac   :  { %2258 = vmatmul.bf16.gmra.mxu3 %v7284_v15 }
 0x2ad   :  { %v7705_v32 = vpack.c.bf16 %v2858_v56, %v2854_v20 }
 0x2ae   :  { %v1794_v38 = vpop.f32.mrf.mxu2 }
 0x2af   :  { %8779 = vst [vmem:[#allocation81_spill] sm:$0xff] %v7705_v32  ;;  %v1795_v28 = vadd.f32 %v1794_v38, %v1691_v23  ;;  %v1898_v31 = vpop.f32.mrf.mxu3  ;;  %v1692_v22 = vpop.f32.mrf.mxu1 }
 0x2b0   :  { %v1588_v36 = vpop.f32.mrf.mxu0 }
 0x2b1   :  { %v1589_v33 = vadd.f32 %v1588_v36, %v7602_v10  ;;  %v1899_v61 = vadd.f32 %v1898_v31, %v1795_v28 }
 0x2b3   :  { %v1693_v59 = vadd.f32 %v1692_v22, %v1589_v33  ;;  %v2862_v53 = vmax.f32 %v1899_v61, 0.0 }
 0x2b6   :  { %v1796_v43 = vpop.f32.mrf.mxu2 }
 0x2b7   :  { %v1797_v29 = vadd.f32 %v1796_v43, %v1693_v59  ;;  %v1900_v41 = vpop.f32.mrf.mxu3  ;;  %v1695_v52 = vpop.f32.mrf.mxu1 }
 0x2b8   :  { %v1591_v30 = vpop.f32.mrf.mxu0 }
 0x2b9   :  { %v1592_v60 = vadd.f32 %v1591_v30, %v7602_v10  ;;  %v1901_v34 = vadd.f32 %v1900_v41, %v1797_v29 }
 0x2ba   :  { %2055 = vmatmul.bf16.gmra.mxu1 %v7292_v25 }
 0x2bb   :  { %v1696_v62 = vadd.f32 %v1695_v52, %v1592_v60  ;;  %1951 = vmatmul.bf16.gmra.mxu0 %v7290_v24  ;;  %v2866_v11 = vmax.f32 %v1901_v34, 0.0  ;;  %2159 = vmatmul.bf16.gmra.mxu2 %v7294_v26 }
 0x2bc   :  { %2263 = vmatmul.bf16.gmra.mxu3 %v7296_v27 }
 0x2bd   :  { %v7713_v23 = vpack.c.bf16 %v2866_v11, %v2862_v53  ;;  %v6869_v11 = vld [vmem:[#allocation5 + $0x2ac] sm:$0xf] }
 0x2be   :  { %v1799_v20 = vpop.f32.mrf.mxu2 }
 0x2bf   :  { %8780 = vst [vmem:[#allocation82_spill] sm:$0xff] %v7713_v23  ;;  %v1800_v56 = vadd.f32 %v1799_v20, %v1696_v62  ;;  %v1903_v38 = vpop.f32.mrf.mxu3  ;;  %v1697_v36 = vpop.f32.mrf.mxu1  ;;  %v6108_v20 = vld [vmem:[#allocation5 + $0x2b8] sm:$0xf0] }
 0x2c0   :  { %v1593_v28 = vpop.f32.mrf.mxu0 }
 0x2c1   :  { %v1594_v31 = vadd.f32 %v1593_v28, %v7602_v10  ;;  %v1904_v33 = vadd.f32 %v1903_v38, %v1800_v56  ;;  %v6805_v56 = vld [vmem:[#allocation5 + $0xac] sm:$0xf]  ;;  %v6111_v28 = vor.u32 %v6869_v11, %v6108_v20 }
 0x2c3   :  { %v1698_v22 = vadd.f32 %v1697_v36, %v1594_v31  ;;  %v2870_v34 = vmax.f32 %v1904_v33, 0.0  ;;  %v5852_v31 = vld [vmem:[#allocation5 + $0xb8] sm:$0xf0]  ;;  %v6901_v36 = vld [vmem:[#allocation5 + $0x3ac] sm:$0xf]  ;;  %2559 = vmatpush.bf16.msrb.mxu2 %v6111_v28 }
 0x2c6   :  { %v1801_v59 = vpop.f32.mrf.mxu2 }
 0x2c7   :  { %v1802_v61 = vadd.f32 %v1801_v59, %v1698_v22  ;;  %v1905_v43 = vpop.f32.mrf.mxu3  ;;  %v1700_v30 = vpop.f32.mrf.mxu1  ;;  %v6236_v22 = vld [vmem:[#allocation5 + $0x3b8] sm:$0xf0] }
 0x2c8   :  { %v1596_v29 = vpop.f32.mrf.mxu0 }
 0x2c9   :  { %v1597_v41 = vadd.f32 %v1596_v29, %v7602_v10  ;;  %v1906_v60 = vadd.f32 %v1905_v43, %v1802_v61  ;;  %v5855_v43 = vor.u32 %v6805_v56, %v5852_v31  ;;  %v6239_v29 = vor.u32 %v6901_v36, %v6236_v22 }
 0x2ca   :  { %2060 = vmatmul.bf16.gmra.mxu1 %v7304_v46 }
 0x2cb   :  { %v1701_v52 = vadd.f32 %v1700_v30, %v1597_v41  ;;  %1956 = vmatmul.bf16.gmra.mxu0 %v7302_v45  ;;  %v2874_v62 = vmax.f32 %v1906_v60, 0.0  ;;  %2164 = vmatmul.bf16.gmra.mxu2 %v7306_v48  ;;  %v6837_v41 = vld [vmem:[#allocation5 + $0x1ac] sm:$0xf]  ;;  %v5980_v30 = vld [vmem:[#allocation5 + $0x1b8] sm:$0xf0] }
 0x2cc   :  { %2268 = vmatmul.bf16.gmra.mxu3 %v7308_v49  ;;  %2351 = vmatpush.bf16.msrb.mxu0 %v5855_v43 }
 0x2cd   :  { %v7721_v53 = vpack.c.bf16 %v2874_v62, %v2870_v34  ;;  %v5983_v34 = vor.u32 %v6837_v41, %v5980_v30  ;;  %2663 = vmatpush.bf16.msrb.mxu3 %v6239_v29 }
 0x2ce   :  { %v1804_v38 = vpop.f32.mrf.mxu2 }
 0x2cf   :  { %8781 = vst [vmem:[#allocation83_spill] sm:$0xff] %v7721_v53  ;;  %v1805_v59 = vadd.f32 %v1804_v38, %v1701_v52  ;;  %v1908_v61 = vpop.f32.mrf.mxu3  ;;  %v1702_v23 = vpop.f32.mrf.mxu1  ;;  %2455 = vmatpush.bf16.msrb.mxu1 %v5983_v34 }
 0x2d0   :  { %v1598_v33 = vpop.f32.mrf.mxu0 }
 0x2d1   :  { %v1599_v60 = vadd.f32 %v1598_v33, %v7602_v10  ;;  %v1909_v62 = vadd.f32 %v1908_v61, %v1805_v59 }
 0x2d3   :  { %v1703_v53 = vadd.f32 %v1702_v23, %v1599_v60  ;;  %v2878_v22 = vmax.f32 %v1909_v62, 0.0 }
 0x2d6   :  { %v1806_v11 = vpop.f32.mrf.mxu2 }
 0x2d7   :  { %v1807_v20 = vadd.f32 %v1806_v11, %v1703_v53  ;;  %v1910_v32 = vpop.f32.mrf.mxu3  ;;  %v1705_v56 = vpop.f32.mrf.mxu1 }
 0x2d8   :  { %v1601_v52 = vpop.f32.mrf.mxu0 }
 0x2d9   :  { %v1602_v38 = vadd.f32 %v1601_v52, %v7602_v10  ;;  %v1911_v31 = vadd.f32 %v1910_v32, %v1807_v20 }
 0x2da   :  { %2065 = vmatmul.bf16.gmra.mxu1 %v7316_v1 }
 0x2db   :  { %v1706_v36 = vadd.f32 %v1705_v56, %v1602_v38  ;;  %1961 = vmatmul.bf16.gmra.mxu0 %v7314_v0  ;;  %v2882_v33 = vmax.f32 %v1911_v31, 0.0  ;;  %2169 = vmatmul.bf16.gmra.mxu2 %v7318_v2 }
 0x2dc   :  { %2273 = vmatmul.bf16.gmra.mxu3 %v7320_v3 }
 0x2dd   :  { %v7729_v23 = vpack.c.bf16 %v2882_v33, %v2878_v22  ;;  %v6865_v22 = vld [vmem:[#allocation5 + $0x28c] sm:$0xf]  ;;  %v6092_v33 = vld [vmem:[#allocation5 + $0x298] sm:$0xf0] }
 0x2de   :  { %v1809_v53 = vpop.f32.mrf.mxu2 }
 0x2df   :  { %8782 = vst [vmem:[#allocation84_spill] sm:$0xff] %v7729_v23  ;;  %v1810_v28 = vadd.f32 %v1809_v53, %v1706_v36  ;;  %v1913_v59 = vpop.f32.mrf.mxu3  ;;  %v1707_v32 = vpop.f32.mrf.mxu1 }
 0x2e0   :  { %v1603_v61 = vpop.f32.mrf.mxu0 }
 0x2e1   :  { %v1604_v43 = vadd.f32 %v1603_v61, %v7602_v10  ;;  %v1914_v29 = vadd.f32 %v1913_v59, %v1810_v28  ;;  %v6095_v28 = vor.u32 %v6865_v22, %v6092_v33 }
 0x2e3   :  { %v1708_v41 = vadd.f32 %v1707_v32, %v1604_v43  ;;  %v2886_v56 = vmax.f32 %v1914_v29, 0.0  ;;  %2560 = vmatpush.bf16.msrb.mxu2 %v6095_v28 }
 0x2e6   :  { %v1811_v30 = vpop.f32.mrf.mxu2 }
 0x2e7   :  { %v1812_v60 = vadd.f32 %v1811_v30, %v1708_v41  ;;  %v1915_v34 = vpop.f32.mrf.mxu3  ;;  %v1710_v20 = vpop.f32.mrf.mxu1 }
 0x2e8   :  { %v1606_v62 = vpop.f32.mrf.mxu0 }
 0x2e9   :  { %v1607_v11 = vadd.f32 %v1606_v62, %v7602_v10  ;;  %v1916_v52 = vadd.f32 %v1915_v34, %v1812_v60  ;;  %v6801_v60 = vld [vmem:[#allocation5 + $0x8c] sm:$0xf]  ;;  %v5836_v34 = vld [vmem:[#allocation5 + $0x98] sm:$0xf0] }
 0x2ea   :  { %2070 = vmatmul.bf16.gmra.mxu1 %v7328_v17  ;;  %v5839_v62 = vor.u32 %v6801_v60, %v5836_v34 }
 0x2eb   :  { %v1711_v38 = vadd.f32 %v1710_v20, %v1607_v11  ;;  %1966 = vmatmul.bf16.gmra.mxu0 %v7326_v16  ;;  %v2890_v31 = vmax.f32 %v1916_v52, 0.0  ;;  %2174 = vmatmul.bf16.gmra.mxu2 %v7330_v18  ;;  %v6897_v11 = vld [vmem:[#allocation5 + $0x38c] sm:$0xf]  ;;  %v6220_v20 = vld [vmem:[#allocation5 + $0x398] sm:$0xf0] }
 0x2ec   :  { %2278 = vmatmul.bf16.gmra.mxu3 %v7332_v19  ;;  %v6833_v52 = vld [vmem:[#allocation5 + $0x18c] sm:$0xf]  ;;  %2352 = vmatpush.bf16.msrb.mxu0 %v5839_v62 }
 0x2ed   :  { %v7737_v36 = vpack.c.bf16 %v2890_v31, %v2886_v56  ;;  %v6223_v56 = vor.u32 %v6897_v11, %v6220_v20  ;;  %v5964_v31 = vld [vmem:[#allocation5 + $0x198] sm:$0xf0] }
 0x2ee   :  { %v1814_v53 = vpop.f32.mrf.mxu2  ;;  %v5967_v22 = vor.u32 %v6833_v52, %v5964_v31 }
 0x2ef   :  { %8783 = vst [vmem:[#allocation85_spill] sm:$0xff] %v7737_v36  ;;  %v1815_v59 = vadd.f32 %v1814_v53, %v1711_v38  ;;  %v1918_v61 = vpop.f32.mrf.mxu3  ;;  %v1712_v41 = vpop.f32.mrf.mxu1  ;;  %2664 = vmatpush.bf16.msrb.mxu3 %v6223_v56 }
 0x2f0   :  { %v1608_v43 = vpop.f32.mrf.mxu0  ;;  %2456 = vmatpush.bf16.msrb.mxu1 %v5967_v22 }
 0x2f1   :  { %v1609_v32 = vadd.f32 %v1608_v43, %v7602_v10  ;;  %v1919_v29 = vadd.f32 %v1918_v61, %v1815_v59 }
 0x2f3   :  { %v1713_v30 = vadd.f32 %v1712_v41, %v1609_v32  ;;  %v2894_v32 = vmax.f32 %v1919_v29, 0.0 }
 0x2f6   :  { %v1816_v36 = vpop.f32.mrf.mxu2 }
 0x2f7   :  { %v1817_v38 = vadd.f32 %v1816_v36, %v1713_v30  ;;  %v1920_v33 = vpop.f32.mrf.mxu3  ;;  %v1715_v28 = vpop.f32.mrf.mxu1 }
 0x2f8   :  { %v1611_v53 = vpop.f32.mrf.mxu0 }
 0x2f9   :  { %v1612_v43 = vadd.f32 %v1611_v53, %v7602_v10  ;;  %v1921_v59 = vadd.f32 %v1920_v33, %v1817_v38 }
 0x2fa   :  { %2075 = vmatmul.bf16.gmra.mxu1 %v7340_v50 }
 0x2fb   :  { %v1716_v61 = vadd.f32 %v1715_v28, %v1612_v43  ;;  %1971 = vmatmul.bf16.gmra.mxu0 %v7338_v44  ;;  %v2898_v41 = vmax.f32 %v1921_v59, 0.0  ;;  %2179 = vmatmul.bf16.gmra.mxu2 %v7342_v54 }
 0x2fc   :  { %2283 = vmatmul.bf16.gmra.mxu3 %v7344_v55 }
 0x2fd   :  { %v7745_v36 = vpack.c.bf16 %v2898_v41, %v2894_v32 }
 0x2fe   :  { %v1819_v30 = vpop.f32.mrf.mxu2 }
 0x2ff   :  { %8784 = vst [vmem:[#allocation86_spill] sm:$0xff] %v7745_v36  ;;  %v1820_v60 = vadd.f32 %v1819_v30, %v1716_v61  ;;  %v1923_v34 = vpop.f32.mrf.mxu3  ;;  %v1717_v20 = vpop.f32.mrf.mxu1 }
 0x300   :  { %v1613_v62 = vpop.f32.mrf.mxu0 }
 0x301   :  { %v1614_v11 = vadd.f32 %v1613_v62, %v7602_v10  ;;  %v1924_v52 = vadd.f32 %v1923_v34, %v1820_v60 }
 0x303   :  { %v1718_v56 = vadd.f32 %v1717_v20, %v1614_v11  ;;  %v2902_v59 = vmax.f32 %v1924_v52, 0.0 }
 0x306   :  { %v1821_v31 = vpop.f32.mrf.mxu2 }
 0x307   :  { %v1822_v29 = vadd.f32 %v1821_v31, %v1718_v56  ;;  %v1925_v22 = vpop.f32.mrf.mxu3  ;;  %v1720_v53 = vpop.f32.mrf.mxu1  ;;  %v7051_v31 = vld [vmem:[#allocation7] sm:$0xf] }
 0x308   :  { %v1616_v38 = vpop.f32.mrf.mxu0  ;;  %v7756_v52 = vperm.slane %v7051_v31, 2 }
 0x309   :  { %v1617_v33 = vadd.f32 %v1616_v38, %v7602_v10  ;;  %v1926_v43 = vadd.f32 %v1925_v22, %v1822_v29  ;;  %v6861_v29 = vld [vmem:[#allocation5 + $0x26c] sm:$0xf]  ;;  %v6076_v22 = vld [vmem:[#allocation5 + $0x278] sm:$0xf0] }
 0x30a   :  { %2080 = vmatmul.bf16.gmra.mxu1 %v7352_v5  ;;  %v6079_v38 = vor.u32 %v6861_v29, %v6076_v22  ;;  %v8786_v29 = vld [vmem:[#allocation18_spill] sm:$0xff]  ;;  %v8787_v22 = vld [vmem:[#allocation19_spill] sm:$0xff] }
 0x30b   :  { %v1721_v28 = vadd.f32 %v1720_v53, %v1617_v33  ;;  %1976 = vmatmul.bf16.gmra.mxu0 %v7350_v4  ;;  %v2906_v61 = vmax.f32 %v1926_v43, 0.0  ;;  %2184 = vmatmul.bf16.gmra.mxu2 %v7354_v6  ;;  %v6797_v33 = vld [vmem:[#allocation5 + $0x6c] sm:$0xf]  ;;  %v5820_v53 = vld [vmem:[#allocation5 + $0x78] sm:$0xf0] }
 0x30c   :  { %2288 = vmatmul.bf16.gmra.mxu3 %v7356_v7  ;;  %v6893_v43 = vld [vmem:[#allocation5 + $0x36c] sm:$0xf]  ;;  %2561 = vmatpush.bf16.msrb.mxu2 %v6079_v38 }
 0x30d   :  { %v7753_v32 = vpack.c.bf16 %v2906_v61, %v2902_v59  ;;  %v5823_v59 = vor.u32 %v6797_v33, %v5820_v53  ;;  %v6204_v61 = vld [vmem:[#allocation5 + $0x378] sm:$0xf0]  ;;  %v8788_v38 = vld [vmem:[#allocation20_spill] sm:$0xff] }
 0x30e   :  { %v1824_v41 = vpop.f32.mrf.mxu2  ;;  %v5948_v33 = vld [vmem:[#allocation5 + $0x178] sm:$0xf0] }
 0x30f   :  { %8785 = vst [vmem:[#allocation87_spill] sm:$0xff] %v7753_v32  ;;  %v1825_v30 = vadd.f32 %v1824_v41, %v1721_v28  ;;  %v1928_v60 = vpop.f32.mrf.mxu3  ;;  %v1722_v11 = vpop.f32.mrf.mxu1  ;;  %v6207_v28 = vor.u32 %v6893_v43, %v6204_v61  ;;  %2353 = vmatpush.bf16.msrb.mxu0 %v5823_v59 }
 0x310   :  { %v1618_v34 = vpop.f32.mrf.mxu0 }
 0x311   :  { %v1619_v62 = vadd.f32 %v1618_v34, %v7602_v10  ;;  %v1929_v20 = vadd.f32 %v1928_v60, %v1825_v30  ;;  %2665 = vmatpush.bf16.msrb.mxu3 %v6207_v28 }
 0x313   :  { %v1723_v56 = vadd.f32 %v1722_v11, %v1619_v62  ;;  %v2910_v11 = vmax.f32 %v1929_v20, 0.0 }
 0x316   :  { %v1826_v32 = vpop.f32.mrf.mxu2 }
 0x317   :  { %v1827_v41 = vadd.f32 %v1826_v32, %v1723_v56  ;;  %v1930_v36 = vpop.f32.mrf.mxu3  ;;  %v2046_v60 = vpop.f32.mrf.mxu1  ;;  %v6829_v56 = vld [vmem:[#allocation5 + $0x16c] sm:$0xf] }
 0x318   :  { %v1942_v10 = vpop.f32.mrf.mxu0  ;;  %v5951_v43 = vor.u32 %v6829_v56, %v5948_v33  ;;  %v8791_v33 = vld [vmem:[#allocation22_spill] sm:$0xff] }
 0x319   :  { %v1943_v30 = vadd.f32 %v1942_v10, %v7756_v52  ;;  %v1931_v34 = vadd.f32 %v1930_v36, %v1827_v41 }
 0x31a   :  { %2085 = vmatmul.bf16.gmra.mxu1 %v8786_v29 }
 0x31b   :  { %v2047_v62 = vadd.f32 %v2046_v60, %v1943_v30  ;;  %1981 = vmatmul.bf16.gmra.mxu0 %v7364_v39  ;;  %v2914_v31 = vmax.f32 %v1931_v34, 0.0  ;;  %2189 = vmatmul.bf16.gmra.mxu2 %v8787_v22  ;;  %v8790_v22 = vld [vmem:[#allocation21_spill] sm:$0xff] }
 0x31c   :  { %2293 = vmatmul.bf16.gmra.mxu3 %v8788_v38  ;;  %2457 = vmatpush.bf16.msrb.mxu1 %v5951_v43  ;;  %v8793_v43 = vld [vmem:[#allocation24_spill] sm:$0xff] }
 0x31d   :  { %v7763_v32 = vpack.c.bf16 %v2914_v31, %v2910_v11 }
 0x31e   :  { %v2150_v53 = vpop.f32.mrf.mxu2 }
 0x31f   :  { %8789 = vst [vmem:[#allocation88_spill] sm:$0xff] %v7763_v32  ;;  %v2151_v59 = vadd.f32 %v2150_v53, %v2047_v62  ;;  %v2254_v61 = vpop.f32.mrf.mxu3  ;;  %v2048_v41 = vpop.f32.mrf.mxu1  ;;  %v8792_v53 = vld [vmem:[#allocation23_spill] sm:$0xff] }
 0x320   :  { %v1944_v36 = vpop.f32.mrf.mxu0 }
 0x321   :  { %v1945_v28 = vadd.f32 %v1944_v36, %v7756_v52  ;;  %v2255_v20 = vadd.f32 %v2254_v61, %v2151_v59 }
 0x323   :  { %v2049_v10 = vadd.f32 %v2048_v41, %v1945_v28  ;;  %v2767_v62 = vmax.f32 %v2255_v20, 0.0 }
 0x326   :  { %v2152_v30 = vpop.f32.mrf.mxu2 }
 0x327   :  { %v2153_v60 = vadd.f32 %v2152_v30, %v2049_v10  ;;  %v2256_v34 = vpop.f32.mrf.mxu3  ;;  %v2051_v31 = vpop.f32.mrf.mxu1 }
 0x328   :  { %v1947_v23 = vpop.f32.mrf.mxu0 }
 0x329   :  { %v1948_v11 = vadd.f32 %v1947_v23, %v7756_v52  ;;  %v2257_v32 = vadd.f32 %v2256_v34, %v2153_v60 }
 0x32a   :  { %2090 = vmatmul.bf16.gmra.mxu1 %v8791_v33 }
 0x32b   :  { %v2052_v38 = vadd.f32 %v2051_v31, %v1948_v11  ;;  %1986 = vmatmul.bf16.gmra.mxu0 %v8790_v22  ;;  %v2771_v56 = vmax.f32 %v2257_v32, 0.0  ;;  %2194 = vmatmul.bf16.gmra.mxu2 %v8792_v53  ;;  %v5932_v22 = vld [vmem:[#allocation5 + $0x158] sm:$0xf0] }
 0x32c   :  { %2298 = vmatmul.bf16.gmra.mxu3 %v8793_v43 }
 0x32d   :  { %v7771_v59 = vpack.c.bf16 %v2771_v56, %v2767_v62  ;;  %v8795_v62 = vld [vmem:[#allocation26_spill] sm:$0xff] }
 0x32e   :  { %v2155_v61 = vpop.f32.mrf.mxu2 }
 0x32f   :  { %8794 = vst [vmem:[#allocation89_spill] sm:$0xff] %v7771_v59  ;;  %v2156_v36 = vadd.f32 %v2155_v61, %v2052_v38  ;;  %v2259_v28 = vpop.f32.mrf.mxu3  ;;  %v2053_v10 = vpop.f32.mrf.mxu1  ;;  %v8796_v61 = vld [vmem:[#allocation27_spill] sm:$0xff]  ;;  %v8797_v59 = vld [vmem:[#allocation28_spill] sm:$0xff] }
 0x330   :  { %v1949_v41 = vpop.f32.mrf.mxu0 }
 0x331   :  { %v1950_v23 = vadd.f32 %v1949_v41, %v7756_v52  ;;  %v2260_v30 = vadd.f32 %v2259_v28, %v2156_v36  ;;  %v8798_v41 = vld [vmem:[#allocation29_spill] sm:$0xff]  ;;  %v6857_v28 = vld [vmem:[#allocation5 + $0x24c] sm:$0xf] }
 0x333   :  { %v2054_v60 = vadd.f32 %v2053_v10, %v1950_v23  ;;  %v2775_v56 = vmax.f32 %v2260_v30, 0.0  ;;  %v6060_v23 = vld [vmem:[#allocation5 + $0x258] sm:$0xf0]  ;;  %v6793_v10 = vld [vmem:[#allocation5 + $0x4c] sm:$0xf] }
 0x336   :  { %v2157_v34 = vpop.f32.mrf.mxu2 }
 0x337   :  { %v2158_v20 = vadd.f32 %v2157_v34, %v2054_v60  ;;  %v2261_v32 = vpop.f32.mrf.mxu3  ;;  %v2056_v53 = vpop.f32.mrf.mxu1  ;;  %v6063_v34 = vor.u32 %v6857_v28, %v6060_v23 }
 0x338   :  { %v1952_v11 = vpop.f32.mrf.mxu0 }
 0x339   :  { %v1953_v31 = vadd.f32 %v1952_v11, %v7756_v52  ;;  %v2262_v33 = vadd.f32 %v2261_v32, %v2158_v20  ;;  %v5804_v11 = vld [vmem:[#allocation5 + $0x58] sm:$0xf0]  ;;  %v6889_v20 = vld [vmem:[#allocation5 + $0x34c] sm:$0xf]  ;;  %2562 = vmatpush.bf16.msrb.mxu2 %v6063_v34 }
 0x33a   :  { %2095 = vmatmul.bf16.gmra.mxu1 %v8796_v61  ;;  %v6825_v61 = vld [vmem:[#allocation5 + $0x14c] sm:$0xf] }
 0x33b   :  { %v2057_v43 = vadd.f32 %v2056_v53, %v1953_v31  ;;  %1991 = vmatmul.bf16.gmra.mxu0 %v8795_v62  ;;  %v2779_v38 = vmax.f32 %v2262_v33, 0.0  ;;  %2199 = vmatmul.bf16.gmra.mxu2 %v8797_v59  ;;  %v6188_v53 = vld [vmem:[#allocation5 + $0x358] sm:$0xf0]  ;;  %v5807_v33 = vor.u32 %v6793_v10, %v5804_v11  ;;  %v8800_v34 = vld [vmem:[#allocation32_spill] sm:$0xff] }
 0x33c   :  { %2303 = vmatmul.bf16.gmra.mxu3 %v8798_v41  ;;  %v6191_v62 = vor.u32 %v6889_v20, %v6188_v53 }
 0x33d   :  { %v7779_v36 = vpack.c.bf16 %v2779_v38, %v2775_v56  ;;  %v5935_v56 = vor.u32 %v6825_v61, %v5932_v22  ;;  %2354 = vmatpush.bf16.msrb.mxu0 %v5807_v33  ;;  %v8801_v22 = vld [vmem:[#allocation33_spill] sm:$0xff] }
 0x33e   :  { %v2160_v60 = vpop.f32.mrf.mxu2  ;;  %2666 = vmatpush.bf16.msrb.mxu3 %v6191_v62  ;;  %v8802_v62 = vld [vmem:[#allocation34_spill] sm:$0xff] }
 0x33f   :  { %8799 = vst [vmem:[#allocation90_spill] sm:$0xff] %v7779_v36  ;;  %v2161_v32 = vadd.f32 %v2160_v60, %v2057_v43  ;;  %v2264_v31 = vpop.f32.mrf.mxu3  ;;  %v2058_v41 = vpop.f32.mrf.mxu1  ;;  %2458 = vmatpush.bf16.msrb.mxu1 %v5935_v56 }
 0x340   :  { %v1954_v30 = vpop.f32.mrf.mxu0 }
 0x341   :  { %v1955_v59 = vadd.f32 %v1954_v30, %v7756_v52  ;;  %v2265_v38 = vadd.f32 %v2264_v31, %v2161_v32 }
 0x343   :  { %v2059_v36 = vadd.f32 %v2058_v41, %v1955_v59  ;;  %v2783_v53 = vmax.f32 %v2265_v38, 0.0 }
 0x346   :  { %v2162_v28 = vpop.f32.mrf.mxu2 }
 0x347   :  { %v2163_v23 = vadd.f32 %v2162_v28, %v2059_v36  ;;  %v2266_v29 = vpop.f32.mrf.mxu3  ;;  %v2061_v10 = vpop.f32.mrf.mxu1 }
 0x348   :  { %v1957_v43 = vpop.f32.mrf.mxu0 }
 0x349   :  { %v1958_v60 = vadd.f32 %v1957_v43, %v7756_v52  ;;  %v2267_v11 = vadd.f32 %v2266_v29, %v2163_v23 }
 0x34a   :  { %2100 = vmatmul.bf16.gmra.mxu1 %v8800_v34 }
 0x34b   :  { %v2062_v20 = vadd.f32 %v2061_v10, %v1958_v60  ;;  %1996 = vmatmul.bf16.gmra.mxu0 %v8745_v63  ;;  %v2787_v30 = vmax.f32 %v2267_v11, 0.0  ;;  %2204 = vmatmul.bf16.gmra.mxu2 %v8801_v22  ;;  %v6172_v22 = vld [vmem:[#allocation5 + $0x338] sm:$0xf0] }
 0x34c   :  { %2308 = vmatmul.bf16.gmra.mxu3 %v8802_v62 }
 0x34d   :  { %v7787_v59 = vpack.c.bf16 %v2787_v30, %v2783_v53  ;;  %v8804_v53 = vld [vmem:[#allocation36_spill] sm:$0xff] }
 0x34e   :  { %v2165_v61 = vpop.f32.mrf.mxu2 }
 0x34f   :  { %8803 = vst [vmem:[#allocation91_spill] sm:$0xff] %v7787_v59  ;;  %v2166_v41 = vadd.f32 %v2165_v61, %v2062_v20  ;;  %v2269_v36 = vpop.f32.mrf.mxu3  ;;  %v2063_v29 = vpop.f32.mrf.mxu1  ;;  %v8805_v61 = vld [vmem:[#allocation37_spill] sm:$0xff]  ;;  %v8806_v59 = vld [vmem:[#allocation38_spill] sm:$0xff] }
 0x350   :  { %v1959_v32 = vpop.f32.mrf.mxu0 }
 0x351   :  { %v1960_v31 = vadd.f32 %v1959_v32, %v7756_v52  ;;  %v2270_v33 = vadd.f32 %v2269_v36, %v2166_v41  ;;  %v8807_v32 = vld [vmem:[#allocation39_spill] sm:$0xff] }
 0x353   :  { %v2064_v56 = vadd.f32 %v2063_v29, %v1960_v31  ;;  %v2791_v30 = vmax.f32 %v2270_v33, 0.0  ;;  %v6044_v33 = vld [vmem:[#allocation5 + $0x238] sm:$0xf0] }
 0x356   :  { %v2167_v28 = vpop.f32.mrf.mxu2 }
 0x357   :  { %v2168_v38 = vadd.f32 %v2167_v28, %v2064_v56  ;;  %v2271_v23 = vpop.f32.mrf.mxu3  ;;  %v2066_v10 = vpop.f32.mrf.mxu1 }
 0x358   :  { %v1962_v43 = vpop.f32.mrf.mxu0 }
 0x359   :  { %v1963_v60 = vadd.f32 %v1962_v43, %v7756_v52  ;;  %v2272_v11 = vadd.f32 %v2271_v23, %v2168_v38 }
 0x35a   :  { %2105 = vmatmul.bf16.gmra.mxu1 %v8805_v61  ;;  %v5788_v61 = vld [vmem:[#allocation5 + $0x38] sm:$0xf0] }
 0x35b   :  { %v2067_v62 = vadd.f32 %v2066_v10, %v1963_v60  ;;  %2001 = vmatmul.bf16.gmra.mxu0 %v8804_v53  ;;  %v2795_v20 = vmax.f32 %v2272_v11, 0.0  ;;  %2209 = vmatmul.bf16.gmra.mxu2 %v8806_v59  ;;  %v6853_v60 = vld [vmem:[#allocation5 + $0x22c] sm:$0xf] }
 0x35c   :  { %2313 = vmatmul.bf16.gmra.mxu3 %v8807_v32  ;;  %v6047_v10 = vor.u32 %v6853_v60, %v6044_v33  ;;  %v6789_v11 = vld [vmem:[#allocation5 + $0x2c] sm:$0xf] }
 0x35d   :  { %v7795_v41 = vpack.c.bf16 %v2795_v20, %v2791_v30  ;;  %v6885_v53 = vld [vmem:[#allocation5 + $0x32c] sm:$0xf]  ;;  %v5791_v59 = vor.u32 %v6789_v11, %v5788_v61  ;;  %v5916_v30 = vld [vmem:[#allocation5 + $0x138] sm:$0xf0] }
 0x35e   :  { %v2170_v36 = vpop.f32.mrf.mxu2  ;;  %v6821_v32 = vld [vmem:[#allocation5 + $0x12c] sm:$0xf]  ;;  %2563 = vmatpush.bf16.msrb.mxu2 %v6047_v10 }
 0x35f   :  { %8808 = vst [vmem:[#allocation92_spill] sm:$0xff] %v7795_v41  ;;  %v2171_v31 = vadd.f32 %v2170_v36, %v2067_v62  ;;  %v2274_v29 = vpop.f32.mrf.mxu3  ;;  %v2068_v38 = vpop.f32.mrf.mxu1  ;;  %v6175_v62 = vor.u32 %v6885_v53, %v6172_v22  ;;  %v5919_v36 = vor.u32 %v6821_v32, %v5916_v30  ;;  %2355 = vmatpush.bf16.msrb.mxu0 %v5791_v59 }
 0x360   :  { %v1964_v56 = vpop.f32.mrf.mxu0 }
 0x361   :  { %v1965_v28 = vadd.f32 %v1964_v56, %v7756_v52  ;;  %v2275_v23 = vadd.f32 %v2274_v29, %v2171_v31  ;;  %2667 = vmatpush.bf16.msrb.mxu3 %v6175_v62  ;;  %2459 = vmatpush.bf16.msrb.mxu1 %v5919_v36 }
 0x363   :  { %v2069_v43 = vadd.f32 %v2068_v38, %v1965_v28  ;;  %v2799_v61 = vmax.f32 %v2275_v23, 0.0 }
 0x366   :  { %v2172_v20 = vpop.f32.mrf.mxu2 }
 0x367   :  { %v2173_v41 = vadd.f32 %v2172_v20, %v2069_v43  ;;  %v2276_v34 = vpop.f32.mrf.mxu3  ;;  %v2071_v29 = vpop.f32.mrf.mxu1 }
 0x368   :  { %v1967_v56 = vpop.f32.mrf.mxu0 }
 0x369   :  { %v1968_v31 = vadd.f32 %v1967_v56, %v7756_v52  ;;  %v2277_v28 = vadd.f32 %v2276_v34, %v2173_v41 }
 0x36a   :  { %2110 = vmatmul.bf16.gmra.mxu1 %v7444_v57 }
 0x36b   :  { %v2072_v38 = vadd.f32 %v2071_v29, %v1968_v31  ;;  %2006 = vmatmul.bf16.gmra.mxu0 %v7442_v9  ;;  %v2803_v60 = vmax.f32 %v2277_v28, 0.0  ;;  %2214 = vmatmul.bf16.gmra.mxu2 %v7446_v42  ;;  %v8810_v29 = vld [vmem:[#allocation42_spill] sm:$0xff] }
 0x36c   :  { %2318 = vmatmul.bf16.gmra.mxu3 %v7449_v40 }
 0x36d   :  { %v7803_v22 = vpack.c.bf16 %v2803_v60, %v2799_v61  ;;  %v8811_v61 = vld [vmem:[#allocation43_spill] sm:$0xff]  ;;  %v8812_v60 = vld [vmem:[#allocation44_spill] sm:$0xff] }
 0x36e   :  { %v2175_v59 = vpop.f32.mrf.mxu2 }
 0x36f   :  { %8809 = vst [vmem:[#allocation93_spill] sm:$0xff] %v7803_v22  ;;  %v2176_v53 = vadd.f32 %v2175_v59, %v2072_v38  ;;  %v2279_v32 = vpop.f32.mrf.mxu3  ;;  %v2073_v34 = vpop.f32.mrf.mxu1  ;;  %v8813_v59 = vld [vmem:[#allocation45_spill] sm:$0xff] }
 0x370   :  { %v1969_v43 = vpop.f32.mrf.mxu0 }
 0x371   :  { %v1970_v33 = vadd.f32 %v1969_v43, %v7756_v52  ;;  %v2280_v41 = vadd.f32 %v2279_v32, %v2176_v53 }
 0x373   :  { %v2074_v10 = vadd.f32 %v2073_v34, %v1970_v33  ;;  %v2807_v28 = vmax.f32 %v2280_v41, 0.0  ;;  %v6028_v41 = vld [vmem:[#allocation5 + $0x218] sm:$0xf0] }
 0x376   :  { %v2177_v11 = vpop.f32.mrf.mxu2 }
 0x377   :  { %v2178_v23 = vadd.f32 %v2177_v11, %v2074_v10  ;;  %v2281_v30 = vpop.f32.mrf.mxu3  ;;  %v2076_v36 = vpop.f32.mrf.mxu1 }
 0x378   :  { %v1972_v20 = vpop.f32.mrf.mxu0 }
 0x379   :  { %v1973_v62 = vadd.f32 %v1972_v20, %v7756_v52  ;;  %v2282_v56 = vadd.f32 %v2281_v30, %v2178_v23  ;;  %v6849_v20 = vld [vmem:[#allocation5 + $0x20c] sm:$0xf] }
 0x37a   :  { %2115 = vmatmul.bf16.gmra.mxu1 %v8811_v61  ;;  %v8816_v61 = vld [vmem:[#allocation48_spill] sm:$0xff] }
 0x37b   :  { %v2077_v31 = vadd.f32 %v2076_v36, %v1973_v62  ;;  %2011 = vmatmul.bf16.gmra.mxu0 %v8810_v29  ;;  %v2811_v38 = vmax.f32 %v2282_v56, 0.0  ;;  %2219 = vmatmul.bf16.gmra.mxu2 %v8812_v60  ;;  %v6031_v62 = vor.u32 %v6849_v20, %v6028_v41  ;;  %v6881_v20 = vld [vmem:[#allocation5 + $0x30c] sm:$0xf] }
 0x37c   :  { %2323 = vmatmul.bf16.gmra.mxu3 %v8813_v59 }
 0x37d   :  { %v7811_v53 = vpack.c.bf16 %v2811_v38, %v2807_v28  ;;  %2564 = vmatpush.bf16.msrb.mxu2 %v6031_v62  ;;  %v6156_v62 = vld [vmem:[#allocation5 + $0x318] sm:$0xf0] }
 0x37e   :  { %v2180_v32 = vpop.f32.mrf.mxu2 }
 0x37f   :  { %8814 = vst [vmem:[#allocation94_spill] sm:$0xff] %v7811_v53  ;;  %v2181_v43 = vadd.f32 %v2180_v32, %v2077_v31  ;;  %v2284_v33 = vpop.f32.mrf.mxu3  ;;  %v2078_v11 = vpop.f32.mrf.mxu1  ;;  %v8815_v32 = vld [vmem:[#allocation47_spill] sm:$0xff] }
 0x380   :  { %v1974_v34 = vpop.f32.mrf.mxu0 }
 0x381   :  { %v1975_v10 = vadd.f32 %v1974_v34, %v7756_v52  ;;  %v2285_v23 = vadd.f32 %v2284_v33, %v2181_v43  ;;  %v8817_v43 = vld [vmem:[#allocation49_spill] sm:$0xff]  ;;  %v8818_v33 = vld [vmem:[#allocation50_spill] sm:$0xff] }
 0x383   :  { %v2079_v30 = vadd.f32 %v2078_v11, %v1975_v10  ;;  %v2815_v59 = vmax.f32 %v2285_v23, 0.0  ;;  %v6785_v11 = vld [vmem:[#allocation5 + $0xc] sm:$0xf] }
 0x386   :  { %v2182_v36 = vpop.f32.mrf.mxu2 }
 0x387   :  { %v2183_v56 = vadd.f32 %v2182_v36, %v2079_v30  ;;  %v2286_v22 = vpop.f32.mrf.mxu3  ;;  %v2081_v38 = vpop.f32.mrf.mxu1  ;;  %v5772_v30 = vld [vmem:[#allocation5 + $0x18] sm:$0xf0] }
 0x388   :  { %v1977_v60 = vpop.f32.mrf.mxu0  ;;  %v5900_v36 = vld [vmem:[#allocation5 + $0x118] sm:$0xf0] }
 0x389   :  { %v1978_v28 = vadd.f32 %v1977_v60, %v7756_v52  ;;  %v2287_v53 = vadd.f32 %v2286_v22, %v2183_v56  ;;  %v5775_v60 = vor.u32 %v6785_v11, %v5772_v30  ;;  %v6817_v22 = vld [vmem:[#allocation5 + $0x10c] sm:$0xf] }
 0x38a   :  { %2120 = vmatmul.bf16.gmra.mxu1 %v8816_v61 }
 0x38b   :  { %v2082_v31 = vadd.f32 %v2081_v38, %v1978_v28  ;;  %2016 = vmatmul.bf16.gmra.mxu0 %v8815_v32  ;;  %v2819_v34 = vmax.f32 %v2287_v53, 0.0  ;;  %2224 = vmatmul.bf16.gmra.mxu2 %v8817_v43  ;;  %v6159_v53 = vor.u32 %v6881_v20, %v6156_v62  ;;  %v5903_v38 = vor.u32 %v6817_v22, %v5900_v36  ;;  %v8820_v22 = vld [vmem:[#allocation53_spill] sm:$0xff]  ;;  %v8822_v36 = vld [vmem:[#allocation55_spill] sm:$0xff] }
 0x38c   :  { %2328 = vmatmul.bf16.gmra.mxu3 %v8818_v33  ;;  %2356 = vmatpush.bf16.msrb.mxu0 %v5775_v60  ;;  %v8821_v60 = vld [vmem:[#allocation54_spill] sm:$0xff] }
 0x38d   :  { %v7819_v10 = vpack.c.bf16 %v2819_v34, %v2815_v59  ;;  %2668 = vmatpush.bf16.msrb.mxu3 %v6159_v53  ;;  %2460 = vmatpush.bf16.msrb.mxu1 %v5903_v38 }
 0x38e   :  { %v2185_v41 = vpop.f32.mrf.mxu2 }
 0x38f   :  { %8819 = vst [vmem:[#allocation95_spill] sm:$0xff] %v7819_v10  ;;  %v2186_v56 = vadd.f32 %v2185_v41, %v2082_v31  ;;  %v2289_v28 = vpop.f32.mrf.mxu3  ;;  %v2083_v43 = vpop.f32.mrf.mxu1 }
 0x390   :  { %v1979_v23 = vpop.f32.mrf.mxu0 }
 0x391   :  { %v1980_v61 = vadd.f32 %v1979_v23, %v7756_v52  ;;  %v2290_v33 = vadd.f32 %v2289_v28, %v2186_v56 }
 0x393   :  { %v2084_v59 = vadd.f32 %v2083_v43, %v1980_v61  ;;  %v2823_v20 = vmax.f32 %v2290_v33, 0.0 }
 0x396   :  { %v2187_v34 = vpop.f32.mrf.mxu2 }
 0x397   :  { %v2188_v10 = vadd.f32 %v2187_v34, %v2084_v59  ;;  %v2291_v32 = vpop.f32.mrf.mxu3  ;;  %v2086_v29 = vpop.f32.mrf.mxu1 }
 0x398   :  { %v1982_v11 = vpop.f32.mrf.mxu0 }
 0x399   :  { %v1983_v30 = vadd.f32 %v1982_v11, %v7756_v52  ;;  %v2292_v31 = vadd.f32 %v2291_v32, %v2188_v10 }
 0x39a   :  { %2125 = vmatmul.bf16.gmra.mxu1 %v8820_v22 }
 0x39b   :  { %v2087_v41 = vadd.f32 %v2086_v29, %v1983_v30  ;;  %2021 = vmatmul.bf16.gmra.mxu0 %v8765_v35  ;;  %v2827_v62 = vmax.f32 %v2292_v31, 0.0  ;;  %2229 = vmatmul.bf16.gmra.mxu2 %v8821_v60 }
 0x39c   :  { %2333 = vmatmul.bf16.gmra.mxu3 %v8822_v36 }
 0x39d   :  { %v7827_v61 = vpack.c.bf16 %v2827_v62, %v2823_v20  ;;  %v8824_v20 = vld [vmem:[#allocation57_spill] sm:$0xff] }
 0x39e   :  { %v2190_v43 = vpop.f32.mrf.mxu2 }
 0x39f   :  { %8823 = vst [vmem:[#allocation96_spill] sm:$0xff] %v7827_v61  ;;  %v2191_v56 = vadd.f32 %v2190_v43, %v2087_v41  ;;  %v2294_v28 = vpop.f32.mrf.mxu3  ;;  %v2088_v32 = vpop.f32.mrf.mxu1  ;;  %v8825_v43 = vld [vmem:[#allocation58_spill] sm:$0xff]  ;;  %v8826_v61 = vld [vmem:[#allocation59_spill] sm:$0xff] }
 0x3a0   :  { %v1984_v23 = vpop.f32.mrf.mxu0 }
 0x3a1   :  { %v1985_v53 = vadd.f32 %v1984_v23, %v7756_v52  ;;  %v2295_v29 = vadd.f32 %v2294_v28, %v2191_v56  ;;  %v8827_v23 = vld [vmem:[#allocation60_spill] sm:$0xff]  ;;  %v6642_v28 = vld [vmem:[#allocation8 + $0x2e0] sm:$0xf] }
 0x3a3   :  { %v2089_v10 = vadd.f32 %v2088_v32, %v1985_v53  ;;  %v2831_v62 = vmax.f32 %v2295_v29, 0.0  ;;  %v7006_v53 = vld [vmem:[#allocation8 + $0x2ec] sm:$0xf0]  ;;  %v6386_v32 = vld [vmem:[#allocation8 + $0xe0] sm:$0xf] }
 0x3a6   :  { %v2192_v38 = vpop.f32.mrf.mxu2 }
 0x3a7   :  { %v2193_v33 = vadd.f32 %v2192_v38, %v2089_v10  ;;  %v2296_v59 = vpop.f32.mrf.mxu3  ;;  %v2091_v30 = vpop.f32.mrf.mxu1  ;;  %v6643_v38 = vor.u32 %v7006_v53, %v6642_v28 }
 0x3a8   :  { %v1987_v34 = vpop.f32.mrf.mxu0 }
 0x3a9   :  { %v1988_v11 = vadd.f32 %v1987_v34, %v7756_v52  ;;  %v2297_v31 = vadd.f32 %v2296_v59, %v2193_v33  ;;  %v6942_v34 = vld [vmem:[#allocation8 + $0xec] sm:$0xf0]  ;;  %v6770_v33 = vld [vmem:[#allocation8 + $0x3e0] sm:$0xf]  ;;  %3979 = vmatpush.bf16.msra.mxu2 %v6643_v38 }
 0x3aa   :  { %2130 = vmatmul.bf16.gmra.mxu1 %v8825_v43  ;;  %v7038_v59 = vld [vmem:[#allocation8 + $0x3ec] sm:$0xf0] }
 0x3ab   :  { %v2092_v36 = vadd.f32 %v2091_v30, %v1988_v11  ;;  %2026 = vmatmul.bf16.gmra.mxu0 %v8824_v20  ;;  %v2835_v41 = vmax.f32 %v2297_v31, 0.0  ;;  %2234 = vmatmul.bf16.gmra.mxu2 %v8826_v61  ;;  %v6387_v31 = vor.u32 %v6942_v34, %v6386_v32  ;;  %v6771_v20 = vor.u32 %v7038_v59, %v6770_v33 }
 0x3ac   :  { %2338 = vmatmul.bf16.gmra.mxu3 %v8827_v23 }
 0x3ad   :  { %v7835_v56 = vpack.c.bf16 %v2835_v41, %v2831_v62  ;;  %3771 = vmatpush.bf16.msra.mxu0 %v6387_v31  ;;  %4083 = vmatpush.bf16.msra.mxu3 %v6771_v20  ;;  %v6514_v41 = vld [vmem:[#allocation8 + $0x1e0] sm:$0xf] }
 0x3ae   :  { %v2195_v10 = vpop.f32.mrf.mxu2 }
 0x3af   :  { %8828 = vst [vmem:[#allocation97_spill] sm:$0xff] %v7835_v56  ;;  %v2196_v11 = vadd.f32 %v2195_v10, %v2092_v36  ;;  %v2299_v30 = vpop.f32.mrf.mxu3  ;;  %v2093_v61 = vpop.f32.mrf.mxu1  ;;  %v6974_v56 = vld [vmem:[#allocation8 + $0x1ec] sm:$0xf0] }
 0x3b0   :  { %v1989_v29 = vpop.f32.mrf.mxu0  ;;  %v6515_v60 = vor.u32 %v6974_v56, %v6514_v41 }
 0x3b1   :  { %v1990_v43 = vadd.f32 %v1989_v29, %v7756_v52  ;;  %v2300_v23 = vadd.f32 %v2299_v30, %v2196_v11 }
 0x3b2   :  { %3875 = vmatpush.bf16.msra.mxu1 %v6515_v60 }
 0x3b3   :  { %v2094_v62 = vadd.f32 %v2093_v61, %v1990_v43  ;;  %v2839_v38 = vmax.f32 %v2300_v23, 0.0 }
 0x3b6   :  { %v2197_v28 = vpop.f32.mrf.mxu2 }
 0x3b7   :  { %v2198_v53 = vadd.f32 %v2197_v28, %v2094_v62  ;;  %v2301_v22 = vpop.f32.mrf.mxu3  ;;  %v2096_v32 = vpop.f32.mrf.mxu1 }
 0x3b8   :  { %v1992_v36 = vpop.f32.mrf.mxu0 }
 0x3b9   :  { %v1993_v10 = vadd.f32 %v1992_v36, %v7756_v52  ;;  %v2302_v34 = vadd.f32 %v2301_v22, %v2198_v53 }
 0x3ba   :  { %2135 = vmatmul.bf16.gmra.mxu1 %v7524_v58 }
 0x3bb   :  { %v2097_v33 = vadd.f32 %v2096_v32, %v1993_v10  ;;  %2031 = vmatmul.bf16.gmra.mxu0 %v7522_v8  ;;  %v2843_v59 = vmax.f32 %v2302_v34, 0.0  ;;  %2239 = vmatmul.bf16.gmra.mxu2 %v7526_v37 }
 0x3bc   :  { %2343 = vmatmul.bf16.gmra.mxu3 %v7529_v21 }
 0x3bd   :  { %v7843_v61 = vpack.c.bf16 %v2843_v59, %v2839_v38  ;;  %v8831_v38 = vld [vmem:[#allocation17_spill] sm:$0xff] }
 0x3be   :  { %v2200_v60 = vpop.f32.mrf.mxu2 }
 0x3bf   :  { %8829 = vst [vmem:[#allocation98_spill] sm:$0xff] %v7843_v61  ;;  %v2201_v20 = vadd.f32 %v2200_v60, %v2097_v33  ;;  %v2304_v43 = vpop.f32.mrf.mxu3  ;;  %v2098_v22 = vpop.f32.mrf.mxu1  ;;  %v8830_v33 = vld [vmem:[#allocation16_spill] sm:$0xff] }
 0x3c0   :  { %v1994_v56 = vpop.f32.mrf.mxu0 }
 0x3c1   :  { %v1995_v11 = vadd.f32 %v1994_v56, %v7756_v52  ;;  %v2305_v30 = vadd.f32 %v2304_v43, %v2201_v20 }
 0x3c3   :  { %v2099_v29 = vadd.f32 %v2098_v22, %v1995_v11  ;;  %v2847_v32 = vmax.f32 %v2305_v30, 0.0  ;;  %v7002_v30 = vld [vmem:[#allocation8 + $0x2cc] sm:$0xf0] }
 0x3c6   :  { %v2202_v31 = vpop.f32.mrf.mxu2 }
 0x3c7   :  { %v2203_v23 = vadd.f32 %v2202_v31, %v2099_v29  ;;  %v2306_v62 = vpop.f32.mrf.mxu3  ;;  %v2101_v53 = vpop.f32.mrf.mxu1 }
 0x3c8   :  { %v1997_v41 = vpop.f32.mrf.mxu0 }
 0x3c9   :  { %v1998_v28 = vadd.f32 %v1997_v41, %v7756_v52  ;;  %v2307_v36 = vadd.f32 %v2306_v62, %v2203_v23  ;;  %v6370_v62 = vld [vmem:[#allocation8 + $0xc0] sm:$0xf] }
 0x3ca   :  { %2461 = vmatmul.bf16.vlgmr.msrb.gmra.mxu1 %v7268_v51  ;;  %v6938_v51 = vld [vmem:[#allocation8 + $0xcc] sm:$0xf0]  ;;  %v6754_v41 = vld [vmem:[#allocation8 + $0x3c0] sm:$0xf] }
 0x3cb   :  { %v2102_v10 = vadd.f32 %v2101_v53, %v1998_v28  ;;  %2357 = vmatmul.bf16.vlgmr.msrb.gmra.mxu0 %v7266_v47  ;;  %v2851_v34 = vmax.f32 %v2307_v36, 0.0  ;;  %2565 = vmatmul.bf16.vlgmr.msrb.gmra.mxu2 %v8830_v33  ;;  %v6626_v47 = vld [vmem:[#allocation8 + $0x2c0] sm:$0xf]  ;;  %v6371_v28 = vor.u32 %v6938_v51, %v6370_v62  ;;  %v7034_v53 = vld [vmem:[#allocation8 + $0x3cc] sm:$0xf0] }
 0x3cc   :  { %2669 = vmatmul.bf16.vlgmr.msrb.gmra.mxu3 %v8831_v38  ;;  %v6627_v23 = vor.u32 %v7002_v30, %v6626_v47  ;;  %v6498_v36 = vld [vmem:[#allocation8 + $0x1c0] sm:$0xf] }
 0x3cd   :  { %v7851_v59 = vpack.c.bf16 %v2851_v34, %v2847_v32  ;;  %v6970_v32 = vld [vmem:[#allocation8 + $0x1cc] sm:$0xf0]  ;;  %3772 = vmatpush.bf16.msra.mxu0 %v6371_v28 }
 0x3ce   :  { %v2205_v60 = vpop.f32.mrf.mxu2  ;;  %3980 = vmatpush.bf16.msra.mxu2 %v6627_v23  ;;  %v6499_v33 = vor.u32 %v6970_v32, %v6498_v36 }
 0x3cf   :  { %8832 = vst [vmem:[#allocation16_spill] sm:$0xff] %v7851_v59  ;;  %v2206_v20 = vadd.f32 %v2205_v60, %v2102_v10  ;;  %v2309_v43 = vpop.f32.mrf.mxu3  ;;  %v2103_v22 = vpop.f32.mrf.mxu1  ;;  %v6755_v10 = vor.u32 %v7034_v53, %v6754_v41 }
 0x3d0   :  { %v1999_v56 = vpop.f32.mrf.mxu0  ;;  %3876 = vmatpush.bf16.msra.mxu1 %v6499_v33 }
 0x3d1   :  { %v2000_v11 = vadd.f32 %v1999_v56, %v7756_v52  ;;  %v2310_v29 = vadd.f32 %v2309_v43, %v2206_v20  ;;  %4084 = vmatpush.bf16.msra.mxu3 %v6755_v10 }
 0x3d3   :  { %v2104_v31 = vadd.f32 %v2103_v22, %v2000_v11  ;;  %v2855_v47 = vmax.f32 %v2310_v29, 0.0 }
 0x3d6   :  { %v2207_v34 = vpop.f32.mrf.mxu2 }
 0x3d7   :  { %v2208_v38 = vadd.f32 %v2207_v34, %v2104_v31  ;;  %v2311_v60 = vpop.f32.mrf.mxu3  ;;  %v2106_v43 = vpop.f32.mrf.mxu1 }
 0x3d8   :  { %v2002_v56 = vpop.f32.mrf.mxu0 }
 0x3d9   :  { %v2003_v20 = vadd.f32 %v2002_v56, %v7756_v52  ;;  %v2312_v11 = vadd.f32 %v2311_v60, %v2208_v38 }
 0x3da   :  { %2466 = vmatmul.bf16.gmra.mxu1 %v7280_v13 }
 0x3db   :  { %v2107_v22 = vadd.f32 %v2106_v43, %v2003_v20  ;;  %2362 = vmatmul.bf16.gmra.mxu0 %v7278_v12  ;;  %v2859_v30 = vmax.f32 %v2312_v11, 0.0  ;;  %2570 = vmatmul.bf16.gmra.mxu2 %v7282_v14 }
 0x3dc   :  { %2674 = vmatmul.bf16.gmra.mxu3 %v7284_v15 }
 0x3dd   :  { %v7859_v31 = vpack.c.bf16 %v2859_v30, %v2855_v47 }
 0x3de   :  { %v2210_v23 = vpop.f32.mrf.mxu2 }
 0x3df   :  { %v2211_v62 = vadd.f32 %v2210_v23, %v2107_v22  ;;  %v2314_v51 = vpop.f32.mrf.mxu3  ;;  %v2108_v53 = vpop.f32.mrf.mxu1 }
 0x3e0   :  { %v2004_v41 = vpop.f32.mrf.mxu0 }
 0x3e1   :  { %v2005_v28 = vadd.f32 %v2004_v41, %v7756_v52  ;;  %v2315_v36 = vadd.f32 %v2314_v51, %v2211_v62 }
 0x3e3   :  { %v2109_v32 = vadd.f32 %v2108_v53, %v2005_v28  ;;  %v2863_v38 = vmax.f32 %v2315_v36, 0.0 }
 0x3e6   :  { %v2212_v12 = vpop.f32.mrf.mxu2 }
 0x3e7   :  { %v2213_v29 = vadd.f32 %v2212_v12, %v2109_v32  ;;  %v2316_v34 = vpop.f32.mrf.mxu3  ;;  %v2111_v14 = vpop.f32.mrf.mxu1 }
 0x3e8   :  { %v2007_v10 = vpop.f32.mrf.mxu0 }
 0x3e9   :  { %v2008_v13 = vadd.f32 %v2007_v10, %v7756_v52  ;;  %v2317_v33 = vadd.f32 %v2316_v34, %v2213_v29  ;;  %v6610_v29 = vld [vmem:[#allocation8 + $0x2a0] sm:$0xf]  ;;  %v6998_v34 = vld [vmem:[#allocation8 + $0x2ac] sm:$0xf0] }
 0x3ea   :  { %2471 = vmatmul.bf16.gmra.mxu1 %v7292_v25  ;;  %v6354_v10 = vld [vmem:[#allocation8 + $0xa0] sm:$0xf] }
 0x3eb   :  { %v2112_v15 = vadd.f32 %v2111_v14, %v2008_v13  ;;  %2367 = vmatmul.bf16.gmra.mxu0 %v7290_v24  ;;  %v2867_v60 = vmax.f32 %v2317_v33, 0.0  ;;  %2575 = vmatmul.bf16.gmra.mxu2 %v7294_v26  ;;  %v6611_v14 = vor.u32 %v6998_v34, %v6610_v29  ;;  %v6934_v33 = vld [vmem:[#allocation8 + $0xac] sm:$0xf0] }
 0x3ec   :  { %2679 = vmatmul.bf16.gmra.mxu3 %v7296_v27 }
 0x3ed   :  { %v7867_v56 = vpack.c.bf16 %v2867_v60, %v2863_v38  ;;  %v7030_v38 = vld [vmem:[#allocation8 + $0x3ac] sm:$0xf0]  ;;  %3981 = vmatpush.bf16.msra.mxu2 %v6611_v14 }
 0x3ee   :  { %v2215_v20 = vpop.f32.mrf.mxu2 }
 0x3ef   :  { %8833 = vst [vmem:[#allocation17_spill] sm:$0xff] %v7867_v56  ;;  %v2216_v43 = vadd.f32 %v2215_v20, %v2112_v15  ;;  %v2319_v11 = vpop.f32.mrf.mxu3  ;;  %v2113_v30 = vpop.f32.mrf.mxu1  ;;  %v6738_v15 = vld [vmem:[#allocation8 + $0x3a0] sm:$0xf] }
 0x3f0   :  { %v2009_v22 = vpop.f32.mrf.mxu0 }
 0x3f1   :  { %v2010_v47 = vadd.f32 %v2009_v22, %v7756_v52  ;;  %v2320_v23 = vadd.f32 %v2319_v11, %v2216_v43  ;;  %v6355_v43 = vor.u32 %v6934_v33, %v6354_v10  ;;  %v6739_v11 = vor.u32 %v7030_v38, %v6738_v15  ;;  %v6966_v22 = vld [vmem:[#allocation8 + $0x1ac] sm:$0xf0] }
 0x3f3   :  { %v2114_v62 = vadd.f32 %v2113_v30, %v2010_v47  ;;  %v2871_v36 = vmax.f32 %v2320_v23, 0.0  ;;  %3773 = vmatpush.bf16.msra.mxu0 %v6355_v43  ;;  %4085 = vmatpush.bf16.msra.mxu3 %v6739_v11 }
 0x3f6   :  { %v2217_v24 = vpop.f32.mrf.mxu2 }
 0x3f7   :  { %v2218_v51 = vadd.f32 %v2217_v24, %v2114_v62  ;;  %v2321_v41 = vpop.f32.mrf.mxu3  ;;  %v2116_v26 = vpop.f32.mrf.mxu1 }
 0x3f8   :  { %v2012_v28 = vpop.f32.mrf.mxu0 }
 0x3f9   :  { %v2013_v25 = vadd.f32 %v2012_v28, %v7756_v52  ;;  %v2322_v53 = vadd.f32 %v2321_v41, %v2218_v51 }
 0x3fa   :  { %2476 = vmatmul.bf16.gmra.mxu1 %v7304_v46  ;;  %v6482_v46 = vld [vmem:[#allocation8 + $0x1a0] sm:$0xf] }
 0x3fb   :  { %v2117_v27 = vadd.f32 %v2116_v26, %v2013_v25  ;;  %2372 = vmatmul.bf16.gmra.mxu0 %v7302_v45  ;;  %v2875_v32 = vmax.f32 %v2322_v53, 0.0  ;;  %2580 = vmatmul.bf16.gmra.mxu2 %v7306_v48  ;;  %v6483_v47 = vor.u32 %v6966_v22, %v6482_v46 }
 0x3fc   :  { %2684 = vmatmul.bf16.gmra.mxu3 %v7308_v49 }
 0x3fd   :  { %v7875_v12 = vpack.c.bf16 %v2875_v32, %v2871_v36  ;;  %3877 = vmatpush.bf16.msra.mxu1 %v6483_v47 }
 0x3fe   :  { %v2220_v13 = vpop.f32.mrf.mxu2 }
 0x3ff   :  { %v2221_v60 = vadd.f32 %v2220_v13, %v2117_v27  ;;  %v2324_v45 = vpop.f32.mrf.mxu3  ;;  %v2118_v49 = vpop.f32.mrf.mxu1 }
 0x400   :  { %v2014_v20 = vpop.f32.mrf.mxu0 }
 0x401   :  { %v2015_v48 = vadd.f32 %v2014_v20, %v7756_v52  ;;  %v2325_v30 = vadd.f32 %v2324_v45, %v2221_v60 }
 0x403   :  { %v2119_v23 = vadd.f32 %v2118_v49, %v2015_v48  ;;  %v2879_v27 = vmax.f32 %v2325_v30, 0.0  ;;  %v6594_v48 = vld [vmem:[#allocation8 + $0x280] sm:$0xf]  ;;  %v6994_v49 = vld [vmem:[#allocation8 + $0x28c] sm:$0xf0] }
 0x404   :  { %v6595_v30 = vor.u32 %v6994_v49, %v6594_v48 }
 0x406   :  { %v2222_v62 = vpop.f32.mrf.mxu2  ;;  %3982 = vmatpush.bf16.msra.mxu2 %v6595_v30 }
 0x407   :  { %v2223_v24 = vadd.f32 %v2222_v62, %v2119_v23  ;;  %v2326_v51 = vpop.f32.mrf.mxu3  ;;  %v2121_v25 = vpop.f32.mrf.mxu1 }
 0x408   :  { %v2017_v41 = vpop.f32.mrf.mxu0 }
 0x409   :  { %v2018_v28 = vadd.f32 %v2017_v41, %v7756_v52  ;;  %v2327_v26 = vadd.f32 %v2326_v51, %v2223_v24 }
 0x40a   :  { %2481 = vmatmul.bf16.gmra.mxu1 %v7316_v1 }
 0x40b   :  { %v2122_v53 = vadd.f32 %v2121_v25, %v2018_v28  ;;  %2377 = vmatmul.bf16.gmra.mxu0 %v7314_v0  ;;  %v2883_v36 = vmax.f32 %v2327_v26, 0.0  ;;  %2585 = vmatmul.bf16.gmra.mxu2 %v7318_v2  ;;  %v6930_v25 = vld [vmem:[#allocation8 + $0x8c] sm:$0xf0]  ;;  %v6722_v26 = vld [vmem:[#allocation8 + $0x380] sm:$0xf] }
 0x40c   :  { %2689 = vmatmul.bf16.gmra.mxu3 %v7320_v3 }
 0x40d   :  { %v7883_v32 = vpack.c.bf16 %v2883_v36, %v2879_v27  ;;  %v6962_v36 = vld [vmem:[#allocation8 + $0x18c] sm:$0xf0] }
 0x40e   :  { %v2225_v29 = vpop.f32.mrf.mxu2 }
 0x40f   :  { %8834 = vst [vmem:[#allocation99_spill] sm:$0xff] %v7883_v32  ;;  %v2226_v34 = vadd.f32 %v2225_v29, %v2122_v53  ;;  %v2329_v10 = vpop.f32.mrf.mxu3  ;;  %v2123_v33 = vpop.f32.mrf.mxu1  ;;  %v6466_v53 = vld [vmem:[#allocation8 + $0x180] sm:$0xf] }
 0x410   :  { %v2019_v13 = vpop.f32.mrf.mxu0 }
 0x411   :  { %v2020_v14 = vadd.f32 %v2019_v13, %v7756_v52  ;;  %v2330_v15 = vadd.f32 %v2329_v10, %v2226_v34  ;;  %v6467_v34 = vor.u32 %v6962_v36, %v6466_v53  ;;  %v6578_v36 = vld [vmem:[#allocation8 + $0x260] sm:$0xf] }
 0x413   :  { %v2124_v38 = vadd.f32 %v2123_v33, %v2020_v14  ;;  %v2887_v11 = vmax.f32 %v2330_v15, 0.0  ;;  %3878 = vmatpush.bf16.msra.mxu1 %v6467_v34  ;;  %v6926_v34 = vld [vmem:[#allocation8 + $0x6c] sm:$0xf0] }
 0x416   :  { %v2227_v0 = vpop.f32.mrf.mxu2 }
 0x417   :  { %v2228_v60 = vadd.f32 %v2227_v0, %v2124_v38  ;;  %v2331_v45 = vpop.f32.mrf.mxu3  ;;  %v2126_v2 = vpop.f32.mrf.mxu1 }
 0x418   :  { %v2022_v20 = vpop.f32.mrf.mxu0 }
 0x419   :  { %v2023_v1 = vadd.f32 %v2022_v20, %v7756_v52  ;;  %v2332_v43 = vadd.f32 %v2331_v45, %v2228_v60 }
 0x41a   :  { %2486 = vmatmul.bf16.gmra.mxu1 %v7328_v17  ;;  %v6338_v17 = vld [vmem:[#allocation8 + $0x80] sm:$0xf] }
 0x41b   :  { %v2127_v3 = vadd.f32 %v2126_v2, %v2023_v1  ;;  %2382 = vmatmul.bf16.gmra.mxu0 %v7326_v16  ;;  %v2891_v46 = vmax.f32 %v2332_v43, 0.0  ;;  %2590 = vmatmul.bf16.gmra.mxu2 %v7330_v18  ;;  %v6339_v18 = vor.u32 %v6930_v25, %v6338_v17 }
 0x41c   :  { %2694 = vmatmul.bf16.gmra.mxu3 %v7332_v19  ;;  %v7026_v19 = vld [vmem:[#allocation8 + $0x38c] sm:$0xf0] }
 0x41d   :  { %v7891_v22 = vpack.c.bf16 %v2891_v46, %v2887_v11  ;;  %v6723_v27 = vor.u32 %v7026_v19, %v6722_v26  ;;  %3774 = vmatpush.bf16.msra.mxu0 %v6339_v18 }
 0x41e   :  { %v2230_v47 = vpop.f32.mrf.mxu2 }
 0x41f   :  { %8835 = vst [vmem:[#allocation100_spill] sm:$0xff] %v7891_v22  ;;  %v2231_v23 = vadd.f32 %v2230_v47, %v2127_v3  ;;  %v2334_v62 = vpop.f32.mrf.mxu3  ;;  %v2128_v16 = vpop.f32.mrf.mxu1  ;;  %4086 = vmatpush.bf16.msra.mxu3 %v6723_v27 }
 0x420   :  { %v2024_v24 = vpop.f32.mrf.mxu0 }
 0x421   :  { %v2025_v51 = vadd.f32 %v2024_v24, %v7756_v52  ;;  %v2335_v41 = vadd.f32 %v2334_v62, %v2231_v23 }
 0x423   :  { %v2129_v28 = vadd.f32 %v2128_v16, %v2025_v51  ;;  %v2895_v60 = vmax.f32 %v2335_v41, 0.0 }
 0x426   :  { %v2232_v29 = vpop.f32.mrf.mxu2 }
 0x427   :  { %v2233_v10 = vadd.f32 %v2232_v29, %v2129_v28  ;;  %v2336_v13 = vpop.f32.mrf.mxu3  ;;  %v2131_v15 = vpop.f32.mrf.mxu1 }
 0x428   :  { %v2027_v14 = vpop.f32.mrf.mxu0 }
 0x429   :  { %v2028_v33 = vadd.f32 %v2027_v14, %v7756_v52  ;;  %v2337_v38 = vadd.f32 %v2336_v13, %v2233_v10  ;;  %v7022_v13 = vld [vmem:[#allocation8 + $0x36c] sm:$0xf0] }
 0x42a   :  { %2491 = vmatmul.bf16.gmra.mxu1 %v7340_v50 }
 0x42b   :  { %v2132_v0 = vadd.f32 %v2131_v15, %v2028_v33  ;;  %2387 = vmatmul.bf16.gmra.mxu0 %v7338_v44  ;;  %v2899_v45 = vmax.f32 %v2337_v38, 0.0  ;;  %2595 = vmatmul.bf16.gmra.mxu2 %v7342_v54 }
 0x42c   :  { %2699 = vmatmul.bf16.gmra.mxu3 %v7344_v55 }
 0x42d   :  { %v7899_v20 = vpack.c.bf16 %v2899_v45, %v2895_v60 }
 0x42e   :  { %v2235_v1 = vpop.f32.mrf.mxu2 }
 0x42f   :  { %8836 = vst [vmem:[#allocation101_spill] sm:$0xff] %v7899_v20  ;;  %v2236_v2 = vadd.f32 %v2235_v1, %v2132_v0  ;;  %v2339_v43 = vpop.f32.mrf.mxu3  ;;  %v2133_v46 = vpop.f32.mrf.mxu1 }
 0x430   :  { %v2029_v3 = vpop.f32.mrf.mxu0 }
 0x431   :  { %v2030_v11 = vadd.f32 %v2029_v3, %v7756_v52  ;;  %v2340_v48 = vadd.f32 %v2339_v43, %v2236_v2  ;;  %v8838_v3 = vld [vmem:[#allocation18_spill] sm:$0xff] }
 0x433   :  { %v2134_v49 = vadd.f32 %v2133_v46, %v2030_v11  ;;  %v2903_v24 = vmax.f32 %v2340_v48, 0.0  ;;  %v8839_v11 = vld [vmem:[#allocation19_spill] sm:$0xff]  ;;  %v8840_v46 = vld [vmem:[#allocation20_spill] sm:$0xff] }
 0x436   :  { %v2237_v44 = vpop.f32.mrf.mxu2 }
 0x437   :  { %v2238_v47 = vadd.f32 %v2237_v44, %v2134_v49  ;;  %v2341_v30 = vpop.f32.mrf.mxu3  ;;  %v2136_v54 = vpop.f32.mrf.mxu1  ;;  %v6450_v49 = vld [vmem:[#allocation8 + $0x160] sm:$0xf]  ;;  %v6958_v44 = vld [vmem:[#allocation8 + $0x16c] sm:$0xf0] }
 0x438   :  { %v2032_v23 = vpop.f32.mrf.mxu0 }
 0x439   :  { %v2033_v50 = vadd.f32 %v2032_v23, %v7756_v52  ;;  %v2342_v62 = vadd.f32 %v2341_v30, %v2238_v47  ;;  %v6451_v30 = vor.u32 %v6958_v44, %v6450_v49 }
 0x43a   :  { %2496 = vmatmul.bf16.gmra.mxu1 %v7352_v5  ;;  %v6990_v5 = vld [vmem:[#allocation8 + $0x26c] sm:$0xf0] }
 0x43b   :  { %v2137_v55 = vadd.f32 %v2136_v54, %v2033_v50  ;;  %2392 = vmatmul.bf16.gmra.mxu0 %v7350_v4  ;;  %v2907_v51 = vmax.f32 %v2342_v62, 0.0  ;;  %2600 = vmatmul.bf16.gmra.mxu2 %v7354_v6  ;;  %v7052_v4 = vld [vmem:[#allocation7] sm:$0xf]  ;;  %v6579_v29 = vor.u32 %v6990_v5, %v6578_v36  ;;  %v6322_v6 = vld [vmem:[#allocation8 + $0x60] sm:$0xf]  ;;  %v8842_v5 = vld [vmem:[#allocation22_spill] sm:$0xff] }
 0x43c   :  { %2704 = vmatmul.bf16.gmra.mxu3 %v7356_v7  ;;  %v7910_v27 = vperm.slane %v7052_v4, 3  ;;  %v6706_v7 = vld [vmem:[#allocation8 + $0x360] sm:$0xf]  ;;  %v6323_v10 = vor.u32 %v6926_v34, %v6322_v6  ;;  %3879 = vmatpush.bf16.msra.mxu1 %v6451_v30  ;;  %v8844_v6 = vld [vmem:[#allocation24_spill] sm:$0xff] }
 0x43d   :  { %v7907_v16 = vpack.c.bf16 %v2907_v51, %v2903_v24  ;;  %3983 = vmatpush.bf16.msra.mxu2 %v6579_v29  ;;  %v6707_v33 = vor.u32 %v7022_v13, %v6706_v7  ;;  %v8843_v29 = vld [vmem:[#allocation23_spill] sm:$0xff]  ;;  %v8848_v30 = vld [vmem:[#allocation28_spill] sm:$0xff] }
 0x43e   :  { %v2240_v41 = vpop.f32.mrf.mxu2  ;;  %3775 = vmatpush.bf16.msra.mxu0 %v6323_v10 }
 0x43f   :  { %8837 = vst [vmem:[#allocation102_spill] sm:$0xff] %v7907_v16  ;;  %v2241_v28 = vadd.f32 %v2240_v41, %v2137_v55  ;;  %v2344_v17 = vpop.f32.mrf.mxu3  ;;  %v2138_v26 = vpop.f32.mrf.mxu1  ;;  %4087 = vmatpush.bf16.msra.mxu3 %v6707_v33 }
 0x440   :  { %v2034_v25 = vpop.f32.mrf.mxu0 }
 0x441   :  { %v2035_v18 = vadd.f32 %v2034_v25, %v7756_v52  ;;  %v2345_v19 = vadd.f32 %v2344_v17, %v2241_v28 }
 0x443   :  { %v2139_v53 = vadd.f32 %v2138_v26, %v2035_v18  ;;  %v2911_v2 = vmax.f32 %v2345_v19, 0.0 }
 0x446   :  { %v2242_v14 = vpop.f32.mrf.mxu2 }
 0x447   :  { %v2243_v15 = vadd.f32 %v2242_v14, %v2139_v53  ;;  %v2346_v38 = vpop.f32.mrf.mxu3  ;;  %v2462_v60 = vpop.f32.mrf.mxu1  ;;  %v8841_v53 = vld [vmem:[#allocation21_spill] sm:$0xff] }
 0x448   :  { %v2358_v52 = vpop.f32.mrf.mxu0 }
 0x449   :  { %v2359_v0 = vadd.f32 %v2358_v52, %v7910_v27  ;;  %v2347_v45 = vadd.f32 %v2346_v38, %v2243_v15 }
 0x44a   :  { %2501 = vmatmul.bf16.gmra.mxu1 %v8838_v3 }
 0x44b   :  { %v2463_v1 = vadd.f32 %v2462_v60, %v2359_v0  ;;  %2397 = vmatmul.bf16.gmra.mxu0 %v7364_v39  ;;  %v2915_v43 = vmax.f32 %v2347_v45, 0.0  ;;  %2605 = vmatmul.bf16.gmra.mxu2 %v8839_v11 }
 0x44c   :  { %2709 = vmatmul.bf16.gmra.mxu3 %v8840_v46  ;;  %v8846_v46 = vld [vmem:[#allocation26_spill] sm:$0xff] }
 0x44d   :  { %v7917_v48 = vpack.c.bf16 %v2915_v43, %v2911_v2 }
 0x44e   :  { %v2566_v47 = vpop.f32.mrf.mxu2 }
 0x44f   :  { %v2567_v23 = vadd.f32 %v2566_v47, %v2463_v1  ;;  %v2670_v50 = vpop.f32.mrf.mxu3  ;;  %v2464_v39 = vpop.f32.mrf.mxu1  ;;  %v8847_v47 = vld [vmem:[#allocation27_spill] sm:$0xff] }
 0x450   :  { %v2360_v54 = vpop.f32.mrf.mxu0 }
 0x451   :  { %v2361_v62 = vadd.f32 %v2360_v54, %v7910_v27  ;;  %v2671_v55 = vadd.f32 %v2670_v50, %v2567_v23  ;;  %v8849_v23 = vld [vmem:[#allocation29_spill] sm:$0xff]  ;;  %v6562_v54 = vld [vmem:[#allocation8 + $0x240] sm:$0xf] }
 0x453   :  { %v2465_v24 = vadd.f32 %v2464_v39, %v2361_v62  ;;  %v2768_v4 = vmax.f32 %v2671_v55, 0.0  ;;  %v6986_v62 = vld [vmem:[#allocation8 + $0x24c] sm:$0xf0]  ;;  %v6306_v39 = vld [vmem:[#allocation8 + $0x40] sm:$0xf] }
 0x456   :  { %v2568_v51 = vpop.f32.mrf.mxu2 }
 0x457   :  { %v2569_v41 = vadd.f32 %v2568_v51, %v2465_v24  ;;  %v2672_v28 = vpop.f32.mrf.mxu3  ;;  %v2467_v18 = vpop.f32.mrf.mxu1  ;;  %v6563_v24 = vor.u32 %v6986_v62, %v6562_v54  ;;  %v6922_v51 = vld [vmem:[#allocation8 + $0x4c] sm:$0xf0] }
 0x458   :  { %v2363_v17 = vpop.f32.mrf.mxu0 }
 0x459   :  { %v2364_v25 = vadd.f32 %v2363_v17, %v7910_v27  ;;  %v2673_v26 = vadd.f32 %v2672_v28, %v2569_v41  ;;  %v6690_v41 = vld [vmem:[#allocation8 + $0x340] sm:$0xf]  ;;  %v7018_v28 = vld [vmem:[#allocation8 + $0x34c] sm:$0xf0]  ;;  %3984 = vmatpush.bf16.msra.mxu2 %v6563_v24 }
 0x45a   :  { %2506 = vmatmul.bf16.gmra.mxu1 %v8842_v5 }
 0x45b   :  { %v2468_v19 = vadd.f32 %v2467_v18, %v2364_v25  ;;  %2402 = vmatmul.bf16.gmra.mxu0 %v8841_v53  ;;  %v2772_v36 = vmax.f32 %v2673_v26, 0.0  ;;  %2610 = vmatmul.bf16.gmra.mxu2 %v8843_v29  ;;  %v6307_v26 = vor.u32 %v6922_v51, %v6306_v39  ;;  %v6434_v53 = vld [vmem:[#allocation8 + $0x140] sm:$0xf] }
 0x45c   :  { %2714 = vmatmul.bf16.gmra.mxu3 %v8844_v6 }
 0x45d   :  { %v7925_v34 = vpack.c.bf16 %v2772_v36, %v2768_v4  ;;  %v6954_v4 = vld [vmem:[#allocation8 + $0x14c] sm:$0xf0]  ;;  %3776 = vmatpush.bf16.msra.mxu0 %v6307_v26 }
 0x45e   :  { %v2571_v7 = vpop.f32.mrf.mxu2  ;;  %v6435_v29 = vor.u32 %v6954_v4, %v6434_v53  ;;  %v8854_v26 = vld [vmem:[#allocation37_spill] sm:$0xff]  ;;  %v8856_v53 = vld [vmem:[#allocation39_spill] sm:$0xff] }
 0x45f   :  { %8845 = vst [vmem:[#allocation18_spill] sm:$0xff] %v7925_v34  ;;  %v2572_v10 = vadd.f32 %v2571_v7, %v2468_v19  ;;  %v2675_v13 = vpop.f32.mrf.mxu3  ;;  %v2469_v15 = vpop.f32.mrf.mxu1  ;;  %v6691_v19 = vor.u32 %v7018_v28, %v6690_v41 }
 0x460   :  { %v2365_v14 = vpop.f32.mrf.mxu0  ;;  %3880 = vmatpush.bf16.msra.mxu1 %v6435_v29 }
 0x461   :  { %v2366_v33 = vadd.f32 %v2365_v14, %v7910_v27  ;;  %v2676_v38 = vadd.f32 %v2675_v13, %v2572_v10  ;;  %4088 = vmatpush.bf16.msra.mxu3 %v6691_v19  ;;  %v8855_v19 = vld [vmem:[#allocation38_spill] sm:$0xff] }
 0x463   :  { %v2470_v52 = vadd.f32 %v2469_v15, %v2366_v33  ;;  %v2776_v49 = vmax.f32 %v2676_v38, 0.0 }
 0x466   :  { %v2573_v0 = vpop.f32.mrf.mxu2 }
 0x467   :  { %v2574_v60 = vadd.f32 %v2573_v0, %v2470_v52  ;;  %v2677_v45 = vpop.f32.mrf.mxu3  ;;  %v2472_v43 = vpop.f32.mrf.mxu1 }
 0x468   :  { %v2368_v1 = vpop.f32.mrf.mxu0 }
 0x469   :  { %v2369_v2 = vadd.f32 %v2368_v1, %v7910_v27  ;;  %v2678_v3 = vadd.f32 %v2677_v45, %v2574_v60  ;;  %v8850_v1 = vld [vmem:[#allocation32_spill] sm:$0xff] }
 0x46a   :  { %2511 = vmatmul.bf16.gmra.mxu1 %v8847_v47 }
 0x46b   :  { %v2473_v11 = vadd.f32 %v2472_v43, %v2369_v2  ;;  %2407 = vmatmul.bf16.gmra.mxu0 %v8846_v46  ;;  %v2780_v44 = vmax.f32 %v2678_v3, 0.0  ;;  %2615 = vmatmul.bf16.gmra.mxu2 %v8848_v30  ;;  %v8851_v2 = vld [vmem:[#allocation33_spill] sm:$0xff]  ;;  %v8852_v43 = vld [vmem:[#allocation34_spill] sm:$0xff] }
 0x46c   :  { %2719 = vmatmul.bf16.gmra.mxu3 %v8849_v23 }
 0x46d   :  { %v7933_v50 = vpack.c.bf16 %v2780_v44, %v2776_v49 }
 0x46e   :  { %v2576_v55 = vpop.f32.mrf.mxu2 }
 0x46f   :  { %v2577_v17 = vadd.f32 %v2576_v55, %v2473_v11  ;;  %v2680_v25 = vpop.f32.mrf.mxu3  ;;  %v2474_v5 = vpop.f32.mrf.mxu1 }
 0x470   :  { %v2370_v18 = vpop.f32.mrf.mxu0 }
 0x471   :  { %v2371_v36 = vadd.f32 %v2370_v18, %v7910_v27  ;;  %v2681_v6 = vadd.f32 %v2680_v25, %v2577_v17  ;;  %v8853_v17 = vld [vmem:[#allocation36_spill] sm:$0xff] }
 0x473   :  { %v2475_v7 = vadd.f32 %v2474_v5, %v2371_v36  ;;  %v2784_v60 = vmax.f32 %v2681_v6, 0.0 }
 0x476   :  { %v2578_v10 = vpop.f32.mrf.mxu2 }
 0x477   :  { %v2579_v13 = vadd.f32 %v2578_v10, %v2475_v7  ;;  %v2682_v14 = vpop.f32.mrf.mxu3  ;;  %v2477_v38 = vpop.f32.mrf.mxu1 }
 0x478   :  { %v2373_v33 = vpop.f32.mrf.mxu0 }
 0x479   :  { %v2374_v15 = vadd.f32 %v2373_v33, %v7910_v27  ;;  %v2683_v52 = vadd.f32 %v2682_v14, %v2579_v13  ;;  %v6546_v33 = vld [vmem:[#allocation8 + $0x220] sm:$0xf] }
 0x47a   :  { %2516 = vmatmul.bf16.gmra.mxu1 %v8850_v1  ;;  %v7014_v1 = vld [vmem:[#allocation8 + $0x32c] sm:$0xf0] }
 0x47b   :  { %v2478_v0 = vadd.f32 %v2477_v38, %v2374_v15  ;;  %2412 = vmatmul.bf16.gmra.mxu0 %v8745_v63  ;;  %v2788_v45 = vmax.f32 %v2683_v52, 0.0  ;;  %2620 = vmatmul.bf16.gmra.mxu2 %v8851_v2  ;;  %v6982_v15 = vld [vmem:[#allocation8 + $0x22c] sm:$0xf0]  ;;  %v6290_v52 = vld [vmem:[#allocation8 + $0x20] sm:$0xf] }
 0x47c   :  { %2724 = vmatmul.bf16.gmra.mxu3 %v8852_v43  ;;  %v6547_v38 = vor.u32 %v6982_v15, %v6546_v33  ;;  %v6418_v2 = vld [vmem:[#allocation8 + $0x120] sm:$0xf]  ;;  %v6950_v43 = vld [vmem:[#allocation8 + $0x12c] sm:$0xf0] }
 0x47d   :  { %v7941_v3 = vpack.c.bf16 %v2788_v45, %v2784_v60  ;;  %v6674_v60 = vld [vmem:[#allocation8 + $0x320] sm:$0xf]  ;;  %v8861_v33 = vld [vmem:[#allocation45_spill] sm:$0xff] }
 0x47e   :  { %v2581_v11 = vpop.f32.mrf.mxu2  ;;  %3985 = vmatpush.bf16.msra.mxu2 %v6547_v38 }
 0x47f   :  { %v2582_v46 = vadd.f32 %v2581_v11, %v2478_v0  ;;  %v2685_v49 = vpop.f32.mrf.mxu3  ;;  %v2479_v30 = vpop.f32.mrf.mxu1  ;;  %v6918_v0 = vld [vmem:[#allocation8 + $0x2c] sm:$0xf0] }
 0x480   :  { %v2375_v44 = vpop.f32.mrf.mxu0  ;;  %v6291_v45 = vor.u32 %v6918_v0, %v6290_v52 }
 0x481   :  { %v2376_v47 = vadd.f32 %v2375_v44, %v7910_v27  ;;  %v2686_v23 = vadd.f32 %v2685_v49, %v2582_v46  ;;  %v6675_v46 = vor.u32 %v7014_v1, %v6674_v60  ;;  %v6419_v49 = vor.u32 %v6950_v43, %v6418_v2 }
 0x482   :  { %3777 = vmatpush.bf16.msra.mxu0 %v6291_v45 }
 0x483   :  { %v2480_v54 = vadd.f32 %v2479_v30, %v2376_v47  ;;  %v2792_v25 = vmax.f32 %v2686_v23, 0.0  ;;  %4089 = vmatpush.bf16.msra.mxu3 %v6675_v46  ;;  %3881 = vmatpush.bf16.msra.mxu1 %v6419_v49  ;;  %v6978_v46 = vld [vmem:[#allocation8 + $0x20c] sm:$0xf0] }
 0x486   :  { %v2583_v63 = vpop.f32.mrf.mxu2 }
 0x487   :  { %v2584_v62 = vadd.f32 %v2583_v63, %v2480_v54  ;;  %v2687_v39 = vpop.f32.mrf.mxu3  ;;  %v2482_v51 = vpop.f32.mrf.mxu1 }
 0x488   :  { %v2378_v55 = vpop.f32.mrf.mxu0 }
 0x489   :  { %v2379_v24 = vadd.f32 %v2378_v55, %v7910_v27  ;;  %v2688_v41 = vadd.f32 %v2687_v39, %v2584_v62 }
 0x48a   :  { %2521 = vmatmul.bf16.gmra.mxu1 %v8854_v26 }
 0x48b   :  { %v2483_v28 = vadd.f32 %v2482_v51, %v2379_v24  ;;  %2417 = vmatmul.bf16.gmra.mxu0 %v8853_v17  ;;  %v2796_v18 = vmax.f32 %v2688_v41, 0.0  ;;  %2625 = vmatmul.bf16.gmra.mxu2 %v8855_v19 }
 0x48c   :  { %2729 = vmatmul.bf16.gmra.mxu3 %v8856_v53 }
 0x48d   :  { %v7949_v4 = vpack.c.bf16 %v2796_v18, %v2792_v25 }
 0x48e   :  { %v2586_v36 = vpop.f32.mrf.mxu2 }
 0x48f   :  { %8857 = vst [vmem:[#allocation19_spill] sm:$0xff] %v7949_v4  ;;  %v2587_v5 = vadd.f32 %v2586_v36, %v2483_v28  ;;  %v2690_v29 = vpop.f32.mrf.mxu3  ;;  %v2484_v10 = vpop.f32.mrf.mxu1 }
 0x490   :  { %v2380_v6 = vpop.f32.mrf.mxu0 }
 0x491   :  { %v2381_v7 = vadd.f32 %v2380_v6, %v7910_v27  ;;  %v2691_v13 = vadd.f32 %v2690_v29, %v2587_v5  ;;  %v8858_v6 = vld [vmem:[#allocation42_spill] sm:$0xff] }
 0x493   :  { %v2485_v14 = vadd.f32 %v2484_v10, %v2381_v7  ;;  %v2800_v39 = vmax.f32 %v2691_v13, 0.0  ;;  %v8859_v13 = vld [vmem:[#allocation43_spill] sm:$0xff] }
 0x496   :  { %v2588_v11 = vpop.f32.mrf.mxu2 }
 0x497   :  { %v2589_v44 = vadd.f32 %v2588_v11, %v2485_v14  ;;  %v2692_v47 = vpop.f32.mrf.mxu3  ;;  %v2487_v54 = vpop.f32.mrf.mxu1  ;;  %v8860_v14 = vld [vmem:[#allocation44_spill] sm:$0xff]  ;;  %v6530_v11 = vld [vmem:[#allocation8 + $0x200] sm:$0xf] }
 0x498   :  { %v2383_v30 = vpop.f32.mrf.mxu0  ;;  %v6531_v49 = vor.u32 %v6978_v46, %v6530_v11 }
 0x499   :  { %v2384_v23 = vadd.f32 %v2383_v30, %v7910_v27  ;;  %v2693_v63 = vadd.f32 %v2692_v47, %v2589_v44 }
 0x49a   :  { %2526 = vmatmul.bf16.gmra.mxu1 %v7444_v57  ;;  %3986 = vmatpush.bf16.msra.mxu2 %v6531_v49 }
 0x49b   :  { %v2488_v62 = vadd.f32 %v2487_v54, %v2384_v23  ;;  %2422 = vmatmul.bf16.gmra.mxu0 %v7442_v9  ;;  %v2804_v55 = vmax.f32 %v2693_v63, 0.0  ;;  %2630 = vmatmul.bf16.gmra.mxu2 %v7446_v42 }
 0x49c   :  { %2734 = vmatmul.bf16.gmra.mxu3 %v7449_v40 }
 0x49d   :  { %v7957_v24 = vpack.c.bf16 %v2804_v55, %v2800_v39  ;;  %v8863_v55 = vld [vmem:[#allocation47_spill] sm:$0xff] }
 0x49e   :  { %v2591_v51 = vpop.f32.mrf.mxu2 }
 0x49f   :  { %v2592_v41 = vadd.f32 %v2591_v51, %v2488_v62  ;;  %v2695_v28 = vpop.f32.mrf.mxu3  ;;  %v2489_v18 = vpop.f32.mrf.mxu1 }
 0x4a0   :  { %v2385_v17 = vpop.f32.mrf.mxu0 }
 0x4a1   :  { %v2386_v25 = vadd.f32 %v2385_v17, %v7910_v27  ;;  %v2696_v26 = vadd.f32 %v2695_v28, %v2592_v41  ;;  %v8864_v28 = vld [vmem:[#allocation48_spill] sm:$0xff]  ;;  %v8865_v17 = vld [vmem:[#allocation49_spill] sm:$0xff] }
 0x4a3   :  { %v2490_v19 = vadd.f32 %v2489_v18, %v2386_v25  ;;  %v2808_v7 = vmax.f32 %v2696_v26, 0.0  ;;  %v8866_v25 = vld [vmem:[#allocation50_spill] sm:$0xff]  ;;  %v6274_v26 = vld [vmem:[#allocation8] sm:$0xf] }
 0x4a6   :  { %v2593_v9 = vpop.f32.mrf.mxu2 }
 0x4a7   :  { %v2594_v53 = vadd.f32 %v2593_v9, %v2490_v19  ;;  %v2697_v36 = vpop.f32.mrf.mxu3  ;;  %v2492_v42 = vpop.f32.mrf.mxu1  ;;  %v6914_v19 = vld [vmem:[#allocation8 + $0xc] sm:$0xf0]  ;;  %v6658_v9 = vld [vmem:[#allocation8 + $0x300] sm:$0xf] }
 0x4a8   :  { %v2388_v5 = vpop.f32.mrf.mxu0 }
 0x4a9   :  { %v2389_v57 = vadd.f32 %v2388_v5, %v7910_v27  ;;  %v2698_v29 = vadd.f32 %v2697_v36, %v2594_v53  ;;  %v6275_v36 = vor.u32 %v6914_v19, %v6274_v26  ;;  %v7010_v5 = vld [vmem:[#allocation8 + $0x30c] sm:$0xf0] }
 0x4aa   :  { %2531 = vmatmul.bf16.gmra.mxu1 %v8859_v13 }
 0x4ab   :  { %v2493_v40 = vadd.f32 %v2492_v42, %v2389_v57  ;;  %2427 = vmatmul.bf16.gmra.mxu0 %v8858_v6  ;;  %v2812_v10 = vmax.f32 %v2698_v29, 0.0  ;;  %2635 = vmatmul.bf16.gmra.mxu2 %v8860_v14  ;;  %v6402_v57 = vld [vmem:[#allocation8 + $0x100] sm:$0xf]  ;;  %v6946_v42 = vld [vmem:[#allocation8 + $0x10c] sm:$0xf0] }
 0x4ac   :  { %2739 = vmatmul.bf16.gmra.mxu3 %v8861_v33  ;;  %3778 = vmatpush.bf16.msra.mxu0 %v6275_v36 }
 0x4ad   :  { %v7965_v15 = vpack.c.bf16 %v2812_v10, %v2808_v7  ;;  %v6659_v7 = vor.u32 %v7010_v5, %v6658_v9  ;;  %v6403_v10 = vor.u32 %v6946_v42, %v6402_v57  ;;  %v8872_v5 = vld [vmem:[#allocation57_spill] sm:$0xff] }
 0x4ae   :  { %v2596_v38 = vpop.f32.mrf.mxu2 }
 0x4af   :  { %8862 = vst [vmem:[#allocation20_spill] sm:$0xff] %v7965_v15  ;;  %v2597_v52 = vadd.f32 %v2596_v38, %v2493_v40  ;;  %v2700_v0 = vpop.f32.mrf.mxu3  ;;  %v2494_v1 = vpop.f32.mrf.mxu1  ;;  %4090 = vmatpush.bf16.msra.mxu3 %v6659_v7  ;;  %3882 = vmatpush.bf16.msra.mxu1 %v6403_v10  ;;  %v7004_v10 = vld [vmem:[#allocation8 + $0x2e4] sm:$0xf] }
 0x4b0   :  { %v2390_v60 = vpop.f32.mrf.mxu0 }
 0x4b1   :  { %v2391_v45 = vadd.f32 %v2390_v60, %v7910_v27  ;;  %v2701_v2 = vadd.f32 %v2700_v0, %v2597_v52 }
 0x4b3   :  { %v2495_v43 = vadd.f32 %v2494_v1, %v2391_v45  ;;  %v2816_v51 = vmax.f32 %v2701_v2, 0.0 }
 0x4b6   :  { %v2598_v44 = vpop.f32.mrf.mxu2 }
 0x4b7   :  { %v2599_v47 = vadd.f32 %v2598_v44, %v2495_v43  ;;  %v2702_v30 = vpop.f32.mrf.mxu3  ;;  %v2497_v63 = vpop.f32.mrf.mxu1  ;;  %v8868_v44 = vld [vmem:[#allocation53_spill] sm:$0xff] }
 0x4b8   :  { %v2393_v23 = vpop.f32.mrf.mxu0 }
 0x4b9   :  { %v2394_v54 = vadd.f32 %v2393_v23, %v7910_v27  ;;  %v2703_v62 = vadd.f32 %v2702_v30, %v2599_v47  ;;  %v8869_v47 = vld [vmem:[#allocation54_spill] sm:$0xff]  ;;  %v8870_v30 = vld [vmem:[#allocation55_spill] sm:$0xff] }
 0x4ba   :  { %2536 = vmatmul.bf16.gmra.mxu1 %v8864_v28 }
 0x4bb   :  { %v2498_v39 = vadd.f32 %v2497_v63, %v2394_v54  ;;  %2432 = vmatmul.bf16.gmra.mxu0 %v8863_v55  ;;  %v2820_v41 = vmax.f32 %v2703_v62, 0.0  ;;  %2640 = vmatmul.bf16.gmra.mxu2 %v8865_v17 }
 0x4bc   :  { %2744 = vmatmul.bf16.gmra.mxu3 %v8866_v25 }
 0x4bd   :  { %v7973_v18 = vpack.c.bf16 %v2820_v41, %v2816_v51 }
 0x4be   :  { %v2601_v53 = vpop.f32.mrf.mxu2 }
 0x4bf   :  { %8867 = vst [vmem:[#allocation21_spill] sm:$0xff] %v7973_v18  ;;  %v2602_v29 = vadd.f32 %v2601_v53, %v2498_v39  ;;  %v2705_v40 = vpop.f32.mrf.mxu3  ;;  %v2499_v14 = vpop.f32.mrf.mxu1 }
 0x4c0   :  { %v2395_v6 = vpop.f32.mrf.mxu0 }
 0x4c1   :  { %v2396_v13 = vadd.f32 %v2395_v6, %v7910_v27  ;;  %v2706_v33 = vadd.f32 %v2705_v40, %v2602_v29  ;;  %v8873_v29 = vld [vmem:[#allocation58_spill] sm:$0xff]  ;;  %v8874_v40 = vld [vmem:[#allocation59_spill] sm:$0xff]  ;;  %v8875_v6 = vld [vmem:[#allocation60_spill] sm:$0xff] }
 0x4c3   :  { %v2500_v38 = vadd.f32 %v2499_v14, %v2396_v13  ;;  %v2824_v46 = vmax.f32 %v2706_v33, 0.0  ;;  %v6644_v13 = vld [vmem:[#allocation8 + $0x2f0] sm:$0xf0]  ;;  %v6940_v14 = vld [vmem:[#allocation8 + $0xe4] sm:$0xf] }
 0x4c6   :  { %v2603_v52 = vpop.f32.mrf.mxu2 }
 0x4c7   :  { %v2604_v0 = vadd.f32 %v2603_v52, %v2500_v38  ;;  %v2707_v60 = vpop.f32.mrf.mxu3  ;;  %v2502_v2 = vpop.f32.mrf.mxu1  ;;  %v6647_v38 = vor.u32 %v7004_v10, %v6644_v13  ;;  %v6388_v52 = vld [vmem:[#allocation8 + $0xf0] sm:$0xf0] }
 0x4c8   :  { %v2398_v45 = vpop.f32.mrf.mxu0 }
 0x4c9   :  { %v2399_v1 = vadd.f32 %v2398_v45, %v7910_v27  ;;  %v2708_v43 = vadd.f32 %v2707_v60, %v2604_v0  ;;  %v7036_v0 = vld [vmem:[#allocation8 + $0x3e4] sm:$0xf]  ;;  %v6772_v60 = vld [vmem:[#allocation8 + $0x3f0] sm:$0xf0]  ;;  %4395 = vmatpush.bf16.msrb.mxu2 %v6647_v38 }
 0x4ca   :  { %2541 = vmatmul.bf16.gmra.mxu1 %v8868_v44 }
 0x4cb   :  { %v2503_v11 = vadd.f32 %v2502_v2, %v2399_v1  ;;  %2437 = vmatmul.bf16.gmra.mxu0 %v8765_v35  ;;  %v2828_v49 = vmax.f32 %v2708_v43, 0.0  ;;  %2645 = vmatmul.bf16.gmra.mxu2 %v8869_v47  ;;  %v6391_v43 = vor.u32 %v6940_v14, %v6388_v52 }
 0x4cc   :  { %2749 = vmatmul.bf16.gmra.mxu3 %v8870_v30  ;;  %v6972_v30 = vld [vmem:[#allocation8 + $0x1e4] sm:$0xf] }
 0x4cd   :  { %v7981_v23 = vpack.c.bf16 %v2828_v49, %v2824_v46  ;;  %4187 = vmatpush.bf16.msrb.mxu0 %v6391_v43 }
 0x4ce   :  { %v2606_v54 = vpop.f32.mrf.mxu2 }
 0x4cf   :  { %8871 = vst [vmem:[#allocation22_spill] sm:$0xff] %v7981_v23  ;;  %v2607_v63 = vadd.f32 %v2606_v54, %v2503_v11  ;;  %v2710_v62 = vpop.f32.mrf.mxu3  ;;  %v2504_v51 = vpop.f32.mrf.mxu1  ;;  %v6775_v11 = vor.u32 %v7036_v0, %v6772_v60  ;;  %v6516_v54 = vld [vmem:[#allocation8 + $0x1f0] sm:$0xf0]  ;;  %v8879_v0 = vld [vmem:[#allocation72_spill] sm:$0xff]  ;;  %v8880_v60 = vld [vmem:[#allocation89_spill] sm:$0xff] }
 0x4d0   :  { %v2400_v39 = vpop.f32.mrf.mxu0 }
 0x4d1   :  { %v2401_v55 = vadd.f32 %v2400_v39, %v7910_v27  ;;  %v2711_v41 = vadd.f32 %v2710_v62, %v2607_v63  ;;  %4499 = vmatpush.bf16.msrb.mxu3 %v6775_v11  ;;  %v6519_v63 = vor.u32 %v6972_v30, %v6516_v54  ;;  %v7000_v30 = vld [vmem:[#allocation8 + $0x2c4] sm:$0xf]  ;;  %v6628_v54 = vld [vmem:[#allocation8 + $0x2d0] sm:$0xf0] }
 0x4d3   :  { %v2505_v28 = vadd.f32 %v2504_v51, %v2401_v55  ;;  %v2832_v57 = vmax.f32 %v2711_v41, 0.0  ;;  %4291 = vmatpush.bf16.msrb.mxu1 %v6519_v63  ;;  %v6631_v63 = vor.u32 %v7000_v30, %v6628_v54 }
 0x4d5   :  { %4396 = vmatpush.bf16.msrb.mxu2 %v6631_v63 }
 0x4d6   :  { %v2608_v35 = vpop.f32.mrf.mxu2 }
 0x4d7   :  { %v2609_v17 = vadd.f32 %v2608_v35, %v2505_v28  ;;  %v2712_v25 = vpop.f32.mrf.mxu3  ;;  %v2507_v9 = vpop.f32.mrf.mxu1 }
 0x4d8   :  { %v2403_v26 = vpop.f32.mrf.mxu0 }
 0x4d9   :  { %v2404_v19 = vadd.f32 %v2403_v26, %v7910_v27  ;;  %v2713_v53 = vadd.f32 %v2712_v25, %v2609_v17 }
 0x4da   :  { %2546 = vmatmul.bf16.gmra.mxu1 %v8873_v29 }
 0x4db   :  { %v2508_v36 = vadd.f32 %v2507_v9, %v2404_v19  ;;  %2442 = vmatmul.bf16.gmra.mxu0 %v8872_v5  ;;  %v2836_v42 = vmax.f32 %v2713_v53, 0.0  ;;  %2650 = vmatmul.bf16.gmra.mxu2 %v8874_v40 }
 0x4dc   :  { %2754 = vmatmul.bf16.gmra.mxu3 %v8875_v6 }
 0x4dd   :  { %v7989_v7 = vpack.c.bf16 %v2836_v42, %v2832_v57 }
 0x4de   :  { %v2611_v33 = vpop.f32.mrf.mxu2 }
 0x4df   :  { %8876 = vst [vmem:[#allocation23_spill] sm:$0xff] %v7989_v7  ;;  %v2612_v45 = vadd.f32 %v2611_v33, %v2508_v36  ;;  %v2715_v1 = vpop.f32.mrf.mxu3  ;;  %v2509_v49 = vpop.f32.mrf.mxu1  ;;  %v8878_v33 = vld [vmem:[#allocation25_spill] sm:$0xff] }
 0x4e0   :  { %v2405_v2 = vpop.f32.mrf.mxu0 }
 0x4e1   :  { %v2406_v46 = vadd.f32 %v2405_v2, %v7910_v27  ;;  %v2716_v44 = vadd.f32 %v2715_v1, %v2612_v45 }
 0x4e3   :  { %v2510_v47 = vadd.f32 %v2509_v49, %v2406_v46  ;;  %v2840_v25 = vmax.f32 %v2716_v44, 0.0 }
 0x4e6   :  { %v2613_v62 = vpop.f32.mrf.mxu2 }
 0x4e7   :  { %v2614_v39 = vadd.f32 %v2613_v62, %v2510_v47  ;;  %v2717_v55 = vpop.f32.mrf.mxu3  ;;  %v2512_v28 = vpop.f32.mrf.mxu1  ;;  %v6936_v62 = vld [vmem:[#allocation8 + $0xc4] sm:$0xf] }
 0x4e8   :  { %v2408_v51 = vpop.f32.mrf.mxu0 }
 0x4e9   :  { %v2409_v41 = vadd.f32 %v2408_v51, %v7910_v27  ;;  %v2718_v35 = vadd.f32 %v2717_v55, %v2614_v39  ;;  %v6372_v39 = vld [vmem:[#allocation8 + $0xd0] sm:$0xf0]  ;;  %v7032_v55 = vld [vmem:[#allocation8 + $0x3c4] sm:$0xf] }
 0x4ea   :  { %2551 = vmatmul.bf16.gmra.mxu1 %v7524_v58  ;;  %v6375_v51 = vor.u32 %v6936_v62, %v6372_v39  ;;  %v8885_v62 = vld [vmem:[#allocation35_spill] sm:$0xff] }
 0x4eb   :  { %v2513_v17 = vadd.f32 %v2512_v28, %v2409_v41  ;;  %2447 = vmatmul.bf16.gmra.mxu0 %v7522_v8  ;;  %v2844_v26 = vmax.f32 %v2718_v35, 0.0  ;;  %2655 = vmatmul.bf16.gmra.mxu2 %v7526_v37  ;;  %v6756_v41 = vld [vmem:[#allocation8 + $0x3d0] sm:$0xf0]  ;;  %v6968_v28 = vld [vmem:[#allocation8 + $0x1c4] sm:$0xf] }
 0x4ec   :  { %2759 = vmatmul.bf16.gmra.mxu3 %v7529_v21  ;;  %v6500_v35 = vld [vmem:[#allocation8 + $0x1d0] sm:$0xf0]  ;;  %4188 = vmatpush.bf16.msrb.mxu0 %v6375_v51  ;;  %v8886_v51 = vld [vmem:[#allocation31_spill] sm:$0xff] }
 0x4ed   :  { %v7997_v19 = vpack.c.bf16 %v2844_v26, %v2840_v25  ;;  %v6759_v25 = vor.u32 %v7032_v55, %v6756_v41  ;;  %v6503_v26 = vor.u32 %v6968_v28, %v6500_v35  ;;  %v8887_v41 = vld [vmem:[#allocation91_spill] sm:$0xff] }
 0x4ee   :  { %v2616_v9 = vpop.f32.mrf.mxu2 }
 0x4ef   :  { %8877 = vst [vmem:[#allocation24_spill] sm:$0xff] %v7997_v19  ;;  %v2617_v53 = vadd.f32 %v2616_v9, %v2513_v17  ;;  %v2720_v36 = vpop.f32.mrf.mxu3  ;;  %v2514_v42 = vpop.f32.mrf.mxu1  ;;  %4500 = vmatpush.bf16.msrb.mxu3 %v6759_v25  ;;  %4292 = vmatpush.bf16.msrb.mxu1 %v6503_v26 }
 0x4f0   :  { %v2410_v5 = vpop.f32.mrf.mxu0 }
 0x4f1   :  { %v2411_v57 = vadd.f32 %v2410_v5, %v7910_v27  ;;  %v2721_v29 = vadd.f32 %v2720_v36, %v2617_v53 }
 0x4f3   :  { %v2515_v40 = vadd.f32 %v2514_v42, %v2411_v57  ;;  %v2848_v38 = vmax.f32 %v2721_v29, 0.0 }
 0x4f6   :  { %v2618_v8 = vpop.f32.mrf.mxu2 }
 0x4f7   :  { %v2619_v6 = vadd.f32 %v2618_v8, %v2515_v40  ;;  %v2722_v10 = vpop.f32.mrf.mxu3  ;;  %v2517_v37 = vpop.f32.mrf.mxu1  ;;  %v8882_v40 = vld [vmem:[#allocation30_spill] sm:$0xff] }
 0x4f8   :  { %v2413_v13 = vpop.f32.mrf.mxu0 }
 0x4f9   :  { %v2414_v58 = vadd.f32 %v2413_v13, %v7910_v27  ;;  %v2723_v14 = vadd.f32 %v2722_v10, %v2619_v6  ;;  %v8883_v10 = vld [vmem:[#allocation73_spill] sm:$0xff]  ;;  %v8884_v13 = vld [vmem:[#allocation90_spill] sm:$0xff] }
 0x4fa   :  { %3883 = vmatmul.bf16.vlgmr.msra.gmra.mxu1 %v8879_v0 }
 0x4fb   :  { %v2518_v21 = vadd.f32 %v2517_v37, %v2414_v58  ;;  %3779 = vmatmul.bf16.vlgmr.msra.gmra.mxu0 %v8878_v33  ;;  %v2852_v52 = vmax.f32 %v2723_v14, 0.0  ;;  %3987 = vmatmul.bf16.vlgmr.msra.gmra.mxu2 %v8880_v60 }
 0x4fc   :  { %4091 = vmatmul.bf16.vlgmr.msra.gmra.mxu3 %v7925_v34 }
 0x4fd   :  { %v8005_v45 = vpack.c.bf16 %v2852_v52, %v2848_v38 }
 0x4fe   :  { %v2621_v1 = vpop.f32.mrf.mxu2 }
 0x4ff   :  { %8881 = vst [vmem:[#allocation26_spill] sm:$0xff] %v8005_v45  ;;  %v2622_v2 = vadd.f32 %v2621_v1, %v2518_v21  ;;  %v2725_v43 = vpop.f32.mrf.mxu3  ;;  %v2519_v49 = vpop.f32.mrf.mxu1 }
 0x500   :  { %v2415_v11 = vpop.f32.mrf.mxu0 }
 0x501   :  { %v2416_v46 = vadd.f32 %v2415_v11, %v7910_v27  ;;  %v2726_v44 = vadd.f32 %v2725_v43, %v2622_v2 }
 0x503   :  { %v2520_v47 = vadd.f32 %v2519_v49, %v2416_v46  ;;  %v2856_v8 = vmax.f32 %v2726_v44, 0.0 }
 0x506   :  { %v2623_v17 = vpop.f32.mrf.mxu2 }
 0x507   :  { %v2624_v9 = vadd.f32 %v2623_v17, %v2520_v47  ;;  %v2727_v53 = vpop.f32.mrf.mxu3  ;;  %v2522_v57 = vpop.f32.mrf.mxu1 }
 0x508   :  { %v2418_v36 = vpop.f32.mrf.mxu0 }
 0x509   :  { %v2419_v5 = vadd.f32 %v2418_v36, %v7910_v27  ;;  %v2728_v42 = vadd.f32 %v2727_v53, %v2624_v9 }
 0x50a   :  { %3888 = vmatmul.bf16.gmra.mxu1 %v8883_v10 }
 0x50b   :  { %v2523_v29 = vadd.f32 %v2522_v57, %v2419_v5  ;;  %3784 = vmatmul.bf16.gmra.mxu0 %v8882_v40  ;;  %v2860_v6 = vmax.f32 %v2728_v42, 0.0  ;;  %3992 = vmatmul.bf16.gmra.mxu2 %v8884_v13 }
 0x50c   :  { %4096 = vmatmul.bf16.gmra.mxu3 %v7933_v50 }
 0x50d   :  { %v8013_v58 = vpack.c.bf16 %v2860_v6, %v2856_v8 }
 0x50e   :  { %v2626_v37 = vpop.f32.mrf.mxu2 }
 0x50f   :  { %v2627_v14 = vadd.f32 %v2626_v37, %v2523_v29  ;;  %v2730_v21 = vpop.f32.mrf.mxu3  ;;  %v2524_v1 = vpop.f32.mrf.mxu1 }
 0x510   :  { %v2420_v38 = vpop.f32.mrf.mxu0 }
 0x511   :  { %v2421_v52 = vadd.f32 %v2420_v38, %v7910_v27  ;;  %v2731_v2 = vadd.f32 %v2730_v21, %v2627_v14  ;;  %v8889_v38 = vld [vmem:[#allocation40_spill] sm:$0xff] }
 0x513   :  { %v2525_v43 = vadd.f32 %v2524_v1, %v2421_v52  ;;  %v2864_v39 = vmax.f32 %v2731_v2, 0.0  ;;  %v8890_v2 = vld [vmem:[#allocation74_spill] sm:$0xff] }
 0x516   :  { %v2628_v11 = vpop.f32.mrf.mxu2 }
 0x517   :  { %v2629_v46 = vadd.f32 %v2628_v11, %v2525_v43  ;;  %v2732_v49 = vpop.f32.mrf.mxu3  ;;  %v2527_v30 = vpop.f32.mrf.mxu1  ;;  %v8891_v43 = vld [vmem:[#allocation92_spill] sm:$0xff] }
 0x518   :  { %v2423_v44 = vpop.f32.mrf.mxu0 }
 0x519   :  { %v2424_v47 = vadd.f32 %v2423_v44, %v7910_v27  ;;  %v2733_v54 = vadd.f32 %v2732_v49, %v2629_v46  ;;  %v6996_v46 = vld [vmem:[#allocation8 + $0x2a4] sm:$0xf]  ;;  %v6612_v49 = vld [vmem:[#allocation8 + $0x2b0] sm:$0xf0] }
 0x51a   :  { %3893 = vmatmul.bf16.gmra.mxu1 %v8886_v51  ;;  %v6932_v44 = vld [vmem:[#allocation8 + $0xa4] sm:$0xf] }
 0x51b   :  { %v2528_v63 = vadd.f32 %v2527_v30, %v2424_v47  ;;  %3789 = vmatmul.bf16.gmra.mxu0 %v8885_v62  ;;  %v2868_v55 = vmax.f32 %v2733_v54, 0.0  ;;  %3997 = vmatmul.bf16.gmra.mxu2 %v8887_v41  ;;  %v6615_v30 = vor.u32 %v6996_v46, %v6612_v49  ;;  %v6356_v54 = vld [vmem:[#allocation8 + $0xb0] sm:$0xf0]  ;;  %v8892_v49 = vld [vmem:[#allocation41_spill] sm:$0xff] }
 0x51c   :  { %4101 = vmatmul.bf16.gmra.mxu3 %v7941_v3 }
 0x51d   :  { %v8021_v28 = vpack.c.bf16 %v2868_v55, %v2864_v39  ;;  %v6740_v39 = vld [vmem:[#allocation8 + $0x3b0] sm:$0xf0]  ;;  %4397 = vmatpush.bf16.msrb.mxu2 %v6615_v30  ;;  %v8893_v30 = vld [vmem:[#allocation75_spill] sm:$0xff] }
 0x51e   :  { %v2631_v35 = vpop.f32.mrf.mxu2 }
 0x51f   :  { %8888 = vst [vmem:[#allocation27_spill] sm:$0xff] %v8021_v28  ;;  %v2632_v17 = vadd.f32 %v2631_v35, %v2528_v63  ;;  %v2735_v25 = vpop.f32.mrf.mxu3  ;;  %v2529_v53 = vpop.f32.mrf.mxu1  ;;  %v7028_v63 = vld [vmem:[#allocation8 + $0x3a4] sm:$0xf] }
 0x520   :  { %v2425_v26 = vpop.f32.mrf.mxu0 }
 0x521   :  { %v2426_v9 = vadd.f32 %v2425_v26, %v7910_v27  ;;  %v2736_v36 = vadd.f32 %v2735_v25, %v2632_v17  ;;  %v6359_v25 = vor.u32 %v6932_v44, %v6356_v54  ;;  %v6743_v26 = vor.u32 %v7028_v63, %v6740_v39  ;;  %v8894_v54 = vld [vmem:[#allocation93_spill] sm:$0xff] }
 0x523   :  { %v2530_v5 = vadd.f32 %v2529_v53, %v2426_v9  ;;  %v2872_v52 = vmax.f32 %v2736_v36, 0.0  ;;  %v6964_v9 = vld [vmem:[#allocation8 + $0x1a4] sm:$0xf]  ;;  %v6484_v53 = vld [vmem:[#allocation8 + $0x1b0] sm:$0xf0]  ;;  %4189 = vmatpush.bf16.msrb.mxu0 %v6359_v25  ;;  %4501 = vmatpush.bf16.msrb.mxu3 %v6743_v26 }
 0x526   :  { %v2633_v57 = vpop.f32.mrf.mxu2 }
 0x527   :  { %v2634_v42 = vadd.f32 %v2633_v57, %v2530_v5  ;;  %v2737_v29 = vpop.f32.mrf.mxu3  ;;  %v2532_v37 = vpop.f32.mrf.mxu1  ;;  %v6487_v57 = vor.u32 %v6964_v9, %v6484_v53 }
 0x528   :  { %v2428_v8 = vpop.f32.mrf.mxu0 }
 0x529   :  { %v2429_v6 = vadd.f32 %v2428_v8, %v7910_v27  ;;  %v2738_v14 = vadd.f32 %v2737_v29, %v2634_v42  ;;  %4293 = vmatpush.bf16.msrb.mxu1 %v6487_v57 }
 0x52a   :  { %3898 = vmatmul.bf16.gmra.mxu1 %v8890_v2 }
 0x52b   :  { %v2533_v21 = vadd.f32 %v2532_v37, %v2429_v6  ;;  %3794 = vmatmul.bf16.gmra.mxu0 %v8889_v38  ;;  %v2876_v1 = vmax.f32 %v2738_v14, 0.0  ;;  %4002 = vmatmul.bf16.gmra.mxu2 %v8891_v43 }
 0x52c   :  { %4106 = vmatmul.bf16.gmra.mxu3 %v7949_v4 }
 0x52d   :  { %v8029_v11 = vpack.c.bf16 %v2876_v1, %v2872_v52 }
 0x52e   :  { %v2636_v47 = vpop.f32.mrf.mxu2 }
 0x52f   :  { %v2637_v55 = vadd.f32 %v2636_v47, %v2533_v21  ;;  %v2740_v35 = vpop.f32.mrf.mxu3  ;;  %v2534_v5 = vpop.f32.mrf.mxu1 }
 0x530   :  { %v2430_v17 = vpop.f32.mrf.mxu0 }
 0x531   :  { %v2431_v36 = vadd.f32 %v2430_v17, %v7910_v27  ;;  %v2741_v42 = vadd.f32 %v2740_v35, %v2637_v55 }
 0x533   :  { %v2535_v29 = vadd.f32 %v2534_v5, %v2431_v36  ;;  %v2880_v44 = vmax.f32 %v2741_v42, 0.0 }
 0x536   :  { %v2638_v8 = vpop.f32.mrf.mxu2 }
 0x537   :  { %v2639_v6 = vadd.f32 %v2638_v8, %v2535_v29  ;;  %v2742_v37 = vpop.f32.mrf.mxu3  ;;  %v2537_v52 = vpop.f32.mrf.mxu1 }
 0x538   :  { %v2433_v14 = vpop.f32.mrf.mxu0 }
 0x539   :  { %v2434_v21 = vadd.f32 %v2433_v14, %v7910_v27  ;;  %v2743_v1 = vadd.f32 %v2742_v37, %v2639_v6  ;;  %v8896_v14 = vld [vmem:[#allocation46_spill] sm:$0xff] }
 0x53a   :  { %3903 = vmatmul.bf16.gmra.mxu1 %v8893_v30 }
 0x53b   :  { %v2538_v46 = vadd.f32 %v2537_v52, %v2434_v21  ;;  %3799 = vmatmul.bf16.gmra.mxu0 %v8892_v49  ;;  %v2884_v47 = vmax.f32 %v2743_v1, 0.0  ;;  %4007 = vmatmul.bf16.gmra.mxu2 %v8894_v54  ;;  %v8897_v1 = vld [vmem:[#allocation76_spill] sm:$0xff] }
 0x53c   :  { %4111 = vmatmul.bf16.gmra.mxu3 %v7957_v24 }
 0x53d   :  { %v8037_v63 = vpack.c.bf16 %v2884_v47, %v2880_v44  ;;  %v6992_v47 = vld [vmem:[#allocation8 + $0x284] sm:$0xf] }
 0x53e   :  { %v2641_v39 = vpop.f32.mrf.mxu2 }
 0x53f   :  { %8895 = vst [vmem:[#allocation28_spill] sm:$0xff] %v8037_v63  ;;  %v2642_v55 = vadd.f32 %v2641_v39, %v2538_v46  ;;  %v2745_v35 = vpop.f32.mrf.mxu3  ;;  %v2539_v26 = vpop.f32.mrf.mxu1  ;;  %v8898_v46 = vld [vmem:[#allocation94_spill] sm:$0xff] }
 0x540   :  { %v2435_v17 = vpop.f32.mrf.mxu0  ;;  %v6596_v39 = vld [vmem:[#allocation8 + $0x290] sm:$0xf0] }
 0x541   :  { %v2436_v25 = vadd.f32 %v2435_v17, %v7910_v27  ;;  %v2746_v9 = vadd.f32 %v2745_v35, %v2642_v55  ;;  %v6599_v35 = vor.u32 %v6992_v47, %v6596_v39 }
 0x543   :  { %v2540_v53 = vadd.f32 %v2539_v26, %v2436_v25  ;;  %v2888_v21 = vmax.f32 %v2746_v9, 0.0  ;;  %4398 = vmatpush.bf16.msrb.mxu2 %v6599_v35 }
 0x546   :  { %v2643_v36 = vpop.f32.mrf.mxu2 }
 0x547   :  { %v2644_v5 = vadd.f32 %v2643_v36, %v2540_v53  ;;  %v2747_v57 = vpop.f32.mrf.mxu3  ;;  %v2542_v8 = vpop.f32.mrf.mxu1 }
 0x548   :  { %v2438_v42 = vpop.f32.mrf.mxu0 }
 0x549   :  { %v2439_v29 = vadd.f32 %v2438_v42, %v7910_v27  ;;  %v2748_v6 = vadd.f32 %v2747_v57, %v2644_v5  ;;  %v6928_v57 = vld [vmem:[#allocation8 + $0x84] sm:$0xf]  ;;  %v6340_v42 = vld [vmem:[#allocation8 + $0x90] sm:$0xf0] }
 0x54a   :  { %3908 = vmatmul.bf16.gmra.mxu1 %v8897_v1 }
 0x54b   :  { %v2543_v37 = vadd.f32 %v2542_v8, %v2439_v29  ;;  %3804 = vmatmul.bf16.gmra.mxu0 %v8896_v14  ;;  %v2892_v52 = vmax.f32 %v2748_v6, 0.0  ;;  %4012 = vmatmul.bf16.gmra.mxu2 %v8898_v46  ;;  %v6343_v29 = vor.u32 %v6928_v57, %v6340_v42  ;;  %v7024_v8 = vld [vmem:[#allocation8 + $0x384] sm:$0xf]  ;;  %v6724_v6 = vld [vmem:[#allocation8 + $0x390] sm:$0xf0]  ;;  %v8901_v42 = vld [vmem:[#allocation77_spill] sm:$0xff] }
 0x54c   :  { %4116 = vmatmul.bf16.gmra.mxu3 %v7965_v15  ;;  %v6468_v15 = vld [vmem:[#allocation8 + $0x190] sm:$0xf0] }
 0x54d   :  { %v8045_v44 = vpack.c.bf16 %v2892_v52, %v2888_v21  ;;  %v6960_v21 = vld [vmem:[#allocation8 + $0x184] sm:$0xf]  ;;  %v6727_v52 = vor.u32 %v7024_v8, %v6724_v6  ;;  %4190 = vmatpush.bf16.msrb.mxu0 %v6343_v29  ;;  %v8902_v8 = vld [vmem:[#allocation95_spill] sm:$0xff] }
 0x54e   :  { %v2646_v55 = vpop.f32.mrf.mxu2  ;;  %v6471_v47 = vor.u32 %v6960_v21, %v6468_v15 }
 0x54f   :  { %8899 = vst [vmem:[#allocation29_spill] sm:$0xff] %v8045_v44  ;;  %v2647_v17 = vadd.f32 %v2646_v55, %v2543_v37  ;;  %v2750_v25 = vpop.f32.mrf.mxu3  ;;  %v2544_v36 = vpop.f32.mrf.mxu1  ;;  %4502 = vmatpush.bf16.msrb.mxu3 %v6727_v52 }
 0x550   :  { %v2440_v26 = vpop.f32.mrf.mxu0  ;;  %4294 = vmatpush.bf16.msrb.mxu1 %v6471_v47 }
 0x551   :  { %v2441_v53 = vadd.f32 %v2440_v26, %v7910_v27  ;;  %v2751_v9 = vadd.f32 %v2750_v25, %v2647_v17 }
 0x553   :  { %v2545_v5 = vadd.f32 %v2544_v36, %v2441_v53  ;;  %v8900_v53 = vld [vmem:[#allocation51_spill] sm:$0xff]  ;;  %v2896_v36 = vmax.f32 %v2751_v9, 0.0 }
 0x556   :  { %v2648_v46 = vpop.f32.mrf.mxu2 }
 0x557   :  { %v2649_v37 = vadd.f32 %v2648_v46, %v2545_v5  ;;  %v2752_v39 = vpop.f32.mrf.mxu3  ;;  %v2547_v35 = vpop.f32.mrf.mxu1 }
 0x558   :  { %v2443_v55 = vpop.f32.mrf.mxu0 }
 0x559   :  { %v2444_v26 = vadd.f32 %v2443_v55, %v7910_v27  ;;  %v2753_v17 = vadd.f32 %v2752_v39, %v2649_v37 }
 0x55a   :  { %3913 = vmatmul.bf16.gmra.mxu1 %v8901_v42  ;;  %v8906_v42 = vld [vmem:[#allocation96_spill] sm:$0xff] }
 0x55b   :  { %v2548_v25 = vadd.f32 %v2547_v35, %v2444_v26  ;;  %3809 = vmatmul.bf16.gmra.mxu0 %v8900_v53  ;;  %v2900_v57 = vmax.f32 %v2753_v17, 0.0  ;;  %4017 = vmatmul.bf16.gmra.mxu2 %v8902_v8 }
 0x55c   :  { %4121 = vmatmul.bf16.gmra.mxu3 %v7973_v18 }
 0x55d   :  { %v8053_v15 = vpack.c.bf16 %v2900_v57, %v2896_v36  ;;  %v8904_v36 = vld [vmem:[#allocation56_spill] sm:$0xff] }
 0x55e   :  { %v2651_v46 = vpop.f32.mrf.mxu2 }
 0x55f   :  { %8903 = vst [vmem:[#allocation32_spill] sm:$0xff] %v8053_v15  ;;  %v2652_v5 = vadd.f32 %v2651_v46, %v2548_v25  ;;  %v2755_v29 = vpop.f32.mrf.mxu3  ;;  %v2549_v52 = vpop.f32.mrf.mxu1  ;;  %v8905_v46 = vld [vmem:[#allocation52_spill] sm:$0xff] }
 0x560   :  { %v2445_v6 = vpop.f32.mrf.mxu0 }
 0x561   :  { %v2446_v21 = vadd.f32 %v2445_v6, %v7910_v27  ;;  %v2756_v47 = vadd.f32 %v2755_v29, %v2652_v5 }
 0x563   :  { %v2550_v37 = vadd.f32 %v2549_v52, %v2446_v21  ;;  %v2904_v57 = vmax.f32 %v2756_v47, 0.0 }
 0x566   :  { %v2653_v39 = vpop.f32.mrf.mxu2 }
 0x567   :  { %v2654_v9 = vadd.f32 %v2653_v39, %v2550_v37  ;;  %v2757_v55 = vpop.f32.mrf.mxu3  ;;  %v2552_v17 = vpop.f32.mrf.mxu1 }
 0x568   :  { %v2448_v26 = vpop.f32.mrf.mxu0 }
 0x569   :  { %v2449_v35 = vadd.f32 %v2448_v26, %v7910_v27  ;;  %v2758_v8 = vadd.f32 %v2757_v55, %v2654_v9  ;;  %v3121_v55 = vld [vmem:[#allocation10] sm:$0xf] }
 0x56a   :  { %3918 = vmatmul.bf16.gmra.mxu1 %v8905_v46  ;;  %v8064_v47 = vperm.slane %v3121_v55, 0  ;;  %v8909_v55 = vld [vmem:[#allocation78_spill] sm:$0xff] }
 0x56b   :  { %v2553_v18 = vadd.f32 %v2552_v17, %v2449_v35  ;;  %3814 = vmatmul.bf16.gmra.mxu0 %v8904_v36  ;;  %v2908_v25 = vmax.f32 %v2758_v8, 0.0  ;;  %4022 = vmatmul.bf16.gmra.mxu2 %v8906_v42  ;;  %v6988_v8 = vld [vmem:[#allocation8 + $0x264] sm:$0xf]  ;;  %v6580_v35 = vld [vmem:[#allocation8 + $0x270] sm:$0xf0] }
 0x56c   :  { %4126 = vmatmul.bf16.gmra.mxu3 %v7981_v23  ;;  %v6924_v17 = vld [vmem:[#allocation8 + $0x64] sm:$0xf]  ;;  %v6583_v46 = vor.u32 %v6988_v8, %v6580_v35  ;;  %v6324_v23 = vld [vmem:[#allocation8 + $0x70] sm:$0xf0]  ;;  %v8910_v8 = vld [vmem:[#allocation97_spill] sm:$0xff] }
 0x56d   :  { %v8061_v5 = vpack.c.bf16 %v2908_v25, %v2904_v57  ;;  %v7020_v57 = vld [vmem:[#allocation8 + $0x364] sm:$0xf]  ;;  %v6708_v25 = vld [vmem:[#allocation8 + $0x370] sm:$0xf0]  ;;  %v6327_v53 = vor.u32 %v6924_v17, %v6324_v23 }
 0x56e   :  { %v2656_v29 = vpop.f32.mrf.mxu2  ;;  %v6711_v1 = vor.u32 %v7020_v57, %v6708_v25  ;;  %4399 = vmatpush.bf16.msrb.mxu2 %v6583_v46  ;;  %v6452_v46 = vld [vmem:[#allocation8 + $0x170] sm:$0xf0] }
 0x56f   :  { %8907 = vst [vmem:[#allocation33_spill] sm:$0xff] %v8061_v5  ;;  %v2657_v6 = vadd.f32 %v2656_v29, %v2553_v18  ;;  %v2760_v21 = vpop.f32.mrf.mxu3  ;;  %v2554_v39 = vpop.f32.mrf.mxu1  ;;  %4191 = vmatpush.bf16.msrb.mxu0 %v6327_v53 }
 0x570   :  { %v2450_v52 = vpop.f32.mrf.mxu0  ;;  %4503 = vmatpush.bf16.msrb.mxu3 %v6711_v1 }
 0x571   :  { %v2451_v37 = vadd.f32 %v2450_v52, %v7910_v27  ;;  %v2761_v9 = vadd.f32 %v2760_v21, %v2657_v6  ;;  %v8908_v52 = vld [vmem:[#allocation61_spill] sm:$0xff] }
 0x573   :  { %v2555_v26 = vadd.f32 %v2554_v39, %v2451_v37  ;;  %v2912_v37 = vmax.f32 %v2761_v9, 0.0 }
 0x576   :  { %v2658_v42 = vpop.f32.mrf.mxu2 }
 0x577   :  { %v2659_v36 = vadd.f32 %v2658_v42, %v2555_v26  ;;  %v2762_v18 = vpop.f32.mrf.mxu3  ;;  %v3884_v27 = vpop.f32.mrf.mxu1  ;;  %v6956_v26 = vld [vmem:[#allocation8 + $0x164] sm:$0xf] }
 0x578   :  { %v3780_v29 = vpop.f32.mrf.mxu0  ;;  %v6455_v35 = vor.u32 %v6956_v26, %v6452_v46  ;;  %v8911_v26 = vld [vmem:[#allocation62_spill] sm:$0xff]  ;;  %v8912_v46 = vld [vmem:[#allocation79_spill] sm:$0xff] }
 0x579   :  { %v2763_v6 = vadd.f32 %v2762_v18, %v2659_v36  ;;  %v3781_v21 = vadd.f32 %v3780_v29, %v8064_v47 }
 0x57a   :  { %3923 = vmatmul.bf16.gmra.mxu1 %v8909_v55 }
 0x57b   :  { %3819 = vmatmul.bf16.gmra.mxu0 %v8908_v52  ;;  %v2916_v39 = vmax.f32 %v2763_v6, 0.0  ;;  %4027 = vmatmul.bf16.gmra.mxu2 %v8910_v8  ;;  %v3885_v23 = vadd.f32 %v3884_v27, %v3781_v21 }
 0x57c   :  { %4131 = vmatmul.bf16.gmra.mxu3 %v7989_v7  ;;  %4295 = vmatpush.bf16.msrb.mxu1 %v6455_v35 }
 0x57d   :  { %v8071_v42 = vpack.c.bf16 %v2916_v39, %v2912_v37 }
 0x57e   :  { %v3988_v36 = vpop.f32.mrf.mxu2 }
 0x57f   :  { %v3989_v17 = vadd.f32 %v3988_v36, %v3885_v23  ;;  %v4092_v53 = vpop.f32.mrf.mxu3  ;;  %v3886_v57 = vpop.f32.mrf.mxu1 }
 0x580   :  { %v3782_v1 = vpop.f32.mrf.mxu0 }
 0x581   :  { %v4093_v9 = vadd.f32 %v4092_v53, %v3989_v17  ;;  %v3783_v25 = vadd.f32 %v3782_v1, %v8064_v47 }
 0x583   :  { %v5435_v18 = vmax.f32 %v4093_v9, 0.0  ;;  %v3887_v29 = vadd.f32 %v3886_v57, %v3783_v25 }
 0x585   :  { %5587 = vst [vmem:[#allocation11] sm:$0xff] %v5435_v18 }
 0x586   :  { %v3990_v6 = vpop.f32.mrf.mxu2 }
 0x587   :  { %v3991_v7 = vadd.f32 %v3990_v6, %v3887_v29  ;;  %v4094_v37 = vpop.f32.mrf.mxu3  ;;  %v3889_v27 = vpop.f32.mrf.mxu1 }
 0x588   :  { %v3785_v39 = vpop.f32.mrf.mxu0 }
 0x589   :  { %v4095_v21 = vadd.f32 %v4094_v37, %v3991_v7  ;;  %v3786_v8 = vadd.f32 %v3785_v39, %v8064_v47 }
 0x58a   :  { %3928 = vmatmul.bf16.gmra.mxu1 %v8912_v46 }
 0x58b   :  { %3824 = vmatmul.bf16.gmra.mxu0 %v8911_v26  ;;  %v5439_v23 = vmax.f32 %v4095_v21, 0.0  ;;  %4032 = vmatmul.bf16.gmra.mxu2 %v7843_v61  ;;  %v3890_v36 = vadd.f32 %v3889_v27, %v3786_v8  ;;  %v8913_v8 = vld [vmem:[#allocation63_spill] sm:$0xff] }
 0x58c   :  { %4136 = vmatmul.bf16.gmra.mxu3 %v7997_v19 }
 0x58d   :  { %5591 = vst [vmem:[#allocation11 + $0x20] sm:$0xff] %v5439_v23 }
 0x58e   :  { %v3993_v35 = vpop.f32.mrf.mxu2 }
 0x58f   :  { %v3994_v17 = vadd.f32 %v3993_v35, %v3890_v36  ;;  %v4097_v53 = vpop.f32.mrf.mxu3  ;;  %v3891_v57 = vpop.f32.mrf.mxu1  ;;  %v8914_v36 = vld [vmem:[#allocation80_spill] sm:$0xff] }
 0x590   :  { %v3787_v1 = vpop.f32.mrf.mxu0 }
 0x591   :  { %v4098_v9 = vadd.f32 %v4097_v53, %v3994_v17  ;;  %v3788_v7 = vadd.f32 %v3787_v1, %v8064_v47  ;;  %v6984_v17 = vld [vmem:[#allocation8 + $0x244] sm:$0xf]  ;;  %v6564_v53 = vld [vmem:[#allocation8 + $0x250] sm:$0xf0] }
 0x593   :  { %v5443_v25 = vmax.f32 %v4098_v9, 0.0  ;;  %v3892_v18 = vadd.f32 %v3891_v57, %v3788_v7  ;;  %v6567_v57 = vor.u32 %v6984_v17, %v6564_v53  ;;  %v6920_v9 = vld [vmem:[#allocation8 + $0x44] sm:$0xf]  ;;  %v6308_v7 = vld [vmem:[#allocation8 + $0x50] sm:$0xf0] }
 0x595   :  { %5595 = vst [vmem:[#allocation11 + $0x40] sm:$0xff] %v5443_v25  ;;  %v7016_v25 = vld [vmem:[#allocation8 + $0x344] sm:$0xf]  ;;  %4400 = vmatpush.bf16.msrb.mxu2 %v6567_v57 }
 0x596   :  { %v3995_v29 = vpop.f32.mrf.mxu2  ;;  %v8915_v57 = vld [vmem:[#allocation64_spill] sm:$0xff] }
 0x597   :  { %v3996_v6 = vadd.f32 %v3995_v29, %v3892_v18  ;;  %v4099_v37 = vpop.f32.mrf.mxu3  ;;  %v3894_v21 = vpop.f32.mrf.mxu1 }
 0x598   :  { %v3790_v39 = vpop.f32.mrf.mxu0 }
 0x599   :  { %v4100_v61 = vadd.f32 %v4099_v37, %v3996_v6  ;;  %v3791_v23 = vadd.f32 %v3790_v39, %v8064_v47  ;;  %v6311_v37 = vor.u32 %v6920_v9, %v6308_v7  ;;  %v6952_v39 = vld [vmem:[#allocation8 + $0x144] sm:$0xf] }
 0x59a   :  { %3933 = vmatmul.bf16.gmra.mxu1 %v8914_v36  ;;  %v6436_v36 = vld [vmem:[#allocation8 + $0x150] sm:$0xf0] }
 0x59b   :  { %3829 = vmatmul.bf16.gmra.mxu0 %v8913_v8  ;;  %v5447_v27 = vmax.f32 %v4100_v61, 0.0  ;;  %4037 = vmatmul.bf16.gmra.mxu2 %v7851_v59  ;;  %v3895_v35 = vadd.f32 %v3894_v21, %v3791_v23  ;;  %v6692_v61 = vld [vmem:[#allocation8 + $0x350] sm:$0xf0] }
 0x59c   :  { %4141 = vmatmul.bf16.gmra.mxu3 %v8005_v45  ;;  %v6695_v59 = vor.u32 %v7016_v25, %v6692_v61  ;;  %v6439_v45 = vor.u32 %v6952_v39, %v6436_v36  ;;  %4192 = vmatpush.bf16.msrb.mxu0 %v6311_v37  ;;  %v8916_v25 = vld [vmem:[#allocation81_spill] sm:$0xff] }
 0x59d   :  { %5599 = vst [vmem:[#allocation11 + $0x60] sm:$0xff] %v5447_v27 }
 0x59e   :  { %v3998_v1 = vpop.f32.mrf.mxu2  ;;  %4504 = vmatpush.bf16.msrb.mxu3 %v6695_v59  ;;  %4296 = vmatpush.bf16.msrb.mxu1 %v6439_v45 }
 0x59f   :  { %v3999_v18 = vadd.f32 %v3998_v1, %v3895_v35  ;;  %v4102_v29 = vpop.f32.mrf.mxu3  ;;  %v3896_v8 = vpop.f32.mrf.mxu1 }
 0x5a0   :  { %v3792_v6 = vpop.f32.mrf.mxu0 }
 0x5a1   :  { %v4103_v27 = vadd.f32 %v4102_v29, %v3999_v18  ;;  %v3793_v21 = vadd.f32 %v3792_v6, %v8064_v47 }
 0x5a3   :  { %v5451_v23 = vmax.f32 %v4103_v27, 0.0  ;;  %v3897_v17 = vadd.f32 %v3896_v8, %v3793_v21 }
 0x5a5   :  { %5603 = vst [vmem:[#allocation11 + $0x80] sm:$0xff] %v5451_v23 }
 0x5a6   :  { %v4000_v35 = vpop.f32.mrf.mxu2 }
 0x5a7   :  { %v4001_v53 = vadd.f32 %v4000_v35, %v3897_v17  ;;  %v4104_v1 = vpop.f32.mrf.mxu3  ;;  %v3899_v7 = vpop.f32.mrf.mxu1 }
 0x5a8   :  { %v3795_v9 = vpop.f32.mrf.mxu0 }
 0x5a9   :  { %v4105_v19 = vadd.f32 %v4104_v1, %v4001_v53  ;;  %v3796_v46 = vadd.f32 %v3795_v9, %v8064_v47 }
 0x5aa   :  { %3938 = vmatmul.bf16.gmra.mxu1 %v8916_v25 }
 0x5ab   :  { %3834 = vmatmul.bf16.gmra.mxu0 %v8915_v57  ;;  %v5455_v36 = vmax.f32 %v4105_v19, 0.0  ;;  %4042 = vmatmul.bf16.gmra.mxu2 %v7859_v31  ;;  %v3900_v59 = vadd.f32 %v3899_v7, %v3796_v46  ;;  %v8917_v46 = vld [vmem:[#allocation65_spill] sm:$0xff]  ;;  %v8918_v7 = vld [vmem:[#allocation82_spill] sm:$0xff] }
 0x5ac   :  { %4146 = vmatmul.bf16.gmra.mxu3 %v8013_v58 }
 0x5ad   :  { %5607 = vst [vmem:[#allocation11 + $0xa0] sm:$0xff] %v5455_v36 }
 0x5ae   :  { %v4003_v45 = vpop.f32.mrf.mxu2 }
 0x5af   :  { %v4004_v8 = vadd.f32 %v4003_v45, %v3900_v59  ;;  %v4107_v18 = vpop.f32.mrf.mxu3  ;;  %v3901_v6 = vpop.f32.mrf.mxu1 }
 0x5b0   :  { %v3797_v29 = vpop.f32.mrf.mxu0 }
 0x5b1   :  { %v4108_v37 = vadd.f32 %v4107_v18, %v4004_v8  ;;  %v3798_v61 = vadd.f32 %v3797_v29, %v8064_v47 }
 0x5b3   :  { %v5459_v39 = vmax.f32 %v4108_v37, 0.0  ;;  %v3902_v27 = vadd.f32 %v3901_v6, %v3798_v61 }
 0x5b5   :  { %5611 = vst [vmem:[#allocation11 + $0xc0] sm:$0xff] %v5459_v39 }
 0x5b6   :  { %v4005_v19 = vpop.f32.mrf.mxu2 }
 0x5b7   :  { %v4006_v21 = vadd.f32 %v4005_v19, %v3902_v27  ;;  %v4109_v23 = vpop.f32.mrf.mxu3  ;;  %v3904_v35 = vpop.f32.mrf.mxu1  ;;  %v6980_v27 = vld [vmem:[#allocation8 + $0x224] sm:$0xf]  ;;  %v6548_v19 = vld [vmem:[#allocation8 + $0x230] sm:$0xf0] }
 0x5b8   :  { %v3800_v17 = vpop.f32.mrf.mxu0 }
 0x5b9   :  { %v4110_v53 = vadd.f32 %v4109_v23, %v4006_v21  ;;  %v3801_v1 = vadd.f32 %v3800_v17, %v8064_v47  ;;  %v6551_v23 = vor.u32 %v6980_v27, %v6548_v19  ;;  %v6916_v17 = vld [vmem:[#allocation8 + $0x24] sm:$0xf]  ;;  %v8920_v27 = vld [vmem:[#allocation83_spill] sm:$0xff] }
 0x5ba   :  { %3943 = vmatmul.bf16.gmra.mxu1 %v8918_v7  ;;  %v6420_v7 = vld [vmem:[#allocation8 + $0x130] sm:$0xf0] }
 0x5bb   :  { %3839 = vmatmul.bf16.gmra.mxu0 %v8917_v46  ;;  %v5463_v9 = vmax.f32 %v4110_v53, 0.0  ;;  %4047 = vmatmul.bf16.gmra.mxu2 %v7867_v56  ;;  %v3905_v36 = vadd.f32 %v3904_v35, %v3801_v1  ;;  %v6292_v53 = vld [vmem:[#allocation8 + $0x30] sm:$0xf0]  ;;  %v6948_v56 = vld [vmem:[#allocation8 + $0x124] sm:$0xf] }
 0x5bc   :  { %4151 = vmatmul.bf16.gmra.mxu3 %v8021_v28  ;;  %v7012_v28 = vld [vmem:[#allocation8 + $0x324] sm:$0xf]  ;;  %4401 = vmatpush.bf16.msrb.mxu2 %v6551_v23 }
 0x5bd   :  { %5615 = vst [vmem:[#allocation11 + $0xe0] sm:$0xff] %v5463_v9 }
 0x5be   :  { %v4008_v59 = vpop.f32.mrf.mxu2 }
 0x5bf   :  { %v4009_v45 = vadd.f32 %v4008_v59, %v3905_v36  ;;  %v4112_v8 = vpop.f32.mrf.mxu3  ;;  %v3906_v29 = vpop.f32.mrf.mxu1  ;;  %v6295_v36 = vor.u32 %v6916_v17, %v6292_v53  ;;  %v6676_v59 = vld [vmem:[#allocation8 + $0x330] sm:$0xf0] }
 0x5c0   :  { %v3802_v18 = vpop.f32.mrf.mxu0 }
 0x5c1   :  { %v4113_v6 = vadd.f32 %v4112_v8, %v4009_v45  ;;  %v3803_v37 = vadd.f32 %v3802_v18, %v8064_v47  ;;  %v6679_v8 = vor.u32 %v7012_v28, %v6676_v59  ;;  %v6423_v18 = vor.u32 %v6948_v56, %v6420_v7  ;;  %4193 = vmatpush.bf16.msrb.mxu0 %v6295_v36 }
 0x5c3   :  { %v5467_v61 = vmax.f32 %v4113_v6, 0.0  ;;  %v3907_v39 = vadd.f32 %v3906_v29, %v3803_v37  ;;  %v8919_v37 = vld [vmem:[#allocation66_spill] sm:$0xff]  ;;  %4505 = vmatpush.bf16.msrb.mxu3 %v6679_v8  ;;  %4297 = vmatpush.bf16.msrb.mxu1 %v6423_v18 }
 0x5c5   :  { %5619 = vst [vmem:[#allocation11 + $0x100] sm:$0xff] %v5467_v61 }
 0x5c6   :  { %v4010_v21 = vpop.f32.mrf.mxu2 }
 0x5c7   :  { %v4011_v9 = vadd.f32 %v4010_v21, %v3907_v39  ;;  %v4114_v35 = vpop.f32.mrf.mxu3  ;;  %v3909_v45 = vpop.f32.mrf.mxu1 }
 0x5c8   :  { %v3805_v1 = vpop.f32.mrf.mxu0 }
 0x5c9   :  { %v4115_v6 = vadd.f32 %v4114_v35, %v4011_v9  ;;  %v3806_v29 = vadd.f32 %v3805_v1, %v8064_v47 }
 0x5ca   :  { %3948 = vmatmul.bf16.gmra.mxu1 %v8920_v27 }
 0x5cb   :  { %3844 = vmatmul.bf16.gmra.mxu0 %v8919_v37  ;;  %v5471_v61 = vmax.f32 %v4115_v6, 0.0  ;;  %4052 = vmatmul.bf16.gmra.mxu2 %v7875_v12  ;;  %v3910_v39 = vadd.f32 %v3909_v45, %v3806_v29  ;;  %v8921_v45 = vld [vmem:[#allocation67_spill] sm:$0xff] }
 0x5cc   :  { %4156 = vmatmul.bf16.gmra.mxu3 %v8029_v11 }
 0x5cd   :  { %5623 = vst [vmem:[#allocation11 + $0x120] sm:$0xff] %v5471_v61  ;;  %v8922_v61 = vld [vmem:[#allocation84_spill] sm:$0xff] }
 0x5ce   :  { %v4013_v19 = vpop.f32.mrf.mxu2 }
 0x5cf   :  { %v4014_v28 = vadd.f32 %v4013_v19, %v3910_v39  ;;  %v4117_v56 = vpop.f32.mrf.mxu3  ;;  %v3911_v21 = vpop.f32.mrf.mxu1 }
 0x5d0   :  { %v3807_v7 = vpop.f32.mrf.mxu0 }
 0x5d1   :  { %v4118_v23 = vadd.f32 %v4117_v56, %v4014_v28  ;;  %v3808_v17 = vadd.f32 %v3807_v7, %v8064_v47 }
 0x5d3   :  { %v5475_v53 = vmax.f32 %v4118_v23, 0.0  ;;  %v3912_v9 = vadd.f32 %v3911_v21, %v3808_v17 }
 0x5d5   :  { %5627 = vst [vmem:[#allocation11 + $0x140] sm:$0xff] %v5475_v53 }
 0x5d6   :  { %v4015_v35 = vpop.f32.mrf.mxu2 }
 0x5d7   :  { %v4016_v1 = vadd.f32 %v4015_v35, %v3912_v9  ;;  %v4119_v36 = vpop.f32.mrf.mxu3  ;;  %v3914_v8 = vpop.f32.mrf.mxu1  ;;  %v6976_v35 = vld [vmem:[#allocation8 + $0x204] sm:$0xf] }
 0x5d8   :  { %v3810_v59 = vpop.f32.mrf.mxu0 }
 0x5d9   :  { %v4120_v6 = vadd.f32 %v4119_v36, %v4016_v1  ;;  %v3811_v18 = vadd.f32 %v3810_v59, %v8064_v47  ;;  %v6532_v1 = vld [vmem:[#allocation8 + $0x210] sm:$0xf0] }
 0x5da   :  { %3953 = vmatmul.bf16.gmra.mxu1 %v8922_v61  ;;  %v6535_v59 = vor.u32 %v6976_v35, %v6532_v1 }
 0x5db   :  { %3849 = vmatmul.bf16.gmra.mxu0 %v8921_v45  ;;  %v5479_v29 = vmax.f32 %v4120_v6, 0.0  ;;  %4057 = vmatmul.bf16.gmra.mxu2 %v7883_v32  ;;  %v3915_v39 = vadd.f32 %v3914_v8, %v3811_v18 }
 0x5dc   :  { %4161 = vmatmul.bf16.gmra.mxu3 %v8037_v63  ;;  %4402 = vmatpush.bf16.msrb.mxu2 %v6535_v59  ;;  %v6404_v59 = vld [vmem:[#allocation8 + $0x110] sm:$0xf0] }
 0x5dd   :  { %5631 = vst [vmem:[#allocation11 + $0x160] sm:$0xff] %v5479_v29 }
 0x5de   :  { %v4018_v19 = vpop.f32.mrf.mxu2 }
 0x5df   :  { %v4019_v28 = vadd.f32 %v4018_v19, %v3915_v39  ;;  %v4122_v56 = vpop.f32.mrf.mxu3  ;;  %v3916_v21 = vpop.f32.mrf.mxu1  ;;  %v8923_v39 = vld [vmem:[#allocation68_spill] sm:$0xff] }
 0x5e0   :  { %v3812_v7 = vpop.f32.mrf.mxu0 }
 0x5e1   :  { %v4123_v23 = vadd.f32 %v4122_v56, %v4019_v28  ;;  %v3813_v17 = vadd.f32 %v3812_v7, %v8064_v47  ;;  %v8924_v28 = vld [vmem:[#allocation85_spill] sm:$0xff]  ;;  %v6912_v7 = vld [vmem:[#allocation8 + $0x4] sm:$0xf] }
 0x5e3   :  { %v5483_v53 = vmax.f32 %v4123_v23, 0.0  ;;  %v3917_v9 = vadd.f32 %v3916_v21, %v3813_v17  ;;  %v6276_v21 = vld [vmem:[#allocation8 + $0x10] sm:$0xf0] }
 0x5e4   :  { %v6279_v17 = vor.u32 %v6912_v7, %v6276_v21 }
 0x5e5   :  { %5635 = vst [vmem:[#allocation11 + $0x180] sm:$0xff] %v5483_v53  ;;  %v7008_v53 = vld [vmem:[#allocation8 + $0x304] sm:$0xf] }
 0x5e6   :  { %v4020_v36 = vpop.f32.mrf.mxu2  ;;  %4194 = vmatpush.bf16.msrb.mxu0 %v6279_v17 }
 0x5e7   :  { %v4021_v6 = vadd.f32 %v4020_v36, %v3917_v9  ;;  %v4124_v32 = vpop.f32.mrf.mxu3  ;;  %v3919_v29 = vpop.f32.mrf.mxu1  ;;  %v6660_v9 = vld [vmem:[#allocation8 + $0x310] sm:$0xf0] }
 0x5e8   :  { %v3815_v63 = vpop.f32.mrf.mxu0  ;;  %v6663_v36 = vor.u32 %v7008_v53, %v6660_v9  ;;  %v8925_v9 = vld [vmem:[#allocation69_spill] sm:$0xff] }
 0x5e9   :  { %v4125_v8 = vadd.f32 %v4124_v32, %v4021_v6  ;;  %v3816_v18 = vadd.f32 %v3815_v63, %v8064_v47  ;;  %v6944_v32 = vld [vmem:[#allocation8 + $0x104] sm:$0xf] }
 0x5ea   :  { %3958 = vmatmul.bf16.gmra.mxu1 %v8924_v28  ;;  %4506 = vmatpush.bf16.msrb.mxu3 %v6663_v36 }
 0x5eb   :  { %3854 = vmatmul.bf16.gmra.mxu0 %v8923_v39  ;;  %v5487_v19 = vmax.f32 %v4125_v8, 0.0  ;;  %4062 = vmatmul.bf16.gmra.mxu2 %v7891_v22  ;;  %v3920_v56 = vadd.f32 %v3919_v29, %v3816_v18  ;;  %v6407_v8 = vor.u32 %v6944_v32, %v6404_v59  ;;  %v8926_v32 = vld [vmem:[#allocation86_spill] sm:$0xff] }
 0x5ec   :  { %4166 = vmatmul.bf16.gmra.mxu3 %v8045_v44 }
 0x5ed   :  { %5639 = vst [vmem:[#allocation11 + $0x1a0] sm:$0xff] %v5487_v19  ;;  %4298 = vmatpush.bf16.msrb.mxu1 %v6407_v8 }
 0x5ee   :  { %v4023_v23 = vpop.f32.mrf.mxu2 }
 0x5ef   :  { %v4024_v35 = vadd.f32 %v4023_v23, %v3920_v56  ;;  %v4127_v63 = vpop.f32.mrf.mxu3  ;;  %v3921_v6 = vpop.f32.mrf.mxu1 }
 0x5f0   :  { %v3817_v1 = vpop.f32.mrf.mxu0 }
 0x5f1   :  { %v4128_v22 = vadd.f32 %v4127_v63, %v4024_v35  ;;  %v3818_v44 = vadd.f32 %v3817_v1, %v8064_v47 }
 0x5f3   :  { %v5491_v29 = vmax.f32 %v4128_v22, 0.0  ;;  %v3922_v18 = vadd.f32 %v3921_v6, %v3818_v44 }
 0x5f5   :  { %5643 = vst [vmem:[#allocation11 + $0x1c0] sm:$0xff] %v5491_v29 }
 0x5f6   :  { %v4025_v19 = vpop.f32.mrf.mxu2 }
 0x5f7   :  { %v4026_v7 = vadd.f32 %v4025_v19, %v3922_v18  ;;  %v4129_v21 = vpop.f32.mrf.mxu3  ;;  %v3924_v56 = vpop.f32.mrf.mxu1 }
 0x5f8   :  { %v3820_v28 = vpop.f32.mrf.mxu0 }
 0x5f9   :  { %v4130_v23 = vadd.f32 %v4129_v21, %v4026_v7  ;;  %v3821_v53 = vadd.f32 %v3820_v28, %v8064_v47 }
 0x5fa   :  { %3963 = vmatmul.bf16.gmra.mxu1 %v8926_v32 }
 0x5fb   :  { %3859 = vmatmul.bf16.gmra.mxu0 %v8925_v9  ;;  %v5495_v17 = vmax.f32 %v4130_v23, 0.0  ;;  %4067 = vmatmul.bf16.gmra.mxu2 %v7899_v20  ;;  %v3925_v22 = vadd.f32 %v3924_v56, %v3821_v53  ;;  %v8927_v56 = vld [vmem:[#allocation70_spill] sm:$0xff] }
 0x5fc   :  { %4171 = vmatmul.bf16.gmra.mxu3 %v8053_v15 }
 0x5fd   :  { %5647 = vst [vmem:[#allocation11 + $0x1e0] sm:$0xff] %v5495_v17 }
 0x5fe   :  { %v4028_v44 = vpop.f32.mrf.mxu2 }
 0x5ff   :  { %v4029_v35 = vadd.f32 %v4028_v44, %v3925_v22  ;;  %v4132_v63 = vpop.f32.mrf.mxu3  ;;  %v3926_v36 = vpop.f32.mrf.mxu1  ;;  %v8928_v22 = vld [vmem:[#allocation87_spill] sm:$0xff] }
 0x600   :  { %v3822_v1 = vpop.f32.mrf.mxu0 }
 0x601   :  { %v4133_v59 = vadd.f32 %v4132_v63, %v4029_v35  ;;  %v3823_v6 = vadd.f32 %v3822_v1, %v8064_v47  ;;  %v6650_v35 = vld [vmem:[#allocation8 + $0x2e8] sm:$0xf]  ;;  %v7007_v63 = vld [vmem:[#allocation8 + $0x2f4] sm:$0xf0] }
 0x603   :  { %v5499_v28 = vmax.f32 %v4133_v59, 0.0  ;;  %v3927_v8 = vadd.f32 %v3926_v36, %v3823_v6  ;;  %v6651_v36 = vor.u32 %v7007_v63, %v6650_v35  ;;  %v6394_v59 = vld [vmem:[#allocation8 + $0xe8] sm:$0xf]  ;;  %v6943_v6 = vld [vmem:[#allocation8 + $0xf4] sm:$0xf0] }
 0x604   :  { %v6975_v35 = vld [vmem:[#allocation8 + $0x1f4] sm:$0xf0] }
 0x605   :  { %5651 = vst [vmem:[#allocation11 + $0x200] sm:$0xff] %v5499_v28  ;;  %v6778_v28 = vld [vmem:[#allocation8 + $0x3e8] sm:$0xf]  ;;  %4811 = vmatpush.bf16.msra.mxu2 %v6651_v36 }
 0x606   :  { %v4030_v29 = vpop.f32.mrf.mxu2 }
 0x607   :  { %v4031_v18 = vadd.f32 %v4030_v29, %v3927_v8  ;;  %v4134_v19 = vpop.f32.mrf.mxu3  ;;  %v3929_v21 = vpop.f32.mrf.mxu1 }
 0x608   :  { %v3825_v7 = vpop.f32.mrf.mxu0 }
 0x609   :  { %v4135_v23 = vadd.f32 %v4134_v19, %v4031_v18  ;;  %v3826_v17 = vadd.f32 %v3825_v7, %v8064_v47  ;;  %v6395_v19 = vor.u32 %v6943_v6, %v6394_v59  ;;  %v7039_v7 = vld [vmem:[#allocation8 + $0x3f4] sm:$0xf0] }
 0x60a   :  { %3968 = vmatmul.bf16.gmra.mxu1 %v8928_v22  ;;  %v6779_v22 = vor.u32 %v7039_v7, %v6778_v28  ;;  %v8929_v28 = vld [vmem:[#allocation71_spill] sm:$0xff] }
 0x60b   :  { %3864 = vmatmul.bf16.gmra.mxu0 %v8927_v56  ;;  %v5503_v53 = vmax.f32 %v4135_v23, 0.0  ;;  %4072 = vmatmul.bf16.gmra.mxu2 %v7907_v16  ;;  %v3930_v44 = vadd.f32 %v3929_v21, %v3826_v17 }
 0x60c   :  { %4176 = vmatmul.bf16.gmra.mxu3 %v8061_v5  ;;  %4603 = vmatpush.bf16.msra.mxu0 %v6395_v19 }
 0x60d   :  { %5655 = vst [vmem:[#allocation11 + $0x220] sm:$0xff] %v5503_v53  ;;  %4915 = vmatpush.bf16.msra.mxu3 %v6779_v22  ;;  %v6522_v53 = vld [vmem:[#allocation8 + $0x1e8] sm:$0xf] }
 0x60e   :  { %v4033_v1 = vpop.f32.mrf.mxu2  ;;  %v6523_v56 = vor.u32 %v6975_v35, %v6522_v53 }
 0x60f   :  { %v4034_v8 = vadd.f32 %v4033_v1, %v3930_v44  ;;  %v4137_v29 = vpop.f32.mrf.mxu3  ;;  %v3931_v23 = vpop.f32.mrf.mxu1 }
 0x610   :  { %v3827_v18 = vpop.f32.mrf.mxu0  ;;  %4707 = vmatpush.bf16.msra.mxu1 %v6523_v56 }
 0x611   :  { %v4138_v16 = vadd.f32 %v4137_v29, %v4034_v8  ;;  %v3828_v5 = vadd.f32 %v3827_v18, %v8064_v47  ;;  %v8930_v29 = vld [vmem:[#allocation88_spill] sm:$0xff] }
 0x613   :  { %v5507_v21 = vmax.f32 %v4138_v16, 0.0  ;;  %v3932_v17 = vadd.f32 %v3931_v23, %v3828_v5 }
 0x615   :  { %5659 = vst [vmem:[#allocation11 + $0x240] sm:$0xff] %v5507_v21 }
 0x616   :  { %v4035_v63 = vpop.f32.mrf.mxu2 }
 0x617   :  { %v4036_v44 = vadd.f32 %v4035_v63, %v3932_v17  ;;  %v4139_v1 = vpop.f32.mrf.mxu3  ;;  %v3934_v59 = vpop.f32.mrf.mxu1 }
 0x618   :  { %v3830_v15 = vpop.f32.mrf.mxu0 }
 0x619   :  { %v4140_v6 = vadd.f32 %v4139_v1, %v4036_v44  ;;  %v3831_v36 = vadd.f32 %v3830_v15, %v8064_v47 }
 0x61a   :  { %3973 = vmatmul.bf16.gmra.mxu1 %v8930_v29 }
 0x61b   :  { %3869 = vmatmul.bf16.gmra.mxu0 %v8929_v28  ;;  %v5511_v8 = vmax.f32 %v4140_v6, 0.0  ;;  %4077 = vmatmul.bf16.gmra.mxu2 %v7917_v48  ;;  %v3935_v16 = vadd.f32 %v3934_v59, %v3831_v36 }
 0x61c   :  { %4181 = vmatmul.bf16.gmra.mxu3 %v8071_v42 }
 0x61d   :  { %5663 = vst [vmem:[#allocation11 + $0x260] sm:$0xff] %v5511_v8 }
 0x61e   :  { %v4038_v5 = vpop.f32.mrf.mxu2 }
 0x61f   :  { %v4039_v22 = vadd.f32 %v4038_v5, %v3935_v16  ;;  %v4142_v18 = vpop.f32.mrf.mxu3  ;;  %v3936_v7 = vpop.f32.mrf.mxu1 }
 0x620   :  { %v3832_v19 = vpop.f32.mrf.mxu0 }
 0x621   :  { %v4143_v56 = vadd.f32 %v4142_v18, %v4039_v22  ;;  %v3833_v23 = vadd.f32 %v3832_v19, %v8064_v47 }
 0x623   :  { %v5515_v15 = vmax.f32 %v4143_v56, 0.0  ;;  %v3937_v21 = vadd.f32 %v3936_v7, %v3833_v23 }
 0x625   :  { %5667 = vst [vmem:[#allocation11 + $0x280] sm:$0xff] %v5515_v15  ;;  %v6634_v15 = vld [vmem:[#allocation8 + $0x2c8] sm:$0xf] }
 0x626   :  { %v4040_v17 = vpop.f32.mrf.mxu2 }
 0x627   :  { %v4041_v53 = vadd.f32 %v4040_v17, %v3937_v21  ;;  %v4144_v35 = vpop.f32.mrf.mxu3  ;;  %v3939_v44 = vpop.f32.mrf.mxu1  ;;  %v7003_v21 = vld [vmem:[#allocation8 + $0x2d4] sm:$0xf0] }
 0x628   :  { %v3835_v63 = vpop.f32.mrf.mxu0 }
 0x629   :  { %v4145_v1 = vadd.f32 %v4144_v35, %v4041_v53  ;;  %v3836_v6 = vadd.f32 %v3835_v63, %v8064_v47  ;;  %v6635_v53 = vor.u32 %v7003_v21, %v6634_v15  ;;  %v6378_v35 = vld [vmem:[#allocation8 + $0xc8] sm:$0xf]  ;;  %v6939_v63 = vld [vmem:[#allocation8 + $0xd4] sm:$0xf0] }
 0x62a   :  { %4299 = vmatmul.bf16.vlgmr.msrb.gmra.mxu1 %v8879_v0 }
 0x62b   :  { %4195 = vmatmul.bf16.vlgmr.msrb.gmra.mxu0 %v8878_v33  ;;  %v5519_v59 = vmax.f32 %v4145_v1, 0.0  ;;  %4403 = vmatmul.bf16.vlgmr.msrb.gmra.mxu2 %v8880_v60  ;;  %v3940_v36 = vadd.f32 %v3939_v44, %v3836_v6  ;;  %v6762_v1 = vld [vmem:[#allocation8 + $0x3c8] sm:$0xf]  ;;  %v6971_v60 = vld [vmem:[#allocation8 + $0x1d4] sm:$0xf0] }
 0x62c   :  { %4507 = vmatmul.bf16.vlgmr.msrb.gmra.mxu3 %v7925_v34  ;;  %v6506_v34 = vld [vmem:[#allocation8 + $0x1c8] sm:$0xf]  ;;  %4812 = vmatpush.bf16.msra.mxu2 %v6635_v53 }
 0x62d   :  { %5671 = vst [vmem:[#allocation11 + $0x2a0] sm:$0xff] %v5519_v59 }
 0x62e   :  { %v4043_v8 = vpop.f32.mrf.mxu2 }
 0x62f   :  { %v4044_v16 = vadd.f32 %v4043_v8, %v3940_v36  ;;  %v4147_v5 = vpop.f32.mrf.mxu3  ;;  %v3941_v18 = vpop.f32.mrf.mxu1  ;;  %v6379_v36 = vor.u32 %v6939_v63, %v6378_v35  ;;  %v7035_v8 = vld [vmem:[#allocation8 + $0x3d4] sm:$0xf0] }
 0x630   :  { %v3837_v22 = vpop.f32.mrf.mxu0 }
 0x631   :  { %v4148_v19 = vadd.f32 %v4147_v5, %v4044_v16  ;;  %v3838_v7 = vadd.f32 %v3837_v22, %v8064_v47  ;;  %v6763_v5 = vor.u32 %v7035_v8, %v6762_v1  ;;  %v6507_v22 = vor.u32 %v6971_v60, %v6506_v34  ;;  %4604 = vmatpush.bf16.msra.mxu0 %v6379_v36 }
 0x633   :  { %v5523_v56 = vmax.f32 %v4148_v19, 0.0  ;;  %v3942_v23 = vadd.f32 %v3941_v18, %v3838_v7  ;;  %4916 = vmatpush.bf16.msra.mxu3 %v6763_v5  ;;  %4708 = vmatpush.bf16.msra.mxu1 %v6507_v22 }
 0x635   :  { %5675 = vst [vmem:[#allocation11 + $0x2c0] sm:$0xff] %v5523_v56 }
 0x636   :  { %v4045_v17 = vpop.f32.mrf.mxu2 }
 0x637   :  { %v4046_v59 = vadd.f32 %v4045_v17, %v3942_v23  ;;  %v4149_v44 = vpop.f32.mrf.mxu3  ;;  %v3944_v16 = vpop.f32.mrf.mxu1 }
 0x638   :  { %v3840_v6 = vpop.f32.mrf.mxu0 }
 0x639   :  { %v4150_v19 = vadd.f32 %v4149_v44, %v4046_v59  ;;  %v3841_v18 = vadd.f32 %v3840_v6, %v8064_v47 }
 0x63a   :  { %4304 = vmatmul.bf16.gmra.mxu1 %v8883_v10 }
 0x63b   :  { %4200 = vmatmul.bf16.gmra.mxu0 %v8882_v40  ;;  %v5527_v7 = vmax.f32 %v4150_v19, 0.0  ;;  %4408 = vmatmul.bf16.gmra.mxu2 %v8884_v13  ;;  %v3945_v56 = vadd.f32 %v3944_v16, %v3841_v18 }
 0x63c   :  { %4512 = vmatmul.bf16.gmra.mxu3 %v7933_v50 }
 0x63d   :  { %5679 = vst [vmem:[#allocation11 + $0x2e0] sm:$0xff] %v5527_v7 }
 0x63e   :  { %v4048_v23 = vpop.f32.mrf.mxu2 }
 0x63f   :  { %v4049_v15 = vadd.f32 %v4048_v23, %v3945_v56  ;;  %v4152_v34 = vpop.f32.mrf.mxu3  ;;  %v3946_v21 = vpop.f32.mrf.mxu1 }
 0x640   :  { %v3842_v60 = vpop.f32.mrf.mxu0 }
 0x641   :  { %v4153_v17 = vadd.f32 %v4152_v34, %v4049_v15  ;;  %v3843_v53 = vadd.f32 %v3842_v60, %v8064_v47 }
 0x643   :  { %v5531_v35 = vmax.f32 %v4153_v17, 0.0  ;;  %v3947_v63 = vadd.f32 %v3946_v21, %v3843_v53 }
 0x645   :  { %5683 = vst [vmem:[#allocation11 + $0x300] sm:$0xff] %v5531_v35 }
 0x646   :  { %v4050_v1 = vpop.f32.mrf.mxu2 }
 0x647   :  { %v4051_v59 = vadd.f32 %v4050_v1, %v3947_v63  ;;  %v4154_v44 = vpop.f32.mrf.mxu3  ;;  %v3949_v36 = vpop.f32.mrf.mxu1 }
 0x648   :  { %v3845_v6 = vpop.f32.mrf.mxu0 }
 0x649   :  { %v4155_v8 = vadd.f32 %v4154_v44, %v4051_v59  ;;  %v3846_v5 = vadd.f32 %v3845_v6, %v8064_v47 }
 0x64a   :  { %4309 = vmatmul.bf16.gmra.mxu1 %v8886_v51 }
 0x64b   :  { %4205 = vmatmul.bf16.gmra.mxu0 %v8885_v62  ;;  %v5535_v16 = vmax.f32 %v4155_v8, 0.0  ;;  %4413 = vmatmul.bf16.gmra.mxu2 %v8887_v41  ;;  %v3950_v22 = vadd.f32 %v3949_v36, %v3846_v5  ;;  %v6618_v8 = vld [vmem:[#allocation8 + $0x2a8] sm:$0xf]  ;;  %v6999_v5 = vld [vmem:[#allocation8 + $0x2b4] sm:$0xf0] }
 0x64c   :  { %4517 = vmatmul.bf16.gmra.mxu3 %v7941_v3 }
 0x64d   :  { %5687 = vst [vmem:[#allocation11 + $0x320] sm:$0xff] %v5535_v16 }
 0x64e   :  { %v4053_v19 = vpop.f32.mrf.mxu2 }
 0x64f   :  { %v4054_v18 = vadd.f32 %v4053_v19, %v3950_v22  ;;  %v4157_v7 = vpop.f32.mrf.mxu3  ;;  %v3951_v23 = vpop.f32.mrf.mxu1  ;;  %v6619_v22 = vor.u32 %v6999_v5, %v6618_v8  ;;  %v6362_v19 = vld [vmem:[#allocation8 + $0xa8] sm:$0xf] }
 0x650   :  { %v3847_v56 = vpop.f32.mrf.mxu0 }
 0x651   :  { %v4158_v15 = vadd.f32 %v4157_v7, %v4054_v18  ;;  %v3848_v34 = vadd.f32 %v3847_v56, %v8064_v47  ;;  %v6935_v18 = vld [vmem:[#allocation8 + $0xb4] sm:$0xf0]  ;;  %v6746_v7 = vld [vmem:[#allocation8 + $0x3a8] sm:$0xf]  ;;  %4813 = vmatpush.bf16.msra.mxu2 %v6619_v22 }
 0x653   :  { %v5539_v60 = vmax.f32 %v4158_v15, 0.0  ;;  %v3952_v21 = vadd.f32 %v3951_v23, %v3848_v34  ;;  %v6363_v34 = vor.u32 %v6935_v18, %v6362_v19 }
 0x655   :  { %5691 = vst [vmem:[#allocation11 + $0x340] sm:$0xff] %v5539_v60  ;;  %v7031_v60 = vld [vmem:[#allocation8 + $0x3b4] sm:$0xf0]  ;;  %4605 = vmatpush.bf16.msra.mxu0 %v6363_v34 }
 0x656   :  { %v4055_v17 = vpop.f32.mrf.mxu2 }
 0x657   :  { %v4056_v53 = vadd.f32 %v4055_v17, %v3952_v21  ;;  %v4159_v35 = vpop.f32.mrf.mxu3  ;;  %v3954_v1 = vpop.f32.mrf.mxu1  ;;  %v6490_v21 = vld [vmem:[#allocation8 + $0x1a8] sm:$0xf]  ;;  %v6967_v17 = vld [vmem:[#allocation8 + $0x1b4] sm:$0xf0] }
 0x658   :  { %v3850_v63 = vpop.f32.mrf.mxu0 }
 0x659   :  { %v4160_v59 = vadd.f32 %v4159_v35, %v4056_v53  ;;  %v3851_v44 = vadd.f32 %v3850_v63, %v8064_v47  ;;  %v6747_v35 = vor.u32 %v7031_v60, %v6746_v7  ;;  %v6491_v63 = vor.u32 %v6967_v17, %v6490_v21 }
 0x65a   :  { %4314 = vmatmul.bf16.gmra.mxu1 %v8890_v2 }
 0x65b   :  { %4210 = vmatmul.bf16.gmra.mxu0 %v8889_v38  ;;  %v5543_v6 = vmax.f32 %v4160_v59, 0.0  ;;  %4418 = vmatmul.bf16.gmra.mxu2 %v8891_v43  ;;  %v3955_v36 = vadd.f32 %v3954_v1, %v3851_v44 }
 0x65c   :  { %4522 = vmatmul.bf16.gmra.mxu3 %v7949_v4  ;;  %4709 = vmatpush.bf16.msra.mxu1 %v6491_v63 }
 0x65d   :  { %5695 = vst [vmem:[#allocation11 + $0x360] sm:$0xff] %v5543_v6  ;;  %4917 = vmatpush.bf16.msra.mxu3 %v6747_v35 }
 0x65e   :  { %v4058_v16 = vpop.f32.mrf.mxu2 }
 0x65f   :  { %v4059_v56 = vadd.f32 %v4058_v16, %v3955_v36  ;;  %v4162_v23 = vpop.f32.mrf.mxu3  ;;  %v3956_v53 = vpop.f32.mrf.mxu1 }
 0x660   :  { %v3852_v15 = vpop.f32.mrf.mxu0 }
 0x661   :  { %v4163_v59 = vadd.f32 %v4162_v23, %v4059_v56  ;;  %v3853_v1 = vadd.f32 %v3852_v15, %v8064_v47 }
 0x663   :  { %v5547_v44 = vmax.f32 %v4163_v59, 0.0  ;;  %v3957_v6 = vadd.f32 %v3956_v53, %v3853_v1 }
 0x665   :  { %5699 = vst [vmem:[#allocation11 + $0x380] sm:$0xff] %v5547_v44 }
 0x666   :  { %v4060_v36 = vpop.f32.mrf.mxu2 }
 0x667   :  { %v4061_v8 = vadd.f32 %v4060_v36, %v3957_v6  ;;  %v4164_v5 = vpop.f32.mrf.mxu3  ;;  %v3959_v19 = vpop.f32.mrf.mxu1 }
 0x668   :  { %v3855_v16 = vpop.f32.mrf.mxu0 }
 0x669   :  { %v4165_v18 = vadd.f32 %v4164_v5, %v4061_v8  ;;  %v3856_v4 = vadd.f32 %v3855_v16, %v8064_v47  ;;  %v8931_v5 = vld [vmem:[#allocation76_spill] sm:$0xff]  ;;  %v8932_v16 = vld [vmem:[#allocation94_spill] sm:$0xff] }
 0x66a   :  { %4319 = vmatmul.bf16.gmra.mxu1 %v8893_v30 }
 0x66b   :  { %4215 = vmatmul.bf16.gmra.mxu0 %v8892_v49  ;;  %v5551_v22 = vmax.f32 %v4165_v18, 0.0  ;;  %4423 = vmatmul.bf16.gmra.mxu2 %v8894_v54  ;;  %v3960_v7 = vadd.f32 %v3959_v19, %v3856_v4  ;;  %v8933_v19 = vld [vmem:[#allocation20_spill] sm:$0xff] }
 0x66c   :  { %4527 = vmatmul.bf16.gmra.mxu3 %v7957_v24 }
 0x66d   :  { %5703 = vst [vmem:[#allocation11 + $0x3a0] sm:$0xff] %v5551_v22  ;;  %v6602_v22 = vld [vmem:[#allocation8 + $0x288] sm:$0xf] }
 0x66e   :  { %v4063_v56 = vpop.f32.mrf.mxu2 }
 0x66f   :  { %v4064_v23 = vadd.f32 %v4063_v56, %v3960_v7  ;;  %v4167_v15 = vpop.f32.mrf.mxu3  ;;  %v3961_v60 = vpop.f32.mrf.mxu1  ;;  %v6995_v7 = vld [vmem:[#allocation8 + $0x294] sm:$0xf0] }
 0x670   :  { %v3857_v34 = vpop.f32.mrf.mxu0 }
 0x671   :  { %v4168_v21 = vadd.f32 %v4167_v15, %v4064_v23  ;;  %v3858_v17 = vadd.f32 %v3857_v34, %v8064_v47  ;;  %v6603_v23 = vor.u32 %v6995_v7, %v6602_v22 }
 0x673   :  { %v5555_v53 = vmax.f32 %v4168_v21, 0.0  ;;  %v3962_v35 = vadd.f32 %v3961_v60, %v3858_v17  ;;  %4814 = vmatpush.bf16.msra.mxu2 %v6603_v23 }
 0x675   :  { %5707 = vst [vmem:[#allocation11 + $0x3c0] sm:$0xff] %v5555_v53 }
 0x676   :  { %v4065_v63 = vpop.f32.mrf.mxu2 }
 0x677   :  { %v4066_v59 = vadd.f32 %v4065_v63, %v3962_v35  ;;  %v4169_v1 = vpop.f32.mrf.mxu3  ;;  %v3964_v6 = vpop.f32.mrf.mxu1 }
 0x678   :  { %v3860_v44 = vpop.f32.mrf.mxu0 }
 0x679   :  { %v4170_v36 = vadd.f32 %v4169_v1, %v4066_v59  ;;  %v3861_v8 = vadd.f32 %v3860_v44, %v8064_v47  ;;  %v6346_v59 = vld [vmem:[#allocation8 + $0x88] sm:$0xf]  ;;  %v6931_v1 = vld [vmem:[#allocation8 + $0x94] sm:$0xf0] }
 0x67a   :  { %4324 = vmatmul.bf16.gmra.mxu1 %v8931_v5 }
 0x67b   :  { %4220 = vmatmul.bf16.gmra.mxu0 %v8896_v14  ;;  %v5559_v4 = vmax.f32 %v4170_v36, 0.0  ;;  %4428 = vmatmul.bf16.gmra.mxu2 %v8932_v16  ;;  %v3965_v18 = vadd.f32 %v3964_v6, %v3861_v8  ;;  %v6347_v36 = vor.u32 %v6931_v1, %v6346_v59  ;;  %v6730_v6 = vld [vmem:[#allocation8 + $0x388] sm:$0xf]  ;;  %v7027_v8 = vld [vmem:[#allocation8 + $0x394] sm:$0xf0] }
 0x67c   :  { %4532 = vmatmul.bf16.gmra.mxu3 %v8933_v19  ;;  %v6731_v7 = vor.u32 %v7027_v8, %v6730_v6 }
 0x67d   :  { %5711 = vst [vmem:[#allocation11 + $0x3e0] sm:$0xff] %v5559_v4  ;;  %v6474_v4 = vld [vmem:[#allocation8 + $0x188] sm:$0xf]  ;;  %4606 = vmatpush.bf16.msra.mxu0 %v6347_v36 }
 0x67e   :  { %v4068_v56 = vpop.f32.mrf.mxu2  ;;  %4918 = vmatpush.bf16.msra.mxu3 %v6731_v7 }
 0x67f   :  { %v4069_v15 = vadd.f32 %v4068_v56, %v3965_v18  ;;  %v4172_v34 = vpop.f32.mrf.mxu3  ;;  %v3966_v21 = vpop.f32.mrf.mxu1  ;;  %v6963_v56 = vld [vmem:[#allocation8 + $0x194] sm:$0xf0] }
 0x680   :  { %v3862_v60 = vpop.f32.mrf.mxu0  ;;  %v6475_v23 = vor.u32 %v6963_v56, %v6474_v4 }
 0x681   :  { %v4173_v17 = vadd.f32 %v4172_v34, %v4069_v15  ;;  %v3863_v53 = vadd.f32 %v3862_v60, %v8064_v47  ;;  %v8934_v60 = vld [vmem:[#allocation51_spill] sm:$0xff] }
 0x682   :  { %4710 = vmatpush.bf16.msra.mxu1 %v6475_v23 }
 0x683   :  { %v5563_v35 = vmax.f32 %v4173_v17, 0.0  ;;  %v3967_v63 = vadd.f32 %v3966_v21, %v3863_v53  ;;  %v8935_v17 = vld [vmem:[#allocation77_spill] sm:$0xff]  ;;  %v8936_v53 = vld [vmem:[#allocation95_spill] sm:$0xff] }
 0x685   :  { %5715 = vst [vmem:[#allocation11 + $0x400] sm:$0xff] %v5563_v35  ;;  %v8937_v35 = vld [vmem:[#allocation21_spill] sm:$0xff] }
 0x686   :  { %v4070_v44 = vpop.f32.mrf.mxu2 }
 0x687   :  { %v4071_v19 = vadd.f32 %v4070_v44, %v3967_v63  ;;  %v4174_v22 = vpop.f32.mrf.mxu3  ;;  %v3969_v16 = vpop.f32.mrf.mxu1 }
 0x688   :  { %v3865_v18 = vpop.f32.mrf.mxu0 }
 0x689   :  { %v4175_v15 = vadd.f32 %v4174_v22, %v4071_v19  ;;  %v3866_v34 = vadd.f32 %v3865_v18, %v8064_v47 }
 0x68a   :  { %4329 = vmatmul.bf16.gmra.mxu1 %v8935_v17 }
 0x68b   :  { %4225 = vmatmul.bf16.gmra.mxu0 %v8934_v60  ;;  %v5567_v21 = vmax.f32 %v4175_v15, 0.0  ;;  %4433 = vmatmul.bf16.gmra.mxu2 %v8936_v53  ;;  %v3970_v63 = vadd.f32 %v3969_v16, %v3866_v34  ;;  %v8938_v16 = vld [vmem:[#allocation56_spill] sm:$0xff] }
 0x68c   :  { %4537 = vmatmul.bf16.gmra.mxu3 %v8937_v35 }
 0x68d   :  { %5719 = vst [vmem:[#allocation11 + $0x420] sm:$0xff] %v5567_v21 }
 0x68e   :  { %v4073_v59 = vpop.f32.mrf.mxu2 }
 0x68f   :  { %v4074_v1 = vadd.f32 %v4073_v59, %v3970_v63  ;;  %v4177_v44 = vpop.f32.mrf.mxu3  ;;  %v3971_v19 = vpop.f32.mrf.mxu1  ;;  %v8939_v63 = vld [vmem:[#allocation52_spill] sm:$0xff] }
 0x690   :  { %v3867_v36 = vpop.f32.mrf.mxu0  ;;  %v8940_v59 = vld [vmem:[#allocation96_spill] sm:$0xff] }
 0x691   :  { %v4178_v6 = vadd.f32 %v4177_v44, %v4074_v1  ;;  %v3868_v8 = vadd.f32 %v3867_v36, %v8064_v47  ;;  %v8941_v1 = vld [vmem:[#allocation22_spill] sm:$0xff] }
 0x693   :  { %v5571_v4 = vmax.f32 %v4178_v6, 0.0  ;;  %v3972_v22 = vadd.f32 %v3971_v19, %v3868_v8 }
 0x695   :  { %5723 = vst [vmem:[#allocation11 + $0x440] sm:$0xff] %v5571_v4 }
 0x696   :  { %v4075_v18 = vpop.f32.mrf.mxu2 }
 0x697   :  { %v4076_v7 = vadd.f32 %v4075_v18, %v3972_v22  ;;  %v4179_v56 = vpop.f32.mrf.mxu3  ;;  %v3974_v15 = vpop.f32.mrf.mxu1 }
 0x698   :  { %v3870_v23 = vpop.f32.mrf.mxu0 }
 0x699   :  { %v4180_v53 = vadd.f32 %v4179_v56, %v4076_v7  ;;  %v3871_v21 = vadd.f32 %v3870_v23, %v8064_v47 }
 0x69a   :  { %4334 = vmatmul.bf16.gmra.mxu1 %v8939_v63  ;;  %v6586_v63 = vld [vmem:[#allocation8 + $0x268] sm:$0xf] }
 0x69b   :  { %4230 = vmatmul.bf16.gmra.mxu0 %v8938_v16  ;;  %v5575_v34 = vmax.f32 %v4180_v53, 0.0  ;;  %4438 = vmatmul.bf16.gmra.mxu2 %v8940_v59  ;;  %v3975_v44 = vadd.f32 %v3974_v15, %v3871_v21  ;;  %v7053_v53 = vld [vmem:[#allocation10] sm:$0xf]  ;;  %v6991_v59 = vld [vmem:[#allocation8 + $0x274] sm:$0xf0] }
 0x69c   :  { %4542 = vmatmul.bf16.gmra.mxu3 %v8941_v1  ;;  %v8182_v23 = vperm.slane %v7053_v53, 1  ;;  %v6587_v1 = vor.u32 %v6991_v59, %v6586_v63  ;;  %v6927_v15 = vld [vmem:[#allocation8 + $0x74] sm:$0xf0]  ;;  %v6714_v21 = vld [vmem:[#allocation8 + $0x368] sm:$0xf]  ;;  %v8942_v63 = vld [vmem:[#allocation97_spill] sm:$0xff] }
 0x69d   :  { %5727 = vst [vmem:[#allocation11 + $0x460] sm:$0xff] %v5575_v34  ;;  %v6330_v34 = vld [vmem:[#allocation8 + $0x68] sm:$0xf] }
 0x69e   :  { %v4078_v36 = vpop.f32.mrf.mxu2  ;;  %v6331_v17 = vor.u32 %v6927_v15, %v6330_v34  ;;  %4815 = vmatpush.bf16.msra.mxu2 %v6587_v1 }
 0x69f   :  { %v4079_v19 = vadd.f32 %v4078_v36, %v3975_v44  ;;  %v4182_v6 = vpop.f32.mrf.mxu3  ;;  %v3976_v4 = vpop.f32.mrf.mxu1 }
 0x6a0   :  { %v3872_v8 = vpop.f32.mrf.mxu0  ;;  %4607 = vmatpush.bf16.msra.mxu0 %v6331_v17 }
 0x6a1   :  { %v4183_v22 = vadd.f32 %v4182_v6, %v4079_v19  ;;  %v3873_v18 = vadd.f32 %v3872_v8, %v8064_v47  ;;  %v7023_v19 = vld [vmem:[#allocation8 + $0x374] sm:$0xf0] }
 0x6a2   :  { %v6715_v47 = vor.u32 %v7023_v19, %v6714_v21 }
 0x6a3   :  { %v5579_v7 = vmax.f32 %v4183_v22, 0.0  ;;  %v3977_v56 = vadd.f32 %v3976_v4, %v3873_v18  ;;  %v6458_v18 = vld [vmem:[#allocation8 + $0x168] sm:$0xf] }
 0x6a4   :  { %4919 = vmatpush.bf16.msra.mxu3 %v6715_v47 }
 0x6a5   :  { %5731 = vst [vmem:[#allocation11 + $0x480] sm:$0xff] %v5579_v7  ;;  %v6959_v7 = vld [vmem:[#allocation8 + $0x174] sm:$0xf0] }
 0x6a6   :  { %v4080_v16 = vpop.f32.mrf.mxu2 }
 0x6a7   :  { %v4081_v44 = vadd.f32 %v4080_v16, %v3977_v56  ;;  %v4184_v36 = vpop.f32.mrf.mxu3  ;;  %v4300_v6 = vpop.f32.mrf.mxu1  ;;  %v8943_v16 = vld [vmem:[#allocation23_spill] sm:$0xff]  ;;  %v6459_v56 = vor.u32 %v6959_v7, %v6458_v18  ;;  %v8945_v7 = vld [vmem:[#allocation98_spill] sm:$0xff] }
 0x6a8   :  { %v4196_v35 = vpop.f32.mrf.mxu0  ;;  %v8944_v18 = vld [vmem:[#allocation79_spill] sm:$0xff] }
 0x6a9   :  { %v4185_v8 = vadd.f32 %v4184_v36, %v4081_v44  ;;  %v4197_v4 = vadd.f32 %v4196_v35, %v8182_v23  ;;  %4711 = vmatpush.bf16.msra.mxu1 %v6459_v56 }
 0x6aa   :  { %4339 = vmatmul.bf16.gmra.mxu1 %v8909_v55 }
 0x6ab   :  { %4235 = vmatmul.bf16.gmra.mxu0 %v8908_v52  ;;  %v5583_v22 = vmax.f32 %v4185_v8, 0.0  ;;  %4443 = vmatmul.bf16.gmra.mxu2 %v8942_v63  ;;  %v4301_v59 = vadd.f32 %v4300_v6, %v4197_v4 }
 0x6ac   :  { %4547 = vmatmul.bf16.gmra.mxu3 %v8943_v16 }
 0x6ad   :  { %5735 = vst [vmem:[#allocation11 + $0x4a0] sm:$0xff] %v5583_v22 }
 0x6ae   :  { %v4404_v1 = vpop.f32.mrf.mxu2 }
 0x6af   :  { %v4405_v53 = vadd.f32 %v4404_v1, %v4301_v59  ;;  %v4508_v34 = vpop.f32.mrf.mxu3  ;;  %v4302_v17 = vpop.f32.mrf.mxu1  ;;  %v8946_v1 = vld [vmem:[#allocation24_spill] sm:$0xff] }
 0x6b0   :  { %v4198_v35 = vpop.f32.mrf.mxu0 }
 0x6b1   :  { %v4509_v15 = vadd.f32 %v4508_v34, %v4405_v53  ;;  %v4199_v21 = vadd.f32 %v4198_v35, %v8182_v23 }
 0x6b3   :  { %v5436_v44 = vmax.f32 %v4509_v15, 0.0  ;;  %v4303_v36 = vadd.f32 %v4302_v17, %v4199_v21 }
 0x6b5   :  { %5588 = vst [vmem:[#allocation11 + $0x8] sm:$0xff] %v5436_v44 }
 0x6b6   :  { %v4406_v19 = vpop.f32.mrf.mxu2 }
 0x6b7   :  { %v4407_v47 = vadd.f32 %v4406_v19, %v4303_v36  ;;  %v4510_v8 = vpop.f32.mrf.mxu3  ;;  %v4305_v6 = vpop.f32.mrf.mxu1 }
 0x6b8   :  { %v4201_v22 = vpop.f32.mrf.mxu0 }
 0x6b9   :  { %v4511_v4 = vadd.f32 %v4510_v8, %v4407_v47  ;;  %v4202_v16 = vadd.f32 %v4201_v22, %v8182_v23 }
 0x6ba   :  { %4344 = vmatmul.bf16.gmra.mxu1 %v8944_v18 }
 0x6bb   :  { %4240 = vmatmul.bf16.gmra.mxu0 %v8911_v26  ;;  %v5440_v59 = vmax.f32 %v4511_v4, 0.0  ;;  %4448 = vmatmul.bf16.gmra.mxu2 %v8945_v7  ;;  %v4306_v56 = vadd.f32 %v4305_v6, %v4202_v16  ;;  %v8947_v16 = vld [vmem:[#allocation63_spill] sm:$0xff] }
 0x6bc   :  { %4552 = vmatmul.bf16.gmra.mxu3 %v8946_v1  ;;  %v6442_v1 = vld [vmem:[#allocation8 + $0x148] sm:$0xf] }
 0x6bd   :  { %5592 = vst [vmem:[#allocation11 + $0x28] sm:$0xff] %v5440_v59 }
 0x6be   :  { %v4409_v53 = vpop.f32.mrf.mxu2 }
 0x6bf   :  { %v4410_v34 = vadd.f32 %v4409_v53, %v4306_v56  ;;  %v4513_v35 = vpop.f32.mrf.mxu3  ;;  %v4307_v15 = vpop.f32.mrf.mxu1  ;;  %v8948_v56 = vld [vmem:[#allocation80_spill] sm:$0xff] }
 0x6c0   :  { %v4203_v17 = vpop.f32.mrf.mxu0  ;;  %v8949_v53 = vld [vmem:[#allocation16_spill] sm:$0xff] }
 0x6c1   :  { %v4514_v21 = vadd.f32 %v4513_v35, %v4410_v34  ;;  %v4204_v44 = vadd.f32 %v4203_v17, %v8182_v23  ;;  %v8950_v34 = vld [vmem:[#allocation26_spill] sm:$0xff]  ;;  %v6570_v17 = vld [vmem:[#allocation8 + $0x248] sm:$0xf] }
 0x6c3   :  { %v5444_v36 = vmax.f32 %v4514_v21, 0.0  ;;  %v4308_v19 = vadd.f32 %v4307_v15, %v4204_v44  ;;  %v6987_v15 = vld [vmem:[#allocation8 + $0x254] sm:$0xf0] }
 0x6c4   :  { %v6571_v44 = vor.u32 %v6987_v15, %v6570_v17 }
 0x6c5   :  { %5596 = vst [vmem:[#allocation11 + $0x48] sm:$0xff] %v5444_v36  ;;  %v6314_v36 = vld [vmem:[#allocation8 + $0x48] sm:$0xf] }
 0x6c6   :  { %v4411_v47 = vpop.f32.mrf.mxu2  ;;  %4816 = vmatpush.bf16.msra.mxu2 %v6571_v44 }
 0x6c7   :  { %v4412_v8 = vadd.f32 %v4411_v47, %v4308_v19  ;;  %v4515_v22 = vpop.f32.mrf.mxu3  ;;  %v4310_v7 = vpop.f32.mrf.mxu1  ;;  %v6923_v19 = vld [vmem:[#allocation8 + $0x54] sm:$0xf0]  ;;  %v6698_v47 = vld [vmem:[#allocation8 + $0x348] sm:$0xf] }
 0x6c8   :  { %v4206_v4 = vpop.f32.mrf.mxu0 }
 0x6c9   :  { %v4516_v18 = vadd.f32 %v4515_v22, %v4412_v8  ;;  %v4207_v59 = vadd.f32 %v4206_v4, %v8182_v23 }
 0x6ca   :  { %4349 = vmatmul.bf16.gmra.mxu1 %v8948_v56  ;;  %v6955_v56 = vld [vmem:[#allocation8 + $0x154] sm:$0xf0] }
 0x6cb   :  { %4245 = vmatmul.bf16.gmra.mxu0 %v8947_v16  ;;  %v5448_v6 = vmax.f32 %v4516_v18, 0.0  ;;  %4453 = vmatmul.bf16.gmra.mxu2 %v8949_v53  ;;  %v4311_v35 = vadd.f32 %v4310_v7, %v4207_v59  ;;  %v6315_v16 = vor.u32 %v6923_v19, %v6314_v36  ;;  %v7019_v18 = vld [vmem:[#allocation8 + $0x354] sm:$0xf0] }
 0x6cc   :  { %4557 = vmatmul.bf16.gmra.mxu3 %v8950_v34  ;;  %v6699_v53 = vor.u32 %v7019_v18, %v6698_v47  ;;  %v6443_v34 = vor.u32 %v6955_v56, %v6442_v1 }
 0x6cd   :  { %5600 = vst [vmem:[#allocation11 + $0x68] sm:$0xff] %v5448_v6  ;;  %4608 = vmatpush.bf16.msra.mxu0 %v6315_v16 }
 0x6ce   :  { %v4414_v21 = vpop.f32.mrf.mxu2  ;;  %4920 = vmatpush.bf16.msra.mxu3 %v6699_v53  ;;  %4712 = vmatpush.bf16.msra.mxu1 %v6443_v34 }
 0x6cf   :  { %v4415_v8 = vadd.f32 %v4414_v21, %v4311_v35  ;;  %v4518_v22 = vpop.f32.mrf.mxu3  ;;  %v4312_v26 = vpop.f32.mrf.mxu1 }
 0x6d0   :  { %v4208_v4 = vpop.f32.mrf.mxu0 }
 0x6d1   :  { %v4519_v6 = vadd.f32 %v4518_v22, %v4415_v8  ;;  %v4209_v7 = vadd.f32 %v4208_v4, %v8182_v23 }
 0x6d3   :  { %v5452_v59 = vmax.f32 %v4519_v6, 0.0  ;;  %v4313_v17 = vadd.f32 %v4312_v26, %v4209_v7 }
 0x6d5   :  { %5604 = vst [vmem:[#allocation11 + $0x88] sm:$0xff] %v5452_v59 }
 0x6d6   :  { %v4416_v35 = vpop.f32.mrf.mxu2 }
 0x6d7   :  { %v4417_v15 = vadd.f32 %v4416_v35, %v4313_v17  ;;  %v4520_v21 = vpop.f32.mrf.mxu3  ;;  %v4315_v19 = vpop.f32.mrf.mxu1 }
 0x6d8   :  { %v4211_v36 = vpop.f32.mrf.mxu0 }
 0x6d9   :  { %v4521_v63 = vadd.f32 %v4520_v21, %v4417_v15  ;;  %v4212_v55 = vadd.f32 %v4211_v36, %v8182_v23  ;;  %v8951_v15 = vld [vmem:[#allocation82_spill] sm:$0xff]  ;;  %v8952_v21 = vld [vmem:[#allocation17_spill] sm:$0xff]  ;;  %v8953_v36 = vld [vmem:[#allocation27_spill] sm:$0xff] }
 0x6da   :  { %4354 = vmatmul.bf16.gmra.mxu1 %v8916_v25 }
 0x6db   :  { %4250 = vmatmul.bf16.gmra.mxu0 %v8915_v57  ;;  %v5456_v1 = vmax.f32 %v4521_v63, 0.0  ;;  %4458 = vmatmul.bf16.gmra.mxu2 %v7859_v31  ;;  %v4316_v16 = vadd.f32 %v4315_v19, %v4212_v55 }
 0x6dc   :  { %4562 = vmatmul.bf16.gmra.mxu3 %v8013_v58 }
 0x6dd   :  { %5608 = vst [vmem:[#allocation11 + $0xa8] sm:$0xff] %v5456_v1 }
 0x6de   :  { %v4419_v26 = vpop.f32.mrf.mxu2 }
 0x6df   :  { %v4420_v56 = vadd.f32 %v4419_v26, %v4316_v16  ;;  %v4523_v53 = vpop.f32.mrf.mxu3  ;;  %v4317_v44 = vpop.f32.mrf.mxu1 }
 0x6e0   :  { %v4213_v34 = vpop.f32.mrf.mxu0 }
 0x6e1   :  { %v4524_v47 = vadd.f32 %v4523_v53, %v4420_v56  ;;  %v4214_v8 = vadd.f32 %v4213_v34, %v8182_v23 }
 0x6e3   :  { %v5460_v22 = vmax.f32 %v4524_v47, 0.0  ;;  %v4318_v4 = vadd.f32 %v4317_v44, %v4214_v8 }
 0x6e5   :  { %5612 = vst [vmem:[#allocation11 + $0xc8] sm:$0xff] %v5460_v22  ;;  %v6554_v22 = vld [vmem:[#allocation8 + $0x228] sm:$0xf] }
 0x6e6   :  { %v4421_v63 = vpop.f32.mrf.mxu2 }
 0x6e7   :  { %v4422_v18 = vadd.f32 %v4421_v63, %v4318_v4  ;;  %v4525_v6 = vpop.f32.mrf.mxu3  ;;  %v4320_v59 = vpop.f32.mrf.mxu1  ;;  %v6983_v4 = vld [vmem:[#allocation8 + $0x234] sm:$0xf0] }
 0x6e8   :  { %v4216_v7 = vpop.f32.mrf.mxu0 }
 0x6e9   :  { %v4526_v17 = vadd.f32 %v4525_v6, %v4422_v18  ;;  %v4217_v35 = vadd.f32 %v4216_v7, %v8182_v23  ;;  %v6555_v18 = vor.u32 %v6983_v4, %v6554_v22  ;;  %v6298_v6 = vld [vmem:[#allocation8 + $0x28] sm:$0xf]  ;;  %v6919_v7 = vld [vmem:[#allocation8 + $0x34] sm:$0xf0] }
 0x6ea   :  { %4359 = vmatmul.bf16.gmra.mxu1 %v8951_v15 }
 0x6eb   :  { %4255 = vmatmul.bf16.gmra.mxu0 %v8917_v46  ;;  %v5464_v55 = vmax.f32 %v4526_v17, 0.0  ;;  %4463 = vmatmul.bf16.gmra.mxu2 %v8952_v21  ;;  %v4321_v19 = vadd.f32 %v4320_v59, %v4217_v35  ;;  %v6682_v17 = vld [vmem:[#allocation8 + $0x328] sm:$0xf]  ;;  %v6951_v21 = vld [vmem:[#allocation8 + $0x134] sm:$0xf0] }
 0x6ec   :  { %4567 = vmatmul.bf16.gmra.mxu3 %v8953_v36  ;;  %v6426_v36 = vld [vmem:[#allocation8 + $0x128] sm:$0xf]  ;;  %4817 = vmatpush.bf16.msra.mxu2 %v6555_v18 }
 0x6ed   :  { %5616 = vst [vmem:[#allocation11 + $0xe8] sm:$0xff] %v5464_v55 }
 0x6ee   :  { %v4424_v1 = vpop.f32.mrf.mxu2 }
 0x6ef   :  { %v4425_v16 = vadd.f32 %v4424_v1, %v4321_v19  ;;  %v4528_v26 = vpop.f32.mrf.mxu3  ;;  %v4322_v53 = vpop.f32.mrf.mxu1  ;;  %v6299_v19 = vor.u32 %v6919_v7, %v6298_v6  ;;  %v7015_v1 = vld [vmem:[#allocation8 + $0x334] sm:$0xf0] }
 0x6f0   :  { %v4218_v56 = vpop.f32.mrf.mxu0 }
 0x6f1   :  { %v4529_v34 = vadd.f32 %v4528_v26, %v4425_v16  ;;  %v4219_v44 = vadd.f32 %v4218_v56, %v8182_v23  ;;  %v6683_v26 = vor.u32 %v7015_v1, %v6682_v17  ;;  %v6427_v56 = vor.u32 %v6951_v21, %v6426_v36  ;;  %4609 = vmatpush.bf16.msra.mxu0 %v6299_v19 }
 0x6f3   :  { %v5468_v47 = vmax.f32 %v4529_v34, 0.0  ;;  %v4323_v8 = vadd.f32 %v4322_v53, %v4219_v44  ;;  %4921 = vmatpush.bf16.msra.mxu3 %v6683_v26  ;;  %4713 = vmatpush.bf16.msra.mxu1 %v6427_v56  ;;  %v8954_v56 = vld [vmem:[#allocation99_spill] sm:$0xff] }
 0x6f5   :  { %5620 = vst [vmem:[#allocation11 + $0x108] sm:$0xff] %v5468_v47 }
 0x6f6   :  { %v4426_v63 = vpop.f32.mrf.mxu2 }
 0x6f7   :  { %v4427_v55 = vadd.f32 %v4426_v63, %v4323_v8  ;;  %v4530_v59 = vpop.f32.mrf.mxu3  ;;  %v4325_v16 = vpop.f32.mrf.mxu1 }
 0x6f8   :  { %v4221_v35 = vpop.f32.mrf.mxu0 }
 0x6f9   :  { %v4531_v34 = vadd.f32 %v4530_v59, %v4427_v55  ;;  %v4222_v53 = vadd.f32 %v4221_v35, %v8182_v23 }
 0x6fa   :  { %4364 = vmatmul.bf16.gmra.mxu1 %v8920_v27 }
 0x6fb   :  { %4260 = vmatmul.bf16.gmra.mxu0 %v8919_v37  ;;  %v5472_v44 = vmax.f32 %v4531_v34, 0.0  ;;  %4468 = vmatmul.bf16.gmra.mxu2 %v7875_v12  ;;  %v4326_v47 = vadd.f32 %v4325_v16, %v4222_v53  ;;  %v8955_v34 = vld [vmem:[#allocation28_spill] sm:$0xff] }
 0x6fc   :  { %4572 = vmatmul.bf16.gmra.mxu3 %v8029_v11 }
 0x6fd   :  { %5624 = vst [vmem:[#allocation11 + $0x128] sm:$0xff] %v5472_v44 }
 0x6fe   :  { %v4429_v8 = vpop.f32.mrf.mxu2 }
 0x6ff   :  { %v4430_v22 = vadd.f32 %v4429_v8, %v4326_v47  ;;  %v4533_v21 = vpop.f32.mrf.mxu3  ;;  %v4327_v4 = vpop.f32.mrf.mxu1 }
 0x700   :  { %v4223_v36 = vpop.f32.mrf.mxu0 }
 0x701   :  { %v4534_v63 = vadd.f32 %v4533_v21, %v4430_v22  ;;  %v4224_v18 = vadd.f32 %v4223_v36, %v8182_v23 }
 0x703   :  { %v5476_v6 = vmax.f32 %v4534_v63, 0.0  ;;  %v4328_v7 = vadd.f32 %v4327_v4, %v4224_v18 }
 0x705   :  { %5628 = vst [vmem:[#allocation11 + $0x148] sm:$0xff] %v5476_v6  ;;  %v6538_v6 = vld [vmem:[#allocation8 + $0x208] sm:$0xf] }
 0x706   :  { %v4431_v17 = vpop.f32.mrf.mxu2 }
 0x707   :  { %v4432_v55 = vadd.f32 %v4431_v17, %v4328_v7  ;;  %v4535_v59 = vpop.f32.mrf.mxu3  ;;  %v4330_v19 = vpop.f32.mrf.mxu1  ;;  %v6979_v7 = vld [vmem:[#allocation8 + $0x214] sm:$0xf0] }
 0x708   :  { %v4226_v35 = vpop.f32.mrf.mxu0 }
 0x709   :  { %v4536_v1 = vadd.f32 %v4535_v59, %v4432_v55  ;;  %v4227_v26 = vadd.f32 %v4226_v35, %v8182_v23  ;;  %v6539_v55 = vor.u32 %v6979_v7, %v6538_v6  ;;  %v7011_v6 = vld [vmem:[#allocation8 + $0x314] sm:$0xf0]  ;;  %v6410_v7 = vld [vmem:[#allocation8 + $0x108] sm:$0xf] }
 0x70a   :  { %4369 = vmatmul.bf16.gmra.mxu1 %v8922_v61 }
 0x70b   :  { %4265 = vmatmul.bf16.gmra.mxu0 %v8921_v45  ;;  %v5480_v16 = vmax.f32 %v4536_v1, 0.0  ;;  %4473 = vmatmul.bf16.gmra.mxu2 %v8954_v56  ;;  %v4331_v53 = vadd.f32 %v4330_v19, %v4227_v26 }
 0x70c   :  { %4577 = vmatmul.bf16.gmra.mxu3 %v8955_v34  ;;  %4818 = vmatpush.bf16.msra.mxu2 %v6539_v55 }
 0x70d   :  { %5632 = vst [vmem:[#allocation11 + $0x168] sm:$0xff] %v5480_v16 }
 0x70e   :  { %v4434_v44 = vpop.f32.mrf.mxu2 }
 0x70f   :  { %v4435_v47 = vadd.f32 %v4434_v44, %v4331_v53  ;;  %v4538_v8 = vpop.f32.mrf.mxu3  ;;  %v4332_v21 = vpop.f32.mrf.mxu1  ;;  %v8956_v44 = vld [vmem:[#allocation85_spill] sm:$0xff] }
 0x710   :  { %v4228_v22 = vpop.f32.mrf.mxu0 }
 0x711   :  { %v4539_v36 = vadd.f32 %v4538_v8, %v4435_v47  ;;  %v4229_v4 = vadd.f32 %v4228_v22, %v8182_v23  ;;  %v8957_v47 = vld [vmem:[#allocation100_spill] sm:$0xff]  ;;  %v8958_v8 = vld [vmem:[#allocation29_spill] sm:$0xff] }
 0x713   :  { %v5484_v63 = vmax.f32 %v4539_v36, 0.0  ;;  %v4333_v18 = vadd.f32 %v4332_v21, %v4229_v4  ;;  %v6282_v21 = vld [vmem:[#allocation8 + $0x8] sm:$0xf]  ;;  %v6915_v36 = vld [vmem:[#allocation8 + $0x14] sm:$0xf0] }
 0x715   :  { %5636 = vst [vmem:[#allocation11 + $0x188] sm:$0xff] %v5484_v63  ;;  %v6283_v63 = vor.u32 %v6915_v36, %v6282_v21 }
 0x716   :  { %v4436_v17 = vpop.f32.mrf.mxu2 }
 0x717   :  { %v4437_v59 = vadd.f32 %v4436_v17, %v4333_v18  ;;  %v4540_v35 = vpop.f32.mrf.mxu3  ;;  %v4335_v16 = vpop.f32.mrf.mxu1  ;;  %v6666_v18 = vld [vmem:[#allocation8 + $0x308] sm:$0xf]  ;;  %4610 = vmatpush.bf16.msra.mxu0 %v6283_v63 }
 0x718   :  { %v4231_v1 = vpop.f32.mrf.mxu0 }
 0x719   :  { %v4541_v19 = vadd.f32 %v4540_v35, %v4437_v59  ;;  %v4232_v26 = vadd.f32 %v4231_v1, %v8182_v23  ;;  %v6667_v35 = vor.u32 %v7011_v6, %v6666_v18  ;;  %v6947_v1 = vld [vmem:[#allocation8 + $0x114] sm:$0xf0]  ;;  %v8959_v6 = vld [vmem:[#allocation32_spill] sm:$0xff] }
 0x71a   :  { %4374 = vmatmul.bf16.gmra.mxu1 %v8956_v44  ;;  %v6411_v44 = vor.u32 %v6947_v1, %v6410_v7 }
 0x71b   :  { %4270 = vmatmul.bf16.gmra.mxu0 %v8923_v39  ;;  %v5488_v53 = vmax.f32 %v4541_v19, 0.0  ;;  %4478 = vmatmul.bf16.gmra.mxu2 %v8957_v47  ;;  %v4336_v22 = vadd.f32 %v4335_v16, %v4232_v26 }
 0x71c   :  { %4582 = vmatmul.bf16.gmra.mxu3 %v8958_v8  ;;  %4714 = vmatpush.bf16.msra.mxu1 %v6411_v44 }
 0x71d   :  { %5640 = vst [vmem:[#allocation11 + $0x1a8] sm:$0xff] %v5488_v53  ;;  %4922 = vmatpush.bf16.msra.mxu3 %v6667_v35 }
 0x71e   :  { %v4439_v4 = vpop.f32.mrf.mxu2 }
 0x71f   :  { %v4440_v17 = vadd.f32 %v4439_v4, %v4336_v22  ;;  %v4543_v55 = vpop.f32.mrf.mxu3  ;;  %v4337_v19 = vpop.f32.mrf.mxu1 }
 0x720   :  { %v4233_v59 = vpop.f32.mrf.mxu0 }
 0x721   :  { %v4544_v47 = vadd.f32 %v4543_v55, %v4440_v17  ;;  %v4234_v8 = vadd.f32 %v4233_v59, %v8182_v23 }
 0x723   :  { %v5492_v16 = vmax.f32 %v4544_v47, 0.0  ;;  %v4338_v26 = vadd.f32 %v4337_v19, %v4234_v8 }
 0x725   :  { %5644 = vst [vmem:[#allocation11 + $0x1c8] sm:$0xff] %v5492_v16 }
 0x726   :  { %v4441_v53 = vpop.f32.mrf.mxu2 }
 0x727   :  { %v4442_v21 = vadd.f32 %v4441_v53, %v4338_v26  ;;  %v4545_v36 = vpop.f32.mrf.mxu3  ;;  %v4340_v22 = vpop.f32.mrf.mxu1 }
 0x728   :  { %v4236_v39 = vpop.f32.mrf.mxu0 }
 0x729   :  { %v4546_v4 = vadd.f32 %v4545_v36, %v4442_v21  ;;  %v4237_v18 = vadd.f32 %v4236_v39, %v8182_v23 }
 0x72a   :  { %4379 = vmatmul.bf16.gmra.mxu1 %v8926_v32 }
 0x72b   :  { %4275 = vmatmul.bf16.gmra.mxu0 %v8925_v9  ;;  %v5496_v63 = vmax.f32 %v4546_v4, 0.0  ;;  %4483 = vmatmul.bf16.gmra.mxu2 %v7899_v20  ;;  %v4341_v44 = vadd.f32 %v4340_v22, %v4237_v18  ;;  %v8960_v22 = vld [vmem:[#allocation70_spill] sm:$0xff] }
 0x72c   :  { %4587 = vmatmul.bf16.gmra.mxu3 %v8959_v6 }
 0x72d   :  { %5648 = vst [vmem:[#allocation11 + $0x1e8] sm:$0xff] %v5496_v63  ;;  %v8961_v63 = vld [vmem:[#allocation87_spill] sm:$0xff] }
 0x72e   :  { %v4444_v47 = vpop.f32.mrf.mxu2 }
 0x72f   :  { %v4445_v8 = vadd.f32 %v4444_v47, %v4341_v44  ;;  %v4548_v7 = vpop.f32.mrf.mxu3  ;;  %v4342_v55 = vpop.f32.mrf.mxu1  ;;  %v8962_v44 = vld [vmem:[#allocation102_spill] sm:$0xff]  ;;  %v8963_v47 = vld [vmem:[#allocation33_spill] sm:$0xff] }
 0x730   :  { %v4238_v17 = vpop.f32.mrf.mxu0 }
 0x731   :  { %v4549_v59 = vadd.f32 %v4548_v7, %v4445_v8  ;;  %v4239_v35 = vadd.f32 %v4238_v17, %v8182_v23  ;;  %v7005_v7 = vld [vmem:[#allocation8 + $0x2ec] sm:$0xf]  ;;  %v6652_v17 = vld [vmem:[#allocation8 + $0x2f8] sm:$0xf0] }
 0x733   :  { %v5500_v39 = vmax.f32 %v4549_v59, 0.0  ;;  %v4343_v1 = vadd.f32 %v4342_v55, %v4239_v35  ;;  %v6655_v59 = vor.u32 %v7005_v7, %v6652_v17  ;;  %v6941_v35 = vld [vmem:[#allocation8 + $0xec] sm:$0xf]  ;;  %v6524_v7 = vld [vmem:[#allocation8 + $0x1f8] sm:$0xf0] }
 0x735   :  { %5652 = vst [vmem:[#allocation11 + $0x208] sm:$0xff] %v5500_v39  ;;  %v6396_v39 = vld [vmem:[#allocation8 + $0xf8] sm:$0xf0]  ;;  %5227 = vmatpush.bf16.msrb.mxu2 %v6655_v59 }
 0x736   :  { %v4446_v19 = vpop.f32.mrf.mxu2 }
 0x737   :  { %v4447_v16 = vadd.f32 %v4446_v19, %v4343_v1  ;;  %v4550_v26 = vpop.f32.mrf.mxu3  ;;  %v4345_v21 = vpop.f32.mrf.mxu1  ;;  %v7037_v1 = vld [vmem:[#allocation8 + $0x3ec] sm:$0xf] }
 0x738   :  { %v4241_v53 = vpop.f32.mrf.mxu0 }
 0x739   :  { %v4551_v36 = vadd.f32 %v4550_v26, %v4447_v16  ;;  %v4242_v4 = vadd.f32 %v4241_v53, %v8182_v23  ;;  %v6399_v53 = vor.u32 %v6941_v35, %v6396_v39 }
 0x73a   :  { %4384 = vmatmul.bf16.gmra.mxu1 %v8961_v63 }
 0x73b   :  { %4280 = vmatmul.bf16.gmra.mxu0 %v8960_v22  ;;  %v5504_v18 = vmax.f32 %v4551_v36, 0.0  ;;  %4488 = vmatmul.bf16.gmra.mxu2 %v8962_v44  ;;  %v4346_v8 = vadd.f32 %v4345_v21, %v4242_v4  ;;  %v6780_v36 = vld [vmem:[#allocation8 + $0x3f8] sm:$0xf0] }
 0x73c   :  { %4592 = vmatmul.bf16.gmra.mxu3 %v8963_v47  ;;  %v6783_v63 = vor.u32 %v7037_v1, %v6780_v36  ;;  %5019 = vmatpush.bf16.msrb.mxu0 %v6399_v53 }
 0x73d   :  { %5656 = vst [vmem:[#allocation11 + $0x228] sm:$0xff] %v5504_v18  ;;  %v6973_v18 = vld [vmem:[#allocation8 + $0x1ec] sm:$0xf] }
 0x73e   :  { %v4449_v55 = vpop.f32.mrf.mxu2  ;;  %5331 = vmatpush.bf16.msrb.mxu3 %v6783_v63  ;;  %v6527_v6 = vor.u32 %v6973_v18, %v6524_v7 }
 0x73f   :  { %v4450_v19 = vadd.f32 %v4449_v55, %v4346_v8  ;;  %v4553_v16 = vpop.f32.mrf.mxu3  ;;  %v4347_v22 = vpop.f32.mrf.mxu1 }
 0x740   :  { %v4243_v26 = vpop.f32.mrf.mxu0  ;;  %5123 = vmatpush.bf16.msrb.mxu1 %v6527_v6 }
 0x741   :  { %v4554_v44 = vadd.f32 %v4553_v16, %v4450_v19  ;;  %v4244_v47 = vadd.f32 %v4243_v26, %v8182_v23 }
 0x743   :  { %v5508_v21 = vmax.f32 %v4554_v44, 0.0  ;;  %v4348_v4 = vadd.f32 %v4347_v22, %v4244_v47 }
 0x745   :  { %5660 = vst [vmem:[#allocation11 + $0x248] sm:$0xff] %v5508_v21 }
 0x746   :  { %v4451_v17 = vpop.f32.mrf.mxu2 }
 0x747   :  { %v4452_v8 = vadd.f32 %v4451_v17, %v4348_v4  ;;  %v4555_v55 = vpop.f32.mrf.mxu3  ;;  %v4350_v35 = vpop.f32.mrf.mxu1 }
 0x748   :  { %v4246_v20 = vpop.f32.mrf.mxu0 }
 0x749   :  { %v4556_v39 = vadd.f32 %v4555_v55, %v4452_v8  ;;  %v4247_v59 = vadd.f32 %v4246_v20, %v8182_v23 }
 0x74a   :  { %4389 = vmatmul.bf16.gmra.mxu1 %v8930_v29 }
 0x74b   :  { %4285 = vmatmul.bf16.gmra.mxu0 %v8929_v28  ;;  %v5512_v1 = vmax.f32 %v4556_v39, 0.0  ;;  %4493 = vmatmul.bf16.gmra.mxu2 %v7917_v48  ;;  %v4351_v22 = vadd.f32 %v4350_v35, %v4247_v59  ;;  %v8964_v35 = vld [vmem:[#allocation89_spill] sm:$0xff]  ;;  %v8965_v39 = vld [vmem:[#allocation18_spill] sm:$0xff] }
 0x74c   :  { %4597 = vmatmul.bf16.gmra.mxu3 %v8071_v42 }
 0x74d   :  { %5664 = vst [vmem:[#allocation11 + $0x268] sm:$0xff] %v5512_v1 }
 0x74e   :  { %v4454_v63 = vpop.f32.mrf.mxu2 }
 0x74f   :  { %v4455_v44 = vadd.f32 %v4454_v63, %v4351_v22  ;;  %v4558_v47 = vpop.f32.mrf.mxu3  ;;  %v4352_v16 = vpop.f32.mrf.mxu1 }
 0x750   :  { %v4248_v19 = vpop.f32.mrf.mxu0 }
 0x751   :  { %v4559_v6 = vadd.f32 %v4558_v47, %v4455_v44  ;;  %v4249_v26 = vadd.f32 %v4248_v19, %v8182_v23 }
 0x753   :  { %v5516_v20 = vmax.f32 %v4559_v6, 0.0  ;;  %v4353_v53 = vadd.f32 %v4352_v16, %v4249_v26 }
 0x755   :  { %5668 = vst [vmem:[#allocation11 + $0x288] sm:$0xff] %v5516_v20  ;;  %v7001_v20 = vld [vmem:[#allocation8 + $0x2cc] sm:$0xf] }
 0x756   :  { %v4456_v36 = vpop.f32.mrf.mxu2 }
 0x757   :  { %v4457_v21 = vadd.f32 %v4456_v36, %v4353_v53  ;;  %v4560_v4 = vpop.f32.mrf.mxu3  ;;  %v4355_v7 = vpop.f32.mrf.mxu1  ;;  %v6636_v53 = vld [vmem:[#allocation8 + $0x2d8] sm:$0xf0] }
 0x758   :  { %v4251_v18 = vpop.f32.mrf.mxu0 }
 0x759   :  { %v4561_v17 = vadd.f32 %v4560_v4, %v4457_v21  ;;  %v4252_v8 = vadd.f32 %v4251_v18, %v8182_v23  ;;  %v6639_v21 = vor.u32 %v7001_v20, %v6636_v53  ;;  %v6937_v4 = vld [vmem:[#allocation8 + $0xcc] sm:$0xf]  ;;  %v6380_v18 = vld [vmem:[#allocation8 + $0xd8] sm:$0xf0] }
 0x75a   :  { %4715 = vmatmul.bf16.vlgmr.msra.gmra.mxu1 %v8879_v0 }
 0x75b   :  { %4611 = vmatmul.bf16.vlgmr.msra.gmra.mxu0 %v8878_v33  ;;  %v5520_v55 = vmax.f32 %v4561_v17, 0.0  ;;  %4819 = vmatmul.bf16.vlgmr.msra.gmra.mxu2 %v8964_v35  ;;  %v4356_v59 = vadd.f32 %v4355_v7, %v4252_v8  ;;  %v7033_v17 = vld [vmem:[#allocation8 + $0x3cc] sm:$0xf]  ;;  %v6508_v35 = vld [vmem:[#allocation8 + $0x1d8] sm:$0xf0] }
 0x75c   :  { %4923 = vmatmul.bf16.vlgmr.msra.gmra.mxu3 %v8965_v39  ;;  %v6969_v39 = vld [vmem:[#allocation8 + $0x1cc] sm:$0xf]  ;;  %5228 = vmatpush.bf16.msrb.mxu2 %v6639_v21 }
 0x75d   :  { %5672 = vst [vmem:[#allocation11 + $0x2a8] sm:$0xff] %v5520_v55 }
 0x75e   :  { %v4459_v1 = vpop.f32.mrf.mxu2 }
 0x75f   :  { %v4460_v22 = vadd.f32 %v4459_v1, %v4356_v59  ;;  %v4563_v63 = vpop.f32.mrf.mxu3  ;;  %v4357_v47 = vpop.f32.mrf.mxu1  ;;  %v6383_v59 = vor.u32 %v6937_v4, %v6380_v18  ;;  %v6764_v1 = vld [vmem:[#allocation8 + $0x3d8] sm:$0xf0] }
 0x760   :  { %v4253_v44 = vpop.f32.mrf.mxu0 }
 0x761   :  { %v4564_v19 = vadd.f32 %v4563_v63, %v4460_v22  ;;  %v4254_v16 = vadd.f32 %v4253_v44, %v8182_v23  ;;  %v6767_v63 = vor.u32 %v7033_v17, %v6764_v1  ;;  %v6511_v44 = vor.u32 %v6969_v39, %v6508_v35  ;;  %5020 = vmatpush.bf16.msrb.mxu0 %v6383_v59 }
 0x763   :  { %v5524_v6 = vmax.f32 %v4564_v19, 0.0  ;;  %v4358_v26 = vadd.f32 %v4357_v47, %v4254_v16  ;;  %5332 = vmatpush.bf16.msrb.mxu3 %v6767_v63  ;;  %5124 = vmatpush.bf16.msrb.mxu1 %v6511_v44 }
 0x765   :  { %5676 = vst [vmem:[#allocation11 + $0x2c8] sm:$0xff] %v5524_v6 }
 0x766   :  { %v4461_v36 = vpop.f32.mrf.mxu2 }
 0x767   :  { %v4462_v55 = vadd.f32 %v4461_v36, %v4358_v26  ;;  %v4565_v7 = vpop.f32.mrf.mxu3  ;;  %v4360_v22 = vpop.f32.mrf.mxu1 }
 0x768   :  { %v4256_v8 = vpop.f32.mrf.mxu0 }
 0x769   :  { %v4566_v19 = vadd.f32 %v4565_v7, %v4462_v55  ;;  %v4257_v47 = vadd.f32 %v4256_v8, %v8182_v23 }
 0x76a   :  { %4720 = vmatmul.bf16.gmra.mxu1 %v8883_v10 }
 0x76b   :  { %4616 = vmatmul.bf16.gmra.mxu0 %v8882_v40  ;;  %v5528_v16 = vmax.f32 %v4566_v19, 0.0  ;;  %4824 = vmatmul.bf16.gmra.mxu2 %v8884_v13  ;;  %v4361_v6 = vadd.f32 %v4360_v22, %v4257_v47 }
 0x76c   :  { %4928 = vmatmul.bf16.gmra.mxu3 %v7933_v50 }
 0x76d   :  { %5680 = vst [vmem:[#allocation11 + $0x2e8] sm:$0xff] %v5528_v16 }
 0x76e   :  { %v4464_v26 = vpop.f32.mrf.mxu2 }
 0x76f   :  { %v4465_v20 = vadd.f32 %v4464_v26, %v4361_v6  ;;  %v4568_v35 = vpop.f32.mrf.mxu3  ;;  %v4362_v53 = vpop.f32.mrf.mxu1 }
 0x770   :  { %v4258_v39 = vpop.f32.mrf.mxu0 }
 0x771   :  { %v4569_v36 = vadd.f32 %v4568_v35, %v4465_v20  ;;  %v4259_v21 = vadd.f32 %v4258_v39, %v8182_v23 }
 0x773   :  { %v5532_v4 = vmax.f32 %v4569_v36, 0.0  ;;  %v4363_v18 = vadd.f32 %v4362_v53, %v4259_v21 }
 0x775   :  { %5684 = vst [vmem:[#allocation11 + $0x308] sm:$0xff] %v5532_v4 }
 0x776   :  { %v4466_v17 = vpop.f32.mrf.mxu2 }
 0x777   :  { %v4467_v55 = vadd.f32 %v4466_v17, %v4363_v18  ;;  %v4570_v7 = vpop.f32.mrf.mxu3  ;;  %v4365_v59 = vpop.f32.mrf.mxu1 }
 0x778   :  { %v4261_v8 = vpop.f32.mrf.mxu0 }
 0x779   :  { %v4571_v1 = vadd.f32 %v4570_v7, %v4467_v55  ;;  %v4262_v63 = vadd.f32 %v4261_v8, %v8182_v23 }
 0x77a   :  { %4725 = vmatmul.bf16.gmra.mxu1 %v8886_v51 }
 0x77b   :  { %4621 = vmatmul.bf16.gmra.mxu0 %v8885_v62  ;;  %v5536_v22 = vmax.f32 %v4571_v1, 0.0  ;;  %4829 = vmatmul.bf16.gmra.mxu2 %v8887_v41  ;;  %v4366_v44 = vadd.f32 %v4365_v59, %v4262_v63  ;;  %v8966_v59 = vld [vmem:[#allocation19_spill] sm:$0xff]  ;;  %v6997_v63 = vld [vmem:[#allocation8 + $0x2ac] sm:$0xf] }
 0x77c   :  { %4933 = vmatmul.bf16.gmra.mxu3 %v7941_v3 }
 0x77d   :  { %5688 = vst [vmem:[#allocation11 + $0x328] sm:$0xff] %v5536_v22  ;;  %v6620_v22 = vld [vmem:[#allocation8 + $0x2b8] sm:$0xf0] }
 0x77e   :  { %v4469_v19 = vpop.f32.mrf.mxu2 }
 0x77f   :  { %v4470_v47 = vadd.f32 %v4469_v19, %v4366_v44  ;;  %v4573_v16 = vpop.f32.mrf.mxu3  ;;  %v4367_v26 = vpop.f32.mrf.mxu1  ;;  %v6623_v19 = vor.u32 %v6997_v63, %v6620_v22 }
 0x780   :  { %v4263_v6 = vpop.f32.mrf.mxu0 }
 0x781   :  { %v4574_v20 = vadd.f32 %v4573_v16, %v4470_v47  ;;  %v4264_v35 = vadd.f32 %v4263_v6, %v8182_v23  ;;  %v6933_v47 = vld [vmem:[#allocation8 + $0xac] sm:$0xf]  ;;  %v6364_v16 = vld [vmem:[#allocation8 + $0xb8] sm:$0xf0]  ;;  %5229 = vmatpush.bf16.msrb.mxu2 %v6623_v19 }
 0x782   :  { %v7029_v6 = vld [vmem:[#allocation8 + $0x3ac] sm:$0xf] }
 0x783   :  { %v5540_v39 = vmax.f32 %v4574_v20, 0.0  ;;  %v4368_v53 = vadd.f32 %v4367_v26, %v4264_v35 }
 0x785   :  { %5692 = vst [vmem:[#allocation11 + $0x348] sm:$0xff] %v5540_v39  ;;  %v6367_v39 = vor.u32 %v6933_v47, %v6364_v16 }
 0x786   :  { %v4471_v36 = vpop.f32.mrf.mxu2 }
 0x787   :  { %v4472_v21 = vadd.f32 %v4471_v36, %v4368_v53  ;;  %v4575_v4 = vpop.f32.mrf.mxu3  ;;  %v4370_v17 = vpop.f32.mrf.mxu1  ;;  %v6748_v53 = vld [vmem:[#allocation8 + $0x3b8] sm:$0xf0]  ;;  %v6965_v36 = vld [vmem:[#allocation8 + $0x1ac] sm:$0xf]  ;;  %5021 = vmatpush.bf16.msrb.mxu0 %v6367_v39 }
 0x788   :  { %v4266_v18 = vpop.f32.mrf.mxu0 }
 0x789   :  { %v4576_v55 = vadd.f32 %v4575_v4, %v4472_v21  ;;  %v4267_v7 = vadd.f32 %v4266_v18, %v8182_v23  ;;  %v6492_v21 = vld [vmem:[#allocation8 + $0x1b8] sm:$0xf0]  ;;  %v6751_v18 = vor.u32 %v7029_v6, %v6748_v53 }
 0x78a   :  { %4730 = vmatmul.bf16.gmra.mxu1 %v8890_v2 }
 0x78b   :  { %4626 = vmatmul.bf16.gmra.mxu0 %v8889_v38  ;;  %v5544_v8 = vmax.f32 %v4576_v55, 0.0  ;;  %4834 = vmatmul.bf16.gmra.mxu2 %v8891_v43  ;;  %v4371_v1 = vadd.f32 %v4370_v17, %v4267_v7  ;;  %v6495_v55 = vor.u32 %v6965_v36, %v6492_v21 }
 0x78c   :  { %4938 = vmatmul.bf16.gmra.mxu3 %v8966_v59 }
 0x78d   :  { %5696 = vst [vmem:[#allocation11 + $0x368] sm:$0xff] %v5544_v8  ;;  %5333 = vmatpush.bf16.msrb.mxu3 %v6751_v18  ;;  %5125 = vmatpush.bf16.msrb.mxu1 %v6495_v55 }
 0x78e   :  { %v4474_v44 = vpop.f32.mrf.mxu2 }
 0x78f   :  { %v4475_v26 = vadd.f32 %v4474_v44, %v4371_v1  ;;  %v4578_v20 = vpop.f32.mrf.mxu3  ;;  %v4372_v4 = vpop.f32.mrf.mxu1 }
 0x790   :  { %v4268_v35 = vpop.f32.mrf.mxu0 }
 0x791   :  { %v4579_v8 = vadd.f32 %v4578_v20, %v4475_v26  ;;  %v4269_v17 = vadd.f32 %v4268_v35, %v8182_v23 }
 0x793   :  { %v5548_v7 = vmax.f32 %v4579_v8, 0.0  ;;  %v4373_v63 = vadd.f32 %v4372_v4, %v4269_v17 }
 0x795   :  { %5700 = vst [vmem:[#allocation11 + $0x388] sm:$0xff] %v5548_v7 }
 0x796   :  { %v4476_v1 = vpop.f32.mrf.mxu2 }
 0x797   :  { %v4477_v22 = vadd.f32 %v4476_v1, %v4373_v63  ;;  %v4580_v44 = vpop.f32.mrf.mxu3  ;;  %v4375_v16 = vpop.f32.mrf.mxu1 }
 0x798   :  { %v4271_v47 = vpop.f32.mrf.mxu0 }
 0x799   :  { %v4581_v59 = vadd.f32 %v4580_v44, %v4477_v22  ;;  %v4272_v43 = vadd.f32 %v4271_v47, %v8182_v23  ;;  %v8967_v22 = vld [vmem:[#allocation94_spill] sm:$0xff]  ;;  %v8968_v44 = vld [vmem:[#allocation20_spill] sm:$0xff] }
 0x79a   :  { %4735 = vmatmul.bf16.gmra.mxu1 %v8893_v30 }
 0x79b   :  { %4631 = vmatmul.bf16.gmra.mxu0 %v8892_v49  ;;  %v5552_v19 = vmax.f32 %v4581_v59, 0.0  ;;  %4839 = vmatmul.bf16.gmra.mxu2 %v8894_v54  ;;  %v4376_v6 = vadd.f32 %v4375_v16, %v4272_v43  ;;  %v6993_v16 = vld [vmem:[#allocation8 + $0x28c] sm:$0xf] }
 0x79c   :  { %4943 = vmatmul.bf16.gmra.mxu3 %v7957_v24 }
 0x79d   :  { %5704 = vst [vmem:[#allocation11 + $0x3a8] sm:$0xff] %v5552_v19  ;;  %v6604_v19 = vld [vmem:[#allocation8 + $0x298] sm:$0xf0] }
 0x79e   :  { %v4479_v26 = vpop.f32.mrf.mxu2 }
 0x79f   :  { %v4480_v20 = vadd.f32 %v4479_v26, %v4376_v6  ;;  %v4583_v35 = vpop.f32.mrf.mxu3  ;;  %v4377_v53 = vpop.f32.mrf.mxu1  ;;  %v6607_v26 = vor.u32 %v6993_v16, %v6604_v19 }
 0x7a0   :  { %v4273_v39 = vpop.f32.mrf.mxu0 }
 0x7a1   :  { %v4584_v36 = vadd.f32 %v4583_v35, %v4480_v20  ;;  %v4274_v21 = vadd.f32 %v4273_v39, %v8182_v23  ;;  %5230 = vmatpush.bf16.msrb.mxu2 %v6607_v26 }
 0x7a3   :  { %v5556_v4 = vmax.f32 %v4584_v36, 0.0  ;;  %v4378_v18 = vadd.f32 %v4377_v53, %v4274_v21 }
 0x7a5   :  { %5708 = vst [vmem:[#allocation11 + $0x3c8] sm:$0xff] %v5556_v4 }
 0x7a6   :  { %v4481_v59 = vpop.f32.mrf.mxu2 }
 0x7a7   :  { %v4482_v55 = vadd.f32 %v4481_v59, %v4378_v18  ;;  %v4585_v8 = vpop.f32.mrf.mxu3  ;;  %v4380_v7 = vpop.f32.mrf.mxu1  ;;  %v6929_v59 = vld [vmem:[#allocation8 + $0x8c] sm:$0xf] }
 0x7a8   :  { %v4276_v17 = vpop.f32.mrf.mxu0 }
 0x7a9   :  { %v4586_v63 = vadd.f32 %v4585_v8, %v4482_v55  ;;  %v4277_v1 = vadd.f32 %v4276_v17, %v8182_v23  ;;  %v6348_v55 = vld [vmem:[#allocation8 + $0x98] sm:$0xf0] }
 0x7aa   :  { %4740 = vmatmul.bf16.gmra.mxu1 %v8931_v5  ;;  %v6351_v17 = vor.u32 %v6929_v59, %v6348_v55 }
 0x7ab   :  { %4636 = vmatmul.bf16.gmra.mxu0 %v8896_v14  ;;  %v5560_v43 = vmax.f32 %v4586_v63, 0.0  ;;  %4844 = vmatmul.bf16.gmra.mxu2 %v8967_v22  ;;  %v4381_v47 = vadd.f32 %v4380_v7, %v4277_v1  ;;  %v7025_v7 = vld [vmem:[#allocation8 + $0x38c] sm:$0xf]  ;;  %v6732_v63 = vld [vmem:[#allocation8 + $0x398] sm:$0xf0] }
 0x7ac   :  { %4948 = vmatmul.bf16.gmra.mxu3 %v8968_v44  ;;  %v6961_v1 = vld [vmem:[#allocation8 + $0x18c] sm:$0xf]  ;;  %v6735_v19 = vor.u32 %v7025_v7, %v6732_v63  ;;  %5022 = vmatpush.bf16.msrb.mxu0 %v6351_v17 }
 0x7ad   :  { %5712 = vst [vmem:[#allocation11 + $0x3e8] sm:$0xff] %v5560_v43 }
 0x7ae   :  { %v4484_v6 = vpop.f32.mrf.mxu2  ;;  %5334 = vmatpush.bf16.msrb.mxu3 %v6735_v19 }
 0x7af   :  { %v4485_v20 = vadd.f32 %v4484_v6, %v4381_v47  ;;  %v4588_v35 = vpop.f32.mrf.mxu3  ;;  %v4382_v53 = vpop.f32.mrf.mxu1  ;;  %v6476_v6 = vld [vmem:[#allocation8 + $0x198] sm:$0xf0] }
 0x7b0   :  { %v4278_v39 = vpop.f32.mrf.mxu0  ;;  %v6479_v26 = vor.u32 %v6961_v1, %v6476_v6 }
 0x7b1   :  { %v4589_v36 = vadd.f32 %v4588_v35, %v4485_v20  ;;  %v4279_v21 = vadd.f32 %v4278_v39, %v8182_v23 }
 0x7b2   :  { %5126 = vmatpush.bf16.msrb.mxu1 %v6479_v26 }
 0x7b3   :  { %v5564_v4 = vmax.f32 %v4589_v36, 0.0  ;;  %v4383_v18 = vadd.f32 %v4382_v53, %v4279_v21  ;;  %v8969_v53 = vld [vmem:[#allocation77_spill] sm:$0xff]  ;;  %v8970_v36 = vld [vmem:[#allocation95_spill] sm:$0xff] }
 0x7b4   :  { %v8971_v21 = vld [vmem:[#allocation21_spill] sm:$0xff] }
 0x7b5   :  { %5716 = vst [vmem:[#allocation11 + $0x408] sm:$0xff] %v5564_v4 }
 0x7b6   :  { %v4486_v8 = vpop.f32.mrf.mxu2 }
 0x7b7   :  { %v4487_v43 = vadd.f32 %v4486_v8, %v4383_v18  ;;  %v4590_v16 = vpop.f32.mrf.mxu3  ;;  %v4385_v44 = vpop.f32.mrf.mxu1 }
 0x7b8   :  { %v4281_v47 = vpop.f32.mrf.mxu0 }
 0x7b9   :  { %v4591_v20 = vadd.f32 %v4590_v16, %v4487_v43  ;;  %v4282_v35 = vadd.f32 %v4281_v47, %v8182_v23 }
 0x7ba   :  { %4745 = vmatmul.bf16.gmra.mxu1 %v8969_v53 }
 0x7bb   :  { %4641 = vmatmul.bf16.gmra.mxu0 %v8934_v60  ;;  %v5568_v39 = vmax.f32 %v4591_v20, 0.0  ;;  %4849 = vmatmul.bf16.gmra.mxu2 %v8970_v36  ;;  %v4386_v4 = vadd.f32 %v4385_v44, %v4282_v35  ;;  %v8972_v44 = vld [vmem:[#allocation56_spill] sm:$0xff] }
 0x7bc   :  { %4953 = vmatmul.bf16.gmra.mxu3 %v8971_v21 }
 0x7bd   :  { %5720 = vst [vmem:[#allocation11 + $0x428] sm:$0xff] %v5568_v39 }
 0x7be   :  { %v4489_v18 = vpop.f32.mrf.mxu2 }
 0x7bf   :  { %v4490_v59 = vadd.f32 %v4489_v18, %v4386_v4  ;;  %v4593_v55 = vpop.f32.mrf.mxu3  ;;  %v4387_v17 = vpop.f32.mrf.mxu1  ;;  %v8973_v4 = vld [vmem:[#allocation52_spill] sm:$0xff] }
 0x7c0   :  { %v4283_v8 = vpop.f32.mrf.mxu0  ;;  %v8974_v18 = vld [vmem:[#allocation96_spill] sm:$0xff] }
 0x7c1   :  { %v4594_v7 = vadd.f32 %v4593_v55, %v4490_v59  ;;  %v4284_v63 = vadd.f32 %v4283_v8, %v8182_v23  ;;  %v8975_v59 = vld [vmem:[#allocation22_spill] sm:$0xff] }
 0x7c3   :  { %v5572_v1 = vmax.f32 %v4594_v7, 0.0  ;;  %v4388_v43 = vadd.f32 %v4387_v17, %v4284_v63 }
 0x7c5   :  { %5724 = vst [vmem:[#allocation11 + $0x448] sm:$0xff] %v5572_v1 }
 0x7c6   :  { %v4491_v16 = vpop.f32.mrf.mxu2 }
 0x7c7   :  { %v4492_v47 = vadd.f32 %v4491_v16, %v4388_v43  ;;  %v4595_v19 = vpop.f32.mrf.mxu3  ;;  %v4390_v26 = vpop.f32.mrf.mxu1 }
 0x7c8   :  { %v4286_v6 = vpop.f32.mrf.mxu0 }
 0x7c9   :  { %v4596_v20 = vadd.f32 %v4595_v19, %v4492_v47  ;;  %v4287_v39 = vadd.f32 %v4286_v6, %v8182_v23  ;;  %v7054_v6 = vld [vmem:[#allocation10] sm:$0xf] }
 0x7ca   :  { %4750 = vmatmul.bf16.gmra.mxu1 %v8973_v4  ;;  %v6989_v4 = vld [vmem:[#allocation8 + $0x26c] sm:$0xf] }
 0x7cb   :  { %4646 = vmatmul.bf16.gmra.mxu0 %v8972_v44  ;;  %v5576_v35 = vmax.f32 %v4596_v20, 0.0  ;;  %4854 = vmatmul.bf16.gmra.mxu2 %v8974_v18  ;;  %v4391_v55 = vadd.f32 %v4390_v26, %v4287_v39  ;;  %v8298_v20 = vperm.slane %v7054_v6, 2  ;;  %v6588_v18 = vld [vmem:[#allocation8 + $0x278] sm:$0xf0]  ;;  %v7021_v39 = vld [vmem:[#allocation8 + $0x36c] sm:$0xf] }
 0x7cc   :  { %4958 = vmatmul.bf16.gmra.mxu3 %v8975_v59  ;;  %v6591_v59 = vor.u32 %v6989_v4, %v6588_v18  ;;  %v6332_v26 = vld [vmem:[#allocation8 + $0x78] sm:$0xf0]  ;;  %v8976_v4 = vld [vmem:[#allocation78_spill] sm:$0xff]  ;;  %v8977_v18 = vld [vmem:[#allocation97_spill] sm:$0xff] }
 0x7cd   :  { %5728 = vst [vmem:[#allocation11 + $0x468] sm:$0xff] %v5576_v35  ;;  %v6925_v35 = vld [vmem:[#allocation8 + $0x6c] sm:$0xf] }
 0x7ce   :  { %v4494_v8 = vpop.f32.mrf.mxu2  ;;  %v6335_v36 = vor.u32 %v6925_v35, %v6332_v26  ;;  %5231 = vmatpush.bf16.msrb.mxu2 %v6591_v59 }
 0x7cf   :  { %v4495_v17 = vadd.f32 %v4494_v8, %v4391_v55  ;;  %v4598_v7 = vpop.f32.mrf.mxu3  ;;  %v4392_v1 = vpop.f32.mrf.mxu1 }
 0x7d0   :  { %v4288_v63 = vpop.f32.mrf.mxu0  ;;  %5023 = vmatpush.bf16.msrb.mxu0 %v6335_v36 }
 0x7d1   :  { %v4599_v43 = vadd.f32 %v4598_v7, %v4495_v17  ;;  %v4289_v16 = vadd.f32 %v4288_v63, %v8182_v23  ;;  %v6716_v17 = vld [vmem:[#allocation8 + $0x378] sm:$0xf0] }
 0x7d2   :  { %v6719_v23 = vor.u32 %v7021_v39, %v6716_v17 }
 0x7d3   :  { %v5580_v47 = vmax.f32 %v4599_v43, 0.0  ;;  %v4393_v19 = vadd.f32 %v4392_v1, %v4289_v16 }
 0x7d4   :  { %5335 = vmatpush.bf16.msrb.mxu3 %v6719_v23 }
 0x7d5   :  { %5732 = vst [vmem:[#allocation11 + $0x488] sm:$0xff] %v5580_v47  ;;  %v6957_v47 = vld [vmem:[#allocation8 + $0x16c] sm:$0xf] }
 0x7d6   :  { %v4496_v44 = vpop.f32.mrf.mxu2 }
 0x7d7   :  { %v4497_v55 = vadd.f32 %v4496_v44, %v4393_v19  ;;  %v4600_v8 = vpop.f32.mrf.mxu3  ;;  %v4716_v7 = vpop.f32.mrf.mxu1  ;;  %v8978_v44 = vld [vmem:[#allocation23_spill] sm:$0xff] }
 0x7d8   :  { %v4612_v21 = vpop.f32.mrf.mxu0  ;;  %v6460_v19 = vld [vmem:[#allocation8 + $0x178] sm:$0xf0] }
 0x7d9   :  { %v4601_v63 = vadd.f32 %v4600_v8, %v4497_v55  ;;  %v4613_v1 = vadd.f32 %v4612_v21, %v8298_v20  ;;  %v6463_v6 = vor.u32 %v6957_v47, %v6460_v19  ;;  %v8979_v47 = vld [vmem:[#allocation62_spill] sm:$0xff]  ;;  %v8980_v19 = vld [vmem:[#allocation79_spill] sm:$0xff] }
 0x7da   :  { %4755 = vmatmul.bf16.gmra.mxu1 %v8976_v4 }
 0x7db   :  { %4651 = vmatmul.bf16.gmra.mxu0 %v8908_v52  ;;  %v5584_v43 = vmax.f32 %v4601_v63, 0.0  ;;  %4859 = vmatmul.bf16.gmra.mxu2 %v8977_v18  ;;  %v4717_v16 = vadd.f32 %v4716_v7, %v4613_v1 }
 0x7dc   :  { %4963 = vmatmul.bf16.gmra.mxu3 %v8978_v44  ;;  %5127 = vmatpush.bf16.msrb.mxu1 %v6463_v6  ;;  %v8982_v6 = vld [vmem:[#allocation24_spill] sm:$0xff] }
 0x7dd   :  { %5736 = vst [vmem:[#allocation11 + $0x4a8] sm:$0xff] %v5584_v43 }
 0x7de   :  { %v4820_v59 = vpop.f32.mrf.mxu2 }
 0x7df   :  { %v4821_v35 = vadd.f32 %v4820_v59, %v4717_v16  ;;  %v4924_v26 = vpop.f32.mrf.mxu3  ;;  %v4718_v36 = vpop.f32.mrf.mxu1  ;;  %v8981_v59 = vld [vmem:[#allocation98_spill] sm:$0xff] }
 0x7e0   :  { %v4614_v21 = vpop.f32.mrf.mxu0 }
 0x7e1   :  { %v4925_v39 = vadd.f32 %v4924_v26, %v4821_v35  ;;  %v4615_v55 = vadd.f32 %v4614_v21, %v8298_v20 }
 0x7e3   :  { %v5437_v8 = vmax.f32 %v4925_v39, 0.0  ;;  %v4719_v17 = vadd.f32 %v4718_v36, %v4615_v55 }
 0x7e5   :  { %5589 = vst [vmem:[#allocation11 + $0x10] sm:$0xff] %v5437_v8 }
 0x7e6   :  { %v4822_v23 = vpop.f32.mrf.mxu2 }
 0x7e7   :  { %v4823_v63 = vadd.f32 %v4822_v23, %v4719_v17  ;;  %v4926_v44 = vpop.f32.mrf.mxu3  ;;  %v4721_v7 = vpop.f32.mrf.mxu1 }
 0x7e8   :  { %v4617_v43 = vpop.f32.mrf.mxu0 }
 0x7e9   :  { %v4927_v1 = vadd.f32 %v4926_v44, %v4823_v63  ;;  %v4618_v18 = vadd.f32 %v4617_v43, %v8298_v20 }
 0x7ea   :  { %4760 = vmatmul.bf16.gmra.mxu1 %v8980_v19 }
 0x7eb   :  { %4656 = vmatmul.bf16.gmra.mxu0 %v8979_v47  ;;  %v5441_v16 = vmax.f32 %v4927_v1, 0.0  ;;  %4864 = vmatmul.bf16.gmra.mxu2 %v8981_v59  ;;  %v4722_v35 = vadd.f32 %v4721_v7, %v4618_v18  ;;  %v8983_v18 = vld [vmem:[#allocation63_spill] sm:$0xff] }
 0x7ec   :  { %4968 = vmatmul.bf16.gmra.mxu3 %v8982_v6  ;;  %v6953_v6 = vld [vmem:[#allocation8 + $0x14c] sm:$0xf] }
 0x7ed   :  { %5593 = vst [vmem:[#allocation11 + $0x30] sm:$0xff] %v5441_v16 }
 0x7ee   :  { %v4825_v26 = vpop.f32.mrf.mxu2 }
 0x7ef   :  { %v4826_v21 = vadd.f32 %v4825_v26, %v4722_v35  ;;  %v4929_v36 = vpop.f32.mrf.mxu3  ;;  %v4723_v55 = vpop.f32.mrf.mxu1  ;;  %v8984_v35 = vld [vmem:[#allocation80_spill] sm:$0xff] }
 0x7f0   :  { %v4619_v39 = vpop.f32.mrf.mxu0  ;;  %v8985_v26 = vld [vmem:[#allocation16_spill] sm:$0xff] }
 0x7f1   :  { %v4930_v8 = vadd.f32 %v4929_v36, %v4826_v21  ;;  %v4620_v44 = vadd.f32 %v4619_v39, %v8298_v20  ;;  %v8986_v21 = vld [vmem:[#allocation26_spill] sm:$0xff]  ;;  %v6985_v39 = vld [vmem:[#allocation8 + $0x24c] sm:$0xf] }
 0x7f3   :  { %v5445_v17 = vmax.f32 %v4930_v8, 0.0  ;;  %v4724_v23 = vadd.f32 %v4723_v55, %v4620_v44  ;;  %v6572_v55 = vld [vmem:[#allocation8 + $0x258] sm:$0xf0] }
 0x7f4   :  { %v6575_v44 = vor.u32 %v6985_v39, %v6572_v55 }
 0x7f5   :  { %5597 = vst [vmem:[#allocation11 + $0x50] sm:$0xff] %v5445_v17  ;;  %v6921_v17 = vld [vmem:[#allocation8 + $0x4c] sm:$0xf] }
 0x7f6   :  { %v4827_v63 = vpop.f32.mrf.mxu2  ;;  %5232 = vmatpush.bf16.msrb.mxu2 %v6575_v44 }
 0x7f7   :  { %v4828_v43 = vadd.f32 %v4827_v63, %v4724_v23  ;;  %v4931_v1 = vpop.f32.mrf.mxu3  ;;  %v4726_v59 = vpop.f32.mrf.mxu1  ;;  %v6316_v23 = vld [vmem:[#allocation8 + $0x58] sm:$0xf0]  ;;  %v7017_v63 = vld [vmem:[#allocation8 + $0x34c] sm:$0xf] }
 0x7f8   :  { %v4622_v19 = vpop.f32.mrf.mxu0 }
 0x7f9   :  { %v4932_v47 = vadd.f32 %v4931_v1, %v4828_v43  ;;  %v4623_v16 = vadd.f32 %v4622_v19, %v8298_v20 }
 0x7fa   :  { %4765 = vmatmul.bf16.gmra.mxu1 %v8984_v35  ;;  %v6444_v35 = vld [vmem:[#allocation8 + $0x158] sm:$0xf0] }
 0x7fb   :  { %4661 = vmatmul.bf16.gmra.mxu0 %v8983_v18  ;;  %v5449_v7 = vmax.f32 %v4932_v47, 0.0  ;;  %4869 = vmatmul.bf16.gmra.mxu2 %v8985_v26  ;;  %v4727_v36 = vadd.f32 %v4726_v59, %v4623_v16  ;;  %v6319_v18 = vor.u32 %v6921_v17, %v6316_v23  ;;  %v6700_v47 = vld [vmem:[#allocation8 + $0x358] sm:$0xf0] }
 0x7fc   :  { %4973 = vmatmul.bf16.gmra.mxu3 %v8986_v21  ;;  %v6703_v26 = vor.u32 %v7017_v63, %v6700_v47  ;;  %v6447_v21 = vor.u32 %v6953_v6, %v6444_v35 }
 0x7fd   :  { %5601 = vst [vmem:[#allocation11 + $0x70] sm:$0xff] %v5449_v7  ;;  %5024 = vmatpush.bf16.msrb.mxu0 %v6319_v18 }
 0x7fe   :  { %v4830_v8 = vpop.f32.mrf.mxu2  ;;  %5336 = vmatpush.bf16.msrb.mxu3 %v6703_v26  ;;  %5128 = vmatpush.bf16.msrb.mxu1 %v6447_v21 }
 0x7ff   :  { %v4831_v43 = vadd.f32 %v4830_v8, %v4727_v36  ;;  %v4934_v19 = vpop.f32.mrf.mxu3  ;;  %v4728_v4 = vpop.f32.mrf.mxu1 }
 0x800   :  { %v4624_v1 = vpop.f32.mrf.mxu0 }
 0x801   :  { %v4935_v7 = vadd.f32 %v4934_v19, %v4831_v43  ;;  %v4625_v59 = vadd.f32 %v4624_v1, %v8298_v20 }
 0x803   :  { %v5453_v16 = vmax.f32 %v4935_v7, 0.0  ;;  %v4729_v39 = vadd.f32 %v4728_v4, %v4625_v59 }
 0x805   :  { %5605 = vst [vmem:[#allocation11 + $0x90] sm:$0xff] %v5453_v16 }
 0x806   :  { %v4832_v36 = vpop.f32.mrf.mxu2 }
 0x807   :  { %v4833_v55 = vadd.f32 %v4832_v36, %v4729_v39  ;;  %v4936_v8 = vpop.f32.mrf.mxu3  ;;  %v4731_v23 = vpop.f32.mrf.mxu1 }
 0x808   :  { %v4627_v17 = vpop.f32.mrf.mxu0 }
 0x809   :  { %v4937_v52 = vadd.f32 %v4936_v8, %v4833_v55  ;;  %v4628_v53 = vadd.f32 %v4627_v17, %v8298_v20  ;;  %v8987_v55 = vld [vmem:[#allocation17_spill] sm:$0xff]  ;;  %v8988_v8 = vld [vmem:[#allocation27_spill] sm:$0xff] }
 0x80a   :  { %4770 = vmatmul.bf16.gmra.mxu1 %v8916_v25 }
 0x80b   :  { %4666 = vmatmul.bf16.gmra.mxu0 %v8915_v57  ;;  %v5457_v6 = vmax.f32 %v4937_v52, 0.0  ;;  %4874 = vmatmul.bf16.gmra.mxu2 %v7859_v31  ;;  %v4732_v18 = vadd.f32 %v4731_v23, %v4628_v53 }
 0x80c   :  { %4978 = vmatmul.bf16.gmra.mxu3 %v8013_v58 }
 0x80d   :  { %5609 = vst [vmem:[#allocation11 + $0xb0] sm:$0xff] %v5457_v6 }
 0x80e   :  { %v4835_v4 = vpop.f32.mrf.mxu2 }
 0x80f   :  { %v4836_v35 = vadd.f32 %v4835_v4, %v4732_v18  ;;  %v4939_v26 = vpop.f32.mrf.mxu3  ;;  %v4733_v44 = vpop.f32.mrf.mxu1 }
 0x810   :  { %v4629_v21 = vpop.f32.mrf.mxu0 }
 0x811   :  { %v4940_v63 = vadd.f32 %v4939_v26, %v4836_v35  ;;  %v4630_v43 = vadd.f32 %v4629_v21, %v8298_v20 }
 0x813   :  { %v5461_v19 = vmax.f32 %v4940_v63, 0.0  ;;  %v4734_v1 = vadd.f32 %v4733_v44, %v4630_v43  ;;  %v6981_v43 = vld [vmem:[#allocation8 + $0x22c] sm:$0xf] }
 0x815   :  { %5613 = vst [vmem:[#allocation11 + $0xd0] sm:$0xff] %v5461_v19  ;;  %v6556_v19 = vld [vmem:[#allocation8 + $0x238] sm:$0xf0] }
 0x816   :  { %v4837_v52 = vpop.f32.mrf.mxu2 }
 0x817   :  { %v4838_v47 = vadd.f32 %v4837_v52, %v4734_v1  ;;  %v4941_v7 = vpop.f32.mrf.mxu3  ;;  %v4736_v16 = vpop.f32.mrf.mxu1  ;;  %v6559_v52 = vor.u32 %v6981_v43, %v6556_v19 }
 0x818   :  { %v4632_v59 = vpop.f32.mrf.mxu0 }
 0x819   :  { %v4942_v39 = vadd.f32 %v4941_v7, %v4838_v47  ;;  %v4633_v36 = vadd.f32 %v4632_v59, %v8298_v20  ;;  %v6917_v47 = vld [vmem:[#allocation8 + $0x2c] sm:$0xf]  ;;  %v6300_v7 = vld [vmem:[#allocation8 + $0x38] sm:$0xf0]  ;;  %5233 = vmatpush.bf16.msrb.mxu2 %v6559_v52 }
 0x81a   :  { %4775 = vmatmul.bf16.gmra.mxu1 %v8951_v15  ;;  %v7013_v59 = vld [vmem:[#allocation8 + $0x32c] sm:$0xf] }
 0x81b   :  { %4671 = vmatmul.bf16.gmra.mxu0 %v8917_v46  ;;  %v5465_v53 = vmax.f32 %v4942_v39, 0.0  ;;  %4879 = vmatmul.bf16.gmra.mxu2 %v8987_v55  ;;  %v4737_v17 = vadd.f32 %v4736_v16, %v4633_v36 }
 0x81c   :  { %4983 = vmatmul.bf16.gmra.mxu3 %v8988_v8  ;;  %v6428_v8 = vld [vmem:[#allocation8 + $0x138] sm:$0xf0] }
 0x81d   :  { %5617 = vst [vmem:[#allocation11 + $0xf0] sm:$0xff] %v5465_v53  ;;  %v6303_v53 = vor.u32 %v6917_v47, %v6300_v7 }
 0x81e   :  { %v4840_v23 = vpop.f32.mrf.mxu2 }
 0x81f   :  { %v4841_v6 = vadd.f32 %v4840_v23, %v4737_v17  ;;  %v4944_v18 = vpop.f32.mrf.mxu3  ;;  %v4738_v35 = vpop.f32.mrf.mxu1  ;;  %v6684_v17 = vld [vmem:[#allocation8 + $0x338] sm:$0xf0]  ;;  %v6949_v23 = vld [vmem:[#allocation8 + $0x12c] sm:$0xf]  ;;  %5025 = vmatpush.bf16.msrb.mxu0 %v6303_v53 }
 0x820   :  { %v4634_v4 = vpop.f32.mrf.mxu0 }
 0x821   :  { %v4945_v26 = vadd.f32 %v4944_v18, %v4841_v6  ;;  %v4635_v21 = vadd.f32 %v4634_v4, %v8298_v20  ;;  %v6687_v18 = vor.u32 %v7013_v59, %v6684_v17  ;;  %v6431_v4 = vor.u32 %v6949_v23, %v6428_v8 }
 0x823   :  { %v5469_v44 = vmax.f32 %v4945_v26, 0.0  ;;  %v4739_v63 = vadd.f32 %v4738_v35, %v4635_v21  ;;  %5337 = vmatpush.bf16.msrb.mxu3 %v6687_v18  ;;  %5129 = vmatpush.bf16.msrb.mxu1 %v6431_v4 }
 0x825   :  { %5621 = vst [vmem:[#allocation11 + $0x110] sm:$0xff] %v5469_v44 }
 0x826   :  { %v4842_v1 = vpop.f32.mrf.mxu2 }
 0x827   :  { %v4843_v39 = vadd.f32 %v4842_v1, %v4739_v63  ;;  %v4946_v16 = vpop.f32.mrf.mxu3  ;;  %v4741_v6 = vpop.f32.mrf.mxu1 }
 0x828   :  { %v4637_v36 = vpop.f32.mrf.mxu0 }
 0x829   :  { %v4947_v26 = vadd.f32 %v4946_v16, %v4843_v39  ;;  %v4638_v35 = vadd.f32 %v4637_v36, %v8298_v20 }
 0x82a   :  { %4780 = vmatmul.bf16.gmra.mxu1 %v8920_v27 }
 0x82b   :  { %4676 = vmatmul.bf16.gmra.mxu0 %v8919_v37  ;;  %v5473_v21 = vmax.f32 %v4947_v26, 0.0  ;;  %4884 = vmatmul.bf16.gmra.mxu2 %v7875_v12  ;;  %v4742_v44 = vadd.f32 %v4741_v6, %v4638_v35 }
 0x82c   :  { %4988 = vmatmul.bf16.gmra.mxu3 %v8029_v11 }
 0x82d   :  { %5625 = vst [vmem:[#allocation11 + $0x130] sm:$0xff] %v5473_v21 }
 0x82e   :  { %v4845_v63 = vpop.f32.mrf.mxu2 }
 0x82f   :  { %v4846_v43 = vadd.f32 %v4845_v63, %v4742_v44  ;;  %v4949_v8 = vpop.f32.mrf.mxu3  ;;  %v4743_v1 = vpop.f32.mrf.mxu1 }
 0x830   :  { %v4639_v19 = vpop.f32.mrf.mxu0 }
 0x831   :  { %v4950_v52 = vadd.f32 %v4949_v8, %v4846_v43  ;;  %v4640_v47 = vadd.f32 %v4639_v19, %v8298_v20 }
 0x833   :  { %v5477_v7 = vmax.f32 %v4950_v52, 0.0  ;;  %v4744_v59 = vadd.f32 %v4743_v1, %v4640_v47  ;;  %v6977_v52 = vld [vmem:[#allocation8 + $0x20c] sm:$0xf]  ;;  %v6540_v47 = vld [vmem:[#allocation8 + $0x218] sm:$0xf0] }
 0x835   :  { %5629 = vst [vmem:[#allocation11 + $0x150] sm:$0xff] %v5477_v7 }
 0x836   :  { %v4847_v39 = vpop.f32.mrf.mxu2 }
 0x837   :  { %v4848_v16 = vadd.f32 %v4847_v39, %v4744_v59  ;;  %v4951_v36 = vpop.f32.mrf.mxu3  ;;  %v4746_v17 = vpop.f32.mrf.mxu1  ;;  %v6543_v59 = vor.u32 %v6977_v52, %v6540_v47  ;;  %v6945_v52 = vld [vmem:[#allocation8 + $0x10c] sm:$0xf] }
 0x838   :  { %v4642_v53 = vpop.f32.mrf.mxu0 }
 0x839   :  { %v4952_v23 = vadd.f32 %v4951_v36, %v4848_v16  ;;  %v4643_v18 = vadd.f32 %v4642_v53, %v8298_v20  ;;  %5234 = vmatpush.bf16.msrb.mxu2 %v6543_v59 }
 0x83a   :  { %4785 = vmatmul.bf16.gmra.mxu1 %v8922_v61 }
 0x83b   :  { %4681 = vmatmul.bf16.gmra.mxu0 %v8921_v45  ;;  %v5481_v6 = vmax.f32 %v4952_v23, 0.0  ;;  %4889 = vmatmul.bf16.gmra.mxu2 %v8954_v56  ;;  %v4747_v4 = vadd.f32 %v4746_v17, %v4643_v18  ;;  %v8989_v18 = vld [vmem:[#allocation68_spill] sm:$0xff] }
 0x83c   :  { %4993 = vmatmul.bf16.gmra.mxu3 %v8955_v34 }
 0x83d   :  { %5633 = vst [vmem:[#allocation11 + $0x170] sm:$0xff] %v5481_v6 }
 0x83e   :  { %v4850_v26 = vpop.f32.mrf.mxu2 }
 0x83f   :  { %v4851_v35 = vadd.f32 %v4850_v26, %v4747_v4  ;;  %v4954_v21 = vpop.f32.mrf.mxu3  ;;  %v4748_v63 = vpop.f32.mrf.mxu1  ;;  %v8990_v4 = vld [vmem:[#allocation85_spill] sm:$0xff]  ;;  %v8991_v26 = vld [vmem:[#allocation100_spill] sm:$0xff] }
 0x840   :  { %v4644_v44 = vpop.f32.mrf.mxu0 }
 0x841   :  { %v4955_v43 = vadd.f32 %v4954_v21, %v4851_v35  ;;  %v4645_v8 = vadd.f32 %v4644_v44, %v8298_v20  ;;  %v8992_v35 = vld [vmem:[#allocation29_spill] sm:$0xff] }
 0x842   :  { %v6913_v44 = vld [vmem:[#allocation8 + $0xc] sm:$0xf] }
 0x843   :  { %v5485_v19 = vmax.f32 %v4955_v43, 0.0  ;;  %v4749_v1 = vadd.f32 %v4748_v63, %v4645_v8  ;;  %v6284_v63 = vld [vmem:[#allocation8 + $0x18] sm:$0xf0] }
 0x844   :  { %v6287_v8 = vor.u32 %v6913_v44, %v6284_v63 }
 0x845   :  { %5637 = vst [vmem:[#allocation11 + $0x190] sm:$0xff] %v5485_v19  ;;  %v7009_v19 = vld [vmem:[#allocation8 + $0x30c] sm:$0xf] }
 0x846   :  { %v4852_v7 = vpop.f32.mrf.mxu2  ;;  %5026 = vmatpush.bf16.msrb.mxu0 %v6287_v8 }
 0x847   :  { %v4853_v39 = vadd.f32 %v4852_v7, %v4749_v1  ;;  %v4956_v16 = vpop.f32.mrf.mxu3  ;;  %v4751_v53 = vpop.f32.mrf.mxu1  ;;  %v6668_v1 = vld [vmem:[#allocation8 + $0x318] sm:$0xf0] }
 0x848   :  { %v4647_v36 = vpop.f32.mrf.mxu0 }
 0x849   :  { %v4957_v17 = vadd.f32 %v4956_v16, %v4853_v39  ;;  %v4648_v23 = vadd.f32 %v4647_v36, %v8298_v20  ;;  %v6671_v39 = vor.u32 %v7009_v19, %v6668_v1  ;;  %v6412_v16 = vld [vmem:[#allocation8 + $0x118] sm:$0xf0]  ;;  %v8993_v1 = vld [vmem:[#allocation101_spill] sm:$0xff] }
 0x84a   :  { %4790 = vmatmul.bf16.gmra.mxu1 %v8990_v4 }
 0x84b   :  { %4686 = vmatmul.bf16.gmra.mxu0 %v8989_v18  ;;  %v5489_v6 = vmax.f32 %v4957_v17, 0.0  ;;  %4894 = vmatmul.bf16.gmra.mxu2 %v8991_v26  ;;  %v4752_v21 = vadd.f32 %v4751_v53, %v4648_v23  ;;  %v6415_v17 = vor.u32 %v6945_v52, %v6412_v16  ;;  %v8994_v52 = vld [vmem:[#allocation32_spill] sm:$0xff] }
 0x84c   :  { %4998 = vmatmul.bf16.gmra.mxu3 %v8992_v35 }
 0x84d   :  { %5641 = vst [vmem:[#allocation11 + $0x1b0] sm:$0xff] %v5489_v6  ;;  %5338 = vmatpush.bf16.msrb.mxu3 %v6671_v39  ;;  %5130 = vmatpush.bf16.msrb.mxu1 %v6415_v17 }
 0x84e   :  { %v4855_v43 = vpop.f32.mrf.mxu2 }
 0x84f   :  { %v4856_v47 = vadd.f32 %v4855_v43, %v4752_v21  ;;  %v4959_v7 = vpop.f32.mrf.mxu3  ;;  %v4753_v36 = vpop.f32.mrf.mxu1 }
 0x850   :  { %v4649_v59 = vpop.f32.mrf.mxu0 }
 0x851   :  { %v4960_v26 = vadd.f32 %v4959_v7, %v4856_v47  ;;  %v4650_v35 = vadd.f32 %v4649_v59, %v8298_v20 }
 0x853   :  { %v5493_v53 = vmax.f32 %v4960_v26, 0.0  ;;  %v4754_v23 = vadd.f32 %v4753_v36, %v4650_v35 }
 0x855   :  { %5645 = vst [vmem:[#allocation11 + $0x1d0] sm:$0xff] %v5493_v53 }
 0x856   :  { %v4857_v6 = vpop.f32.mrf.mxu2 }
 0x857   :  { %v4858_v44 = vadd.f32 %v4857_v6, %v4754_v23  ;;  %v4961_v63 = vpop.f32.mrf.mxu3  ;;  %v4756_v21 = vpop.f32.mrf.mxu1 }
 0x858   :  { %v4652_v4 = vpop.f32.mrf.mxu0 }
 0x859   :  { %v4962_v43 = vadd.f32 %v4961_v63, %v4858_v44  ;;  %v4653_v19 = vadd.f32 %v4652_v4, %v8298_v20 }
 0x85a   :  { %4795 = vmatmul.bf16.gmra.mxu1 %v8926_v32 }
 0x85b   :  { %4691 = vmatmul.bf16.gmra.mxu0 %v8925_v9  ;;  %v5497_v8 = vmax.f32 %v4962_v43, 0.0  ;;  %4899 = vmatmul.bf16.gmra.mxu2 %v8993_v1  ;;  %v4757_v26 = vadd.f32 %v4756_v21, %v4653_v19  ;;  %v8995_v21 = vld [vmem:[#allocation70_spill] sm:$0xff] }
 0x85c   :  { %5003 = vmatmul.bf16.gmra.mxu3 %v8994_v52 }
 0x85d   :  { %5649 = vst [vmem:[#allocation11 + $0x1f0] sm:$0xff] %v5497_v8 }
 0x85e   :  { %v4860_v35 = vpop.f32.mrf.mxu2 }
 0x85f   :  { %v4861_v47 = vadd.f32 %v4860_v35, %v4757_v26  ;;  %v4964_v7 = vpop.f32.mrf.mxu3  ;;  %v4758_v39 = vpop.f32.mrf.mxu1  ;;  %v8996_v26 = vld [vmem:[#allocation87_spill] sm:$0xff]  ;;  %v8997_v35 = vld [vmem:[#allocation102_spill] sm:$0xff] }
 0x860   :  { %v4654_v59 = vpop.f32.mrf.mxu0 }
 0x861   :  { %v4965_v16 = vadd.f32 %v4964_v7, %v4861_v47  ;;  %v4655_v36 = vadd.f32 %v4654_v59, %v8298_v20  ;;  %v8998_v47 = vld [vmem:[#allocation33_spill] sm:$0xff] }
 0x863   :  { %v5501_v4 = vmax.f32 %v4965_v16, 0.0  ;;  %v4759_v17 = vadd.f32 %v4758_v39, %v4655_v36 }
 0x865   :  { %5653 = vst [vmem:[#allocation11 + $0x210] sm:$0xff] %v5501_v4 }
 0x866   :  { %v4862_v53 = vpop.f32.mrf.mxu2 }
 0x867   :  { %v4863_v23 = vadd.f32 %v4862_v53, %v4759_v17  ;;  %v4966_v6 = vpop.f32.mrf.mxu3  ;;  %v4761_v63 = vpop.f32.mrf.mxu1 }
 0x868   :  { %v4657_v44 = vpop.f32.mrf.mxu0 }
 0x869   :  { %v4967_v43 = vadd.f32 %v4966_v6, %v4863_v23  ;;  %v4658_v8 = vadd.f32 %v4657_v44, %v8298_v20 }
 0x86a   :  { %4800 = vmatmul.bf16.gmra.mxu1 %v8996_v26 }
 0x86b   :  { %4696 = vmatmul.bf16.gmra.mxu0 %v8995_v21  ;;  %v5505_v19 = vmax.f32 %v4967_v43, 0.0  ;;  %4904 = vmatmul.bf16.gmra.mxu2 %v8997_v35  ;;  %v4762_v7 = vadd.f32 %v4761_v63, %v4658_v8 }
 0x86c   :  { %5008 = vmatmul.bf16.gmra.mxu3 %v8998_v47 }
 0x86d   :  { %5657 = vst [vmem:[#allocation11 + $0x230] sm:$0xff] %v5505_v19 }
 0x86e   :  { %v4865_v59 = vpop.f32.mrf.mxu2 }
 0x86f   :  { %v4866_v39 = vadd.f32 %v4865_v59, %v4762_v7  ;;  %v4969_v16 = vpop.f32.mrf.mxu3  ;;  %v4763_v4 = vpop.f32.mrf.mxu1 }
 0x870   :  { %v4659_v36 = vpop.f32.mrf.mxu0 }
 0x871   :  { %v4970_v17 = vadd.f32 %v4969_v16, %v4866_v39  ;;  %v4660_v53 = vadd.f32 %v4659_v36, %v8298_v20 }
 0x873   :  { %v5509_v23 = vmax.f32 %v4970_v17, 0.0  ;;  %v4764_v6 = vadd.f32 %v4763_v4, %v4660_v53 }
 0x875   :  { %5661 = vst [vmem:[#allocation11 + $0x250] sm:$0xff] %v5509_v23 }
 0x876   :  { %v4867_v44 = vpop.f32.mrf.mxu2 }
 0x877   :  { %v4868_v43 = vadd.f32 %v4867_v44, %v4764_v6  ;;  %v4971_v26 = vpop.f32.mrf.mxu3  ;;  %v4766_v35 = vpop.f32.mrf.mxu1 }
 0x878   :  { %v4662_v21 = vpop.f32.mrf.mxu0 }
 0x879   :  { %v4972_v52 = vadd.f32 %v4971_v26, %v4868_v43  ;;  %v4663_v19 = vadd.f32 %v4662_v21, %v8298_v20 }
 0x87a   :  { %4805 = vmatmul.bf16.gmra.mxu1 %v8930_v29 }
 0x87b   :  { %4701 = vmatmul.bf16.gmra.mxu0 %v8929_v28  ;;  %v5513_v63 = vmax.f32 %v4972_v52, 0.0  ;;  %4909 = vmatmul.bf16.gmra.mxu2 %v7917_v48  ;;  %v4767_v8 = vadd.f32 %v4766_v35, %v4663_v19  ;;  %v8999_v19 = vld [vmem:[#allocation89_spill] sm:$0xff] }
 0x87c   :  { %5013 = vmatmul.bf16.gmra.mxu3 %v8071_v42 }
 0x87d   :  { %5665 = vst [vmem:[#allocation11 + $0x270] sm:$0xff] %v5513_v63 }
 0x87e   :  { %v4870_v7 = vpop.f32.mrf.mxu2 }
 0x87f   :  { %v4871_v59 = vadd.f32 %v4870_v7, %v4767_v8  ;;  %v4974_v39 = vpop.f32.mrf.mxu3  ;;  %v4768_v36 = vpop.f32.mrf.mxu1  ;;  %v9000_v8 = vld [vmem:[#allocation18_spill] sm:$0xff] }
 0x880   :  { %v4664_v16 = vpop.f32.mrf.mxu0 }
 0x881   :  { %v4975_v4 = vadd.f32 %v4974_v39, %v4871_v59  ;;  %v4665_v26 = vadd.f32 %v4664_v16, %v8298_v20 }
 0x883   :  { %v5517_v21 = vmax.f32 %v4975_v4, 0.0  ;;  %v4769_v17 = vadd.f32 %v4768_v36, %v4665_v26 }
 0x885   :  { %5669 = vst [vmem:[#allocation11 + $0x290] sm:$0xff] %v5517_v21 }
 0x886   :  { %v4872_v52 = vpop.f32.mrf.mxu2 }
 0x887   :  { %v4873_v53 = vadd.f32 %v4872_v52, %v4769_v17  ;;  %v4976_v23 = vpop.f32.mrf.mxu3  ;;  %v4771_v44 = vpop.f32.mrf.mxu1 }
 0x888   :  { %v4667_v6 = vpop.f32.mrf.mxu0 }
 0x889   :  { %v4977_v43 = vadd.f32 %v4976_v23, %v4873_v53  ;;  %v4668_v63 = vadd.f32 %v4667_v6, %v8298_v20 }
 0x88a   :  { %5131 = vmatmul.bf16.vlgmr.msrb.gmra.mxu1 %v8879_v0 }
 0x88b   :  { %5027 = vmatmul.bf16.vlgmr.msrb.gmra.mxu0 %v8878_v33  ;;  %v5521_v35 = vmax.f32 %v4977_v43, 0.0  ;;  %5235 = vmatmul.bf16.vlgmr.msrb.gmra.mxu2 %v8999_v19  ;;  %v4772_v7 = vadd.f32 %v4771_v44, %v4668_v63 }
 0x88c   :  { %5339 = vmatmul.bf16.vlgmr.msrb.gmra.mxu3 %v9000_v8 }
 0x88d   :  { %5673 = vst [vmem:[#allocation11 + $0x2b0] sm:$0xff] %v5521_v35 }
 0x88e   :  { %v4875_v59 = vpop.f32.mrf.mxu2 }
 0x88f   :  { %v4876_v39 = vadd.f32 %v4875_v59, %v4772_v7  ;;  %v4979_v16 = vpop.f32.mrf.mxu3  ;;  %v4773_v4 = vpop.f32.mrf.mxu1 }
 0x890   :  { %v4669_v36 = vpop.f32.mrf.mxu0 }
 0x891   :  { %v4980_v26 = vadd.f32 %v4979_v16, %v4876_v39  ;;  %v4670_v21 = vadd.f32 %v4669_v36, %v8298_v20 }
 0x893   :  { %v5525_v17 = vmax.f32 %v4980_v26, 0.0  ;;  %v4774_v33 = vadd.f32 %v4773_v4, %v4670_v21 }
 0x895   :  { %5677 = vst [vmem:[#allocation11 + $0x2d0] sm:$0xff] %v5525_v17 }
 0x896   :  { %v4877_v52 = vpop.f32.mrf.mxu2 }
 0x897   :  { %v4878_v53 = vadd.f32 %v4877_v52, %v4774_v33  ;;  %v4981_v0 = vpop.f32.mrf.mxu3  ;;  %v4776_v6 = vpop.f32.mrf.mxu1 }
 0x898   :  { %v4672_v23 = vpop.f32.mrf.mxu0 }
 0x899   :  { %v4982_v43 = vadd.f32 %v4981_v0, %v4878_v53  ;;  %v4673_v35 = vadd.f32 %v4672_v23, %v8298_v20 }
 0x89a   :  { %5136 = vmatmul.bf16.gmra.mxu1 %v8883_v10 }
 0x89b   :  { %5032 = vmatmul.bf16.gmra.mxu0 %v8882_v40  ;;  %v5529_v44 = vmax.f32 %v4982_v43, 0.0  ;;  %5240 = vmatmul.bf16.gmra.mxu2 %v8884_v13  ;;  %v4777_v63 = vadd.f32 %v4776_v6, %v4673_v35 }
 0x89c   :  { %5344 = vmatmul.bf16.gmra.mxu3 %v7933_v50 }
 0x89d   :  { %5681 = vst [vmem:[#allocation11 + $0x2f0] sm:$0xff] %v5529_v44 }
 0x89e   :  { %v4880_v19 = vpop.f32.mrf.mxu2 }
 0x89f   :  { %v4881_v8 = vadd.f32 %v4880_v19, %v4777_v63  ;;  %v4984_v7 = vpop.f32.mrf.mxu3  ;;  %v4778_v39 = vpop.f32.mrf.mxu1 }
 0x8a0   :  { %v4674_v59 = vpop.f32.mrf.mxu0 }
 0x8a1   :  { %v4985_v16 = vadd.f32 %v4984_v7, %v4881_v8  ;;  %v4675_v36 = vadd.f32 %v4674_v59, %v8298_v20 }
 0x8a3   :  { %v5533_v4 = vmax.f32 %v4985_v16, 0.0  ;;  %v4779_v40 = vadd.f32 %v4778_v39, %v4675_v36  ;;  %v9001_v36 = vld [vmem:[#allocation92_spill] sm:$0xff] }
 0x8a5   :  { %5685 = vst [vmem:[#allocation11 + $0x310] sm:$0xff] %v5533_v4  ;;  %v9002_v4 = vld [vmem:[#allocation19_spill] sm:$0xff] }
 0x8a6   :  { %v4882_v26 = vpop.f32.mrf.mxu2 }
 0x8a7   :  { %v4883_v21 = vadd.f32 %v4882_v26, %v4779_v40  ;;  %v4986_v10 = vpop.f32.mrf.mxu3  ;;  %v4781_v13 = vpop.f32.mrf.mxu1 }
 0x8a8   :  { %v4677_v17 = vpop.f32.mrf.mxu0 }
 0x8a9   :  { %v4987_v33 = vadd.f32 %v4986_v10, %v4883_v21  ;;  %v4678_v50 = vadd.f32 %v4677_v17, %v8298_v20 }
 0x8aa   :  { %5141 = vmatmul.bf16.gmra.mxu1 %v8886_v51 }
 0x8ab   :  { %5037 = vmatmul.bf16.gmra.mxu0 %v8885_v62  ;;  %v5537_v52 = vmax.f32 %v4987_v33, 0.0  ;;  %5245 = vmatmul.bf16.gmra.mxu2 %v8887_v41  ;;  %v4782_v53 = vadd.f32 %v4781_v13, %v4678_v50 }
 0x8ac   :  { %5349 = vmatmul.bf16.gmra.mxu3 %v7941_v3 }
 0x8ad   :  { %5689 = vst [vmem:[#allocation11 + $0x330] sm:$0xff] %v5537_v52 }
 0x8ae   :  { %v4885_v0 = vpop.f32.mrf.mxu2 }
 0x8af   :  { %v4886_v23 = vadd.f32 %v4885_v0, %v4782_v53  ;;  %v4989_v6 = vpop.f32.mrf.mxu3  ;;  %v4783_v35 = vpop.f32.mrf.mxu1 }
 0x8b0   :  { %v4679_v43 = vpop.f32.mrf.mxu0 }
 0x8b1   :  { %v4990_v44 = vadd.f32 %v4989_v6, %v4886_v23  ;;  %v4680_v63 = vadd.f32 %v4679_v43, %v8298_v20 }
 0x8b3   :  { %v5541_v19 = vmax.f32 %v4990_v44, 0.0  ;;  %v4784_v62 = vadd.f32 %v4783_v35, %v4680_v63 }
 0x8b5   :  { %5693 = vst [vmem:[#allocation11 + $0x350] sm:$0xff] %v5541_v19 }
 0x8b6   :  { %v4887_v8 = vpop.f32.mrf.mxu2 }
 0x8b7   :  { %v4888_v7 = vadd.f32 %v4887_v8, %v4784_v62  ;;  %v4991_v51 = vpop.f32.mrf.mxu3  ;;  %v4786_v41 = vpop.f32.mrf.mxu1 }
 0x8b8   :  { %v4682_v59 = vpop.f32.mrf.mxu0 }
 0x8b9   :  { %v4992_v39 = vadd.f32 %v4991_v51, %v4888_v7  ;;  %v4683_v3 = vadd.f32 %v4682_v59, %v8298_v20 }
 0x8ba   :  { %5146 = vmatmul.bf16.gmra.mxu1 %v8890_v2 }
 0x8bb   :  { %5042 = vmatmul.bf16.gmra.mxu0 %v8889_v38  ;;  %v5545_v16 = vmax.f32 %v4992_v39, 0.0  ;;  %5250 = vmatmul.bf16.gmra.mxu2 %v9001_v36  ;;  %v4787_v40 = vadd.f32 %v4786_v41, %v4683_v3 }
 0x8bc   :  { %5354 = vmatmul.bf16.gmra.mxu3 %v9002_v4 }
 0x8bd   :  { %5697 = vst [vmem:[#allocation11 + $0x370] sm:$0xff] %v5545_v16 }
 0x8be   :  { %v4890_v26 = vpop.f32.mrf.mxu2 }
 0x8bf   :  { %v4891_v21 = vadd.f32 %v4890_v26, %v4787_v40  ;;  %v4994_v10 = vpop.f32.mrf.mxu3  ;;  %v4788_v13 = vpop.f32.mrf.mxu1  ;;  %v9003_v26 = vld [vmem:[#allocation20_spill] sm:$0xff] }
 0x8c0   :  { %v4684_v17 = vpop.f32.mrf.mxu0 }
 0x8c1   :  { %v4995_v33 = vadd.f32 %v4994_v10, %v4891_v21  ;;  %v4685_v50 = vadd.f32 %v4684_v17, %v8298_v20 }
 0x8c3   :  { %v5549_v52 = vmax.f32 %v4995_v33, 0.0  ;;  %v4789_v38 = vadd.f32 %v4788_v13, %v4685_v50 }
 0x8c5   :  { %5701 = vst [vmem:[#allocation11 + $0x390] sm:$0xff] %v5549_v52 }
 0x8c6   :  { %v4892_v53 = vpop.f32.mrf.mxu2 }
 0x8c7   :  { %v4893_v0 = vadd.f32 %v4892_v53, %v4789_v38  ;;  %v4996_v2 = vpop.f32.mrf.mxu3  ;;  %v4791_v6 = vpop.f32.mrf.mxu1 }
 0x8c8   :  { %v4687_v23 = vpop.f32.mrf.mxu0 }
 0x8c9   :  { %v4997_v43 = vadd.f32 %v4996_v2, %v4893_v0  ;;  %v4688_v35 = vadd.f32 %v4687_v23, %v8298_v20 }
 0x8ca   :  { %5151 = vmatmul.bf16.gmra.mxu1 %v8893_v30 }
 0x8cb   :  { %5047 = vmatmul.bf16.gmra.mxu0 %v8892_v49  ;;  %v5553_v44 = vmax.f32 %v4997_v43, 0.0  ;;  %5255 = vmatmul.bf16.gmra.mxu2 %v8894_v54  ;;  %v4792_v63 = vadd.f32 %v4791_v6, %v4688_v35 }
 0x8cc   :  { %5359 = vmatmul.bf16.gmra.mxu3 %v7957_v24 }
 0x8cd   :  { %5705 = vst [vmem:[#allocation11 + $0x3b0] sm:$0xff] %v5553_v44  ;;  %v9004_v44 = vld [vmem:[#allocation77_spill] sm:$0xff] }
 0x8ce   :  { %v4895_v19 = vpop.f32.mrf.mxu2 }
 0x8cf   :  { %v4896_v62 = vadd.f32 %v4895_v19, %v4792_v63  ;;  %v4999_v8 = vpop.f32.mrf.mxu3  ;;  %v4793_v51 = vpop.f32.mrf.mxu1  ;;  %v9005_v63 = vld [vmem:[#allocation95_spill] sm:$0xff]  ;;  %v9006_v19 = vld [vmem:[#allocation21_spill] sm:$0xff] }
 0x8d0   :  { %v4689_v7 = vpop.f32.mrf.mxu0 }
 0x8d1   :  { %v5000_v59 = vadd.f32 %v4999_v8, %v4896_v62  ;;  %v4690_v41 = vadd.f32 %v4689_v7, %v8298_v20 }
 0x8d3   :  { %v5557_v39 = vmax.f32 %v5000_v59, 0.0  ;;  %v4794_v49 = vadd.f32 %v4793_v51, %v4690_v41 }
 0x8d5   :  { %5709 = vst [vmem:[#allocation11 + $0x3d0] sm:$0xff] %v5557_v39 }
 0x8d6   :  { %v4897_v3 = vpop.f32.mrf.mxu2 }
 0x8d7   :  { %v4898_v16 = vadd.f32 %v4897_v3, %v4794_v49  ;;  %v5001_v30 = vpop.f32.mrf.mxu3  ;;  %v4796_v54 = vpop.f32.mrf.mxu1 }
 0x8d8   :  { %v4692_v36 = vpop.f32.mrf.mxu0 }
 0x8d9   :  { %v5002_v4 = vadd.f32 %v5001_v30, %v4898_v16  ;;  %v4693_v24 = vadd.f32 %v4692_v36, %v8298_v20 }
 0x8da   :  { %5156 = vmatmul.bf16.gmra.mxu1 %v8931_v5 }
 0x8db   :  { %5052 = vmatmul.bf16.gmra.mxu0 %v8896_v14  ;;  %v5561_v40 = vmax.f32 %v5002_v4, 0.0  ;;  %5260 = vmatmul.bf16.gmra.mxu2 %v8967_v22  ;;  %v4797_v21 = vadd.f32 %v4796_v54, %v4693_v24 }
 0x8dc   :  { %5364 = vmatmul.bf16.gmra.mxu3 %v9003_v26  ;;  %v9007_v26 = vld [vmem:[#allocation56_spill] sm:$0xff] }
 0x8dd   :  { %5713 = vst [vmem:[#allocation11 + $0x3f0] sm:$0xff] %v5561_v40 }
 0x8de   :  { %v4900_v10 = vpop.f32.mrf.mxu2 }
 0x8df   :  { %v4901_v17 = vadd.f32 %v4900_v10, %v4797_v21  ;;  %v5004_v13 = vpop.f32.mrf.mxu3  ;;  %v4798_v50 = vpop.f32.mrf.mxu1  ;;  %v9008_v10 = vld [vmem:[#allocation52_spill] sm:$0xff] }
 0x8e0   :  { %v4694_v33 = vpop.f32.mrf.mxu0 }
 0x8e1   :  { %v5005_v52 = vadd.f32 %v5004_v13, %v4901_v17  ;;  %v4695_v38 = vadd.f32 %v4694_v33, %v8298_v20  ;;  %v9009_v17 = vld [vmem:[#allocation96_spill] sm:$0xff]  ;;  %v9010_v13 = vld [vmem:[#allocation22_spill] sm:$0xff] }
 0x8e3   :  { %v5565_v53 = vmax.f32 %v5005_v52, 0.0  ;;  %v4799_v14 = vadd.f32 %v4798_v50, %v4695_v38 }
 0x8e5   :  { %5717 = vst [vmem:[#allocation11 + $0x410] sm:$0xff] %v5565_v53 }
 0x8e6   :  { %v4902_v0 = vpop.f32.mrf.mxu2 }
 0x8e7   :  { %v4903_v2 = vadd.f32 %v4902_v0, %v4799_v14  ;;  %v5006_v5 = vpop.f32.mrf.mxu3  ;;  %v4801_v22 = vpop.f32.mrf.mxu1 }
 0x8e8   :  { %v4697_v23 = vpop.f32.mrf.mxu0 }
 0x8e9   :  { %v5007_v6 = vadd.f32 %v5006_v5, %v4903_v2  ;;  %v4698_v43 = vadd.f32 %v4697_v23, %v8298_v20 }
 0x8ea   :  { %5161 = vmatmul.bf16.gmra.mxu1 %v9004_v44 }
 0x8eb   :  { %5057 = vmatmul.bf16.gmra.mxu0 %v8934_v60  ;;  %v5569_v35 = vmax.f32 %v5007_v6, 0.0  ;;  %5265 = vmatmul.bf16.gmra.mxu2 %v9005_v63  ;;  %v4802_v62 = vadd.f32 %v4801_v22, %v4698_v43  ;;  %v7055_v22 = vld [vmem:[#allocation10] sm:$0xf] }
 0x8ec   :  { %5369 = vmatmul.bf16.gmra.mxu3 %v9006_v19  ;;  %v8414_v6 = vperm.slane %v7055_v22, 3 }
 0x8ed   :  { %5721 = vst [vmem:[#allocation11 + $0x430] sm:$0xff] %v5569_v35 }
 0x8ee   :  { %v4905_v8 = vpop.f32.mrf.mxu2 }
 0x8ef   :  { %v4906_v7 = vadd.f32 %v4905_v8, %v4802_v62  ;;  %v5009_v51 = vpop.f32.mrf.mxu3  ;;  %v4803_v41 = vpop.f32.mrf.mxu1 }
 0x8f0   :  { %v4699_v59 = vpop.f32.mrf.mxu0 }
 0x8f1   :  { %v5010_v39 = vadd.f32 %v5009_v51, %v4906_v7  ;;  %v4700_v49 = vadd.f32 %v4699_v59, %v8298_v20  ;;  %v9011_v7 = vld [vmem:[#allocation61_spill] sm:$0xff]  ;;  %v9012_v59 = vld [vmem:[#allocation78_spill] sm:$0xff] }
 0x8f3   :  { %v5573_v3 = vmax.f32 %v5010_v39, 0.0  ;;  %v4804_v60 = vadd.f32 %v4803_v41, %v4700_v49  ;;  %v9014_v41 = vld [vmem:[#allocation23_spill] sm:$0xff] }
 0x8f5   :  { %5725 = vst [vmem:[#allocation11 + $0x450] sm:$0xff] %v5573_v3 }
 0x8f6   :  { %v4907_v16 = vpop.f32.mrf.mxu2 }
 0x8f7   :  { %v4908_v30 = vadd.f32 %v4907_v16, %v4804_v60  ;;  %v5011_v36 = vpop.f32.mrf.mxu3  ;;  %v4806_v4 = vpop.f32.mrf.mxu1 }
 0x8f8   :  { %v4702_v54 = vpop.f32.mrf.mxu0 }
 0x8f9   :  { %v5012_v24 = vadd.f32 %v5011_v36, %v4908_v30  ;;  %v4703_v40 = vadd.f32 %v4702_v54, %v8298_v20 }
 0x8fa   :  { %5166 = vmatmul.bf16.gmra.mxu1 %v9008_v10 }
 0x8fb   :  { %5062 = vmatmul.bf16.gmra.mxu0 %v9007_v26  ;;  %v5577_v21 = vmax.f32 %v5012_v24, 0.0  ;;  %5270 = vmatmul.bf16.gmra.mxu2 %v9009_v17  ;;  %v4807_v33 = vadd.f32 %v4806_v4, %v4703_v40 }
 0x8fc   :  { %5374 = vmatmul.bf16.gmra.mxu3 %v9010_v13 }
 0x8fd   :  { %5729 = vst [vmem:[#allocation11 + $0x470] sm:$0xff] %v5577_v21 }
 0x8fe   :  { %v4910_v50 = vpop.f32.mrf.mxu2 }
 0x8ff   :  { %v4911_v52 = vadd.f32 %v4910_v50, %v4807_v33  ;;  %v5014_v38 = vpop.f32.mrf.mxu3  ;;  %v4808_v14 = vpop.f32.mrf.mxu1  ;;  %v9015_v50 = vld [vmem:[#allocation62_spill] sm:$0xff] }
 0x900   :  { %v4704_v53 = vpop.f32.mrf.mxu0 }
 0x901   :  { %v5015_v0 = vadd.f32 %v5014_v38, %v4911_v52  ;;  %v4705_v2 = vadd.f32 %v4704_v53, %v8298_v20  ;;  %v9013_v20 = vld [vmem:[#allocation97_spill] sm:$0xff]  ;;  %v9016_v38 = vld [vmem:[#allocation79_spill] sm:$0xff]  ;;  %v9017_v53 = vld [vmem:[#allocation98_spill] sm:$0xff] }
 0x903   :  { %v5581_v5 = vmax.f32 %v5015_v0, 0.0  ;;  %v4809_v23 = vadd.f32 %v4808_v14, %v4705_v2  ;;  %v9018_v14 = vld [vmem:[#allocation24_spill] sm:$0xff] }
 0x905   :  { %5733 = vst [vmem:[#allocation11 + $0x490] sm:$0xff] %v5581_v5 }
 0x906   :  { %v4912_v43 = vpop.f32.mrf.mxu2 }
 0x907   :  { %v4913_v35 = vadd.f32 %v4912_v43, %v4809_v23  ;;  %v5016_v44 = vpop.f32.mrf.mxu3  ;;  %v5132_v19 = vpop.f32.mrf.mxu1 }
 0x908   :  { %v5028_v63 = vpop.f32.mrf.mxu0 }
 0x909   :  { %v5017_v62 = vadd.f32 %v5016_v44, %v4913_v35  ;;  %v5029_v8 = vadd.f32 %v5028_v63, %v8414_v6 }
 0x90a   :  { %5171 = vmatmul.bf16.gmra.mxu1 %v9012_v59 }
 0x90b   :  { %5067 = vmatmul.bf16.gmra.mxu0 %v9011_v7  ;;  %v5585_v51 = vmax.f32 %v5017_v62, 0.0  ;;  %5275 = vmatmul.bf16.gmra.mxu2 %v9013_v20  ;;  %v5133_v39 = vadd.f32 %v5132_v19, %v5029_v8 }
 0x90c   :  { %5379 = vmatmul.bf16.gmra.mxu3 %v9014_v41 }
 0x90d   :  { %5737 = vst [vmem:[#allocation11 + $0x4b0] sm:$0xff] %v5585_v51 }
 0x90e   :  { %v5236_v49 = vpop.f32.mrf.mxu2 }
 0x90f   :  { %v5237_v3 = vadd.f32 %v5236_v49, %v5133_v39  ;;  %v5340_v60 = vpop.f32.mrf.mxu3  ;;  %v5134_v30 = vpop.f32.mrf.mxu1  ;;  %v9019_v39 = vld [vmem:[#allocation63_spill] sm:$0xff] }
 0x910   :  { %v5030_v16 = vpop.f32.mrf.mxu0 }
 0x911   :  { %v5341_v36 = vadd.f32 %v5340_v60, %v5237_v3  ;;  %v5031_v54 = vadd.f32 %v5030_v16, %v8414_v6  ;;  %v9020_v3 = vld [vmem:[#allocation80_spill] sm:$0xff]  ;;  %v9022_v16 = vld [vmem:[#allocation26_spill] sm:$0xff] }
 0x912   :  { %v9021_v60 = vld [vmem:[#allocation16_spill] sm:$0xff] }
 0x913   :  { %v5438_v4 = vmax.f32 %v5341_v36, 0.0  ;;  %v5135_v24 = vadd.f32 %v5134_v30, %v5031_v54 }
 0x915   :  { %5590 = vst [vmem:[#allocation11 + $0x18] sm:$0xff] %v5438_v4 }
 0x916   :  { %v5238_v40 = vpop.f32.mrf.mxu2 }
 0x917   :  { %v5239_v26 = vadd.f32 %v5238_v40, %v5135_v24  ;;  %v5342_v21 = vpop.f32.mrf.mxu3  ;;  %v5137_v17 = vpop.f32.mrf.mxu1 }
 0x918   :  { %v5033_v10 = vpop.f32.mrf.mxu0 }
 0x919   :  { %v5343_v13 = vadd.f32 %v5342_v21, %v5239_v26  ;;  %v5034_v33 = vadd.f32 %v5033_v10, %v8414_v6 }
 0x91a   :  { %5176 = vmatmul.bf16.gmra.mxu1 %v9016_v38 }
 0x91b   :  { %5072 = vmatmul.bf16.gmra.mxu0 %v9015_v50  ;;  %v5442_v52 = vmax.f32 %v5343_v13, 0.0  ;;  %5280 = vmatmul.bf16.gmra.mxu2 %v9017_v53  ;;  %v5138_v0 = vadd.f32 %v5137_v17, %v5034_v33 }
 0x91c   :  { %5384 = vmatmul.bf16.gmra.mxu3 %v9018_v14 }
 0x91d   :  { %5594 = vst [vmem:[#allocation11 + $0x38] sm:$0xff] %v5442_v52 }
 0x91e   :  { %v5241_v2 = vpop.f32.mrf.mxu2 }
 0x91f   :  { %v5242_v5 = vadd.f32 %v5241_v2, %v5138_v0  ;;  %v5345_v23 = vpop.f32.mrf.mxu3  ;;  %v5139_v43 = vpop.f32.mrf.mxu1 }
 0x920   :  { %v5035_v22 = vpop.f32.mrf.mxu0 }
 0x921   :  { %v5346_v35 = vadd.f32 %v5345_v23, %v5242_v5  ;;  %v5036_v44 = vadd.f32 %v5035_v22, %v8414_v6 }
 0x923   :  { %v5446_v63 = vmax.f32 %v5346_v35, 0.0  ;;  %v5140_v19 = vadd.f32 %v5139_v43, %v5036_v44 }
 0x925   :  { %5598 = vst [vmem:[#allocation11 + $0x58] sm:$0xff] %v5446_v63 }
 0x926   :  { %v5243_v62 = vpop.f32.mrf.mxu2 }
 0x927   :  { %v5244_v8 = vadd.f32 %v5243_v62, %v5140_v19  ;;  %v5347_v7 = vpop.f32.mrf.mxu3  ;;  %v5142_v59 = vpop.f32.mrf.mxu1 }
 0x928   :  { %v5038_v51 = vpop.f32.mrf.mxu0 }
 0x929   :  { %v5348_v20 = vadd.f32 %v5347_v7, %v5244_v8  ;;  %v5039_v41 = vadd.f32 %v5038_v51, %v8414_v6 }
 0x92a   :  { %5181 = vmatmul.bf16.gmra.mxu1 %v9020_v3 }
 0x92b   :  { %5077 = vmatmul.bf16.gmra.mxu0 %v9019_v39  ;;  %v5450_v49 = vmax.f32 %v5348_v20, 0.0  ;;  %5285 = vmatmul.bf16.gmra.mxu2 %v9021_v60  ;;  %v5143_v30 = vadd.f32 %v5142_v59, %v5039_v41  ;;  %v9023_v20 = vld [vmem:[#allocation27_spill] sm:$0xff] }
 0x92c   :  { %5389 = vmatmul.bf16.gmra.mxu3 %v9022_v16 }
 0x92d   :  { %5602 = vst [vmem:[#allocation11 + $0x78] sm:$0xff] %v5450_v49 }
 0x92e   :  { %v5246_v36 = vpop.f32.mrf.mxu2 }
 0x92f   :  { %v5247_v54 = vadd.f32 %v5246_v36, %v5143_v30  ;;  %v5350_v4 = vpop.f32.mrf.mxu3  ;;  %v5144_v40 = vpop.f32.mrf.mxu1 }
 0x930   :  { %v5040_v24 = vpop.f32.mrf.mxu0 }
 0x931   :  { %v5351_v26 = vadd.f32 %v5350_v4, %v5247_v54  ;;  %v5041_v21 = vadd.f32 %v5040_v24, %v8414_v6 }
 0x933   :  { %v5454_v10 = vmax.f32 %v5351_v26, 0.0  ;;  %v5145_v17 = vadd.f32 %v5144_v40, %v5041_v21 }
 0x935   :  { %5606 = vst [vmem:[#allocation11 + $0x98] sm:$0xff] %v5454_v10 }
 0x936   :  { %v5248_v13 = vpop.f32.mrf.mxu2 }
 0x937   :  { %v5249_v33 = vadd.f32 %v5248_v13, %v5145_v17  ;;  %v5352_v50 = vpop.f32.mrf.mxu3  ;;  %v5147_v38 = vpop.f32.mrf.mxu1 }
 0x938   :  { %v5043_v52 = vpop.f32.mrf.mxu0 }
 0x939   :  { %v5353_v53 = vadd.f32 %v5352_v50, %v5249_v33  ;;  %v5044_v14 = vadd.f32 %v5043_v52, %v8414_v6 }
 0x93a   :  { %5186 = vmatmul.bf16.gmra.mxu1 %v8916_v25 }
 0x93b   :  { %5082 = vmatmul.bf16.gmra.mxu0 %v8915_v57  ;;  %v5458_v0 = vmax.f32 %v5353_v53, 0.0  ;;  %5290 = vmatmul.bf16.gmra.mxu2 %v7859_v31  ;;  %v5148_v2 = vadd.f32 %v5147_v38, %v5044_v14 }
 0x93c   :  { %5394 = vmatmul.bf16.gmra.mxu3 %v8013_v58 }
 0x93d   :  { %5610 = vst [vmem:[#allocation11 + $0xb8] sm:$0xff] %v5458_v0 }
 0x93e   :  { %v5251_v5 = vpop.f32.mrf.mxu2 }
 0x93f   :  { %v5252_v23 = vadd.f32 %v5251_v5, %v5148_v2  ;;  %v5355_v22 = vpop.f32.mrf.mxu3  ;;  %v5149_v35 = vpop.f32.mrf.mxu1 }
 0x940   :  { %v5045_v43 = vpop.f32.mrf.mxu0 }
 0x941   :  { %v5356_v44 = vadd.f32 %v5355_v22, %v5252_v23  ;;  %v5046_v63 = vadd.f32 %v5045_v43, %v8414_v6 }
 0x943   :  { %v5462_v19 = vmax.f32 %v5356_v44, 0.0  ;;  %v5150_v57 = vadd.f32 %v5149_v35, %v5046_v63 }
 0x945   :  { %5614 = vst [vmem:[#allocation11 + $0xd8] sm:$0xff] %v5462_v19 }
 0x946   :  { %v5253_v62 = vpop.f32.mrf.mxu2 }
 0x947   :  { %v5254_v8 = vadd.f32 %v5253_v62, %v5150_v57  ;;  %v5357_v25 = vpop.f32.mrf.mxu3  ;;  %v5152_v31 = vpop.f32.mrf.mxu1 }
 0x948   :  { %v5048_v7 = vpop.f32.mrf.mxu0 }
 0x949   :  { %v5358_v51 = vadd.f32 %v5357_v25, %v5254_v8  ;;  %v5049_v58 = vadd.f32 %v5048_v7, %v8414_v6 }
 0x94a   :  { %5191 = vmatmul.bf16.gmra.mxu1 %v8951_v15 }
 0x94b   :  { %5087 = vmatmul.bf16.gmra.mxu0 %v8917_v46  ;;  %v5466_v59 = vmax.f32 %v5358_v51, 0.0  ;;  %5295 = vmatmul.bf16.gmra.mxu2 %v8987_v55  ;;  %v5153_v41 = vadd.f32 %v5152_v31, %v5049_v58 }
 0x94c   :  { %5399 = vmatmul.bf16.gmra.mxu3 %v9023_v20 }
 0x94d   :  { %5618 = vst [vmem:[#allocation11 + $0xf8] sm:$0xff] %v5466_v59 }
 0x94e   :  { %v5256_v39 = vpop.f32.mrf.mxu2 }
 0x94f   :  { %v5257_v49 = vadd.f32 %v5256_v39, %v5153_v41  ;;  %v5360_v3 = vpop.f32.mrf.mxu3  ;;  %v5154_v16 = vpop.f32.mrf.mxu1  ;;  %v9024_v41 = vld [vmem:[#allocation85_spill] sm:$0xff]  ;;  %v9025_v39 = vld [vmem:[#allocation100_spill] sm:$0xff] }
 0x950   :  { %v5050_v60 = vpop.f32.mrf.mxu0 }
 0x951   :  { %v5361_v30 = vadd.f32 %v5360_v3, %v5257_v49  ;;  %v5051_v36 = vadd.f32 %v5050_v60, %v8414_v6  ;;  %v9026_v49 = vld [vmem:[#allocation29_spill] sm:$0xff] }
 0x953   :  { %v5470_v54 = vmax.f32 %v5361_v30, 0.0  ;;  %v5155_v46 = vadd.f32 %v5154_v16, %v5051_v36 }
 0x955   :  { %5622 = vst [vmem:[#allocation11 + $0x118] sm:$0xff] %v5470_v54 }
 0x956   :  { %v5258_v4 = vpop.f32.mrf.mxu2 }
 0x957   :  { %v5259_v24 = vadd.f32 %v5258_v4, %v5155_v46  ;;  %v5362_v15 = vpop.f32.mrf.mxu3  ;;  %v5157_v55 = vpop.f32.mrf.mxu1 }
 0x958   :  { %v5053_v40 = vpop.f32.mrf.mxu0 }
 0x959   :  { %v5363_v26 = vadd.f32 %v5362_v15, %v5259_v24  ;;  %v5054_v21 = vadd.f32 %v5053_v40, %v8414_v6 }
 0x95a   :  { %5196 = vmatmul.bf16.gmra.mxu1 %v8920_v27 }
 0x95b   :  { %5092 = vmatmul.bf16.gmra.mxu0 %v8919_v37  ;;  %v5474_v10 = vmax.f32 %v5363_v26, 0.0  ;;  %5300 = vmatmul.bf16.gmra.mxu2 %v7875_v12  ;;  %v5158_v17 = vadd.f32 %v5157_v55, %v5054_v21 }
 0x95c   :  { %5404 = vmatmul.bf16.gmra.mxu3 %v8029_v11 }
 0x95d   :  { %5626 = vst [vmem:[#allocation11 + $0x138] sm:$0xff] %v5474_v10 }
 0x95e   :  { %v5261_v13 = vpop.f32.mrf.mxu2 }
 0x95f   :  { %v5262_v33 = vadd.f32 %v5261_v13, %v5158_v17  ;;  %v5365_v50 = vpop.f32.mrf.mxu3  ;;  %v5159_v38 = vpop.f32.mrf.mxu1 }
 0x960   :  { %v5055_v52 = vpop.f32.mrf.mxu0 }
 0x961   :  { %v5366_v53 = vadd.f32 %v5365_v50, %v5262_v33  ;;  %v5056_v14 = vadd.f32 %v5055_v52, %v8414_v6  ;;  %v9027_v33 = vld [vmem:[#allocation32_spill] sm:$0xff] }
 0x963   :  { %v5478_v0 = vmax.f32 %v5366_v53, 0.0  ;;  %v5160_v37 = vadd.f32 %v5159_v38, %v5056_v14 }
 0x965   :  { %5630 = vst [vmem:[#allocation11 + $0x158] sm:$0xff] %v5478_v0 }
 0x966   :  { %v5263_v2 = vpop.f32.mrf.mxu2 }
 0x967   :  { %v5264_v5 = vadd.f32 %v5263_v2, %v5160_v37  ;;  %v5367_v27 = vpop.f32.mrf.mxu3  ;;  %v5162_v12 = vpop.f32.mrf.mxu1 }
 0x968   :  { %v5058_v23 = vpop.f32.mrf.mxu0 }
 0x969   :  { %v5368_v22 = vadd.f32 %v5367_v27, %v5264_v5  ;;  %v5059_v11 = vadd.f32 %v5058_v23, %v8414_v6 }
 0x96a   :  { %5201 = vmatmul.bf16.gmra.mxu1 %v8922_v61 }
 0x96b   :  { %5097 = vmatmul.bf16.gmra.mxu0 %v8921_v45  ;;  %v5482_v43 = vmax.f32 %v5368_v22, 0.0  ;;  %5305 = vmatmul.bf16.gmra.mxu2 %v8954_v56  ;;  %v5163_v35 = vadd.f32 %v5162_v12, %v5059_v11 }
 0x96c   :  { %5409 = vmatmul.bf16.gmra.mxu3 %v8955_v34 }
 0x96d   :  { %5634 = vst [vmem:[#allocation11 + $0x178] sm:$0xff] %v5482_v43  ;;  %v9028_v43 = vld [vmem:[#allocation70_spill] sm:$0xff] }
 0x96e   :  { %v5266_v44 = vpop.f32.mrf.mxu2 }
 0x96f   :  { %v5267_v63 = vadd.f32 %v5266_v44, %v5163_v35  ;;  %v5370_v19 = vpop.f32.mrf.mxu3  ;;  %v5164_v62 = vpop.f32.mrf.mxu1  ;;  %v9029_v44 = vld [vmem:[#allocation87_spill] sm:$0xff] }
 0x970   :  { %v5060_v57 = vpop.f32.mrf.mxu0 }
 0x971   :  { %v5371_v8 = vadd.f32 %v5370_v19, %v5267_v63  ;;  %v5061_v25 = vadd.f32 %v5060_v57, %v8414_v6  ;;  %v9030_v63 = vld [vmem:[#allocation102_spill] sm:$0xff] }
 0x973   :  { %v5486_v7 = vmax.f32 %v5371_v8, 0.0  ;;  %v5165_v45 = vadd.f32 %v5164_v62, %v5061_v25 }
 0x975   :  { %5638 = vst [vmem:[#allocation11 + $0x198] sm:$0xff] %v5486_v7 }
 0x976   :  { %v5268_v31 = vpop.f32.mrf.mxu2 }
 0x977   :  { %v5269_v51 = vadd.f32 %v5268_v31, %v5165_v45  ;;  %v5372_v61 = vpop.f32.mrf.mxu3  ;;  %v5167_v56 = vpop.f32.mrf.mxu1 }
 0x978   :  { %v5063_v58 = vpop.f32.mrf.mxu0 }
 0x979   :  { %v5373_v59 = vadd.f32 %v5372_v61, %v5269_v51  ;;  %v5064_v34 = vadd.f32 %v5063_v58, %v8414_v6 }
 0x97a   :  { %5206 = vmatmul.bf16.gmra.mxu1 %v9024_v41 }
 0x97b   :  { %5102 = vmatmul.bf16.gmra.mxu0 %v8989_v18  ;;  %v5490_v20 = vmax.f32 %v5373_v59, 0.0  ;;  %5310 = vmatmul.bf16.gmra.mxu2 %v9025_v39  ;;  %v5168_v3 = vadd.f32 %v5167_v56, %v5064_v34 }
 0x97c   :  { %5414 = vmatmul.bf16.gmra.mxu3 %v9026_v49 }
 0x97d   :  { %5642 = vst [vmem:[#allocation11 + $0x1b8] sm:$0xff] %v5490_v20 }
 0x97e   :  { %v5271_v60 = vpop.f32.mrf.mxu2 }
 0x97f   :  { %v5272_v16 = vadd.f32 %v5271_v60, %v5168_v3  ;;  %v5375_v30 = vpop.f32.mrf.mxu3  ;;  %v5169_v54 = vpop.f32.mrf.mxu1 }
 0x980   :  { %v5065_v36 = vpop.f32.mrf.mxu0 }
 0x981   :  { %v5376_v46 = vadd.f32 %v5375_v30, %v5272_v16  ;;  %v5066_v4 = vadd.f32 %v5065_v36, %v8414_v6 }
 0x983   :  { %v5494_v24 = vmax.f32 %v5376_v46, 0.0  ;;  %v5170_v18 = vadd.f32 %v5169_v54, %v5066_v4 }
 0x985   :  { %5646 = vst [vmem:[#allocation11 + $0x1d8] sm:$0xff] %v5494_v24 }
 0x986   :  { %v5273_v15 = vpop.f32.mrf.mxu2 }
 0x987   :  { %v5274_v40 = vadd.f32 %v5273_v15, %v5170_v18  ;;  %v5377_v55 = vpop.f32.mrf.mxu3  ;;  %v5172_v21 = vpop.f32.mrf.mxu1 }
 0x988   :  { %v5068_v26 = vpop.f32.mrf.mxu0 }
 0x989   :  { %v5378_v10 = vadd.f32 %v5377_v55, %v5274_v40  ;;  %v5069_v17 = vadd.f32 %v5068_v26, %v8414_v6 }
 0x98a   :  { %5211 = vmatmul.bf16.gmra.mxu1 %v8926_v32 }
 0x98b   :  { %5107 = vmatmul.bf16.gmra.mxu0 %v8925_v9  ;;  %v5498_v13 = vmax.f32 %v5378_v10, 0.0  ;;  %5315 = vmatmul.bf16.gmra.mxu2 %v8993_v1  ;;  %v5173_v50 = vadd.f32 %v5172_v21, %v5069_v17 }
 0x98c   :  { %5419 = vmatmul.bf16.gmra.mxu3 %v9027_v33 }
 0x98d   :  { %5650 = vst [vmem:[#allocation11 + $0x1f8] sm:$0xff] %v5498_v13 }
 0x98e   :  { %v5276_v52 = vpop.f32.mrf.mxu2 }
 0x98f   :  { %v5277_v38 = vadd.f32 %v5276_v52, %v5173_v50  ;;  %v5380_v53 = vpop.f32.mrf.mxu3  ;;  %v5174_v0 = vpop.f32.mrf.mxu1 }
 0x990   :  { %v5070_v14 = vpop.f32.mrf.mxu0 }
 0x991   :  { %v5381_v37 = vadd.f32 %v5380_v53, %v5277_v38  ;;  %v5071_v2 = vadd.f32 %v5070_v14, %v8414_v6 }
 0x993   :  { %v5502_v5 = vmax.f32 %v5381_v37, 0.0  ;;  %v5175_v9 = vadd.f32 %v5174_v0, %v5071_v2 }
 0x995   :  { %5654 = vst [vmem:[#allocation11 + $0x218] sm:$0xff] %v5502_v5 }
 0x996   :  { %v5278_v27 = vpop.f32.mrf.mxu2 }
 0x997   :  { %v5279_v23 = vadd.f32 %v5278_v27, %v5175_v9  ;;  %v5382_v32 = vpop.f32.mrf.mxu3  ;;  %v5177_v1 = vpop.f32.mrf.mxu1 }
 0x998   :  { %v5073_v12 = vpop.f32.mrf.mxu0 }
 0x999   :  { %v5383_v22 = vadd.f32 %v5382_v32, %v5279_v23  ;;  %v5074_v11 = vadd.f32 %v5073_v12, %v8414_v6 }
 0x99a   :  { %5216 = vmatmul.bf16.gmra.mxu1 %v9029_v44 }
 0x99b   :  { %5112 = vmatmul.bf16.gmra.mxu0 %v9028_v43  ;;  %v5506_v35 = vmax.f32 %v5383_v22, 0.0  ;;  %5320 = vmatmul.bf16.gmra.mxu2 %v9030_v63  ;;  %v5178_v19 = vadd.f32 %v5177_v1, %v5074_v11 }
 0x99c   :  { %5424 = vmatmul.bf16.gmra.mxu3 %v8998_v47 }
 0x99d   :  { %5658 = vst [vmem:[#allocation11 + $0x238] sm:$0xff] %v5506_v35 }
 0x99e   :  { %v5281_v57 = vpop.f32.mrf.mxu2 }
 0x99f   :  { %v5282_v62 = vadd.f32 %v5281_v57, %v5178_v19  ;;  %v5385_v8 = vpop.f32.mrf.mxu3  ;;  %v5179_v7 = vpop.f32.mrf.mxu1 }
 0x9a0   :  { %v5075_v25 = vpop.f32.mrf.mxu0 }
 0x9a1   :  { %v5386_v45 = vadd.f32 %v5385_v8, %v5282_v62  ;;  %v5076_v31 = vadd.f32 %v5075_v25, %v8414_v6 }
 0x9a3   :  { %v5510_v51 = vmax.f32 %v5386_v45, 0.0  ;;  %v5180_v61 = vadd.f32 %v5179_v7, %v5076_v31 }
 0x9a5   :  { %5662 = vst [vmem:[#allocation11 + $0x258] sm:$0xff] %v5510_v51 }
 0x9a6   :  { %v5283_v58 = vpop.f32.mrf.mxu2 }
 0x9a7   :  { %v5284_v56 = vadd.f32 %v5283_v58, %v5180_v61  ;;  %v5387_v59 = vpop.f32.mrf.mxu3  ;;  %v5182_v20 = vpop.f32.mrf.mxu1 }
 0x9a8   :  { %v5078_v34 = vpop.f32.mrf.mxu0 }
 0x9a9   :  { %v5388_v41 = vadd.f32 %v5387_v59, %v5284_v56  ;;  %v5079_v47 = vadd.f32 %v5078_v34, %v8414_v6 }
 0x9aa   :  { %5221 = vmatmul.bf16.gmra.mxu1 %v8930_v29 }
 0x9ab   :  { %5117 = vmatmul.bf16.gmra.mxu0 %v8929_v28  ;;  %v5514_v39 = vmax.f32 %v5388_v41, 0.0  ;;  %5325 = vmatmul.bf16.gmra.mxu2 %v7917_v48  ;;  %v5183_v49 = vadd.f32 %v5182_v20, %v5079_v47 }
 0x9ac   :  { %5429 = vmatmul.bf16.gmra.mxu3 %v8071_v42 }
 0x9ad   :  { %5666 = vst [vmem:[#allocation11 + $0x278] sm:$0xff] %v5514_v39 }
 0x9ae   :  { %v5286_v3 = vpop.f32.mrf.mxu2 }
 0x9af   :  { %v5287_v60 = vadd.f32 %v5286_v3, %v5183_v49  ;;  %v5390_v16 = vpop.f32.mrf.mxu3  ;;  %v5184_v36 = vpop.f32.mrf.mxu1 }
 0x9b0   :  { %v5080_v30 = vpop.f32.mrf.mxu0 }
 0x9b1   :  { %v5391_v54 = vadd.f32 %v5390_v16, %v5287_v60  ;;  %v5081_v46 = vadd.f32 %v5080_v30, %v8414_v6 }
 0x9b3   :  { %v5518_v4 = vmax.f32 %v5391_v54, 0.0  ;;  %v5185_v28 = vadd.f32 %v5184_v36, %v5081_v46 }
 0x9b5   :  { %5670 = vst [vmem:[#allocation11 + $0x298] sm:$0xff] %v5518_v4 }
 0x9b6   :  { %v5288_v24 = vpop.f32.mrf.mxu2 }
 0x9b7   :  { %v5289_v18 = vadd.f32 %v5288_v24, %v5185_v28  ;;  %v5392_v29 = vpop.f32.mrf.mxu3  ;;  %v5187_v48 = vpop.f32.mrf.mxu1 }
 0x9b8   :  { %v5083_v15 = vpop.f32.mrf.mxu0 }
 0x9b9   :  { %v5393_v40 = vadd.f32 %v5392_v29, %v5289_v18  ;;  %v5084_v42 = vadd.f32 %v5083_v15, %v8414_v6 }
 0x9bb   :  { %v5522_v55 = vmax.f32 %v5393_v40, 0.0  ;;  %v5188_v26 = vadd.f32 %v5187_v48, %v5084_v42 }
 0x9bd   :  { %5674 = vst [vmem:[#allocation11 + $0x2b8] sm:$0xff] %v5522_v55 }
 0x9be   :  { %v5291_v21 = vpop.f32.mrf.mxu2 }
 0x9bf   :  { %v5292_v10 = vadd.f32 %v5291_v21, %v5188_v26  ;;  %v5395_v17 = vpop.f32.mrf.mxu3  ;;  %v5189_v33 = vpop.f32.mrf.mxu1 }
 0x9c0   :  { %v5085_v13 = vpop.f32.mrf.mxu0 }
 0x9c1   :  { %v5396_v50 = vadd.f32 %v5395_v17, %v5292_v10  ;;  %v5086_v52 = vadd.f32 %v5085_v13, %v8414_v6 }
 0x9c3   :  { %v5526_v38 = vmax.f32 %v5396_v50, 0.0  ;;  %v5190_v53 = vadd.f32 %v5189_v33, %v5086_v52 }
 0x9c5   :  { %5678 = vst [vmem:[#allocation11 + $0x2d8] sm:$0xff] %v5526_v38 }
 0x9c6   :  { %v5293_v14 = vpop.f32.mrf.mxu2 }
 0x9c7   :  { %v5294_v0 = vadd.f32 %v5293_v14, %v5190_v53  ;;  %v5397_v37 = vpop.f32.mrf.mxu3  ;;  %v5192_v5 = vpop.f32.mrf.mxu1 }
 0x9c8   :  { %v5088_v2 = vpop.f32.mrf.mxu0 }
 0x9c9   :  { %v5398_v9 = vadd.f32 %v5397_v37, %v5294_v0  ;;  %v5089_v27 = vadd.f32 %v5088_v2, %v8414_v6 }
 0x9cb   :  { %v5530_v23 = vmax.f32 %v5398_v9, 0.0  ;;  %v5193_v32 = vadd.f32 %v5192_v5, %v5089_v27 }
 0x9cd   :  { %5682 = vst [vmem:[#allocation11 + $0x2f8] sm:$0xff] %v5530_v23 }
 0x9ce   :  { %v5296_v12 = vpop.f32.mrf.mxu2 }
 0x9cf   :  { %v5297_v1 = vadd.f32 %v5296_v12, %v5193_v32  ;;  %v5400_v22 = vpop.f32.mrf.mxu3  ;;  %v5194_v43 = vpop.f32.mrf.mxu1 }
 0x9d0   :  { %v5090_v11 = vpop.f32.mrf.mxu0 }
 0x9d1   :  { %v5401_v35 = vadd.f32 %v5400_v22, %v5297_v1  ;;  %v5091_v44 = vadd.f32 %v5090_v11, %v8414_v6 }
 0x9d3   :  { %v5534_v63 = vmax.f32 %v5401_v35, 0.0  ;;  %v5195_v19 = vadd.f32 %v5194_v43, %v5091_v44 }
 0x9d5   :  { %5686 = vst [vmem:[#allocation11 + $0x318] sm:$0xff] %v5534_v63 }
 0x9d6   :  { %v5298_v57 = vpop.f32.mrf.mxu2 }
 0x9d7   :  { %v5299_v62 = vadd.f32 %v5298_v57, %v5195_v19  ;;  %v5402_v8 = vpop.f32.mrf.mxu3  ;;  %v5197_v7 = vpop.f32.mrf.mxu1 }
 0x9d8   :  { %v5093_v25 = vpop.f32.mrf.mxu0 }
 0x9d9   :  { %v5403_v45 = vadd.f32 %v5402_v8, %v5299_v62  ;;  %v5094_v31 = vadd.f32 %v5093_v25, %v8414_v6 }
 0x9db   :  { %v5538_v51 = vmax.f32 %v5403_v45, 0.0  ;;  %v5198_v61 = vadd.f32 %v5197_v7, %v5094_v31 }
 0x9dd   :  { %5690 = vst [vmem:[#allocation11 + $0x338] sm:$0xff] %v5538_v51 }
 0x9de   :  { %v5301_v58 = vpop.f32.mrf.mxu2 }
 0x9df   :  { %v5302_v56 = vadd.f32 %v5301_v58, %v5198_v61  ;;  %v5405_v59 = vpop.f32.mrf.mxu3  ;;  %v5199_v20 = vpop.f32.mrf.mxu1 }
 0x9e0   :  { %v5095_v34 = vpop.f32.mrf.mxu0 }
 0x9e1   :  { %v5406_v41 = vadd.f32 %v5405_v59, %v5302_v56  ;;  %v5096_v47 = vadd.f32 %v5095_v34, %v8414_v6 }
 0x9e3   :  { %v5542_v39 = vmax.f32 %v5406_v41, 0.0  ;;  %v5200_v49 = vadd.f32 %v5199_v20, %v5096_v47 }
 0x9e5   :  { %5694 = vst [vmem:[#allocation11 + $0x358] sm:$0xff] %v5542_v39 }
 0x9e6   :  { %v5303_v3 = vpop.f32.mrf.mxu2 }
 0x9e7   :  { %v5304_v60 = vadd.f32 %v5303_v3, %v5200_v49  ;;  %v5407_v16 = vpop.f32.mrf.mxu3  ;;  %v5202_v36 = vpop.f32.mrf.mxu1 }
 0x9e8   :  { %v5098_v30 = vpop.f32.mrf.mxu0 }
 0x9e9   :  { %v5408_v54 = vadd.f32 %v5407_v16, %v5304_v60  ;;  %v5099_v46 = vadd.f32 %v5098_v30, %v8414_v6 }
 0x9eb   :  { %v5546_v4 = vmax.f32 %v5408_v54, 0.0  ;;  %v5203_v28 = vadd.f32 %v5202_v36, %v5099_v46 }
 0x9ed   :  { %5698 = vst [vmem:[#allocation11 + $0x378] sm:$0xff] %v5546_v4 }
 0x9ee   :  { %v5306_v24 = vpop.f32.mrf.mxu2 }
 0x9ef   :  { %v5307_v18 = vadd.f32 %v5306_v24, %v5203_v28  ;;  %v5410_v29 = vpop.f32.mrf.mxu3  ;;  %v5204_v48 = vpop.f32.mrf.mxu1 }
 0x9f0   :  { %v5100_v15 = vpop.f32.mrf.mxu0 }
 0x9f1   :  { %v5411_v40 = vadd.f32 %v5410_v29, %v5307_v18  ;;  %v5101_v42 = vadd.f32 %v5100_v15, %v8414_v6 }
 0x9f3   :  { %v5550_v55 = vmax.f32 %v5411_v40, 0.0  ;;  %v5205_v26 = vadd.f32 %v5204_v48, %v5101_v42 }
 0x9f5   :  { %5702 = vst [vmem:[#allocation11 + $0x398] sm:$0xff] %v5550_v55 }
 0x9f6   :  { %v5308_v21 = vpop.f32.mrf.mxu2 }
 0x9f7   :  { %v5309_v10 = vadd.f32 %v5308_v21, %v5205_v26  ;;  %v5412_v17 = vpop.f32.mrf.mxu3  ;;  %v5207_v33 = vpop.f32.mrf.mxu1 }
 0x9f8   :  { %v5103_v13 = vpop.f32.mrf.mxu0 }
 0x9f9   :  { %v5413_v50 = vadd.f32 %v5412_v17, %v5309_v10  ;;  %v5104_v52 = vadd.f32 %v5103_v13, %v8414_v6 }
 0x9fb   :  { %v5554_v38 = vmax.f32 %v5413_v50, 0.0  ;;  %v5208_v53 = vadd.f32 %v5207_v33, %v5104_v52 }
 0x9fd   :  { %5706 = vst [vmem:[#allocation11 + $0x3b8] sm:$0xff] %v5554_v38 }
 0x9fe   :  { %v5311_v14 = vpop.f32.mrf.mxu2 }
 0x9ff   :  { %v5312_v0 = vadd.f32 %v5311_v14, %v5208_v53  ;;  %v5415_v37 = vpop.f32.mrf.mxu3  ;;  %v5209_v5 = vpop.f32.mrf.mxu1 }
 0xa00   :  { %v5105_v2 = vpop.f32.mrf.mxu0 }
 0xa01   :  { %v5416_v9 = vadd.f32 %v5415_v37, %v5312_v0  ;;  %v5106_v27 = vadd.f32 %v5105_v2, %v8414_v6 }
 0xa03   :  { %v5558_v23 = vmax.f32 %v5416_v9, 0.0  ;;  %v5210_v32 = vadd.f32 %v5209_v5, %v5106_v27 }
 0xa05   :  { %5710 = vst [vmem:[#allocation11 + $0x3d8] sm:$0xff] %v5558_v23 }
 0xa06   :  { %v5313_v12 = vpop.f32.mrf.mxu2 }
 0xa07   :  { %v5314_v1 = vadd.f32 %v5313_v12, %v5210_v32  ;;  %v5417_v22 = vpop.f32.mrf.mxu3  ;;  %v5212_v43 = vpop.f32.mrf.mxu1 }
 0xa08   :  { %v5108_v11 = vpop.f32.mrf.mxu0 }
 0xa09   :  { %v5418_v35 = vadd.f32 %v5417_v22, %v5314_v1  ;;  %v5109_v44 = vadd.f32 %v5108_v11, %v8414_v6 }
 0xa0b   :  { %v5562_v63 = vmax.f32 %v5418_v35, 0.0  ;;  %v5213_v19 = vadd.f32 %v5212_v43, %v5109_v44 }
 0xa0d   :  { %5714 = vst [vmem:[#allocation11 + $0x3f8] sm:$0xff] %v5562_v63 }
 0xa0e   :  { %v5316_v57 = vpop.f32.mrf.mxu2 }
 0xa0f   :  { %v5317_v62 = vadd.f32 %v5316_v57, %v5213_v19  ;;  %v5420_v8 = vpop.f32.mrf.mxu3  ;;  %v5214_v7 = vpop.f32.mrf.mxu1 }
 0xa10   :  { %v5110_v25 = vpop.f32.mrf.mxu0 }
 0xa11   :  { %v5421_v45 = vadd.f32 %v5420_v8, %v5317_v62  ;;  %v5111_v31 = vadd.f32 %v5110_v25, %v8414_v6 }
 0xa13   :  { %v5566_v51 = vmax.f32 %v5421_v45, 0.0  ;;  %v5215_v61 = vadd.f32 %v5214_v7, %v5111_v31 }
 0xa15   :  { %5718 = vst [vmem:[#allocation11 + $0x418] sm:$0xff] %v5566_v51 }
 0xa16   :  { %v5318_v58 = vpop.f32.mrf.mxu2 }
 0xa17   :  { %v5319_v56 = vadd.f32 %v5318_v58, %v5215_v61  ;;  %v5422_v59 = vpop.f32.mrf.mxu3  ;;  %v5217_v20 = vpop.f32.mrf.mxu1 }
 0xa18   :  { %v5113_v34 = vpop.f32.mrf.mxu0 }
 0xa19   :  { %v5423_v41 = vadd.f32 %v5422_v59, %v5319_v56  ;;  %v5114_v47 = vadd.f32 %v5113_v34, %v8414_v6 }
 0xa1b   :  { %v5570_v39 = vmax.f32 %v5423_v41, 0.0  ;;  %v5218_v49 = vadd.f32 %v5217_v20, %v5114_v47 }
 0xa1d   :  { %5722 = vst [vmem:[#allocation11 + $0x438] sm:$0xff] %v5570_v39 }
 0xa1e   :  { %v5321_v3 = vpop.f32.mrf.mxu2 }
 0xa1f   :  { %v5322_v60 = vadd.f32 %v5321_v3, %v5218_v49  ;;  %v5425_v16 = vpop.f32.mrf.mxu3  ;;  %v5219_v36 = vpop.f32.mrf.mxu1 }
 0xa20   :  { %v5115_v30 = vpop.f32.mrf.mxu0 }
 0xa21   :  { %v5426_v54 = vadd.f32 %v5425_v16, %v5322_v60  ;;  %v5116_v46 = vadd.f32 %v5115_v30, %v8414_v6 }
 0xa23   :  { %v5574_v4 = vmax.f32 %v5426_v54, 0.0  ;;  %v5220_v28 = vadd.f32 %v5219_v36, %v5116_v46 }
 0xa25   :  { %5726 = vst [vmem:[#allocation11 + $0x458] sm:$0xff] %v5574_v4 }
 0xa26   :  { %v5323_v24 = vpop.f32.mrf.mxu2 }
 0xa27   :  { %v5324_v18 = vadd.f32 %v5323_v24, %v5220_v28  ;;  %v5427_v29 = vpop.f32.mrf.mxu3  ;;  %v5222_v42 = vpop.f32.mrf.mxu1 }
 0xa28   :  { %v5118_v15 = vpop.f32.mrf.mxu0 }
 0xa29   :  { %v5428_v48 = vadd.f32 %v5427_v29, %v5324_v18  ;;  %v5119_v40 = vadd.f32 %v5118_v15, %v8414_v6 }
 0xa2b   :  { %v5578_v55 = vmax.f32 %v5428_v48, 0.0  ;;  %v5223_v26 = vadd.f32 %v5222_v42, %v5119_v40 }
 0xa2d   :  { %5730 = vst [vmem:[#allocation11 + $0x478] sm:$0xff] %v5578_v55 }
 0xa2e   :  { %v5326_v21 = vpop.f32.mrf.mxu2 }
 0xa2f   :  { %v5327_v10 = vadd.f32 %v5326_v21, %v5223_v26  ;;  %v5430_v17 = vpop.f32.mrf.mxu3  ;;  %v5224_v38 = vpop.f32.mrf.mxu1 }
 0xa30   :  { %v5120_v13 = vpop.f32.mrf.mxu0 }
 0xa31   :  { %v5431_v33 = vadd.f32 %v5430_v17, %v5327_v10  ;;  %v5121_v50 = vadd.f32 %v5120_v13, %v8414_v6 }
 0xa33   :  { %v5582_v52 = vmax.f32 %v5431_v33, 0.0  ;;  %v5225_v53 = vadd.f32 %v5224_v38, %v5121_v50 }
 0xa35   :  { %5734 = vst [vmem:[#allocation11 + $0x498] sm:$0xff] %v5582_v52 }
 0xa36   :  { %v5328_v14 = vpop.f32.mrf.mxu2 }
 0xa37   :  { %v5329_v0 = vadd.f32 %v5328_v14, %v5225_v53  ;;  %v5432_v37 = vpop.f32.mrf.mxu3 }
 0xa39   :  { %v5433_v2 = vadd.f32 %v5432_v37, %v5329_v0 }
 0xa3b   :  { %v5586_v5 = vmax.f32 %v5433_v2, 0.0 }
 0xa3d   :  { %5738 = vst [vmem:[#allocation11 + $0x4b8] sm:$0xff] %v5586_v5 }
 0xa3e   :  { %5751 = dma.vmem_to_hbm [thread:$0]  %s5744_s4, 19456, %s5746_s21, [#allocation4], %s7213_s11, %s7213_s11, %s7214_s12  }
 0xa3f   :  { %7206 = dma.done.wait [#allocation4], 19456  }
 0xa40   :  { %7207 = vsyncadd [#allocation4], 4294947840 }
 0xa41   :  { %5756 = vsyncpa [#allocation3], 1 }
 0xa42   :  { %5757 = vsyncpa [#allocation6], 1 }
 0xa43   :  { %5758 = vsyncpa [#allocation9], 1 }
 0xa44   :  { %5759 = vsyncpa [#allocation4], 1 }

</bundles_post_ra>
